<compile_context>
chip_gen: v6e
topology: v6e:2x2x1
jax: 0.10.0
libtpu: 0.0.40
codegen_flags: <defaults>
</compile_context>

<pallas_src>
import jax
import jax.numpy as jnp
from jax.experimental import pallas as pl
from jax.experimental.pallas import tpu as pltpu


# ----------------------------- Pallas kernels ------------------------------ #

def _make_conv_pool_relu_kernel(tb, pos, kdim, cdim):
    """Conv (im2col matmul) + MaxPool2d(2) + ReLU for a tile of `tb` samples."""
    m = tb * pos

    def kernel(p_ref, w_ref, b_ref, o_ref):
        # p_ref: (4, tb, pos, kdim) -- 4 pool slots, rows ordered (n, ph, pw)
        p = p_ref[...].reshape(4 * m, kdim)                      # one fused MXU push
        s = jnp.dot(p, w_ref[...], preferred_element_type=jnp.float32)
        s = s.reshape(4, m, cdim)
        pooled = jnp.maximum(jnp.maximum(s[0], s[1]), jnp.maximum(s[2], s[3]))
        o_ref[...] = jnp.maximum(pooled + b_ref[...], 0.0)       # bias once, then ReLU

    return kernel


def _make_conv2_fc_softmax_kernel(tb, pos, kdim, cdim, n_classes):
    """Conv2 + MaxPool2d(2) + ReLU + Linear(320,50) + ReLU + Linear(50,10) + Softmax."""
    m = tb * pos

    def kernel(p_ref, w2_ref, b2_ref, wf1_ref, bf1_ref, wf2_ref, bf2_ref, o_ref):
        # conv2 (single fused matmul over the 4 pool slots) + maxpool + relu
        # p_ref: (4, pos, tb, kdim) -- rows ordered (p, n) within a slot
        p = p_ref[...].reshape(4 * m, kdim)
        s = jnp.dot(p, w2_ref[...], preferred_element_type=jnp.float32)
        s = s.reshape(4, m, cdim)
        y2 = jnp.maximum(jnp.maximum(s[0], s[1]), jnp.maximum(s[2], s[3]))
        y2 = jnp.maximum(y2 + b2_ref[...], 0.0)                  # (pos*tb, cdim)

        # fc1: contraction over the 320 = pos*cdim flattened features, done as `pos`
        # accumulated (tb, cdim) x (cdim, 50) matmuls -> no in-kernel lane-relayout
        # reshape; the NCHW flatten permutation is already folded into wf1.
        h = jnp.zeros((tb, bf1_ref.shape[-1]), jnp.float32)
        for q in range(pos):
            h = h + jnp.dot(y2[q * tb:(q + 1) * tb, :], wf1_ref[q],
                            preferred_element_type=jnp.float32)
        h = jnp.maximum(h + bf1_ref[...], 0.0)

        # fc2 + softmax; classes padded to 128 lanes (lane-dense store); pad columns
        # have weight 0 and bias -1e30 so exp() is exactly 0 there.
        logits = jnp.dot(h, wf2_ref[...], preferred_element_type=jnp.float32) + bf2_ref[...]
        mx = jnp.max(logits[:, :n_classes], axis=-1, keepdims=True)
        e = jnp.exp(logits - mx)
        o_ref[...] = e / jnp.sum(e, axis=-1, keepdims=True)

    return kernel


def conv_pool_relu(patches, w, b, tb):
    _, npad, pos, kdim = patches.shape
    cdim = w.shape[1]
    kern = _make_conv_pool_relu_kernel(tb, pos, kdim, cdim)
    return pl.pallas_call(
        kern,
        out_shape=jax.ShapeDtypeStruct((npad * pos, cdim), jnp.float32),
        grid=(npad // tb,),
        in_specs=[
            pl.BlockSpec((4, tb, pos, kdim), lambda i: (0, i, 0, 0)),
            pl.BlockSpec((kdim, cdim), lambda i: (0, 0)),   # weights stay resident
            pl.BlockSpec((1, cdim), lambda i: (0, 0)),      # bias stays resident
        ],
        out_specs=pl.BlockSpec((tb * pos, cdim), lambda i: (i, 0)),
        compiler_params=pltpu.CompilerParams(dimension_semantics=("parallel",)),
    )(patches, w, b)


def conv2_fc_softmax(patches, w2, b2, wf1, bf1, wf2, bf2, tb, n_classes=10):
    _, pos, npad, kdim = patches.shape
    cdim = w2.shape[1]
    cpad = wf2.shape[1]
    kern = _make_conv2_fc_softmax_kernel(tb, pos, kdim, cdim, n_classes)
    return pl.pallas_call(
        kern,
        out_shape=jax.ShapeDtypeStruct((npad, cpad), jnp.float32),
        grid=(npad // tb,),
        in_specs=[
            pl.BlockSpec((4, pos, tb, kdim), lambda i: (0, 0, i, 0)),
            pl.BlockSpec(w2.shape, lambda i: (0, 0)),
            pl.BlockSpec(b2.shape, lambda i: (0, 0)),
            pl.BlockSpec(wf1.shape, lambda i: (0, 0, 0)),
            pl.BlockSpec(bf1.shape, lambda i: (0, 0)),
            pl.BlockSpec(wf2.shape, lambda i: (0, 0)),
            pl.BlockSpec(bf2.shape, lambda i: (0, 0)),
        ],
        out_specs=pl.BlockSpec((tb, cpad), lambda i: (i, 0)),
        compiler_params=pltpu.CompilerParams(dimension_semantics=("parallel",)),
    )(patches, w2, b2, wf1, bf1, wf2, bf2)


# ------------------------------ JAX glue ----------------------------------- #

def _im2col(x_nhwc, k):
    """(N, H, W, C) -> (N, Ho, Wo, k*k*C), patch elems in (kh, kw, cin) order."""
    n, h, w, c = x_nhwc.shape
    ho, wo = h - k + 1, w - k + 1
    cols = [x_nhwc[:, i:i + ho, j:j + wo, :] for i in range(k) for j in range(k)]
    patches = jnp.stack(cols, axis=3)               # (N, Ho, Wo, k*k, C)
    return patches.reshape(n, ho, wo, k * k * c)


def _group_pool_sample_major(p):
    """(N, Ho, Wo, K) -> (4, N, (Ho//2)*(Wo//2), K); rows ordered (n, ph, pw)."""
    n, ho, wo, k = p.shape
    hp, wp = ho // 2, wo // 2
    g = p.reshape(n, hp, 2, wp, 2, k).transpose(2, 4, 0, 1, 3, 5)
    return g.reshape(4, n, hp * wp, k)


def _group_pool_position_major(p):
    """(N, Ho, Wo, K) -> (4, (Ho//2)*(Wo//2), N, K); rows ordered (ph, pw, n)."""
    n, ho, wo, k = p.shape
    hp, wp = ho // 2, wo // 2
    g = p.reshape(n, hp, 2, wp, 2, k).transpose(2, 4, 1, 3, 0, 5)
    return g.reshape(4, hp * wp, n, k)


def init_params(key):
    ks = jax.random.split(key, 8)

    def u(k, shape, fan_in):
        bound = 1.0 / jnp.sqrt(fan_in)
        return jax.random.uniform(k, shape, jnp.float32, -bound, bound)

    w1 = u(ks[0], (10, 1, 5, 5), 25.0)     # torch Conv2d weight layout (O, I, kh, kw)
    b1 = u(ks[1], (10,), 25.0)
    w2 = u(ks[2], (20, 10, 5, 5), 250.0)
    b2 = u(ks[3], (20,), 250.0)
    wf1 = u(ks[4], (50, 320), 320.0)       # torch Linear weight layout (out, in)
    bf1 = u(ks[5], (50,), 320.0)
    wf2 = u(ks[6], (10, 50), 50.0)
    bf2 = u(ks[7], (10,), 50.0)

    # conv2 contraction dim zero-padded 250 -> 256 (two full 128-lane tiles); exact.
    w2m = jnp.transpose(w2, (2, 3, 1, 0)).reshape(250, 20)
    w2m = jnp.pad(w2m, ((0, 6), (0, 0)))

    # fc1 weight permuted so the NHWC (ph, pw, c) flatten matches torch's NCHW
    # .view(-1, 320); stored as (16 positions, 20 cin, 50 out) for the in-kernel
    # per-position accumulation.
    wf1_pcf = wf1.reshape(50, 20, 4, 4).transpose(2, 3, 1, 0).reshape(16, 20, 50)

    # fc2 padded to 128 output lanes (lane-dense store); pad logits -> prob exactly 0.
    cpad = 128
    wf2_pad = jnp.zeros((50, cpad), jnp.float32).at[:, :10].set(wf2.T)
    bf2_pad = jnp.full((1, cpad), -1e30, jnp.float32).at[0, :10].set(bf2)

    return {
        # raw torch-layout params (pure-JAX reference)
        "w1": w1, "b1v": b1, "w2": w2, "b2v": b2,
        "wf1": wf1, "bf1v": bf1, "wf2": wf2, "bf2v": bf2,
        # kernel-ready operands
        "w1m": jnp.transpose(w1, (2, 3, 1, 0)).reshape(25, 10),
        "b1": b1.reshape(1, 10),
        "w2m": w2m,
        "b2": b2.reshape(1, 20),
        "wf1k": wf1_pcf, "bf1": bf1.reshape(1, 50),
        "wf2k": wf2_pad, "bf2": bf2_pad,
    }


def net_point_forward(x_nchw, p, tb=8):
    n = x_nchw.shape[0]
    npad = ((n + tb - 1) // tb) * tb                     # batch tile (zero-pad, sliced off)
    x = jnp.pad(x_nchw, ((0, npad - n), (0, 0), (0, 0), (0, 0)))
    x_nhwc = jnp.transpose(x, (0, 2, 3, 1))              # (Npad, 28, 28, 1)

    # Conv2d(1,10,5) -> MaxPool2d(2) -> ReLU -> Dropout(0.3)[identity]
    p1 = _group_pool_sample_major(_im2col(x_nhwc, 5))    # (4, Npad, 144, 25)
    y1 = conv_pool_relu(p1, p["w1m"], p["b1"], tb)       # (Npad*144, 10)
    y1 = y1.reshape(npad, 12, 12, 10)                    # NHWC

    # Conv2d(10,20,5) -> Dropout[id] -> MaxPool2d(2) -> ReLU -> Dropout[id]
    #   -> flatten -> Linear(320,50) -> ReLU -> Dropout[id] -> Linear(50,10) -> Softmax
    p2 = _group_pool_position_major(_im2col(y1, 5))      # (4, 16, Npad, 250)
    p2 = jnp.pad(p2, ((0, 0), (0, 0), (0, 0), (0, 6)))   # K 250 -> 256
    out = conv2_fc_softmax(p2, p["w2m"], p["b2"], p["wf1k"], p["bf1"],
                           p["wf2k"], p["bf2"], tb)      # (Npad, 128)
    return out[:n, :10]


# --------------------------- pure-JAX reference ----------------------------- #

def reference_forward(x, p):
    def conv(v, w, b):
        y = jax.lax.conv_general_dilated(
            v, w, (1, 1), "VALID", dimension_numbers=("NCHW", "OIHW", "NCHW"))
        return y + b[None, :, None, None]

    def pool(v):
        bn, c, h, w = v.shape
        return v.reshape(bn, c, h // 2, 2, w // 2, 2).max(axis=(3, 5))

    c1 = jax.nn.relu(pool(conv(x, p["w1"], p["b1v"])))
    c2 = jax.nn.relu(pool(conv(c1, p["w2"], p["b2v"])))
    flat = c2.reshape(x.shape[0], 320)
    h = jax.nn.relu(flat @ p["wf1"].T + p["bf1v"])
    return jax.nn.softmax(h @ p["wf2"].T + p["bf2v"], axis=1)


if __name__ == "__main__":
    key = jax.random.PRNGKey(0)
    pkey, xkey = jax.random.split(key)
    params = init_params(pkey)

    # forward implies MNIST-sized input: 28x28 -> conv5 -> pool -> conv5 -> pool -> 20*4*4 = 320
    n = 12   # deliberately not a multiple of the batch tile (8) to exercise padding + grid
    x = jax.random.normal(xkey, (n, 1, 28, 28), jnp.float32)

    fwd = jax.jit(net_point_forward)
    out = jax.block_until_ready(fwd(x, params))

    ref = reference_forward(x, params)
    assert out.shape == (n, 10)
    assert bool(jnp.allclose(out, ref, atol=1e-5, rtol=1e-5)), "mismatch vs pure-JAX reference"
    assert bool(jnp.allclose(out.sum(axis=1), jnp.ones((n,)), atol=1e-5)), "softmax rows must sum to 1"

    print("KERNEL_OK")
</pallas_src>

<mosaic_0001>
module attributes {stable_mosaic.version = 11 : i64} {
  func.func @kernel(%arg0: i32, %arg1: memref<4x8x144x25xf32, #tpu.memory_space<vmem>>, %arg2: memref<25x10xf32, #tpu.memory_space<vmem>>, %arg3: memref<1x10xf32, #tpu.memory_space<vmem>>, %arg4: memref<1152x10xf32, #tpu.memory_space<vmem>>) attributes {dimension_semantics = [#tpu.dimension_semantics<parallel>], iteration_bounds = array<i64: 2>, scalar_prefetch = 0 : i64, scratch_operands = 0 : i64, tpu.core_type = #tpu.core_type<tc>, window_params = [{transform_indices = @transform_0, window_bounds = array<i64: 4, 8, 144, 25>}, {pipeline_mode = #tpu.pipeline_mode<synchronous>, transform_indices = @transform_1, window_bounds = array<i64: 25, 10>}, {pipeline_mode = #tpu.pipeline_mode<synchronous>, transform_indices = @transform_2, window_bounds = array<i64: 1, 10>}, {transform_indices = @transform_3, window_bounds = array<i64: 1152, 10>}]} {
    %c0 = arith.constant 0 : index
    %c0_0 = arith.constant 0 : index
    %c0_1 = arith.constant 0 : index
    %c0_2 = arith.constant 0 : index
    %0 = vector.load %arg1[%c0, %c0_0, %c0_1, %c0_2] : memref<4x8x144x25xf32, #tpu.memory_space<vmem>>, vector<4x8x144x25xf32>
    %1 = vector.shape_cast %0 : vector<4x8x144x25xf32> to vector<4608x25xf32>
    %c0_3 = arith.constant 0 : index
    %c0_4 = arith.constant 0 : index
    %2 = vector.load %arg2[%c0_3, %c0_4] : memref<25x10xf32, #tpu.memory_space<vmem>>, vector<25x10xf32>
    %cst = arith.constant dense<0.000000e+00> : vector<4608x10xf32>
    %3 = tpu.matmul %1, %2, %cst {dimension_numbers = #tpu.dot_dimension_numbers<[1], [0], [0], [1], [0, 0, 1, 1], [], []>} : vector<4608x25xf32>, vector<25x10xf32>, vector<4608x10xf32> -> vector<4608x10xf32>
    %4 = vector.shape_cast %3 : vector<4608x10xf32> to vector<4x1152x10xf32>
    %5 = vector.extract_strided_slice %4 {offsets = [0, 0, 0], sizes = [1, 1152, 10], strides = [1, 1, 1]} : vector<4x1152x10xf32> to vector<1x1152x10xf32>
    %6 = vector.shape_cast %5 : vector<1x1152x10xf32> to vector<1152x10xf32>
    %7 = vector.extract_strided_slice %4 {offsets = [1, 0, 0], sizes = [1, 1152, 10], strides = [1, 1, 1]} : vector<4x1152x10xf32> to vector<1x1152x10xf32>
    %8 = vector.shape_cast %7 : vector<1x1152x10xf32> to vector<1152x10xf32>
    %9 = arith.maximumf %6, %8 : vector<1152x10xf32>
    %10 = vector.extract_strided_slice %4 {offsets = [2, 0, 0], sizes = [1, 1152, 10], strides = [1, 1, 1]} : vector<4x1152x10xf32> to vector<1x1152x10xf32>
    %11 = vector.shape_cast %10 : vector<1x1152x10xf32> to vector<1152x10xf32>
    %12 = vector.extract_strided_slice %4 {offsets = [3, 0, 0], sizes = [1, 1152, 10], strides = [1, 1, 1]} : vector<4x1152x10xf32> to vector<1x1152x10xf32>
    %13 = vector.shape_cast %12 : vector<1x1152x10xf32> to vector<1152x10xf32>
    %14 = arith.maximumf %11, %13 : vector<1152x10xf32>
    %15 = arith.maximumf %9, %14 : vector<1152x10xf32>
    %c0_5 = arith.constant 0 : index
    %c0_6 = arith.constant 0 : index
    %16 = vector.load %arg3[%c0_5, %c0_6] : memref<1x10xf32, #tpu.memory_space<vmem>>, vector<1x10xf32>
    %17 = vector.broadcast %16 : vector<1x10xf32> to vector<1152x10xf32>
    %18 = arith.addf %15, %17 : vector<1152x10xf32>
    %cst_7 = arith.constant 0.000000e+00 : f32
    %19 = vector.broadcast %cst_7 : f32 to vector<1152x10xf32>
    %20 = arith.maximumf %18, %19 : vector<1152x10xf32>
    %c0_8 = arith.constant 0 : index
    %c0_9 = arith.constant 0 : index
    %21 = vector.load %arg4[%c0_8, %c0_9] : memref<1152x10xf32, #tpu.memory_space<vmem>>, vector<1152x10xf32>
    tpu.vector_store %arg4[%c0_8, %c0_9], %20 {strides = array<i32>} : memref<1152x10xf32, #tpu.memory_space<vmem>>, vector<1152x10xf32>,
    return
  }
  func.func @transform_0(%arg0: i32) -> (i32, i32, i32, i32) {
    %c0_i32 = arith.constant 0 : i32
    %c0_i32_0 = arith.constant 0 : i32
    %c0_i32_1 = arith.constant 0 : i32
    %c0_i32_2 = arith.constant 0 : i32
    return %c0_i32, %arg0, %c0_i32_0, %c0_i32_1 : i32, i32, i32, i32
  }
  func.func @transform_1(%arg0: i32) -> (i32, i32) {
    %c0_i32 = arith.constant 0 : i32
    %c0_i32_0 = arith.constant 0 : i32
    %c0_i32_1 = arith.constant 0 : i32
    return %c0_i32, %c0_i32_0 : i32, i32
  }
  func.func @transform_2(%arg0: i32) -> (i32, i32) {
    %c0_i32 = arith.constant 0 : i32
    %c0_i32_0 = arith.constant 0 : i32
    %c0_i32_1 = arith.constant 0 : i32
    return %c0_i32, %c0_i32_0 : i32, i32
  }
  func.func @transform_3(%arg0: i32) -> (i32, i32) {
    %c0_i32 = arith.constant 0 : i32
    %c0_i32_0 = arith.constant 0 : i32
    return %arg0, %c0_i32 : i32, i32
  }
}

module attributes {stable_mosaic.version = 11 : i64} {
  func.func @kernel(%arg0: i32, %arg1: memref<4x16x8x256xf32, #tpu.memory_space<vmem>>, %arg2: memref<256x20xf32, #tpu.memory_space<vmem>>, %arg3: memref<1x20xf32, #tpu.memory_space<vmem>>, %arg4: memref<16x20x50xf32, #tpu.memory_space<vmem>>, %arg5: memref<1x50xf32, #tpu.memory_space<vmem>>, %arg6: memref<50x128xf32, #tpu.memory_space<vmem>>, %arg7: memref<1x128xf32, #tpu.memory_space<vmem>>, %arg8: memref<8x128xf32, #tpu.memory_space<vmem>>) attributes {dimension_semantics = [#tpu.dimension_semantics<parallel>], iteration_bounds = array<i64: 2>, scalar_prefetch = 0 : i64, scratch_operands = 0 : i64, tpu.core_type = #tpu.core_type<tc>, window_params = [{transform_indices = @transform_0, window_bounds = array<i64: 4, 16, 8, 256>}, {pipeline_mode = #tpu.pipeline_mode<synchronous>, transform_indices = @transform_1, window_bounds = array<i64: 256, 20>}, {pipeline_mode = #tpu.pipeline_mode<synchronous>, transform_indices = @transform_2, window_bounds = array<i64: 1, 20>}, {pipeline_mode = #tpu.pipeline_mode<synchronous>, transform_indices = @transform_3, window_bounds = array<i64: 16, 20, 50>}, {pipeline_mode = #tpu.pipeline_mode<synchronous>, transform_indices = @transform_4, window_bounds = array<i64: 1, 50>}, {pipeline_mode = #tpu.pipeline_mode<synchronous>, transform_indices = @transform_5, window_bounds = array<i64: 50, 128>}, {pipeline_mode = #tpu.pipeline_mode<synchronous>, transform_indices = @transform_6, window_bounds = array<i64: 1, 128>}, {transform_indices = @transform_7, window_bounds = array<i64: 8, 128>}]} {
    %c0 = arith.constant 0 : index
    %c0_0 = arith.constant 0 : index
    %c0_1 = arith.constant 0 : index
    %c0_2 = arith.constant 0 : index
    %0 = vector.load %arg1[%c0, %c0_0, %c0_1, %c0_2] : memref<4x16x8x256xf32, #tpu.memory_space<vmem>>, vector<4x16x8x256xf32>
    %1 = vector.shape_cast %0 : vector<4x16x8x256xf32> to vector<512x256xf32>
    %c0_3 = arith.constant 0 : index
    %c0_4 = arith.constant 0 : index
    %2 = vector.load %arg2[%c0_3, %c0_4] : memref<256x20xf32, #tpu.memory_space<vmem>>, vector<256x20xf32>
    %cst = arith.constant dense<0.000000e+00> : vector<512x20xf32>
    %3 = tpu.matmul %1, %2, %cst {dimension_numbers = #tpu.dot_dimension_numbers<[1], [0], [0], [1], [0, 0, 1, 1], [], []>} : vector<512x256xf32>, vector<256x20xf32>, vector<512x20xf32> -> vector<512x20xf32>
    %4 = vector.shape_cast %3 : vector<512x20xf32> to vector<4x128x20xf32>
    %5 = vector.extract_strided_slice %4 {offsets = [0, 0, 0], sizes = [1, 128, 20], strides = [1, 1, 1]} : vector<4x128x20xf32> to vector<1x128x20xf32>
    %6 = vector.shape_cast %5 : vector<1x128x20xf32> to vector<128x20xf32>
    %7 = vector.extract_strided_slice %4 {offsets = [1, 0, 0], sizes = [1, 128, 20], strides = [1, 1, 1]} : vector<4x128x20xf32> to vector<1x128x20xf32>
    %8 = vector.shape_cast %7 : vector<1x128x20xf32> to vector<128x20xf32>
    %9 = arith.maximumf %6, %8 : vector<128x20xf32>
    %10 = vector.extract_strided_slice %4 {offsets = [2, 0, 0], sizes = [1, 128, 20], strides = [1, 1, 1]} : vector<4x128x20xf32> to vector<1x128x20xf32>
    %11 = vector.shape_cast %10 : vector<1x128x20xf32> to vector<128x20xf32>
    %12 = vector.extract_strided_slice %4 {offsets = [3, 0, 0], sizes = [1, 128, 20], strides = [1, 1, 1]} : vector<4x128x20xf32> to vector<1x128x20xf32>
    %13 = vector.shape_cast %12 : vector<1x128x20xf32> to vector<128x20xf32>
    %14 = arith.maximumf %11, %13 : vector<128x20xf32>
    %15 = arith.maximumf %9, %14 : vector<128x20xf32>
    %c0_5 = arith.constant 0 : index
    %c0_6 = arith.constant 0 : index
    %16 = vector.load %arg3[%c0_5, %c0_6] : memref<1x20xf32, #tpu.memory_space<vmem>>, vector<1x20xf32>
    %17 = vector.broadcast %16 : vector<1x20xf32> to vector<128x20xf32>
    %18 = arith.addf %15, %17 : vector<128x20xf32>
    %cst_7 = arith.constant 0.000000e+00 : f32
    %19 = vector.broadcast %cst_7 : f32 to vector<128x20xf32>
    %20 = arith.maximumf %18, %19 : vector<128x20xf32>
    %cst_8 = arith.constant 0.000000e+00 : f32
    %21 = vector.broadcast %cst_8 : f32 to vector<8x50xf32>
    %22 = vector.extract_strided_slice %20 {offsets = [0, 0], sizes = [8, 20], strides = [1, 1]} : vector<128x20xf32> to vector<8x20xf32>
    %c0_9 = arith.constant 0 : index
    %c0_10 = arith.constant 0 : index
    %c0_11 = arith.constant 0 : index
    %23 = vector.load %arg4[%c0_9, %c0_10, %c0_11] : memref<16x20x50xf32, #tpu.memory_space<vmem>>, vector<1x20x50xf32>
    %24 = vector.shape_cast %23 : vector<1x20x50xf32> to vector<20x50xf32>
    %cst_12 = arith.constant dense<0.000000e+00> : vector<8x50xf32>
    %25 = tpu.matmul %22, %24, %cst_12 {dimension_numbers = #tpu.dot_dimension_numbers<[1], [0], [0], [1], [0, 0, 1, 1], [], []>} : vector<8x20xf32>, vector<20x50xf32>, vector<8x50xf32> -> vector<8x50xf32>
    %26 = arith.addf %21, %25 : vector<8x50xf32>
    %27 = vector.extract_strided_slice %20 {offsets = [8, 0], sizes = [8, 20], strides = [1, 1]} : vector<128x20xf32> to vector<8x20xf32>
    %c1 = arith.constant 1 : index
    %c0_13 = arith.constant 0 : index
    %c0_14 = arith.constant 0 : index
    %28 = vector.load %arg4[%c1, %c0_13, %c0_14] : memref<16x20x50xf32, #tpu.memory_space<vmem>>, vector<1x20x50xf32>
    %29 = vector.shape_cast %28 : vector<1x20x50xf32> to vector<20x50xf32>
    %cst_15 = arith.constant dense<0.000000e+00> : vector<8x50xf32>
    %30 = tpu.matmul %27, %29, %cst_15 {dimension_numbers = #tpu.dot_dimension_numbers<[1], [0], [0], [1], [0, 0, 1, 1], [], []>} : vector<8x20xf32>, vector<20x50xf32>, vector<8x50xf32> -> vector<8x50xf32>
    %31 = arith.addf %26, %30 : vector<8x50xf32>
    %32 = vector.extract_strided_slice %20 {offsets = [16, 0], sizes = [8, 20], strides = [1, 1]} : vector<128x20xf32> to vector<8x20xf32>
    %c2 = arith.constant 2 : index
    %c0_16 = arith.constant 0 : index
    %c0_17 = arith.constant 0 : index
    %33 = vector.load %arg4[%c2, %c0_16, %c0_17] : memref<16x20x50xf32, #tpu.memory_space<vmem>>, vector<1x20x50xf32>
    %34 = vector.shape_cast %33 : vector<1x20x50xf32> to vector<20x50xf32>
    %cst_18 = arith.constant dense<0.000000e+00> : vector<8x50xf32>
    %35 = tpu.matmul %32, %34, %cst_18 {dimension_numbers = #tpu.dot_dimension_numbers<[1], [0], [0], [1], [0, 0, 1, 1], [], []>} : vector<8x20xf32>, vector<20x50xf32>, vector<8x50xf32> -> vector<8x50xf32>
    %36 = arith.addf %31, %35 : vector<8x50xf32>
    %37 = vector.extract_strided_slice %20 {offsets = [24, 0], sizes = [8, 20], strides = [1, 1]} : vector<128x20xf32> to vector<8x20xf32>
    %c3 = arith.constant 3 : index
    %c0_19 = arith.constant 0 : index
    %c0_20 = arith.constant 0 : index
    %38 = vector.load %arg4[%c3, %c0_19, %c0_20] : memref<16x20x50xf32, #tpu.memory_space<vmem>>, vector<1x20x50xf32>
    %39 = vector.shape_cast %38 : vector<1x20x50xf32> to vector<20x50xf32>
    %cst_21 = arith.constant dense<0.000000e+00> : vector<8x50xf32>
    %40 = tpu.matmul %37, %39, %cst_21 {dimension_numbers = #tpu.dot_dimension_numbers<[1], [0], [0], [1], [0, 0, 1, 1], [], []>} : vector<8x20xf32>, vector<20x50xf32>, vector<8x50xf32> -> vector<8x50xf32>
    %41 = arith.addf %36, %40 : vector<8x50xf32>
    %42 = vector.extract_strided_slice %20 {offsets = [32, 0], sizes = [8, 20], strides = [1, 1]} : vector<128x20xf32> to vector<8x20xf32>
    %c4 = arith.constant 4 : index
    %c0_22 = arith.constant 0 : index
    %c0_23 = arith.constant 0 : index
    %43 = vector.load %arg4[%c4, %c0_22, %c0_23] : memref<16x20x50xf32, #tpu.memory_space<vmem>>, vector<1x20x50xf32>
    %44 = vector.shape_cast %43 : vector<1x20x50xf32> to vector<20x50xf32>
    %cst_24 = arith.constant dense<0.000000e+00> : vector<8x50xf32>
    %45 = tpu.matmul %42, %44, %cst_24 {dimension_numbers = #tpu.dot_dimension_numbers<[1], [0], [0], [1], [0, 0, 1, 1], [], []>} : vector<8x20xf32>, vector<20x50xf32>, vector<8x50xf32> -> vector<8x50xf32>
    %46 = arith.addf %41, %45 : vector<8x50xf32>
    %47 = vector.extract_strided_slice %20 {offsets = [40, 0], sizes = [8, 20], strides = [1, 1]} : vector<128x20xf32> to vector<8x20xf32>
    %c5 = arith.constant 5 : index
    %c0_25 = arith.constant 0 : index
    %c0_26 = arith.constant 0 : index
    %48 = vector.load %arg4[%c5, %c0_25, %c0_26] : memref<16x20x50xf32, #tpu.memory_space<vmem>>, vector<1x20x50xf32>
    %49 = vector.shape_cast %48 : vector<1x20x50xf32> to vector<20x50xf32>
    %cst_27 = arith.constant dense<0.000000e+00> : vector<8x50xf32>
    %50 = tpu.matmul %47, %49, %cst_27 {dimension_numbers = #tpu.dot_dimension_numbers<[1], [0], [0], [1], [0, 0, 1, 1], [], []>} : vector<8x20xf32>, vector<20x50xf32>, vector<8x50xf32> -> vector<8x50xf32>
    %51 = arith.addf %46, %50 : vector<8x50xf32>
    %52 = vector.extract_strided_slice %20 {offsets = [48, 0], sizes = [8, 20], strides = [1, 1]} : vector<128x20xf32> to vector<8x20xf32>
    %c6 = arith.constant 6 : index
    %c0_28 = arith.constant 0 : index
    %c0_29 = arith.constant 0 : index
    %53 = vector.load %arg4[%c6, %c0_28, %c0_29] : memref<16x20x50xf32, #tpu.memory_space<vmem>>, vector<1x20x50xf32>
    %54 = vector.shape_cast %53 : vector<1x20x50xf32> to vector<20x50xf32>
    %cst_30 = arith.constant dense<0.000000e+00> : vector<8x50xf32>
    %55 = tpu.matmul %52, %54, %cst_30 {dimension_numbers = #tpu.dot_dimension_numbers<[1], [0], [0], [1], [0, 0, 1, 1], [], []>} : vector<8x20xf32>, vector<20x50xf32>, vector<8x50xf32> -> vector<8x50xf32>
    %56 = arith.addf %51, %55 : vector<8x50xf32>
    %57 = vector.extract_strided_slice %20 {offsets = [56, 0], sizes = [8, 20], strides = [1, 1]} : vector<128x20xf32> to vector<8x20xf32>
    %c7 = arith.constant 7 : index
    %c0_31 = arith.constant 0 : index
    %c0_32 = arith.constant 0 : index
    %58 = vector.load %arg4[%c7, %c0_31, %c0_32] : memref<16x20x50xf32, #tpu.memory_space<vmem>>, vector<1x20x50xf32>
    %59 = vector.shape_cast %58 : vector<1x20x50xf32> to vector<20x50xf32>
    %cst_33 = arith.constant dense<0.000000e+00> : vector<8x50xf32>
    %60 = tpu.matmul %57, %59, %cst_33 {dimension_numbers = #tpu.dot_dimension_numbers<[1], [0], [0], [1], [0, 0, 1, 1], [], []>} : vector<8x20xf32>, vector<20x50xf32>, vector<8x50xf32> -> vector<8x50xf32>
    %61 = arith.addf %56, %60 : vector<8x50xf32>
    %62 = vector.extract_strided_slice %20 {offsets = [64, 0], sizes = [8, 20], strides = [1, 1]} : vector<128x20xf32> to vector<8x20xf32>
    %c8 = arith.constant 8 : index
    %c0_34 = arith.constant 0 : index
    %c0_35 = arith.constant 0 : index
    %63 = vector.load %arg4[%c8, %c0_34, %c0_35] : memref<16x20x50xf32, #tpu.memory_space<vmem>>, vector<1x20x50xf32>
    %64 = vector.shape_cast %63 : vector<1x20x50xf32> to vector<20x50xf32>
    %cst_36 = arith.constant dense<0.000000e+00> : vector<8x50xf32>
    %65 = tpu.matmul %62, %64, %cst_36 {dimension_numbers = #tpu.dot_dimension_numbers<[1], [0], [0], [1], [0, 0, 1, 1], [], []>} : vector<8x20xf32>, vector<20x50xf32>, vector<8x50xf32> -> vector<8x50xf32>
    %66 = arith.addf %61, %65 : vector<8x50xf32>
    %67 = vector.extract_strided_slice %20 {offsets = [72, 0], sizes = [8, 20], strides = [1, 1]} : vector<128x20xf32> to vector<8x20xf32>
    %c9 = arith.constant 9 : index
    %c0_37 = arith.constant 0 : index
    %c0_38 = arith.constant 0 : index
    %68 = vector.load %arg4[%c9, %c0_37, %c0_38] : memref<16x20x50xf32, #tpu.memory_space<vmem>>, vector<1x20x50xf32>
    %69 = vector.shape_cast %68 : vector<1x20x50xf32> to vector<20x50xf32>
    %cst_39 = arith.constant dense<0.000000e+00> : vector<8x50xf32>
    %70 = tpu.matmul %67, %69, %cst_39 {dimension_numbers = #tpu.dot_dimension_numbers<[1], [0], [0], [1], [0, 0, 1, 1], [], []>} : vector<8x20xf32>, vector<20x50xf32>, vector<8x50xf32> -> vector<8x50xf32>
    %71 = arith.addf %66, %70 : vector<8x50xf32>
    %72 = vector.extract_strided_slice %20 {offsets = [80, 0], sizes = [8, 20], strides = [1, 1]} : vector<128x20xf32> to vector<8x20xf32>
    %c10 = arith.constant 10 : index
    %c0_40 = arith.constant 0 : index
    %c0_41 = arith.constant 0 : index
    %73 = vector.load %arg4[%c10, %c0_40, %c0_41] : memref<16x20x50xf32, #tpu.memory_space<vmem>>, vector<1x20x50xf32>
    %74 = vector.shape_cast %73 : vector<1x20x50xf32> to vector<20x50xf32>
    %cst_42 = arith.constant dense<0.000000e+00> : vector<8x50xf32>
    %75 = tpu.matmul %72, %74, %cst_42 {dimension_numbers = #tpu.dot_dimension_numbers<[1], [0], [0], [1], [0, 0, 1, 1], [], []>} : vector<8x20xf32>, vector<20x50xf32>, vector<8x50xf32> -> vector<8x50xf32>
    %76 = arith.addf %71, %75 : vector<8x50xf32>
    %77 = vector.extract_strided_slice %20 {offsets = [88, 0], sizes = [8, 20], strides = [1, 1]} : vector<128x20xf32> to vector<8x20xf32>
    %c11 = arith.constant 11 : index
    %c0_43 = arith.constant 0 : index
    %c0_44 = arith.constant 0 : index
    %78 = vector.load %arg4[%c11, %c0_43, %c0_44] : memref<16x20x50xf32, #tpu.memory_space<vmem>>, vector<1x20x50xf32>
    %79 = vector.shape_cast %78 : vector<1x20x50xf32> to vector<20x50xf32>
    %cst_45 = arith.constant dense<0.000000e+00> : vector<8x50xf32>
    %80 = tpu.matmul %77, %79, %cst_45 {dimension_numbers = #tpu.dot_dimension_numbers<[1], [0], [0], [1], [0, 0, 1, 1], [], []>} : vector<8x20xf32>, vector<20x50xf32>, vector<8x50xf32> -> vector<8x50xf32>
    %81 = arith.addf %76, %80 : vector<8x50xf32>
    %82 = vector.extract_strided_slice %20 {offsets = [96, 0], sizes = [8, 20], strides = [1, 1]} : vector<128x20xf32> to vector<8x20xf32>
    %c12 = arith.constant 12 : index
    %c0_46 = arith.constant 0 : index
    %c0_47 = arith.constant 0 : index
    %83 = vector.load %arg4[%c12, %c0_46, %c0_47] : memref<16x20x50xf32, #tpu.memory_space<vmem>>, vector<1x20x50xf32>
    %84 = vector.shape_cast %83 : vector<1x20x50xf32> to vector<20x50xf32>
    %cst_48 = arith.constant dense<0.000000e+00> : vector<8x50xf32>
    %85 = tpu.matmul %82, %84, %cst_48 {dimension_numbers = #tpu.dot_dimension_numbers<[1], [0], [0], [1], [0, 0, 1, 1], [], []>} : vector<8x20xf32>, vector<20x50xf32>, vector<8x50xf32> -> vector<8x50xf32>
    %86 = arith.addf %81, %85 : vector<8x50xf32>
    %87 = vector.extract_strided_slice %20 {offsets = [104, 0], sizes = [8, 20], strides = [1, 1]} : vector<128x20xf32> to vector<8x20xf32>
    %c13 = arith.constant 13 : index
    %c0_49 = arith.constant 0 : index
    %c0_50 = arith.constant 0 : index
    %88 = vector.load %arg4[%c13, %c0_49, %c0_50] : memref<16x20x50xf32, #tpu.memory_space<vmem>>, vector<1x20x50xf32>
    %89 = vector.shape_cast %88 : vector<1x20x50xf32> to vector<20x50xf32>
    %cst_51 = arith.constant dense<0.000000e+00> : vector<8x50xf32>
    %90 = tpu.matmul %87, %89, %cst_51 {dimension_numbers = #tpu.dot_dimension_numbers<[1], [0], [0], [1], [0, 0, 1, 1], [], []>} : vector<8x20xf32>, vector<20x50xf32>, vector<8x50xf32> -> vector<8x50xf32>
    %91 = arith.addf %86, %90 : vector<8x50xf32>
    %92 = vector.extract_strided_slice %20 {offsets = [112, 0], sizes = [8, 20], strides = [1, 1]} : vector<128x20xf32> to vector<8x20xf32>
    %c14 = arith.constant 14 : index
    %c0_52 = arith.constant 0 : index
    %c0_53 = arith.constant 0 : index
    %93 = vector.load %arg4[%c14, %c0_52, %c0_53] : memref<16x20x50xf32, #tpu.memory_space<vmem>>, vector<1x20x50xf32>
    %94 = vector.shape_cast %93 : vector<1x20x50xf32> to vector<20x50xf32>
    %cst_54 = arith.constant dense<0.000000e+00> : vector<8x50xf32>
    %95 = tpu.matmul %92, %94, %cst_54 {dimension_numbers = #tpu.dot_dimension_numbers<[1], [0], [0], [1], [0, 0, 1, 1], [], []>} : vector<8x20xf32>, vector<20x50xf32>, vector<8x50xf32> -> vector<8x50xf32>
    %96 = arith.addf %91, %95 : vector<8x50xf32>
    %97 = vector.extract_strided_slice %20 {offsets = [120, 0], sizes = [8, 20], strides = [1, 1]} : vector<128x20xf32> to vector<8x20xf32>
    %c15 = arith.constant 15 : index
    %c0_55 = arith.constant 0 : index
    %c0_56 = arith.constant 0 : index
    %98 = vector.load %arg4[%c15, %c0_55, %c0_56] : memref<16x20x50xf32, #tpu.memory_space<vmem>>, vector<1x20x50xf32>
    %99 = vector.shape_cast %98 : vector<1x20x50xf32> to vector<20x50xf32>
    %cst_57 = arith.constant dense<0.000000e+00> : vector<8x50xf32>
    %100 = tpu.matmul %97, %99, %cst_57 {dimension_numbers = #tpu.dot_dimension_numbers<[1], [0], [0], [1], [0, 0, 1, 1], [], []>} : vector<8x20xf32>, vector<20x50xf32>, vector<8x50xf32> -> vector<8x50xf32>
    %101 = arith.addf %96, %100 : vector<8x50xf32>
    %c0_58 = arith.constant 0 : index
    %c0_59 = arith.constant 0 : index
    %102 = vector.load %arg5[%c0_58, %c0_59] : memref<1x50xf32, #tpu.memory_space<vmem>>, vector<1x50xf32>
    %103 = vector.broadcast %102 : vector<1x50xf32> to vector<8x50xf32>
    %104 = arith.addf %101, %103 : vector<8x50xf32>
    %cst_60 = arith.constant 0.000000e+00 : f32
    %105 = vector.broadcast %cst_60 : f32 to vector<8x50xf32>
    %106 = arith.maximumf %104, %105 : vector<8x50xf32>
    %c0_61 = arith.constant 0 : index
    %c0_62 = arith.constant 0 : index
    %107 = vector.load %arg6[%c0_61, %c0_62] : memref<50x128xf32, #tpu.memory_space<vmem>>, vector<50x128xf32>
    %cst_63 = arith.constant dense<0.000000e+00> : vector<8x128xf32>
    %108 = tpu.matmul %106, %107, %cst_63 {dimension_numbers = #tpu.dot_dimension_numbers<[1], [0], [0], [1], [0, 0, 1, 1], [], []>} : vector<8x50xf32>, vector<50x128xf32>, vector<8x128xf32> -> vector<8x128xf32>
    %c0_64 = arith.constant 0 : index
    %c0_65 = arith.constant 0 : index
    %109 = vector.load %arg7[%c0_64, %c0_65] : memref<1x128xf32, #tpu.memory_space<vmem>>, vector<1x128xf32>
    %110 = vector.broadcast %109 : vector<1x128xf32> to vector<8x128xf32>
    %111 = arith.addf %108, %110 : vector<8x128xf32>
    %112 = vector.extract_strided_slice %111 {offsets = [0, 0], sizes = [8, 10], strides = [1, 1]} : vector<8x128xf32> to vector<8x10xf32>
    %cst_66 = arith.constant dense<0xFF800000> : vector<8xf32>
    %113 = vector.multi_reduction <maximumf>, %112, %cst_66 [1] : vector<8x10xf32> to vector<8xf32>
    %114 = vector.shape_cast %113 : vector<8xf32> to vector<8x1xf32>
    %115 = vector.broadcast %114 : vector<8x1xf32> to vector<8x128xf32>
    %116 = arith.subf %111, %115 : vector<8x128xf32>
    %117 = math.exp %116 : vector<8x128xf32>
    %cst_67 = arith.constant dense<0.000000e+00> : vector<8xf32>
    %118 = vector.multi_reduction <add>, %117, %cst_67 [1] : vector<8x128xf32> to vector<8xf32>
    %119 = vector.shape_cast %118 : vector<8xf32> to vector<8x1xf32>
    %120 = vector.broadcast %119 : vector<8x1xf32> to vector<8x128xf32>
    %121 = arith.divf %117, %120 : vector<8x128xf32>
    %c0_68 = arith.constant 0 : index
    %c0_69 = arith.constant 0 : index
    %122 = vector.load %arg8[%c0_68, %c0_69] : memref<8x128xf32, #tpu.memory_space<vmem>>, vector<8x128xf32>
    tpu.vector_store %arg8[%c0_68, %c0_69], %121 {strides = array<i32>} : memref<8x128xf32, #tpu.memory_space<vmem>>, vector<8x128xf32>,
    return
  }
  func.func @transform_0(%arg0: i32) -> (i32, i32, i32, i32) {
    %c0_i32 = arith.constant 0 : i32
    %c0_i32_0 = arith.constant 0 : i32
    %c0_i32_1 = arith.constant 0 : i32
    %c0_i32_2 = arith.constant 0 : i32
    return %c0_i32, %c0_i32_0, %arg0, %c0_i32_1 : i32, i32, i32, i32
  }
  func.func @transform_1(%arg0: i32) -> (i32, i32) {
    %c0_i32 = arith.constant 0 : i32
    %c0_i32_0 = arith.constant 0 : i32
    %c0_i32_1 = arith.constant 0 : i32
    return %c0_i32, %c0_i32_0 : i32, i32
  }
  func.func @transform_2(%arg0: i32) -> (i32, i32) {
    %c0_i32 = arith.constant 0 : i32
    %c0_i32_0 = arith.constant 0 : i32
    %c0_i32_1 = arith.constant 0 : i32
    return %c0_i32, %c0_i32_0 : i32, i32
  }
  func.func @transform_3(%arg0: i32) -> (i32, i32, i32) {
    %c0_i32 = arith.constant 0 : i32
    %c0_i32_0 = arith.constant 0 : i32
    %c0_i32_1 = arith.constant 0 : i32
    %c0_i32_2 = arith.constant 0 : i32
    return %c0_i32, %c0_i32_0, %c0_i32_1 : i32, i32, i32
  }
  func.func @transform_4(%arg0: i32) -> (i32, i32) {
    %c0_i32 = arith.constant 0 : i32
    %c0_i32_0 = arith.constant 0 : i32
    %c0_i32_1 = arith.constant 0 : i32
    return %c0_i32, %c0_i32_0 : i32, i32
  }
  func.func @transform_5(%arg0: i32) -> (i32, i32) {
    %c0_i32 = arith.constant 0 : i32
    %c0_i32_0 = arith.constant 0 : i32
    %c0_i32_1 = arith.constant 0 : i32
    return %c0_i32, %c0_i32_0 : i32, i32
  }
  func.func @transform_6(%arg0: i32) -> (i32, i32) {
    %c0_i32 = arith.constant 0 : i32
    %c0_i32_0 = arith.constant 0 : i32
    %c0_i32_1 = arith.constant 0 : i32
    return %c0_i32, %c0_i32_0 : i32, i32
  }
  func.func @transform_7(%arg0: i32) -> (i32, i32) {
    %c0_i32 = arith.constant 0 : i32
    %c0_i32_0 = arith.constant 0 : i32
    return %arg0, %c0_i32 : i32, i32
  }
}

</mosaic_0001>

<bundles_post_ra>
// kernel: net_point_forward.2
= control target key start
LH: loop header
LB: loop body
LE: loop exit
PB: predicated region body
PF: predicated region fallthrough
CT: control target
= control target key end

     0   :  { %s13177_s12 = smov 0   ;;  %s13179_s13 = smov 0   ;;  %s16867_s0 = inlined_call_operand.vmem [shape: f32[4,16,144,25], index: 0, kind: input, shape index: {}]   ;;  %s16868_s1 = inlined_call_operand.vmem [shape: f32[25,10], index: 1, kind: input, shape index: {}]   ;;  %s16869_s2 = inlined_call_operand.vmem [shape: f32[1,10], index: 2, kind: input, shape index: {}]   ;;  %s16870_s3 = inlined_call_operand.vmem [shape: f32[2304,10], index: 3, kind: output, shape index: {}]  }
   0x1   :  { %s13181_s14 = smov 0  }
   0x2 LB: > { %s11055_s15 = sadd.s32 4294967295, %s13155_s14   ;;  %s13194_s16 = sadd.s32 1, %s13155_s14   ;;  %s13155_s14 = sphi %s13181_s14, %s17351_s14   ;;  %s13151_s13 = sphi %s13179_s13, %s17350_s13   ;;  %s13147_s12 = sphi %s13177_s12, %s17349_s12  }
   0x3   : > { %s17_s17 = ssub.s32 %s13155_s14, %s13194_s16  ;;  %s20_s18 = sadd.s32 1, %s13151_s13 }
   0x4   : > { %p18_p0 = scmp.eq.s32.totalorder %s17_s17, 0  ;;  %p27_p1 = scmp.ne.s32.totalorder %s13151_s13, %s13147_s12 }
   0x5   : > { %p28_p2 = scmp.eq.s32.totalorder %s13155_s14, 0  ;;  %p11058_p4 = scmp.ge.s32.totalorder %s13155_s14, 2 }
   0x6   : > { %s13203_s19 = scalar_select %p18_p0, %s13151_s13, %s20_s18  }
   0x7   : > { %p29_p3 = por %p28_p2, %p27_p1  ;;  %127 = sbr.rel (%p11058_p4) target bundleno = 305 (0x131), region = 24 }
   0xc   : > { %130 = sbr.rel (!%p29_p3) target bundleno = 305 (0x131), region = 28  ;;  %s132_s20 = sand.u32 (%p29_p3), 1, %s13151_s13  }
   0xd   : > { %s13105_s21 = smul.u32 (%p29_p3), 1152, %s13155_s14 }
   0xe   : > { %s13104_s22 = smul.u32 (%p29_p3), 4608, %s132_s20 }
   0xf   : > { %s13211_s25 = scalar_lea.vmem (%p29_p3), %s16867_s0, %s13105_s21 }
  0x10   : > { %v1320_v0 = vld [vmem:[%s13211_s25] sm:$0xff] (%p29_p3)  ;;  %v1322_v1 = vld [vmem:[%s13211_s25 + $0x8] sm:$0xff] (%p29_p3)  ;;  %v1324_v2 = vld [vmem:[%s13211_s25 + $0x10] sm:$0xff] (%p29_p3)  ;;  %s13216_s26 = scalar_lea.vmem (%p29_p3), [#allocation2], %s13104_s22 }
  0x11   : > { %1321 = vst [vmem:[%s13216_s26] sm:$0xff] %v1320_v0  ;;  %1323 = vst [vmem:[%s13216_s26 + $0x8] sm:$0xff] %v1322_v1  ;;  %v1326_v3 = vld [vmem:[%s13211_s25 + $0x18] sm:$0xff]  ;;  %v1328_v4 = vld [vmem:[%s13211_s25 + $0x20] sm:$0xff] }
  0x12   : > { %1325 = vst [vmem:[%s13216_s26 + $0x10] sm:$0xff] %v1324_v2  ;;  %v1330_v5 = vld [vmem:[%s13211_s25 + $0x28] sm:$0xff]  ;;  %1327 = vst [vmem:[%s13216_s26 + $0x18] sm:$0xff] %v1326_v3  ;;  %v1332_v6 = vld [vmem:[%s13211_s25 + $0x30] sm:$0xff] }
  0x13   : > { %1329 = vst [vmem:[%s13216_s26 + $0x20] sm:$0xff] %v1328_v4  ;;  %1331 = vst [vmem:[%s13216_s26 + $0x28] sm:$0xff] %v1330_v5  ;;  %v1334_v7 = vld [vmem:[%s13211_s25 + $0x38] sm:$0xff]  ;;  %v1336_v8 = vld [vmem:[%s13211_s25 + $0x40] sm:$0xff] }
  0x14   : > { %1333 = vst [vmem:[%s13216_s26 + $0x30] sm:$0xff] %v1332_v6  ;;  %1335 = vst [vmem:[%s13216_s26 + $0x38] sm:$0xff] %v1334_v7  ;;  %v1338_v9 = vld [vmem:[%s13211_s25 + $0x48] sm:$0xff]  ;;  %v1340_v10 = vld [vmem:[%s13211_s25 + $0x50] sm:$0xff] }
  0x15   : > { %1337 = vst [vmem:[%s13216_s26 + $0x40] sm:$0xff] %v1336_v8  ;;  %v1342_v11 = vld [vmem:[%s13211_s25 + $0x58] sm:$0xff]  ;;  %1339 = vst [vmem:[%s13216_s26 + $0x48] sm:$0xff] %v1338_v9  ;;  %v1344_v12 = vld [vmem:[%s13211_s25 + $0x60] sm:$0xff] }
  0x16   : > { %1341 = vst [vmem:[%s13216_s26 + $0x50] sm:$0xff] %v1340_v10  ;;  %1343 = vst [vmem:[%s13216_s26 + $0x58] sm:$0xff] %v1342_v11  ;;  %v1346_v13 = vld [vmem:[%s13211_s25 + $0x68] sm:$0xff]  ;;  %v1348_v14 = vld [vmem:[%s13211_s25 + $0x70] sm:$0xff] }
  0x17   : > { %1345 = vst [vmem:[%s13216_s26 + $0x60] sm:$0xff] %v1344_v12  ;;  %1347 = vst [vmem:[%s13216_s26 + $0x68] sm:$0xff] %v1346_v13  ;;  %v1350_v15 = vld [vmem:[%s13211_s25 + $0x78] sm:$0xff]  ;;  %v1352_v16 = vld [vmem:[%s13211_s25 + $0x80] sm:$0xff] }
  0x18   : > { %1349 = vst [vmem:[%s13216_s26 + $0x70] sm:$0xff] %v1348_v14  ;;  %v1354_v17 = vld [vmem:[%s13211_s25 + $0x88] sm:$0xff]  ;;  %1351 = vst [vmem:[%s13216_s26 + $0x78] sm:$0xff] %v1350_v15  ;;  %v1356_v18 = vld [vmem:[%s13211_s25 + $0x90] sm:$0xff] }
  0x19   : > { %1353 = vst [vmem:[%s13216_s26 + $0x80] sm:$0xff] %v1352_v16  ;;  %1355 = vst [vmem:[%s13216_s26 + $0x88] sm:$0xff] %v1354_v17  ;;  %v1358_v19 = vld [vmem:[%s13211_s25 + $0x98] sm:$0xff]  ;;  %v1360_v20 = vld [vmem:[%s13211_s25 + $0xa0] sm:$0xff] }
  0x1a   : > { %1357 = vst [vmem:[%s13216_s26 + $0x90] sm:$0xff] %v1356_v18  ;;  %1359 = vst [vmem:[%s13216_s26 + $0x98] sm:$0xff] %v1358_v19  ;;  %v1362_v21 = vld [vmem:[%s13211_s25 + $0xa8] sm:$0xff]  ;;  %v1364_v22 = vld [vmem:[%s13211_s25 + $0xb0] sm:$0xff] }
  0x1b   : > { %1361 = vst [vmem:[%s13216_s26 + $0xa0] sm:$0xff] %v1360_v20  ;;  %v1366_v23 = vld [vmem:[%s13211_s25 + $0xb8] sm:$0xff]  ;;  %1363 = vst [vmem:[%s13216_s26 + $0xa8] sm:$0xff] %v1362_v21  ;;  %v1368_v24 = vld [vmem:[%s13211_s25 + $0xc0] sm:$0xff] }
  0x1c   : > { %1365 = vst [vmem:[%s13216_s26 + $0xb0] sm:$0xff] %v1364_v22  ;;  %1367 = vst [vmem:[%s13216_s26 + $0xb8] sm:$0xff] %v1366_v23  ;;  %v1370_v25 = vld [vmem:[%s13211_s25 + $0xc8] sm:$0xff]  ;;  %v1372_v26 = vld [vmem:[%s13211_s25 + $0xd0] sm:$0xff] }
  0x1d   : > { %1369 = vst [vmem:[%s13216_s26 + $0xc0] sm:$0xff] %v1368_v24  ;;  %1371 = vst [vmem:[%s13216_s26 + $0xc8] sm:$0xff] %v1370_v25  ;;  %v1374_v27 = vld [vmem:[%s13211_s25 + $0xd8] sm:$0xff]  ;;  %v1376_v28 = vld [vmem:[%s13211_s25 + $0xe0] sm:$0xff] }
  0x1e   : > { %1373 = vst [vmem:[%s13216_s26 + $0xd0] sm:$0xff] %v1372_v26  ;;  %v1378_v29 = vld [vmem:[%s13211_s25 + $0xe8] sm:$0xff]  ;;  %1375 = vst [vmem:[%s13216_s26 + $0xd8] sm:$0xff] %v1374_v27  ;;  %v1380_v30 = vld [vmem:[%s13211_s25 + $0xf0] sm:$0xff] }
  0x1f   : > { %1377 = vst [vmem:[%s13216_s26 + $0xe0] sm:$0xff] %v1376_v28  ;;  %1379 = vst [vmem:[%s13216_s26 + $0xe8] sm:$0xff] %v1378_v29  ;;  %v1382_v31 = vld [vmem:[%s13211_s25 + $0xf8] sm:$0xff]  ;;  %v1384_v32 = vld [vmem:[%s13211_s25 + $0x100] sm:$0xff] }
  0x20   : > { %1381 = vst [vmem:[%s13216_s26 + $0xf0] sm:$0xff] %v1380_v30  ;;  %1383 = vst [vmem:[%s13216_s26 + $0xf8] sm:$0xff] %v1382_v31  ;;  %v1386_v33 = vld [vmem:[%s13211_s25 + $0x108] sm:$0xff]  ;;  %v1388_v34 = vld [vmem:[%s13211_s25 + $0x110] sm:$0xff] }
  0x21   : > { %1385 = vst [vmem:[%s13216_s26 + $0x100] sm:$0xff] %v1384_v32  ;;  %v1390_v35 = vld [vmem:[%s13211_s25 + $0x118] sm:$0xff]  ;;  %1387 = vst [vmem:[%s13216_s26 + $0x108] sm:$0xff] %v1386_v33  ;;  %v1392_v36 = vld [vmem:[%s13211_s25 + $0x120] sm:$0xff] }
  0x22   : > { %1389 = vst [vmem:[%s13216_s26 + $0x110] sm:$0xff] %v1388_v34  ;;  %1391 = vst [vmem:[%s13216_s26 + $0x118] sm:$0xff] %v1390_v35  ;;  %v1394_v37 = vld [vmem:[%s13211_s25 + $0x128] sm:$0xff]  ;;  %v1396_v38 = vld [vmem:[%s13211_s25 + $0x130] sm:$0xff] }
  0x23   : > { %1393 = vst [vmem:[%s13216_s26 + $0x120] sm:$0xff] %v1392_v36  ;;  %1395 = vst [vmem:[%s13216_s26 + $0x128] sm:$0xff] %v1394_v37  ;;  %v1398_v39 = vld [vmem:[%s13211_s25 + $0x138] sm:$0xff]  ;;  %v1400_v40 = vld [vmem:[%s13211_s25 + $0x140] sm:$0xff] }
  0x24   : > { %1397 = vst [vmem:[%s13216_s26 + $0x130] sm:$0xff] %v1396_v38  ;;  %v1402_v41 = vld [vmem:[%s13211_s25 + $0x148] sm:$0xff]  ;;  %1399 = vst [vmem:[%s13216_s26 + $0x138] sm:$0xff] %v1398_v39  ;;  %v1404_v42 = vld [vmem:[%s13211_s25 + $0x150] sm:$0xff] }
  0x25   : > { %1401 = vst [vmem:[%s13216_s26 + $0x140] sm:$0xff] %v1400_v40  ;;  %1403 = vst [vmem:[%s13216_s26 + $0x148] sm:$0xff] %v1402_v41  ;;  %v1406_v43 = vld [vmem:[%s13211_s25 + $0x158] sm:$0xff]  ;;  %v1408_v44 = vld [vmem:[%s13211_s25 + $0x160] sm:$0xff] }
  0x26   : > { %1405 = vst [vmem:[%s13216_s26 + $0x150] sm:$0xff] %v1404_v42  ;;  %1407 = vst [vmem:[%s13216_s26 + $0x158] sm:$0xff] %v1406_v43  ;;  %v1410_v45 = vld [vmem:[%s13211_s25 + $0x168] sm:$0xff]  ;;  %v1412_v46 = vld [vmem:[%s13211_s25 + $0x170] sm:$0xff] }
  0x27   : > { %1409 = vst [vmem:[%s13216_s26 + $0x160] sm:$0xff] %v1408_v44  ;;  %v1414_v47 = vld [vmem:[%s13211_s25 + $0x178] sm:$0xff]  ;;  %1411 = vst [vmem:[%s13216_s26 + $0x168] sm:$0xff] %v1410_v45  ;;  %v1416_v48 = vld [vmem:[%s13211_s25 + $0x180] sm:$0xff] }
  0x28   : > { %1413 = vst [vmem:[%s13216_s26 + $0x170] sm:$0xff] %v1412_v46  ;;  %1415 = vst [vmem:[%s13216_s26 + $0x178] sm:$0xff] %v1414_v47  ;;  %v1418_v49 = vld [vmem:[%s13211_s25 + $0x188] sm:$0xff]  ;;  %v1420_v50 = vld [vmem:[%s13211_s25 + $0x190] sm:$0xff] }
  0x29   : > { %1417 = vst [vmem:[%s13216_s26 + $0x180] sm:$0xff] %v1416_v48  ;;  %1419 = vst [vmem:[%s13216_s26 + $0x188] sm:$0xff] %v1418_v49  ;;  %v1422_v51 = vld [vmem:[%s13211_s25 + $0x198] sm:$0xff]  ;;  %v1424_v52 = vld [vmem:[%s13211_s25 + $0x1a0] sm:$0xff] }
  0x2a   : > { %1421 = vst [vmem:[%s13216_s26 + $0x190] sm:$0xff] %v1420_v50  ;;  %v1426_v53 = vld [vmem:[%s13211_s25 + $0x1a8] sm:$0xff]  ;;  %1423 = vst [vmem:[%s13216_s26 + $0x198] sm:$0xff] %v1422_v51  ;;  %v1428_v54 = vld [vmem:[%s13211_s25 + $0x1b0] sm:$0xff] }
  0x2b   : > { %1425 = vst [vmem:[%s13216_s26 + $0x1a0] sm:$0xff] %v1424_v52  ;;  %1427 = vst [vmem:[%s13216_s26 + $0x1a8] sm:$0xff] %v1426_v53  ;;  %v1430_v55 = vld [vmem:[%s13211_s25 + $0x1b8] sm:$0xff]  ;;  %v1432_v56 = vld [vmem:[%s13211_s25 + $0x1c0] sm:$0xff] }
  0x2c   : > { %1429 = vst [vmem:[%s13216_s26 + $0x1b0] sm:$0xff] %v1428_v54  ;;  %1431 = vst [vmem:[%s13216_s26 + $0x1b8] sm:$0xff] %v1430_v55  ;;  %v1434_v57 = vld [vmem:[%s13211_s25 + $0x1c8] sm:$0xff]  ;;  %v1436_v58 = vld [vmem:[%s13211_s25 + $0x1d0] sm:$0xff] }
  0x2d   : > { %1433 = vst [vmem:[%s13216_s26 + $0x1c0] sm:$0xff] %v1432_v56  ;;  %v1438_v59 = vld [vmem:[%s13211_s25 + $0x1d8] sm:$0xff]  ;;  %1435 = vst [vmem:[%s13216_s26 + $0x1c8] sm:$0xff] %v1434_v57  ;;  %v1440_v60 = vld [vmem:[%s13211_s25 + $0x1e0] sm:$0xff] }
  0x2e   : > { %1437 = vst [vmem:[%s13216_s26 + $0x1d0] sm:$0xff] %v1436_v58  ;;  %1439 = vst [vmem:[%s13216_s26 + $0x1d8] sm:$0xff] %v1438_v59  ;;  %v1442_v61 = vld [vmem:[%s13211_s25 + $0x1e8] sm:$0xff]  ;;  %v1444_v62 = vld [vmem:[%s13211_s25 + $0x1f0] sm:$0xff] }
  0x2f   : > { %1441 = vst [vmem:[%s13216_s26 + $0x1e0] sm:$0xff] %v1440_v60  ;;  %1443 = vst [vmem:[%s13216_s26 + $0x1e8] sm:$0xff] %v1442_v61  ;;  %v1446_v63 = vld [vmem:[%s13211_s25 + $0x1f8] sm:$0xff]  ;;  %v1448_v0 = vld [vmem:[%s13211_s25 + $0x200] sm:$0xff] }
  0x30   : > { %1445 = vst [vmem:[%s13216_s26 + $0x1f0] sm:$0xff] %v1444_v62  ;;  %v1450_v1 = vld [vmem:[%s13211_s25 + $0x208] sm:$0xff]  ;;  %1447 = vst [vmem:[%s13216_s26 + $0x1f8] sm:$0xff] %v1446_v63  ;;  %v1452_v2 = vld [vmem:[%s13211_s25 + $0x210] sm:$0xff] }
  0x31   : > { %1449 = vst [vmem:[%s13216_s26 + $0x200] sm:$0xff] %v1448_v0  ;;  %1451 = vst [vmem:[%s13216_s26 + $0x208] sm:$0xff] %v1450_v1  ;;  %v1454_v3 = vld [vmem:[%s13211_s25 + $0x218] sm:$0xff]  ;;  %v1456_v4 = vld [vmem:[%s13211_s25 + $0x220] sm:$0xff] }
  0x32   : > { %1453 = vst [vmem:[%s13216_s26 + $0x210] sm:$0xff] %v1452_v2  ;;  %1455 = vst [vmem:[%s13216_s26 + $0x218] sm:$0xff] %v1454_v3  ;;  %v1458_v5 = vld [vmem:[%s13211_s25 + $0x228] sm:$0xff]  ;;  %v1460_v6 = vld [vmem:[%s13211_s25 + $0x230] sm:$0xff] }
  0x33   : > { %1457 = vst [vmem:[%s13216_s26 + $0x220] sm:$0xff] %v1456_v4  ;;  %v1462_v7 = vld [vmem:[%s13211_s25 + $0x238] sm:$0xff]  ;;  %1459 = vst [vmem:[%s13216_s26 + $0x228] sm:$0xff] %v1458_v5  ;;  %v1464_v8 = vld [vmem:[%s13211_s25 + $0x240] sm:$0xff] }
  0x34   : > { %1461 = vst [vmem:[%s13216_s26 + $0x230] sm:$0xff] %v1460_v6  ;;  %1463 = vst [vmem:[%s13216_s26 + $0x238] sm:$0xff] %v1462_v7  ;;  %v1466_v9 = vld [vmem:[%s13211_s25 + $0x248] sm:$0xff]  ;;  %v1468_v10 = vld [vmem:[%s13211_s25 + $0x250] sm:$0xff] }
  0x35   : > { %1465 = vst [vmem:[%s13216_s26 + $0x240] sm:$0xff] %v1464_v8  ;;  %1467 = vst [vmem:[%s13216_s26 + $0x248] sm:$0xff] %v1466_v9  ;;  %v1470_v11 = vld [vmem:[%s13211_s25 + $0x258] sm:$0xff]  ;;  %v1472_v12 = vld [vmem:[%s13211_s25 + $0x260] sm:$0xff] }
  0x36   : > { %1469 = vst [vmem:[%s13216_s26 + $0x250] sm:$0xff] %v1468_v10  ;;  %v1474_v13 = vld [vmem:[%s13211_s25 + $0x268] sm:$0xff]  ;;  %1471 = vst [vmem:[%s13216_s26 + $0x258] sm:$0xff] %v1470_v11  ;;  %v1476_v14 = vld [vmem:[%s13211_s25 + $0x270] sm:$0xff] }
  0x37   : > { %1473 = vst [vmem:[%s13216_s26 + $0x260] sm:$0xff] %v1472_v12  ;;  %1475 = vst [vmem:[%s13216_s26 + $0x268] sm:$0xff] %v1474_v13  ;;  %v1478_v15 = vld [vmem:[%s13211_s25 + $0x278] sm:$0xff]  ;;  %v1480_v16 = vld [vmem:[%s13211_s25 + $0x280] sm:$0xff] }
  0x38   : > { %1477 = vst [vmem:[%s13216_s26 + $0x270] sm:$0xff] %v1476_v14  ;;  %1479 = vst [vmem:[%s13216_s26 + $0x278] sm:$0xff] %v1478_v15  ;;  %v1482_v17 = vld [vmem:[%s13211_s25 + $0x288] sm:$0xff]  ;;  %v1484_v18 = vld [vmem:[%s13211_s25 + $0x290] sm:$0xff] }
  0x39   : > { %1481 = vst [vmem:[%s13216_s26 + $0x280] sm:$0xff] %v1480_v16  ;;  %v1486_v19 = vld [vmem:[%s13211_s25 + $0x298] sm:$0xff]  ;;  %1483 = vst [vmem:[%s13216_s26 + $0x288] sm:$0xff] %v1482_v17  ;;  %v1488_v20 = vld [vmem:[%s13211_s25 + $0x2a0] sm:$0xff] }
  0x3a   : > { %1485 = vst [vmem:[%s13216_s26 + $0x290] sm:$0xff] %v1484_v18  ;;  %1487 = vst [vmem:[%s13216_s26 + $0x298] sm:$0xff] %v1486_v19  ;;  %v1490_v21 = vld [vmem:[%s13211_s25 + $0x2a8] sm:$0xff]  ;;  %v1492_v22 = vld [vmem:[%s13211_s25 + $0x2b0] sm:$0xff] }
  0x3b   : > { %1489 = vst [vmem:[%s13216_s26 + $0x2a0] sm:$0xff] %v1488_v20  ;;  %1491 = vst [vmem:[%s13216_s26 + $0x2a8] sm:$0xff] %v1490_v21  ;;  %v1494_v23 = vld [vmem:[%s13211_s25 + $0x2b8] sm:$0xff]  ;;  %v1496_v24 = vld [vmem:[%s13211_s25 + $0x2c0] sm:$0xff] }
  0x3c   : > { %1493 = vst [vmem:[%s13216_s26 + $0x2b0] sm:$0xff] %v1492_v22  ;;  %v1498_v25 = vld [vmem:[%s13211_s25 + $0x2c8] sm:$0xff]  ;;  %1495 = vst [vmem:[%s13216_s26 + $0x2b8] sm:$0xff] %v1494_v23  ;;  %v1500_v26 = vld [vmem:[%s13211_s25 + $0x2d0] sm:$0xff] }
  0x3d   : > { %1497 = vst [vmem:[%s13216_s26 + $0x2c0] sm:$0xff] %v1496_v24  ;;  %1499 = vst [vmem:[%s13216_s26 + $0x2c8] sm:$0xff] %v1498_v25  ;;  %v1502_v27 = vld [vmem:[%s13211_s25 + $0x2d8] sm:$0xff]  ;;  %v1504_v28 = vld [vmem:[%s13211_s25 + $0x2e0] sm:$0xff] }
  0x3e   : > { %1501 = vst [vmem:[%s13216_s26 + $0x2d0] sm:$0xff] %v1500_v26  ;;  %1503 = vst [vmem:[%s13216_s26 + $0x2d8] sm:$0xff] %v1502_v27  ;;  %v1506_v29 = vld [vmem:[%s13211_s25 + $0x2e8] sm:$0xff]  ;;  %v1508_v30 = vld [vmem:[%s13211_s25 + $0x2f0] sm:$0xff] }
  0x3f   : > { %1505 = vst [vmem:[%s13216_s26 + $0x2e0] sm:$0xff] %v1504_v28  ;;  %v1510_v31 = vld [vmem:[%s13211_s25 + $0x2f8] sm:$0xff]  ;;  %1507 = vst [vmem:[%s13216_s26 + $0x2e8] sm:$0xff] %v1506_v29  ;;  %v1512_v32 = vld [vmem:[%s13211_s25 + $0x300] sm:$0xff] }
  0x40   : > { %1509 = vst [vmem:[%s13216_s26 + $0x2f0] sm:$0xff] %v1508_v30  ;;  %1511 = vst [vmem:[%s13216_s26 + $0x2f8] sm:$0xff] %v1510_v31  ;;  %v1514_v33 = vld [vmem:[%s13211_s25 + $0x308] sm:$0xff]  ;;  %v1516_v34 = vld [vmem:[%s13211_s25 + $0x310] sm:$0xff] }
  0x41   : > { %1513 = vst [vmem:[%s13216_s26 + $0x300] sm:$0xff] %v1512_v32  ;;  %1515 = vst [vmem:[%s13216_s26 + $0x308] sm:$0xff] %v1514_v33  ;;  %v1518_v35 = vld [vmem:[%s13211_s25 + $0x318] sm:$0xff]  ;;  %v1520_v36 = vld [vmem:[%s13211_s25 + $0x320] sm:$0xff] }
  0x42   : > { %1517 = vst [vmem:[%s13216_s26 + $0x310] sm:$0xff] %v1516_v34  ;;  %v1522_v37 = vld [vmem:[%s13211_s25 + $0x328] sm:$0xff]  ;;  %1519 = vst [vmem:[%s13216_s26 + $0x318] sm:$0xff] %v1518_v35  ;;  %v1524_v38 = vld [vmem:[%s13211_s25 + $0x330] sm:$0xff] }
  0x43   : > { %1521 = vst [vmem:[%s13216_s26 + $0x320] sm:$0xff] %v1520_v36  ;;  %1523 = vst [vmem:[%s13216_s26 + $0x328] sm:$0xff] %v1522_v37  ;;  %v1526_v39 = vld [vmem:[%s13211_s25 + $0x338] sm:$0xff]  ;;  %v1528_v40 = vld [vmem:[%s13211_s25 + $0x340] sm:$0xff] }
  0x44   : > { %1525 = vst [vmem:[%s13216_s26 + $0x330] sm:$0xff] %v1524_v38  ;;  %1527 = vst [vmem:[%s13216_s26 + $0x338] sm:$0xff] %v1526_v39  ;;  %v1530_v41 = vld [vmem:[%s13211_s25 + $0x348] sm:$0xff]  ;;  %v1532_v42 = vld [vmem:[%s13211_s25 + $0x350] sm:$0xff] }
  0x45   : > { %1529 = vst [vmem:[%s13216_s26 + $0x340] sm:$0xff] %v1528_v40  ;;  %v1534_v43 = vld [vmem:[%s13211_s25 + $0x358] sm:$0xff]  ;;  %1531 = vst [vmem:[%s13216_s26 + $0x348] sm:$0xff] %v1530_v41  ;;  %v1536_v44 = vld [vmem:[%s13211_s25 + $0x360] sm:$0xff] }
  0x46   : > { %1533 = vst [vmem:[%s13216_s26 + $0x350] sm:$0xff] %v1532_v42  ;;  %1535 = vst [vmem:[%s13216_s26 + $0x358] sm:$0xff] %v1534_v43  ;;  %v1538_v45 = vld [vmem:[%s13211_s25 + $0x368] sm:$0xff]  ;;  %v1540_v46 = vld [vmem:[%s13211_s25 + $0x370] sm:$0xff] }
  0x47   : > { %1537 = vst [vmem:[%s13216_s26 + $0x360] sm:$0xff] %v1536_v44  ;;  %1539 = vst [vmem:[%s13216_s26 + $0x368] sm:$0xff] %v1538_v45  ;;  %v1542_v47 = vld [vmem:[%s13211_s25 + $0x378] sm:$0xff]  ;;  %v1544_v48 = vld [vmem:[%s13211_s25 + $0x380] sm:$0xff] }
  0x48   : > { %1541 = vst [vmem:[%s13216_s26 + $0x370] sm:$0xff] %v1540_v46  ;;  %v1546_v49 = vld [vmem:[%s13211_s25 + $0x388] sm:$0xff]  ;;  %1543 = vst [vmem:[%s13216_s26 + $0x378] sm:$0xff] %v1542_v47  ;;  %v1548_v50 = vld [vmem:[%s13211_s25 + $0x390] sm:$0xff] }
  0x49   : > { %1545 = vst [vmem:[%s13216_s26 + $0x380] sm:$0xff] %v1544_v48  ;;  %1547 = vst [vmem:[%s13216_s26 + $0x388] sm:$0xff] %v1546_v49  ;;  %v1550_v51 = vld [vmem:[%s13211_s25 + $0x398] sm:$0xff]  ;;  %v1552_v52 = vld [vmem:[%s13211_s25 + $0x3a0] sm:$0xff] }
  0x4a   : > { %1549 = vst [vmem:[%s13216_s26 + $0x390] sm:$0xff] %v1548_v50  ;;  %1551 = vst [vmem:[%s13216_s26 + $0x398] sm:$0xff] %v1550_v51  ;;  %v1554_v53 = vld [vmem:[%s13211_s25 + $0x3a8] sm:$0xff]  ;;  %v1556_v54 = vld [vmem:[%s13211_s25 + $0x3b0] sm:$0xff] }
  0x4b   : > { %1553 = vst [vmem:[%s13216_s26 + $0x3a0] sm:$0xff] %v1552_v52  ;;  %v1558_v55 = vld [vmem:[%s13211_s25 + $0x3b8] sm:$0xff]  ;;  %1555 = vst [vmem:[%s13216_s26 + $0x3a8] sm:$0xff] %v1554_v53  ;;  %v1560_v56 = vld [vmem:[%s13211_s25 + $0x3c0] sm:$0xff] }
  0x4c   : > { %1557 = vst [vmem:[%s13216_s26 + $0x3b0] sm:$0xff] %v1556_v54  ;;  %1559 = vst [vmem:[%s13216_s26 + $0x3b8] sm:$0xff] %v1558_v55  ;;  %v1562_v57 = vld [vmem:[%s13211_s25 + $0x3c8] sm:$0xff]  ;;  %v1564_v58 = vld [vmem:[%s13211_s25 + $0x3d0] sm:$0xff] }
  0x4d   : > { %1561 = vst [vmem:[%s13216_s26 + $0x3c0] sm:$0xff] %v1560_v56  ;;  %1563 = vst [vmem:[%s13216_s26 + $0x3c8] sm:$0xff] %v1562_v57  ;;  %v1566_v59 = vld [vmem:[%s13211_s25 + $0x3d8] sm:$0xff]  ;;  %v1568_v60 = vld [vmem:[%s13211_s25 + $0x3e0] sm:$0xff] }
  0x4e   : > { %1565 = vst [vmem:[%s13216_s26 + $0x3d0] sm:$0xff] %v1564_v58  ;;  %v1570_v61 = vld [vmem:[%s13211_s25 + $0x3e8] sm:$0xff]  ;;  %1567 = vst [vmem:[%s13216_s26 + $0x3d8] sm:$0xff] %v1566_v59  ;;  %v1572_v62 = vld [vmem:[%s13211_s25 + $0x3f0] sm:$0xff] }
  0x4f   : > { %1569 = vst [vmem:[%s13216_s26 + $0x3e0] sm:$0xff] %v1568_v60  ;;  %1571 = vst [vmem:[%s13216_s26 + $0x3e8] sm:$0xff] %v1570_v61  ;;  %v1574_v63 = vld [vmem:[%s13211_s25 + $0x3f8] sm:$0xff]  ;;  %v1576_v0 = vld [vmem:[%s13211_s25 + $0x400] sm:$0xff] }
  0x50   : > { %1573 = vst [vmem:[%s13216_s26 + $0x3f0] sm:$0xff] %v1572_v62  ;;  %1575 = vst [vmem:[%s13216_s26 + $0x3f8] sm:$0xff] %v1574_v63  ;;  %v1578_v1 = vld [vmem:[%s13211_s25 + $0x408] sm:$0xff]  ;;  %v1580_v2 = vld [vmem:[%s13211_s25 + $0x410] sm:$0xff] }
  0x51   : > { %1577 = vst [vmem:[%s13216_s26 + $0x400] sm:$0xff] %v1576_v0  ;;  %v1582_v3 = vld [vmem:[%s13211_s25 + $0x418] sm:$0xff]  ;;  %1579 = vst [vmem:[%s13216_s26 + $0x408] sm:$0xff] %v1578_v1  ;;  %v1584_v4 = vld [vmem:[%s13211_s25 + $0x420] sm:$0xff] }
  0x52   : > { %1581 = vst [vmem:[%s13216_s26 + $0x410] sm:$0xff] %v1580_v2  ;;  %1583 = vst [vmem:[%s13216_s26 + $0x418] sm:$0xff] %v1582_v3  ;;  %v1586_v5 = vld [vmem:[%s13211_s25 + $0x428] sm:$0xff]  ;;  %v1588_v6 = vld [vmem:[%s13211_s25 + $0x430] sm:$0xff] }
  0x53   : > { %1585 = vst [vmem:[%s13216_s26 + $0x420] sm:$0xff] %v1584_v4  ;;  %1587 = vst [vmem:[%s13216_s26 + $0x428] sm:$0xff] %v1586_v5  ;;  %v1590_v7 = vld [vmem:[%s13211_s25 + $0x438] sm:$0xff]  ;;  %v1592_v8 = vld [vmem:[%s13211_s25 + $0x440] sm:$0xff] }
  0x54   : > { %1589 = vst [vmem:[%s13216_s26 + $0x430] sm:$0xff] %v1588_v6  ;;  %v1594_v9 = vld [vmem:[%s13211_s25 + $0x448] sm:$0xff]  ;;  %1591 = vst [vmem:[%s13216_s26 + $0x438] sm:$0xff] %v1590_v7  ;;  %v1596_v10 = vld [vmem:[%s13211_s25 + $0x450] sm:$0xff] }
  0x55   : > { %1593 = vst [vmem:[%s13216_s26 + $0x440] sm:$0xff] %v1592_v8  ;;  %1595 = vst [vmem:[%s13216_s26 + $0x448] sm:$0xff] %v1594_v9  ;;  %v1598_v11 = vld [vmem:[%s13211_s25 + $0x458] sm:$0xff]  ;;  %v1600_v12 = vld [vmem:[%s13211_s25 + $0x460] sm:$0xff] }
  0x56   : > { %1597 = vst [vmem:[%s13216_s26 + $0x450] sm:$0xff] %v1596_v10  ;;  %1599 = vst [vmem:[%s13216_s26 + $0x458] sm:$0xff] %v1598_v11  ;;  %v1602_v13 = vld [vmem:[%s13211_s25 + $0x468] sm:$0xff]  ;;  %v1604_v14 = vld [vmem:[%s13211_s25 + $0x470] sm:$0xff] }
  0x57   : > { %1601 = vst [vmem:[%s13216_s26 + $0x460] sm:$0xff] %v1600_v12  ;;  %v1606_v15 = vld [vmem:[%s13211_s25 + $0x478] sm:$0xff]  ;;  %1603 = vst [vmem:[%s13216_s26 + $0x468] sm:$0xff] %v1602_v13  ;;  %v1608_v16 = vld [vmem:[%s13211_s25 + $0x900] sm:$0xff] }
  0x58   : > { %1605 = vst [vmem:[%s13216_s26 + $0x470] sm:$0xff] %v1604_v14  ;;  %1607 = vst [vmem:[%s13216_s26 + $0x478] sm:$0xff] %v1606_v15  ;;  %v1610_v17 = vld [vmem:[%s13211_s25 + $0x908] sm:$0xff]  ;;  %v1612_v18 = vld [vmem:[%s13211_s25 + $0x910] sm:$0xff] }
  0x59   : > { %1609 = vst [vmem:[%s13216_s26 + $0x480] sm:$0xff] %v1608_v16  ;;  %1611 = vst [vmem:[%s13216_s26 + $0x488] sm:$0xff] %v1610_v17  ;;  %v1614_v19 = vld [vmem:[%s13211_s25 + $0x918] sm:$0xff]  ;;  %v1616_v20 = vld [vmem:[%s13211_s25 + $0x920] sm:$0xff] }
  0x5a   : > { %1613 = vst [vmem:[%s13216_s26 + $0x490] sm:$0xff] %v1612_v18  ;;  %v1618_v21 = vld [vmem:[%s13211_s25 + $0x928] sm:$0xff]  ;;  %1615 = vst [vmem:[%s13216_s26 + $0x498] sm:$0xff] %v1614_v19  ;;  %v1620_v22 = vld [vmem:[%s13211_s25 + $0x930] sm:$0xff] }
  0x5b   : > { %1617 = vst [vmem:[%s13216_s26 + $0x4a0] sm:$0xff] %v1616_v20  ;;  %1619 = vst [vmem:[%s13216_s26 + $0x4a8] sm:$0xff] %v1618_v21  ;;  %v1622_v23 = vld [vmem:[%s13211_s25 + $0x938] sm:$0xff]  ;;  %v1624_v24 = vld [vmem:[%s13211_s25 + $0x940] sm:$0xff] }
  0x5c   : > { %1621 = vst [vmem:[%s13216_s26 + $0x4b0] sm:$0xff] %v1620_v22  ;;  %1623 = vst [vmem:[%s13216_s26 + $0x4b8] sm:$0xff] %v1622_v23  ;;  %v1626_v25 = vld [vmem:[%s13211_s25 + $0x948] sm:$0xff]  ;;  %v1628_v26 = vld [vmem:[%s13211_s25 + $0x950] sm:$0xff] }
  0x5d   : > { %1625 = vst [vmem:[%s13216_s26 + $0x4c0] sm:$0xff] %v1624_v24  ;;  %v1630_v27 = vld [vmem:[%s13211_s25 + $0x958] sm:$0xff]  ;;  %1627 = vst [vmem:[%s13216_s26 + $0x4c8] sm:$0xff] %v1626_v25  ;;  %v1632_v28 = vld [vmem:[%s13211_s25 + $0x960] sm:$0xff] }
  0x5e   : > { %1629 = vst [vmem:[%s13216_s26 + $0x4d0] sm:$0xff] %v1628_v26  ;;  %1631 = vst [vmem:[%s13216_s26 + $0x4d8] sm:$0xff] %v1630_v27  ;;  %v1634_v29 = vld [vmem:[%s13211_s25 + $0x968] sm:$0xff]  ;;  %v1636_v30 = vld [vmem:[%s13211_s25 + $0x970] sm:$0xff] }
  0x5f   : > { %1633 = vst [vmem:[%s13216_s26 + $0x4e0] sm:$0xff] %v1632_v28  ;;  %1635 = vst [vmem:[%s13216_s26 + $0x4e8] sm:$0xff] %v1634_v29  ;;  %v1638_v31 = vld [vmem:[%s13211_s25 + $0x978] sm:$0xff]  ;;  %v1640_v32 = vld [vmem:[%s13211_s25 + $0x980] sm:$0xff] }
  0x60   : > { %1637 = vst [vmem:[%s13216_s26 + $0x4f0] sm:$0xff] %v1636_v30  ;;  %v1642_v33 = vld [vmem:[%s13211_s25 + $0x988] sm:$0xff]  ;;  %1639 = vst [vmem:[%s13216_s26 + $0x4f8] sm:$0xff] %v1638_v31  ;;  %v1644_v34 = vld [vmem:[%s13211_s25 + $0x990] sm:$0xff] }
  0x61   : > { %1641 = vst [vmem:[%s13216_s26 + $0x500] sm:$0xff] %v1640_v32  ;;  %1643 = vst [vmem:[%s13216_s26 + $0x508] sm:$0xff] %v1642_v33  ;;  %v1646_v35 = vld [vmem:[%s13211_s25 + $0x998] sm:$0xff]  ;;  %v1648_v36 = vld [vmem:[%s13211_s25 + $0x9a0] sm:$0xff] }
  0x62   : > { %1645 = vst [vmem:[%s13216_s26 + $0x510] sm:$0xff] %v1644_v34  ;;  %1647 = vst [vmem:[%s13216_s26 + $0x518] sm:$0xff] %v1646_v35  ;;  %v1650_v37 = vld [vmem:[%s13211_s25 + $0x9a8] sm:$0xff]  ;;  %v1652_v38 = vld [vmem:[%s13211_s25 + $0x9b0] sm:$0xff] }
  0x63   : > { %1649 = vst [vmem:[%s13216_s26 + $0x520] sm:$0xff] %v1648_v36  ;;  %v1654_v39 = vld [vmem:[%s13211_s25 + $0x9b8] sm:$0xff]  ;;  %1651 = vst [vmem:[%s13216_s26 + $0x528] sm:$0xff] %v1650_v37  ;;  %v1656_v40 = vld [vmem:[%s13211_s25 + $0x9c0] sm:$0xff] }
  0x64   : > { %1653 = vst [vmem:[%s13216_s26 + $0x530] sm:$0xff] %v1652_v38  ;;  %1655 = vst [vmem:[%s13216_s26 + $0x538] sm:$0xff] %v1654_v39  ;;  %v1658_v41 = vld [vmem:[%s13211_s25 + $0x9c8] sm:$0xff]  ;;  %v1660_v42 = vld [vmem:[%s13211_s25 + $0x9d0] sm:$0xff] }
  0x65   : > { %1657 = vst [vmem:[%s13216_s26 + $0x540] sm:$0xff] %v1656_v40  ;;  %1659 = vst [vmem:[%s13216_s26 + $0x548] sm:$0xff] %v1658_v41  ;;  %v1662_v43 = vld [vmem:[%s13211_s25 + $0x9d8] sm:$0xff]  ;;  %v1664_v44 = vld [vmem:[%s13211_s25 + $0x9e0] sm:$0xff] }
  0x66   : > { %1661 = vst [vmem:[%s13216_s26 + $0x550] sm:$0xff] %v1660_v42  ;;  %v1666_v45 = vld [vmem:[%s13211_s25 + $0x9e8] sm:$0xff]  ;;  %1663 = vst [vmem:[%s13216_s26 + $0x558] sm:$0xff] %v1662_v43  ;;  %v1668_v46 = vld [vmem:[%s13211_s25 + $0x9f0] sm:$0xff] }
  0x67   : > { %1665 = vst [vmem:[%s13216_s26 + $0x560] sm:$0xff] %v1664_v44  ;;  %1667 = vst [vmem:[%s13216_s26 + $0x568] sm:$0xff] %v1666_v45  ;;  %v1670_v47 = vld [vmem:[%s13211_s25 + $0x9f8] sm:$0xff]  ;;  %v1672_v48 = vld [vmem:[%s13211_s25 + $0xa00] sm:$0xff] }
  0x68   : > { %1669 = vst [vmem:[%s13216_s26 + $0x570] sm:$0xff] %v1668_v46  ;;  %1671 = vst [vmem:[%s13216_s26 + $0x578] sm:$0xff] %v1670_v47  ;;  %v1674_v49 = vld [vmem:[%s13211_s25 + $0xa08] sm:$0xff]  ;;  %v1676_v50 = vld [vmem:[%s13211_s25 + $0xa10] sm:$0xff] }
  0x69   : > { %1673 = vst [vmem:[%s13216_s26 + $0x580] sm:$0xff] %v1672_v48  ;;  %v1678_v51 = vld [vmem:[%s13211_s25 + $0xa18] sm:$0xff]  ;;  %1675 = vst [vmem:[%s13216_s26 + $0x588] sm:$0xff] %v1674_v49  ;;  %v1680_v52 = vld [vmem:[%s13211_s25 + $0xa20] sm:$0xff] }
  0x6a   : > { %1677 = vst [vmem:[%s13216_s26 + $0x590] sm:$0xff] %v1676_v50  ;;  %1679 = vst [vmem:[%s13216_s26 + $0x598] sm:$0xff] %v1678_v51  ;;  %v1682_v53 = vld [vmem:[%s13211_s25 + $0xa28] sm:$0xff]  ;;  %v1684_v54 = vld [vmem:[%s13211_s25 + $0xa30] sm:$0xff] }
  0x6b   : > { %1681 = vst [vmem:[%s13216_s26 + $0x5a0] sm:$0xff] %v1680_v52  ;;  %1683 = vst [vmem:[%s13216_s26 + $0x5a8] sm:$0xff] %v1682_v53  ;;  %v1686_v55 = vld [vmem:[%s13211_s25 + $0xa38] sm:$0xff]  ;;  %v1688_v56 = vld [vmem:[%s13211_s25 + $0xa40] sm:$0xff] }
  0x6c   : > { %1685 = vst [vmem:[%s13216_s26 + $0x5b0] sm:$0xff] %v1684_v54  ;;  %v1690_v57 = vld [vmem:[%s13211_s25 + $0xa48] sm:$0xff]  ;;  %1687 = vst [vmem:[%s13216_s26 + $0x5b8] sm:$0xff] %v1686_v55  ;;  %v1692_v58 = vld [vmem:[%s13211_s25 + $0xa50] sm:$0xff] }
  0x6d   : > { %1689 = vst [vmem:[%s13216_s26 + $0x5c0] sm:$0xff] %v1688_v56  ;;  %1691 = vst [vmem:[%s13216_s26 + $0x5c8] sm:$0xff] %v1690_v57  ;;  %v1694_v59 = vld [vmem:[%s13211_s25 + $0xa58] sm:$0xff]  ;;  %v1696_v60 = vld [vmem:[%s13211_s25 + $0xa60] sm:$0xff] }
  0x6e   : > { %1693 = vst [vmem:[%s13216_s26 + $0x5d0] sm:$0xff] %v1692_v58  ;;  %1695 = vst [vmem:[%s13216_s26 + $0x5d8] sm:$0xff] %v1694_v59  ;;  %v1698_v61 = vld [vmem:[%s13211_s25 + $0xa68] sm:$0xff]  ;;  %v1700_v62 = vld [vmem:[%s13211_s25 + $0xa70] sm:$0xff] }
  0x6f   : > { %1697 = vst [vmem:[%s13216_s26 + $0x5e0] sm:$0xff] %v1696_v60  ;;  %v1702_v63 = vld [vmem:[%s13211_s25 + $0xa78] sm:$0xff]  ;;  %1699 = vst [vmem:[%s13216_s26 + $0x5e8] sm:$0xff] %v1698_v61  ;;  %v1704_v0 = vld [vmem:[%s13211_s25 + $0xa80] sm:$0xff] }
  0x70   : > { %1701 = vst [vmem:[%s13216_s26 + $0x5f0] sm:$0xff] %v1700_v62  ;;  %1703 = vst [vmem:[%s13216_s26 + $0x5f8] sm:$0xff] %v1702_v63  ;;  %v1706_v1 = vld [vmem:[%s13211_s25 + $0xa88] sm:$0xff]  ;;  %v1708_v2 = vld [vmem:[%s13211_s25 + $0xa90] sm:$0xff] }
  0x71   : > { %1705 = vst [vmem:[%s13216_s26 + $0x600] sm:$0xff] %v1704_v0  ;;  %1707 = vst [vmem:[%s13216_s26 + $0x608] sm:$0xff] %v1706_v1  ;;  %v1710_v3 = vld [vmem:[%s13211_s25 + $0xa98] sm:$0xff]  ;;  %v1712_v4 = vld [vmem:[%s13211_s25 + $0xaa0] sm:$0xff] }
  0x72   : > { %1709 = vst [vmem:[%s13216_s26 + $0x610] sm:$0xff] %v1708_v2  ;;  %v1714_v5 = vld [vmem:[%s13211_s25 + $0xaa8] sm:$0xff]  ;;  %1711 = vst [vmem:[%s13216_s26 + $0x618] sm:$0xff] %v1710_v3  ;;  %v1716_v6 = vld [vmem:[%s13211_s25 + $0xab0] sm:$0xff] }
  0x73   : > { %1713 = vst [vmem:[%s13216_s26 + $0x620] sm:$0xff] %v1712_v4  ;;  %1715 = vst [vmem:[%s13216_s26 + $0x628] sm:$0xff] %v1714_v5  ;;  %v1718_v7 = vld [vmem:[%s13211_s25 + $0xab8] sm:$0xff]  ;;  %v1720_v8 = vld [vmem:[%s13211_s25 + $0xac0] sm:$0xff] }
  0x74   : > { %1717 = vst [vmem:[%s13216_s26 + $0x630] sm:$0xff] %v1716_v6  ;;  %1719 = vst [vmem:[%s13216_s26 + $0x638] sm:$0xff] %v1718_v7  ;;  %v1722_v9 = vld [vmem:[%s13211_s25 + $0xac8] sm:$0xff]  ;;  %v1724_v10 = vld [vmem:[%s13211_s25 + $0xad0] sm:$0xff] }
  0x75   : > { %1721 = vst [vmem:[%s13216_s26 + $0x640] sm:$0xff] %v1720_v8  ;;  %v1726_v11 = vld [vmem:[%s13211_s25 + $0xad8] sm:$0xff]  ;;  %1723 = vst [vmem:[%s13216_s26 + $0x648] sm:$0xff] %v1722_v9  ;;  %v1728_v12 = vld [vmem:[%s13211_s25 + $0xae0] sm:$0xff] }
  0x76   : > { %1725 = vst [vmem:[%s13216_s26 + $0x650] sm:$0xff] %v1724_v10  ;;  %1727 = vst [vmem:[%s13216_s26 + $0x658] sm:$0xff] %v1726_v11  ;;  %v1730_v13 = vld [vmem:[%s13211_s25 + $0xae8] sm:$0xff]  ;;  %v1732_v14 = vld [vmem:[%s13211_s25 + $0xaf0] sm:$0xff] }
  0x77   : > { %1729 = vst [vmem:[%s13216_s26 + $0x660] sm:$0xff] %v1728_v12  ;;  %1731 = vst [vmem:[%s13216_s26 + $0x668] sm:$0xff] %v1730_v13  ;;  %v1734_v15 = vld [vmem:[%s13211_s25 + $0xaf8] sm:$0xff]  ;;  %v1736_v16 = vld [vmem:[%s13211_s25 + $0xb00] sm:$0xff] }
  0x78   : > { %1733 = vst [vmem:[%s13216_s26 + $0x670] sm:$0xff] %v1732_v14  ;;  %v1738_v17 = vld [vmem:[%s13211_s25 + $0xb08] sm:$0xff]  ;;  %1735 = vst [vmem:[%s13216_s26 + $0x678] sm:$0xff] %v1734_v15  ;;  %v1740_v18 = vld [vmem:[%s13211_s25 + $0xb10] sm:$0xff] }
  0x79   : > { %1737 = vst [vmem:[%s13216_s26 + $0x680] sm:$0xff] %v1736_v16  ;;  %1739 = vst [vmem:[%s13216_s26 + $0x688] sm:$0xff] %v1738_v17  ;;  %v1742_v19 = vld [vmem:[%s13211_s25 + $0xb18] sm:$0xff]  ;;  %v1744_v20 = vld [vmem:[%s13211_s25 + $0xb20] sm:$0xff] }
  0x7a   : > { %1741 = vst [vmem:[%s13216_s26 + $0x690] sm:$0xff] %v1740_v18  ;;  %1743 = vst [vmem:[%s13216_s26 + $0x698] sm:$0xff] %v1742_v19  ;;  %v1746_v21 = vld [vmem:[%s13211_s25 + $0xb28] sm:$0xff]  ;;  %v1748_v22 = vld [vmem:[%s13211_s25 + $0xb30] sm:$0xff] }
  0x7b   : > { %1745 = vst [vmem:[%s13216_s26 + $0x6a0] sm:$0xff] %v1744_v20  ;;  %v1750_v23 = vld [vmem:[%s13211_s25 + $0xb38] sm:$0xff]  ;;  %1747 = vst [vmem:[%s13216_s26 + $0x6a8] sm:$0xff] %v1746_v21  ;;  %v1752_v24 = vld [vmem:[%s13211_s25 + $0xb40] sm:$0xff] }
  0x7c   : > { %1749 = vst [vmem:[%s13216_s26 + $0x6b0] sm:$0xff] %v1748_v22  ;;  %1751 = vst [vmem:[%s13216_s26 + $0x6b8] sm:$0xff] %v1750_v23  ;;  %v1754_v25 = vld [vmem:[%s13211_s25 + $0xb48] sm:$0xff]  ;;  %v1756_v26 = vld [vmem:[%s13211_s25 + $0xb50] sm:$0xff] }
  0x7d   : > { %1753 = vst [vmem:[%s13216_s26 + $0x6c0] sm:$0xff] %v1752_v24  ;;  %1755 = vst [vmem:[%s13216_s26 + $0x6c8] sm:$0xff] %v1754_v25  ;;  %v1758_v27 = vld [vmem:[%s13211_s25 + $0xb58] sm:$0xff]  ;;  %v1760_v28 = vld [vmem:[%s13211_s25 + $0xb60] sm:$0xff] }
  0x7e   : > { %1757 = vst [vmem:[%s13216_s26 + $0x6d0] sm:$0xff] %v1756_v26  ;;  %v1762_v29 = vld [vmem:[%s13211_s25 + $0xb68] sm:$0xff]  ;;  %1759 = vst [vmem:[%s13216_s26 + $0x6d8] sm:$0xff] %v1758_v27  ;;  %v1764_v30 = vld [vmem:[%s13211_s25 + $0xb70] sm:$0xff] }
  0x7f   : > { %1761 = vst [vmem:[%s13216_s26 + $0x6e0] sm:$0xff] %v1760_v28  ;;  %1763 = vst [vmem:[%s13216_s26 + $0x6e8] sm:$0xff] %v1762_v29  ;;  %v1766_v31 = vld [vmem:[%s13211_s25 + $0xb78] sm:$0xff]  ;;  %v1768_v32 = vld [vmem:[%s13211_s25 + $0xb80] sm:$0xff] }
  0x80   : > { %1765 = vst [vmem:[%s13216_s26 + $0x6f0] sm:$0xff] %v1764_v30  ;;  %1767 = vst [vmem:[%s13216_s26 + $0x6f8] sm:$0xff] %v1766_v31  ;;  %v1770_v33 = vld [vmem:[%s13211_s25 + $0xb88] sm:$0xff]  ;;  %v1772_v34 = vld [vmem:[%s13211_s25 + $0xb90] sm:$0xff] }
  0x81   : > { %1769 = vst [vmem:[%s13216_s26 + $0x700] sm:$0xff] %v1768_v32  ;;  %v1774_v35 = vld [vmem:[%s13211_s25 + $0xb98] sm:$0xff]  ;;  %1771 = vst [vmem:[%s13216_s26 + $0x708] sm:$0xff] %v1770_v33  ;;  %v1776_v36 = vld [vmem:[%s13211_s25 + $0xba0] sm:$0xff] }
  0x82   : > { %1773 = vst [vmem:[%s13216_s26 + $0x710] sm:$0xff] %v1772_v34  ;;  %1775 = vst [vmem:[%s13216_s26 + $0x718] sm:$0xff] %v1774_v35  ;;  %v1778_v37 = vld [vmem:[%s13211_s25 + $0xba8] sm:$0xff]  ;;  %v1780_v38 = vld [vmem:[%s13211_s25 + $0xbb0] sm:$0xff] }
  0x83   : > { %1777 = vst [vmem:[%s13216_s26 + $0x720] sm:$0xff] %v1776_v36  ;;  %1779 = vst [vmem:[%s13216_s26 + $0x728] sm:$0xff] %v1778_v37  ;;  %v1782_v39 = vld [vmem:[%s13211_s25 + $0xbb8] sm:$0xff]  ;;  %v1784_v40 = vld [vmem:[%s13211_s25 + $0xbc0] sm:$0xff] }
  0x84   : > { %1781 = vst [vmem:[%s13216_s26 + $0x730] sm:$0xff] %v1780_v38  ;;  %v1786_v41 = vld [vmem:[%s13211_s25 + $0xbc8] sm:$0xff]  ;;  %1783 = vst [vmem:[%s13216_s26 + $0x738] sm:$0xff] %v1782_v39  ;;  %v1788_v42 = vld [vmem:[%s13211_s25 + $0xbd0] sm:$0xff] }
  0x85   : > { %1785 = vst [vmem:[%s13216_s26 + $0x740] sm:$0xff] %v1784_v40  ;;  %1787 = vst [vmem:[%s13216_s26 + $0x748] sm:$0xff] %v1786_v41  ;;  %v1790_v43 = vld [vmem:[%s13211_s25 + $0xbd8] sm:$0xff]  ;;  %v1792_v44 = vld [vmem:[%s13211_s25 + $0xbe0] sm:$0xff] }
  0x86   : > { %1789 = vst [vmem:[%s13216_s26 + $0x750] sm:$0xff] %v1788_v42  ;;  %1791 = vst [vmem:[%s13216_s26 + $0x758] sm:$0xff] %v1790_v43  ;;  %v1794_v45 = vld [vmem:[%s13211_s25 + $0xbe8] sm:$0xff]  ;;  %v1796_v46 = vld [vmem:[%s13211_s25 + $0xbf0] sm:$0xff] }
  0x87   : > { %1793 = vst [vmem:[%s13216_s26 + $0x760] sm:$0xff] %v1792_v44  ;;  %v1798_v47 = vld [vmem:[%s13211_s25 + $0xbf8] sm:$0xff]  ;;  %1795 = vst [vmem:[%s13216_s26 + $0x768] sm:$0xff] %v1794_v45  ;;  %v1800_v48 = vld [vmem:[%s13211_s25 + $0xc00] sm:$0xff] }
  0x88   : > { %1797 = vst [vmem:[%s13216_s26 + $0x770] sm:$0xff] %v1796_v46  ;;  %1799 = vst [vmem:[%s13216_s26 + $0x778] sm:$0xff] %v1798_v47  ;;  %v1802_v49 = vld [vmem:[%s13211_s25 + $0xc08] sm:$0xff]  ;;  %v1804_v50 = vld [vmem:[%s13211_s25 + $0xc10] sm:$0xff] }
  0x89   : > { %1801 = vst [vmem:[%s13216_s26 + $0x780] sm:$0xff] %v1800_v48  ;;  %1803 = vst [vmem:[%s13216_s26 + $0x788] sm:$0xff] %v1802_v49  ;;  %v1806_v51 = vld [vmem:[%s13211_s25 + $0xc18] sm:$0xff]  ;;  %v1808_v52 = vld [vmem:[%s13211_s25 + $0xc20] sm:$0xff] }
  0x8a   : > { %1805 = vst [vmem:[%s13216_s26 + $0x790] sm:$0xff] %v1804_v50  ;;  %v1810_v53 = vld [vmem:[%s13211_s25 + $0xc28] sm:$0xff]  ;;  %1807 = vst [vmem:[%s13216_s26 + $0x798] sm:$0xff] %v1806_v51  ;;  %v1812_v54 = vld [vmem:[%s13211_s25 + $0xc30] sm:$0xff] }
  0x8b   : > { %1809 = vst [vmem:[%s13216_s26 + $0x7a0] sm:$0xff] %v1808_v52  ;;  %1811 = vst [vmem:[%s13216_s26 + $0x7a8] sm:$0xff] %v1810_v53  ;;  %v1814_v55 = vld [vmem:[%s13211_s25 + $0xc38] sm:$0xff]  ;;  %v1816_v56 = vld [vmem:[%s13211_s25 + $0xc40] sm:$0xff] }
  0x8c   : > { %1813 = vst [vmem:[%s13216_s26 + $0x7b0] sm:$0xff] %v1812_v54  ;;  %1815 = vst [vmem:[%s13216_s26 + $0x7b8] sm:$0xff] %v1814_v55  ;;  %v1818_v57 = vld [vmem:[%s13211_s25 + $0xc48] sm:$0xff]  ;;  %v1820_v58 = vld [vmem:[%s13211_s25 + $0xc50] sm:$0xff] }
  0x8d   : > { %1817 = vst [vmem:[%s13216_s26 + $0x7c0] sm:$0xff] %v1816_v56  ;;  %v1822_v59 = vld [vmem:[%s13211_s25 + $0xc58] sm:$0xff]  ;;  %1819 = vst [vmem:[%s13216_s26 + $0x7c8] sm:$0xff] %v1818_v57  ;;  %v1824_v60 = vld [vmem:[%s13211_s25 + $0xc60] sm:$0xff] }
  0x8e   : > { %1821 = vst [vmem:[%s13216_s26 + $0x7d0] sm:$0xff] %v1820_v58  ;;  %1823 = vst [vmem:[%s13216_s26 + $0x7d8] sm:$0xff] %v1822_v59  ;;  %v1826_v61 = vld [vmem:[%s13211_s25 + $0xc68] sm:$0xff]  ;;  %v1828_v62 = vld [vmem:[%s13211_s25 + $0xc70] sm:$0xff] }
  0x8f   : > { %1825 = vst [vmem:[%s13216_s26 + $0x7e0] sm:$0xff] %v1824_v60  ;;  %1827 = vst [vmem:[%s13216_s26 + $0x7e8] sm:$0xff] %v1826_v61  ;;  %v1830_v63 = vld [vmem:[%s13211_s25 + $0xc78] sm:$0xff]  ;;  %v1832_v0 = vld [vmem:[%s13211_s25 + $0xc80] sm:$0xff] }
  0x90   : > { %1829 = vst [vmem:[%s13216_s26 + $0x7f0] sm:$0xff] %v1828_v62  ;;  %v1834_v1 = vld [vmem:[%s13211_s25 + $0xc88] sm:$0xff]  ;;  %1831 = vst [vmem:[%s13216_s26 + $0x7f8] sm:$0xff] %v1830_v63  ;;  %v1836_v2 = vld [vmem:[%s13211_s25 + $0xc90] sm:$0xff] }
  0x91   : > { %1833 = vst [vmem:[%s13216_s26 + $0x800] sm:$0xff] %v1832_v0  ;;  %1835 = vst [vmem:[%s13216_s26 + $0x808] sm:$0xff] %v1834_v1  ;;  %v1838_v3 = vld [vmem:[%s13211_s25 + $0xc98] sm:$0xff]  ;;  %v1840_v4 = vld [vmem:[%s13211_s25 + $0xca0] sm:$0xff] }
  0x92   : > { %1837 = vst [vmem:[%s13216_s26 + $0x810] sm:$0xff] %v1836_v2  ;;  %1839 = vst [vmem:[%s13216_s26 + $0x818] sm:$0xff] %v1838_v3  ;;  %v1842_v5 = vld [vmem:[%s13211_s25 + $0xca8] sm:$0xff]  ;;  %v1844_v6 = vld [vmem:[%s13211_s25 + $0xcb0] sm:$0xff] }
  0x93   : > { %1841 = vst [vmem:[%s13216_s26 + $0x820] sm:$0xff] %v1840_v4  ;;  %v1846_v7 = vld [vmem:[%s13211_s25 + $0xcb8] sm:$0xff]  ;;  %1843 = vst [vmem:[%s13216_s26 + $0x828] sm:$0xff] %v1842_v5  ;;  %v1848_v8 = vld [vmem:[%s13211_s25 + $0xcc0] sm:$0xff] }
  0x94   : > { %1845 = vst [vmem:[%s13216_s26 + $0x830] sm:$0xff] %v1844_v6  ;;  %1847 = vst [vmem:[%s13216_s26 + $0x838] sm:$0xff] %v1846_v7  ;;  %v1850_v9 = vld [vmem:[%s13211_s25 + $0xcc8] sm:$0xff]  ;;  %v1852_v10 = vld [vmem:[%s13211_s25 + $0xcd0] sm:$0xff] }
  0x95   : > { %1849 = vst [vmem:[%s13216_s26 + $0x840] sm:$0xff] %v1848_v8  ;;  %1851 = vst [vmem:[%s13216_s26 + $0x848] sm:$0xff] %v1850_v9  ;;  %v1854_v11 = vld [vmem:[%s13211_s25 + $0xcd8] sm:$0xff]  ;;  %v1856_v12 = vld [vmem:[%s13211_s25 + $0xce0] sm:$0xff] }
  0x96   : > { %1853 = vst [vmem:[%s13216_s26 + $0x850] sm:$0xff] %v1852_v10  ;;  %v1858_v13 = vld [vmem:[%s13211_s25 + $0xce8] sm:$0xff]  ;;  %1855 = vst [vmem:[%s13216_s26 + $0x858] sm:$0xff] %v1854_v11  ;;  %v1860_v14 = vld [vmem:[%s13211_s25 + $0xcf0] sm:$0xff] }
  0x97   : > { %1857 = vst [vmem:[%s13216_s26 + $0x860] sm:$0xff] %v1856_v12  ;;  %1859 = vst [vmem:[%s13216_s26 + $0x868] sm:$0xff] %v1858_v13  ;;  %v1862_v15 = vld [vmem:[%s13211_s25 + $0xcf8] sm:$0xff]  ;;  %v1864_v16 = vld [vmem:[%s13211_s25 + $0xd00] sm:$0xff] }
  0x98   : > { %1861 = vst [vmem:[%s13216_s26 + $0x870] sm:$0xff] %v1860_v14  ;;  %1863 = vst [vmem:[%s13216_s26 + $0x878] sm:$0xff] %v1862_v15  ;;  %v1866_v17 = vld [vmem:[%s13211_s25 + $0xd08] sm:$0xff]  ;;  %v1868_v18 = vld [vmem:[%s13211_s25 + $0xd10] sm:$0xff] }
  0x99   : > { %1865 = vst [vmem:[%s13216_s26 + $0x880] sm:$0xff] %v1864_v16  ;;  %v1870_v19 = vld [vmem:[%s13211_s25 + $0xd18] sm:$0xff]  ;;  %1867 = vst [vmem:[%s13216_s26 + $0x888] sm:$0xff] %v1866_v17  ;;  %v1872_v20 = vld [vmem:[%s13211_s25 + $0xd20] sm:$0xff] }
  0x9a   : > { %1869 = vst [vmem:[%s13216_s26 + $0x890] sm:$0xff] %v1868_v18  ;;  %1871 = vst [vmem:[%s13216_s26 + $0x898] sm:$0xff] %v1870_v19  ;;  %v1874_v21 = vld [vmem:[%s13211_s25 + $0xd28] sm:$0xff]  ;;  %v1876_v22 = vld [vmem:[%s13211_s25 + $0xd30] sm:$0xff] }
  0x9b   : > { %1873 = vst [vmem:[%s13216_s26 + $0x8a0] sm:$0xff] %v1872_v20  ;;  %1875 = vst [vmem:[%s13216_s26 + $0x8a8] sm:$0xff] %v1874_v21  ;;  %v1878_v23 = vld [vmem:[%s13211_s25 + $0xd38] sm:$0xff]  ;;  %v1880_v24 = vld [vmem:[%s13211_s25 + $0xd40] sm:$0xff] }
  0x9c   : > { %1877 = vst [vmem:[%s13216_s26 + $0x8b0] sm:$0xff] %v1876_v22  ;;  %v1882_v25 = vld [vmem:[%s13211_s25 + $0xd48] sm:$0xff]  ;;  %1879 = vst [vmem:[%s13216_s26 + $0x8b8] sm:$0xff] %v1878_v23  ;;  %v1884_v26 = vld [vmem:[%s13211_s25 + $0xd50] sm:$0xff] }
  0x9d   : > { %1881 = vst [vmem:[%s13216_s26 + $0x8c0] sm:$0xff] %v1880_v24  ;;  %1883 = vst [vmem:[%s13216_s26 + $0x8c8] sm:$0xff] %v1882_v25  ;;  %v1886_v27 = vld [vmem:[%s13211_s25 + $0xd58] sm:$0xff]  ;;  %v1888_v28 = vld [vmem:[%s13211_s25 + $0xd60] sm:$0xff] }
  0x9e   : > { %1885 = vst [vmem:[%s13216_s26 + $0x8d0] sm:$0xff] %v1884_v26  ;;  %1887 = vst [vmem:[%s13216_s26 + $0x8d8] sm:$0xff] %v1886_v27  ;;  %v1890_v29 = vld [vmem:[%s13211_s25 + $0xd68] sm:$0xff]  ;;  %v1892_v30 = vld [vmem:[%s13211_s25 + $0xd70] sm:$0xff] }
  0x9f   : > { %1889 = vst [vmem:[%s13216_s26 + $0x8e0] sm:$0xff] %v1888_v28  ;;  %v1894_v31 = vld [vmem:[%s13211_s25 + $0xd78] sm:$0xff]  ;;  %1891 = vst [vmem:[%s13216_s26 + $0x8e8] sm:$0xff] %v1890_v29  ;;  %v1896_v32 = vld [vmem:[%s13211_s25 + $0x1200] sm:$0xff] }
  0xa0   : > { %1893 = vst [vmem:[%s13216_s26 + $0x8f0] sm:$0xff] %v1892_v30  ;;  %1895 = vst [vmem:[%s13216_s26 + $0x8f8] sm:$0xff] %v1894_v31  ;;  %v1898_v33 = vld [vmem:[%s13211_s25 + $0x1208] sm:$0xff]  ;;  %v1900_v34 = vld [vmem:[%s13211_s25 + $0x1210] sm:$0xff] }
  0xa1   : > { %1897 = vst [vmem:[%s13216_s26 + $0x900] sm:$0xff] %v1896_v32  ;;  %1899 = vst [vmem:[%s13216_s26 + $0x908] sm:$0xff] %v1898_v33  ;;  %v1902_v35 = vld [vmem:[%s13211_s25 + $0x1218] sm:$0xff]  ;;  %v1904_v36 = vld [vmem:[%s13211_s25 + $0x1220] sm:$0xff] }
  0xa2   : > { %1901 = vst [vmem:[%s13216_s26 + $0x910] sm:$0xff] %v1900_v34  ;;  %v1906_v37 = vld [vmem:[%s13211_s25 + $0x1228] sm:$0xff]  ;;  %1903 = vst [vmem:[%s13216_s26 + $0x918] sm:$0xff] %v1902_v35  ;;  %v1908_v38 = vld [vmem:[%s13211_s25 + $0x1230] sm:$0xff] }
  0xa3   : > { %1905 = vst [vmem:[%s13216_s26 + $0x920] sm:$0xff] %v1904_v36  ;;  %1907 = vst [vmem:[%s13216_s26 + $0x928] sm:$0xff] %v1906_v37  ;;  %v1910_v39 = vld [vmem:[%s13211_s25 + $0x1238] sm:$0xff]  ;;  %v1912_v40 = vld [vmem:[%s13211_s25 + $0x1240] sm:$0xff] }
  0xa4   : > { %1909 = vst [vmem:[%s13216_s26 + $0x930] sm:$0xff] %v1908_v38  ;;  %1911 = vst [vmem:[%s13216_s26 + $0x938] sm:$0xff] %v1910_v39  ;;  %v1914_v41 = vld [vmem:[%s13211_s25 + $0x1248] sm:$0xff]  ;;  %v1916_v42 = vld [vmem:[%s13211_s25 + $0x1250] sm:$0xff] }
  0xa5   : > { %1913 = vst [vmem:[%s13216_s26 + $0x940] sm:$0xff] %v1912_v40  ;;  %v1918_v43 = vld [vmem:[%s13211_s25 + $0x1258] sm:$0xff]  ;;  %1915 = vst [vmem:[%s13216_s26 + $0x948] sm:$0xff] %v1914_v41  ;;  %v1920_v44 = vld [vmem:[%s13211_s25 + $0x1260] sm:$0xff] }
  0xa6   : > { %1917 = vst [vmem:[%s13216_s26 + $0x950] sm:$0xff] %v1916_v42  ;;  %1919 = vst [vmem:[%s13216_s26 + $0x958] sm:$0xff] %v1918_v43  ;;  %v1922_v45 = vld [vmem:[%s13211_s25 + $0x1268] sm:$0xff]  ;;  %v1924_v46 = vld [vmem:[%s13211_s25 + $0x1270] sm:$0xff] }
  0xa7   : > { %1921 = vst [vmem:[%s13216_s26 + $0x960] sm:$0xff] %v1920_v44  ;;  %1923 = vst [vmem:[%s13216_s26 + $0x968] sm:$0xff] %v1922_v45  ;;  %v1926_v47 = vld [vmem:[%s13211_s25 + $0x1278] sm:$0xff]  ;;  %v1928_v48 = vld [vmem:[%s13211_s25 + $0x1280] sm:$0xff] }
  0xa8   : > { %1925 = vst [vmem:[%s13216_s26 + $0x970] sm:$0xff] %v1924_v46  ;;  %v1930_v49 = vld [vmem:[%s13211_s25 + $0x1288] sm:$0xff]  ;;  %1927 = vst [vmem:[%s13216_s26 + $0x978] sm:$0xff] %v1926_v47  ;;  %v1932_v50 = vld [vmem:[%s13211_s25 + $0x1290] sm:$0xff] }
  0xa9   : > { %1929 = vst [vmem:[%s13216_s26 + $0x980] sm:$0xff] %v1928_v48  ;;  %1931 = vst [vmem:[%s13216_s26 + $0x988] sm:$0xff] %v1930_v49  ;;  %v1934_v51 = vld [vmem:[%s13211_s25 + $0x1298] sm:$0xff]  ;;  %v1936_v52 = vld [vmem:[%s13211_s25 + $0x12a0] sm:$0xff] }
  0xaa   : > { %1933 = vst [vmem:[%s13216_s26 + $0x990] sm:$0xff] %v1932_v50  ;;  %1935 = vst [vmem:[%s13216_s26 + $0x998] sm:$0xff] %v1934_v51  ;;  %v1938_v53 = vld [vmem:[%s13211_s25 + $0x12a8] sm:$0xff]  ;;  %v1940_v54 = vld [vmem:[%s13211_s25 + $0x12b0] sm:$0xff] }
  0xab   : > { %1937 = vst [vmem:[%s13216_s26 + $0x9a0] sm:$0xff] %v1936_v52  ;;  %v1942_v55 = vld [vmem:[%s13211_s25 + $0x12b8] sm:$0xff]  ;;  %1939 = vst [vmem:[%s13216_s26 + $0x9a8] sm:$0xff] %v1938_v53  ;;  %v1944_v56 = vld [vmem:[%s13211_s25 + $0x12c0] sm:$0xff] }
  0xac   : > { %1941 = vst [vmem:[%s13216_s26 + $0x9b0] sm:$0xff] %v1940_v54  ;;  %1943 = vst [vmem:[%s13216_s26 + $0x9b8] sm:$0xff] %v1942_v55  ;;  %v1946_v57 = vld [vmem:[%s13211_s25 + $0x12c8] sm:$0xff]  ;;  %v1948_v58 = vld [vmem:[%s13211_s25 + $0x12d0] sm:$0xff] }
  0xad   : > { %1945 = vst [vmem:[%s13216_s26 + $0x9c0] sm:$0xff] %v1944_v56  ;;  %1947 = vst [vmem:[%s13216_s26 + $0x9c8] sm:$0xff] %v1946_v57  ;;  %v1950_v59 = vld [vmem:[%s13211_s25 + $0x12d8] sm:$0xff]  ;;  %v1952_v60 = vld [vmem:[%s13211_s25 + $0x12e0] sm:$0xff] }
  0xae   : > { %1949 = vst [vmem:[%s13216_s26 + $0x9d0] sm:$0xff] %v1948_v58  ;;  %v1954_v61 = vld [vmem:[%s13211_s25 + $0x12e8] sm:$0xff]  ;;  %1951 = vst [vmem:[%s13216_s26 + $0x9d8] sm:$0xff] %v1950_v59  ;;  %v1956_v62 = vld [vmem:[%s13211_s25 + $0x12f0] sm:$0xff] }
  0xaf   : > { %1953 = vst [vmem:[%s13216_s26 + $0x9e0] sm:$0xff] %v1952_v60  ;;  %1955 = vst [vmem:[%s13216_s26 + $0x9e8] sm:$0xff] %v1954_v61  ;;  %v1958_v63 = vld [vmem:[%s13211_s25 + $0x12f8] sm:$0xff]  ;;  %v1960_v0 = vld [vmem:[%s13211_s25 + $0x1300] sm:$0xff] }
  0xb0   : > { %1957 = vst [vmem:[%s13216_s26 + $0x9f0] sm:$0xff] %v1956_v62  ;;  %1959 = vst [vmem:[%s13216_s26 + $0x9f8] sm:$0xff] %v1958_v63  ;;  %v1962_v1 = vld [vmem:[%s13211_s25 + $0x1308] sm:$0xff]  ;;  %v1964_v2 = vld [vmem:[%s13211_s25 + $0x1310] sm:$0xff] }
  0xb1   : > { %1961 = vst [vmem:[%s13216_s26 + $0xa00] sm:$0xff] %v1960_v0  ;;  %v1966_v3 = vld [vmem:[%s13211_s25 + $0x1318] sm:$0xff]  ;;  %1963 = vst [vmem:[%s13216_s26 + $0xa08] sm:$0xff] %v1962_v1  ;;  %v1968_v4 = vld [vmem:[%s13211_s25 + $0x1320] sm:$0xff] }
  0xb2   : > { %1965 = vst [vmem:[%s13216_s26 + $0xa10] sm:$0xff] %v1964_v2  ;;  %1967 = vst [vmem:[%s13216_s26 + $0xa18] sm:$0xff] %v1966_v3  ;;  %v1970_v5 = vld [vmem:[%s13211_s25 + $0x1328] sm:$0xff]  ;;  %v1972_v6 = vld [vmem:[%s13211_s25 + $0x1330] sm:$0xff] }
  0xb3   : > { %1969 = vst [vmem:[%s13216_s26 + $0xa20] sm:$0xff] %v1968_v4  ;;  %1971 = vst [vmem:[%s13216_s26 + $0xa28] sm:$0xff] %v1970_v5  ;;  %v1974_v7 = vld [vmem:[%s13211_s25 + $0x1338] sm:$0xff]  ;;  %v1976_v8 = vld [vmem:[%s13211_s25 + $0x1340] sm:$0xff] }
  0xb4   : > { %1973 = vst [vmem:[%s13216_s26 + $0xa30] sm:$0xff] %v1972_v6  ;;  %v1978_v9 = vld [vmem:[%s13211_s25 + $0x1348] sm:$0xff]  ;;  %1975 = vst [vmem:[%s13216_s26 + $0xa38] sm:$0xff] %v1974_v7  ;;  %v1980_v10 = vld [vmem:[%s13211_s25 + $0x1350] sm:$0xff] }
  0xb5   : > { %1977 = vst [vmem:[%s13216_s26 + $0xa40] sm:$0xff] %v1976_v8  ;;  %1979 = vst [vmem:[%s13216_s26 + $0xa48] sm:$0xff] %v1978_v9  ;;  %v1982_v11 = vld [vmem:[%s13211_s25 + $0x1358] sm:$0xff]  ;;  %v1984_v12 = vld [vmem:[%s13211_s25 + $0x1360] sm:$0xff] }
  0xb6   : > { %1981 = vst [vmem:[%s13216_s26 + $0xa50] sm:$0xff] %v1980_v10  ;;  %1983 = vst [vmem:[%s13216_s26 + $0xa58] sm:$0xff] %v1982_v11  ;;  %v1986_v13 = vld [vmem:[%s13211_s25 + $0x1368] sm:$0xff]  ;;  %v1988_v14 = vld [vmem:[%s13211_s25 + $0x1370] sm:$0xff] }
  0xb7   : > { %1985 = vst [vmem:[%s13216_s26 + $0xa60] sm:$0xff] %v1984_v12  ;;  %v1990_v15 = vld [vmem:[%s13211_s25 + $0x1378] sm:$0xff]  ;;  %1987 = vst [vmem:[%s13216_s26 + $0xa68] sm:$0xff] %v1986_v13  ;;  %v1992_v16 = vld [vmem:[%s13211_s25 + $0x1380] sm:$0xff] }
  0xb8   : > { %1989 = vst [vmem:[%s13216_s26 + $0xa70] sm:$0xff] %v1988_v14  ;;  %1991 = vst [vmem:[%s13216_s26 + $0xa78] sm:$0xff] %v1990_v15  ;;  %v1994_v17 = vld [vmem:[%s13211_s25 + $0x1388] sm:$0xff]  ;;  %v1996_v18 = vld [vmem:[%s13211_s25 + $0x1390] sm:$0xff] }
  0xb9   : > { %1993 = vst [vmem:[%s13216_s26 + $0xa80] sm:$0xff] %v1992_v16  ;;  %1995 = vst [vmem:[%s13216_s26 + $0xa88] sm:$0xff] %v1994_v17  ;;  %v1998_v19 = vld [vmem:[%s13211_s25 + $0x1398] sm:$0xff]  ;;  %v2000_v20 = vld [vmem:[%s13211_s25 + $0x13a0] sm:$0xff] }
  0xba   : > { %1997 = vst [vmem:[%s13216_s26 + $0xa90] sm:$0xff] %v1996_v18  ;;  %v2002_v21 = vld [vmem:[%s13211_s25 + $0x13a8] sm:$0xff]  ;;  %1999 = vst [vmem:[%s13216_s26 + $0xa98] sm:$0xff] %v1998_v19  ;;  %v2004_v22 = vld [vmem:[%s13211_s25 + $0x13b0] sm:$0xff] }
  0xbb   : > { %2001 = vst [vmem:[%s13216_s26 + $0xaa0] sm:$0xff] %v2000_v20  ;;  %2003 = vst [vmem:[%s13216_s26 + $0xaa8] sm:$0xff] %v2002_v21  ;;  %v2006_v23 = vld [vmem:[%s13211_s25 + $0x13b8] sm:$0xff]  ;;  %v2008_v24 = vld [vmem:[%s13211_s25 + $0x13c0] sm:$0xff] }
  0xbc   : > { %2005 = vst [vmem:[%s13216_s26 + $0xab0] sm:$0xff] %v2004_v22  ;;  %2007 = vst [vmem:[%s13216_s26 + $0xab8] sm:$0xff] %v2006_v23  ;;  %v2010_v25 = vld [vmem:[%s13211_s25 + $0x13c8] sm:$0xff]  ;;  %v2012_v26 = vld [vmem:[%s13211_s25 + $0x13d0] sm:$0xff] }
  0xbd   : > { %2009 = vst [vmem:[%s13216_s26 + $0xac0] sm:$0xff] %v2008_v24  ;;  %v2014_v27 = vld [vmem:[%s13211_s25 + $0x13d8] sm:$0xff]  ;;  %2011 = vst [vmem:[%s13216_s26 + $0xac8] sm:$0xff] %v2010_v25  ;;  %v2016_v28 = vld [vmem:[%s13211_s25 + $0x13e0] sm:$0xff] }
  0xbe   : > { %2013 = vst [vmem:[%s13216_s26 + $0xad0] sm:$0xff] %v2012_v26  ;;  %2015 = vst [vmem:[%s13216_s26 + $0xad8] sm:$0xff] %v2014_v27  ;;  %v2018_v29 = vld [vmem:[%s13211_s25 + $0x13e8] sm:$0xff]  ;;  %v2020_v30 = vld [vmem:[%s13211_s25 + $0x13f0] sm:$0xff] }
  0xbf   : > { %2017 = vst [vmem:[%s13216_s26 + $0xae0] sm:$0xff] %v2016_v28  ;;  %2019 = vst [vmem:[%s13216_s26 + $0xae8] sm:$0xff] %v2018_v29  ;;  %v2022_v31 = vld [vmem:[%s13211_s25 + $0x13f8] sm:$0xff]  ;;  %v2024_v32 = vld [vmem:[%s13211_s25 + $0x1400] sm:$0xff] }
  0xc0   : > { %2021 = vst [vmem:[%s13216_s26 + $0xaf0] sm:$0xff] %v2020_v30  ;;  %v2026_v33 = vld [vmem:[%s13211_s25 + $0x1408] sm:$0xff]  ;;  %2023 = vst [vmem:[%s13216_s26 + $0xaf8] sm:$0xff] %v2022_v31  ;;  %v2028_v34 = vld [vmem:[%s13211_s25 + $0x1410] sm:$0xff] }
  0xc1   : > { %2025 = vst [vmem:[%s13216_s26 + $0xb00] sm:$0xff] %v2024_v32  ;;  %2027 = vst [vmem:[%s13216_s26 + $0xb08] sm:$0xff] %v2026_v33  ;;  %v2030_v35 = vld [vmem:[%s13211_s25 + $0x1418] sm:$0xff]  ;;  %v2032_v36 = vld [vmem:[%s13211_s25 + $0x1420] sm:$0xff] }
  0xc2   : > { %2029 = vst [vmem:[%s13216_s26 + $0xb10] sm:$0xff] %v2028_v34  ;;  %2031 = vst [vmem:[%s13216_s26 + $0xb18] sm:$0xff] %v2030_v35  ;;  %v2034_v37 = vld [vmem:[%s13211_s25 + $0x1428] sm:$0xff]  ;;  %v2036_v38 = vld [vmem:[%s13211_s25 + $0x1430] sm:$0xff] }
  0xc3   : > { %2033 = vst [vmem:[%s13216_s26 + $0xb20] sm:$0xff] %v2032_v36  ;;  %v2038_v39 = vld [vmem:[%s13211_s25 + $0x1438] sm:$0xff]  ;;  %2035 = vst [vmem:[%s13216_s26 + $0xb28] sm:$0xff] %v2034_v37  ;;  %v2040_v40 = vld [vmem:[%s13211_s25 + $0x1440] sm:$0xff] }
  0xc4   : > { %2037 = vst [vmem:[%s13216_s26 + $0xb30] sm:$0xff] %v2036_v38  ;;  %2039 = vst [vmem:[%s13216_s26 + $0xb38] sm:$0xff] %v2038_v39  ;;  %v2042_v41 = vld [vmem:[%s13211_s25 + $0x1448] sm:$0xff]  ;;  %v2044_v42 = vld [vmem:[%s13211_s25 + $0x1450] sm:$0xff] }
  0xc5   : > { %2041 = vst [vmem:[%s13216_s26 + $0xb40] sm:$0xff] %v2040_v40  ;;  %2043 = vst [vmem:[%s13216_s26 + $0xb48] sm:$0xff] %v2042_v41  ;;  %v2046_v43 = vld [vmem:[%s13211_s25 + $0x1458] sm:$0xff]  ;;  %v2048_v44 = vld [vmem:[%s13211_s25 + $0x1460] sm:$0xff] }
  0xc6   : > { %2045 = vst [vmem:[%s13216_s26 + $0xb50] sm:$0xff] %v2044_v42  ;;  %v2050_v45 = vld [vmem:[%s13211_s25 + $0x1468] sm:$0xff]  ;;  %2047 = vst [vmem:[%s13216_s26 + $0xb58] sm:$0xff] %v2046_v43  ;;  %v2052_v46 = vld [vmem:[%s13211_s25 + $0x1470] sm:$0xff] }
  0xc7   : > { %2049 = vst [vmem:[%s13216_s26 + $0xb60] sm:$0xff] %v2048_v44  ;;  %2051 = vst [vmem:[%s13216_s26 + $0xb68] sm:$0xff] %v2050_v45  ;;  %v2054_v47 = vld [vmem:[%s13211_s25 + $0x1478] sm:$0xff]  ;;  %v2056_v48 = vld [vmem:[%s13211_s25 + $0x1480] sm:$0xff] }
  0xc8   : > { %2053 = vst [vmem:[%s13216_s26 + $0xb70] sm:$0xff] %v2052_v46  ;;  %2055 = vst [vmem:[%s13216_s26 + $0xb78] sm:$0xff] %v2054_v47  ;;  %v2058_v49 = vld [vmem:[%s13211_s25 + $0x1488] sm:$0xff]  ;;  %v2060_v50 = vld [vmem:[%s13211_s25 + $0x1490] sm:$0xff] }
  0xc9   : > { %2057 = vst [vmem:[%s13216_s26 + $0xb80] sm:$0xff] %v2056_v48  ;;  %v2062_v51 = vld [vmem:[%s13211_s25 + $0x1498] sm:$0xff]  ;;  %2059 = vst [vmem:[%s13216_s26 + $0xb88] sm:$0xff] %v2058_v49  ;;  %v2064_v52 = vld [vmem:[%s13211_s25 + $0x14a0] sm:$0xff] }
  0xca   : > { %2061 = vst [vmem:[%s13216_s26 + $0xb90] sm:$0xff] %v2060_v50  ;;  %2063 = vst [vmem:[%s13216_s26 + $0xb98] sm:$0xff] %v2062_v51  ;;  %v2066_v53 = vld [vmem:[%s13211_s25 + $0x14a8] sm:$0xff]  ;;  %v2068_v54 = vld [vmem:[%s13211_s25 + $0x14b0] sm:$0xff] }
  0xcb   : > { %2065 = vst [vmem:[%s13216_s26 + $0xba0] sm:$0xff] %v2064_v52  ;;  %2067 = vst [vmem:[%s13216_s26 + $0xba8] sm:$0xff] %v2066_v53  ;;  %v2070_v55 = vld [vmem:[%s13211_s25 + $0x14b8] sm:$0xff]  ;;  %v2072_v56 = vld [vmem:[%s13211_s25 + $0x14c0] sm:$0xff] }
  0xcc   : > { %2069 = vst [vmem:[%s13216_s26 + $0xbb0] sm:$0xff] %v2068_v54  ;;  %v2074_v57 = vld [vmem:[%s13211_s25 + $0x14c8] sm:$0xff]  ;;  %2071 = vst [vmem:[%s13216_s26 + $0xbb8] sm:$0xff] %v2070_v55  ;;  %v2076_v58 = vld [vmem:[%s13211_s25 + $0x14d0] sm:$0xff] }
  0xcd   : > { %2073 = vst [vmem:[%s13216_s26 + $0xbc0] sm:$0xff] %v2072_v56  ;;  %2075 = vst [vmem:[%s13216_s26 + $0xbc8] sm:$0xff] %v2074_v57  ;;  %v2078_v59 = vld [vmem:[%s13211_s25 + $0x14d8] sm:$0xff]  ;;  %v2080_v60 = vld [vmem:[%s13211_s25 + $0x14e0] sm:$0xff] }
  0xce   : > { %2077 = vst [vmem:[%s13216_s26 + $0xbd0] sm:$0xff] %v2076_v58  ;;  %2079 = vst [vmem:[%s13216_s26 + $0xbd8] sm:$0xff] %v2078_v59  ;;  %v2082_v61 = vld [vmem:[%s13211_s25 + $0x14e8] sm:$0xff]  ;;  %v2084_v62 = vld [vmem:[%s13211_s25 + $0x14f0] sm:$0xff] }
  0xcf   : > { %2081 = vst [vmem:[%s13216_s26 + $0xbe0] sm:$0xff] %v2080_v60  ;;  %v2086_v63 = vld [vmem:[%s13211_s25 + $0x14f8] sm:$0xff]  ;;  %2083 = vst [vmem:[%s13216_s26 + $0xbe8] sm:$0xff] %v2082_v61  ;;  %v2088_v0 = vld [vmem:[%s13211_s25 + $0x1500] sm:$0xff] }
  0xd0   : > { %2085 = vst [vmem:[%s13216_s26 + $0xbf0] sm:$0xff] %v2084_v62  ;;  %2087 = vst [vmem:[%s13216_s26 + $0xbf8] sm:$0xff] %v2086_v63  ;;  %v2090_v1 = vld [vmem:[%s13211_s25 + $0x1508] sm:$0xff]  ;;  %v2092_v2 = vld [vmem:[%s13211_s25 + $0x1510] sm:$0xff] }
  0xd1   : > { %2089 = vst [vmem:[%s13216_s26 + $0xc00] sm:$0xff] %v2088_v0  ;;  %2091 = vst [vmem:[%s13216_s26 + $0xc08] sm:$0xff] %v2090_v1  ;;  %v2094_v3 = vld [vmem:[%s13211_s25 + $0x1518] sm:$0xff]  ;;  %v2096_v4 = vld [vmem:[%s13211_s25 + $0x1520] sm:$0xff] }
  0xd2   : > { %2093 = vst [vmem:[%s13216_s26 + $0xc10] sm:$0xff] %v2092_v2  ;;  %v2098_v5 = vld [vmem:[%s13211_s25 + $0x1528] sm:$0xff]  ;;  %2095 = vst [vmem:[%s13216_s26 + $0xc18] sm:$0xff] %v2094_v3  ;;  %v2100_v6 = vld [vmem:[%s13211_s25 + $0x1530] sm:$0xff] }
  0xd3   : > { %2097 = vst [vmem:[%s13216_s26 + $0xc20] sm:$0xff] %v2096_v4  ;;  %2099 = vst [vmem:[%s13216_s26 + $0xc28] sm:$0xff] %v2098_v5  ;;  %v2102_v7 = vld [vmem:[%s13211_s25 + $0x1538] sm:$0xff]  ;;  %v2104_v8 = vld [vmem:[%s13211_s25 + $0x1540] sm:$0xff] }
  0xd4   : > { %2101 = vst [vmem:[%s13216_s26 + $0xc30] sm:$0xff] %v2100_v6  ;;  %2103 = vst [vmem:[%s13216_s26 + $0xc38] sm:$0xff] %v2102_v7  ;;  %v2106_v9 = vld [vmem:[%s13211_s25 + $0x1548] sm:$0xff]  ;;  %v2108_v10 = vld [vmem:[%s13211_s25 + $0x1550] sm:$0xff] }
  0xd5   : > { %2105 = vst [vmem:[%s13216_s26 + $0xc40] sm:$0xff] %v2104_v8  ;;  %v2110_v11 = vld [vmem:[%s13211_s25 + $0x1558] sm:$0xff]  ;;  %2107 = vst [vmem:[%s13216_s26 + $0xc48] sm:$0xff] %v2106_v9  ;;  %v2112_v12 = vld [vmem:[%s13211_s25 + $0x1560] sm:$0xff] }
  0xd6   : > { %2109 = vst [vmem:[%s13216_s26 + $0xc50] sm:$0xff] %v2108_v10  ;;  %2111 = vst [vmem:[%s13216_s26 + $0xc58] sm:$0xff] %v2110_v11  ;;  %v2114_v13 = vld [vmem:[%s13211_s25 + $0x1568] sm:$0xff]  ;;  %v2116_v14 = vld [vmem:[%s13211_s25 + $0x1570] sm:$0xff] }
  0xd7   : > { %2113 = vst [vmem:[%s13216_s26 + $0xc60] sm:$0xff] %v2112_v12  ;;  %2115 = vst [vmem:[%s13216_s26 + $0xc68] sm:$0xff] %v2114_v13  ;;  %v2118_v15 = vld [vmem:[%s13211_s25 + $0x1578] sm:$0xff]  ;;  %v2120_v16 = vld [vmem:[%s13211_s25 + $0x1580] sm:$0xff] }
  0xd8   : > { %2117 = vst [vmem:[%s13216_s26 + $0xc70] sm:$0xff] %v2116_v14  ;;  %v2122_v17 = vld [vmem:[%s13211_s25 + $0x1588] sm:$0xff]  ;;  %2119 = vst [vmem:[%s13216_s26 + $0xc78] sm:$0xff] %v2118_v15  ;;  %v2124_v18 = vld [vmem:[%s13211_s25 + $0x1590] sm:$0xff] }
  0xd9   : > { %2121 = vst [vmem:[%s13216_s26 + $0xc80] sm:$0xff] %v2120_v16  ;;  %2123 = vst [vmem:[%s13216_s26 + $0xc88] sm:$0xff] %v2122_v17  ;;  %v2126_v19 = vld [vmem:[%s13211_s25 + $0x1598] sm:$0xff]  ;;  %v2128_v20 = vld [vmem:[%s13211_s25 + $0x15a0] sm:$0xff] }
  0xda   : > { %2125 = vst [vmem:[%s13216_s26 + $0xc90] sm:$0xff] %v2124_v18  ;;  %2127 = vst [vmem:[%s13216_s26 + $0xc98] sm:$0xff] %v2126_v19  ;;  %v2130_v21 = vld [vmem:[%s13211_s25 + $0x15a8] sm:$0xff]  ;;  %v2132_v22 = vld [vmem:[%s13211_s25 + $0x15b0] sm:$0xff] }
  0xdb   : > { %2129 = vst [vmem:[%s13216_s26 + $0xca0] sm:$0xff] %v2128_v20  ;;  %v2134_v23 = vld [vmem:[%s13211_s25 + $0x15b8] sm:$0xff]  ;;  %2131 = vst [vmem:[%s13216_s26 + $0xca8] sm:$0xff] %v2130_v21  ;;  %v2136_v24 = vld [vmem:[%s13211_s25 + $0x15c0] sm:$0xff] }
  0xdc   : > { %2133 = vst [vmem:[%s13216_s26 + $0xcb0] sm:$0xff] %v2132_v22  ;;  %2135 = vst [vmem:[%s13216_s26 + $0xcb8] sm:$0xff] %v2134_v23  ;;  %v2138_v25 = vld [vmem:[%s13211_s25 + $0x15c8] sm:$0xff]  ;;  %v2140_v26 = vld [vmem:[%s13211_s25 + $0x15d0] sm:$0xff] }
  0xdd   : > { %2137 = vst [vmem:[%s13216_s26 + $0xcc0] sm:$0xff] %v2136_v24  ;;  %2139 = vst [vmem:[%s13216_s26 + $0xcc8] sm:$0xff] %v2138_v25  ;;  %v2142_v27 = vld [vmem:[%s13211_s25 + $0x15d8] sm:$0xff]  ;;  %v2144_v28 = vld [vmem:[%s13211_s25 + $0x15e0] sm:$0xff] }
  0xde   : > { %2141 = vst [vmem:[%s13216_s26 + $0xcd0] sm:$0xff] %v2140_v26  ;;  %v2146_v29 = vld [vmem:[%s13211_s25 + $0x15e8] sm:$0xff]  ;;  %2143 = vst [vmem:[%s13216_s26 + $0xcd8] sm:$0xff] %v2142_v27  ;;  %v2148_v30 = vld [vmem:[%s13211_s25 + $0x15f0] sm:$0xff] }
  0xdf   : > { %2145 = vst [vmem:[%s13216_s26 + $0xce0] sm:$0xff] %v2144_v28  ;;  %2147 = vst [vmem:[%s13216_s26 + $0xce8] sm:$0xff] %v2146_v29  ;;  %v2150_v31 = vld [vmem:[%s13211_s25 + $0x15f8] sm:$0xff]  ;;  %v2152_v32 = vld [vmem:[%s13211_s25 + $0x1600] sm:$0xff] }
  0xe0   : > { %2149 = vst [vmem:[%s13216_s26 + $0xcf0] sm:$0xff] %v2148_v30  ;;  %2151 = vst [vmem:[%s13216_s26 + $0xcf8] sm:$0xff] %v2150_v31  ;;  %v2154_v33 = vld [vmem:[%s13211_s25 + $0x1608] sm:$0xff]  ;;  %v2156_v34 = vld [vmem:[%s13211_s25 + $0x1610] sm:$0xff] }
  0xe1   : > { %2153 = vst [vmem:[%s13216_s26 + $0xd00] sm:$0xff] %v2152_v32  ;;  %v2158_v35 = vld [vmem:[%s13211_s25 + $0x1618] sm:$0xff]  ;;  %2155 = vst [vmem:[%s13216_s26 + $0xd08] sm:$0xff] %v2154_v33  ;;  %v2160_v36 = vld [vmem:[%s13211_s25 + $0x1620] sm:$0xff] }
  0xe2   : > { %2157 = vst [vmem:[%s13216_s26 + $0xd10] sm:$0xff] %v2156_v34  ;;  %2159 = vst [vmem:[%s13216_s26 + $0xd18] sm:$0xff] %v2158_v35  ;;  %v2162_v37 = vld [vmem:[%s13211_s25 + $0x1628] sm:$0xff]  ;;  %v2164_v38 = vld [vmem:[%s13211_s25 + $0x1630] sm:$0xff] }
  0xe3   : > { %2161 = vst [vmem:[%s13216_s26 + $0xd20] sm:$0xff] %v2160_v36  ;;  %2163 = vst [vmem:[%s13216_s26 + $0xd28] sm:$0xff] %v2162_v37  ;;  %v2166_v39 = vld [vmem:[%s13211_s25 + $0x1638] sm:$0xff]  ;;  %v2168_v40 = vld [vmem:[%s13211_s25 + $0x1640] sm:$0xff] }
  0xe4   : > { %2165 = vst [vmem:[%s13216_s26 + $0xd30] sm:$0xff] %v2164_v38  ;;  %v2170_v41 = vld [vmem:[%s13211_s25 + $0x1648] sm:$0xff]  ;;  %2167 = vst [vmem:[%s13216_s26 + $0xd38] sm:$0xff] %v2166_v39  ;;  %v2172_v42 = vld [vmem:[%s13211_s25 + $0x1650] sm:$0xff] }
  0xe5   : > { %2169 = vst [vmem:[%s13216_s26 + $0xd40] sm:$0xff] %v2168_v40  ;;  %2171 = vst [vmem:[%s13216_s26 + $0xd48] sm:$0xff] %v2170_v41  ;;  %v2174_v43 = vld [vmem:[%s13211_s25 + $0x1658] sm:$0xff]  ;;  %v2176_v44 = vld [vmem:[%s13211_s25 + $0x1660] sm:$0xff] }
  0xe6   : > { %2173 = vst [vmem:[%s13216_s26 + $0xd50] sm:$0xff] %v2172_v42  ;;  %2175 = vst [vmem:[%s13216_s26 + $0xd58] sm:$0xff] %v2174_v43  ;;  %v2178_v45 = vld [vmem:[%s13211_s25 + $0x1668] sm:$0xff]  ;;  %v2180_v46 = vld [vmem:[%s13211_s25 + $0x1670] sm:$0xff] }
  0xe7   : > { %2177 = vst [vmem:[%s13216_s26 + $0xd60] sm:$0xff] %v2176_v44  ;;  %v2182_v47 = vld [vmem:[%s13211_s25 + $0x1678] sm:$0xff]  ;;  %2179 = vst [vmem:[%s13216_s26 + $0xd68] sm:$0xff] %v2178_v45  ;;  %v2184_v48 = vld [vmem:[%s13211_s25 + $0x1b00] sm:$0xff] }
  0xe8   : > { %2181 = vst [vmem:[%s13216_s26 + $0xd70] sm:$0xff] %v2180_v46  ;;  %2183 = vst [vmem:[%s13216_s26 + $0xd78] sm:$0xff] %v2182_v47  ;;  %v2186_v49 = vld [vmem:[%s13211_s25 + $0x1b08] sm:$0xff]  ;;  %v2188_v50 = vld [vmem:[%s13211_s25 + $0x1b10] sm:$0xff] }
  0xe9   : > { %2185 = vst [vmem:[%s13216_s26 + $0xd80] sm:$0xff] %v2184_v48  ;;  %2187 = vst [vmem:[%s13216_s26 + $0xd88] sm:$0xff] %v2186_v49  ;;  %v2190_v51 = vld [vmem:[%s13211_s25 + $0x1b18] sm:$0xff]  ;;  %v2192_v52 = vld [vmem:[%s13211_s25 + $0x1b20] sm:$0xff] }
  0xea   : > { %2189 = vst [vmem:[%s13216_s26 + $0xd90] sm:$0xff] %v2188_v50  ;;  %v2194_v53 = vld [vmem:[%s13211_s25 + $0x1b28] sm:$0xff]  ;;  %2191 = vst [vmem:[%s13216_s26 + $0xd98] sm:$0xff] %v2190_v51  ;;  %v2196_v54 = vld [vmem:[%s13211_s25 + $0x1b30] sm:$0xff] }
  0xeb   : > { %2193 = vst [vmem:[%s13216_s26 + $0xda0] sm:$0xff] %v2192_v52  ;;  %2195 = vst [vmem:[%s13216_s26 + $0xda8] sm:$0xff] %v2194_v53  ;;  %v2198_v55 = vld [vmem:[%s13211_s25 + $0x1b38] sm:$0xff]  ;;  %v2200_v56 = vld [vmem:[%s13211_s25 + $0x1b40] sm:$0xff] }
  0xec   : > { %2197 = vst [vmem:[%s13216_s26 + $0xdb0] sm:$0xff] %v2196_v54  ;;  %2199 = vst [vmem:[%s13216_s26 + $0xdb8] sm:$0xff] %v2198_v55  ;;  %v2202_v57 = vld [vmem:[%s13211_s25 + $0x1b48] sm:$0xff]  ;;  %v2204_v58 = vld [vmem:[%s13211_s25 + $0x1b50] sm:$0xff] }
  0xed   : > { %2201 = vst [vmem:[%s13216_s26 + $0xdc0] sm:$0xff] %v2200_v56  ;;  %v2206_v59 = vld [vmem:[%s13211_s25 + $0x1b58] sm:$0xff]  ;;  %2203 = vst [vmem:[%s13216_s26 + $0xdc8] sm:$0xff] %v2202_v57  ;;  %v2208_v60 = vld [vmem:[%s13211_s25 + $0x1b60] sm:$0xff] }
  0xee   : > { %2205 = vst [vmem:[%s13216_s26 + $0xdd0] sm:$0xff] %v2204_v58  ;;  %2207 = vst [vmem:[%s13216_s26 + $0xdd8] sm:$0xff] %v2206_v59  ;;  %v2210_v61 = vld [vmem:[%s13211_s25 + $0x1b68] sm:$0xff]  ;;  %v2212_v62 = vld [vmem:[%s13211_s25 + $0x1b70] sm:$0xff] }
  0xef   : > { %2209 = vst [vmem:[%s13216_s26 + $0xde0] sm:$0xff] %v2208_v60  ;;  %2211 = vst [vmem:[%s13216_s26 + $0xde8] sm:$0xff] %v2210_v61  ;;  %v2214_v63 = vld [vmem:[%s13211_s25 + $0x1b78] sm:$0xff]  ;;  %v2216_v0 = vld [vmem:[%s13211_s25 + $0x1b80] sm:$0xff] }
  0xf0   : > { %2213 = vst [vmem:[%s13216_s26 + $0xdf0] sm:$0xff] %v2212_v62  ;;  %v2218_v1 = vld [vmem:[%s13211_s25 + $0x1b88] sm:$0xff]  ;;  %2215 = vst [vmem:[%s13216_s26 + $0xdf8] sm:$0xff] %v2214_v63  ;;  %v2220_v2 = vld [vmem:[%s13211_s25 + $0x1b90] sm:$0xff] }
  0xf1   : > { %2217 = vst [vmem:[%s13216_s26 + $0xe00] sm:$0xff] %v2216_v0  ;;  %2219 = vst [vmem:[%s13216_s26 + $0xe08] sm:$0xff] %v2218_v1  ;;  %v2222_v3 = vld [vmem:[%s13211_s25 + $0x1b98] sm:$0xff]  ;;  %v2224_v4 = vld [vmem:[%s13211_s25 + $0x1ba0] sm:$0xff] }
  0xf2   : > { %2221 = vst [vmem:[%s13216_s26 + $0xe10] sm:$0xff] %v2220_v2  ;;  %2223 = vst [vmem:[%s13216_s26 + $0xe18] sm:$0xff] %v2222_v3  ;;  %v2226_v5 = vld [vmem:[%s13211_s25 + $0x1ba8] sm:$0xff]  ;;  %v2228_v6 = vld [vmem:[%s13211_s25 + $0x1bb0] sm:$0xff] }
  0xf3   : > { %2225 = vst [vmem:[%s13216_s26 + $0xe20] sm:$0xff] %v2224_v4  ;;  %v2230_v7 = vld [vmem:[%s13211_s25 + $0x1bb8] sm:$0xff]  ;;  %2227 = vst [vmem:[%s13216_s26 + $0xe28] sm:$0xff] %v2226_v5  ;;  %v2232_v8 = vld [vmem:[%s13211_s25 + $0x1bc0] sm:$0xff] }
  0xf4   : > { %2229 = vst [vmem:[%s13216_s26 + $0xe30] sm:$0xff] %v2228_v6  ;;  %2231 = vst [vmem:[%s13216_s26 + $0xe38] sm:$0xff] %v2230_v7  ;;  %v2234_v9 = vld [vmem:[%s13211_s25 + $0x1bc8] sm:$0xff]  ;;  %v2236_v10 = vld [vmem:[%s13211_s25 + $0x1bd0] sm:$0xff] }
  0xf5   : > { %2233 = vst [vmem:[%s13216_s26 + $0xe40] sm:$0xff] %v2232_v8  ;;  %2235 = vst [vmem:[%s13216_s26 + $0xe48] sm:$0xff] %v2234_v9  ;;  %v2238_v11 = vld [vmem:[%s13211_s25 + $0x1bd8] sm:$0xff]  ;;  %v2240_v12 = vld [vmem:[%s13211_s25 + $0x1be0] sm:$0xff] }
  0xf6   : > { %2237 = vst [vmem:[%s13216_s26 + $0xe50] sm:$0xff] %v2236_v10  ;;  %v2242_v13 = vld [vmem:[%s13211_s25 + $0x1be8] sm:$0xff]  ;;  %2239 = vst [vmem:[%s13216_s26 + $0xe58] sm:$0xff] %v2238_v11  ;;  %v2244_v14 = vld [vmem:[%s13211_s25 + $0x1bf0] sm:$0xff] }
  0xf7   : > { %2241 = vst [vmem:[%s13216_s26 + $0xe60] sm:$0xff] %v2240_v12  ;;  %2243 = vst [vmem:[%s13216_s26 + $0xe68] sm:$0xff] %v2242_v13  ;;  %v2246_v15 = vld [vmem:[%s13211_s25 + $0x1bf8] sm:$0xff]  ;;  %v2248_v16 = vld [vmem:[%s13211_s25 + $0x1c00] sm:$0xff] }
  0xf8   : > { %2245 = vst [vmem:[%s13216_s26 + $0xe70] sm:$0xff] %v2244_v14  ;;  %2247 = vst [vmem:[%s13216_s26 + $0xe78] sm:$0xff] %v2246_v15  ;;  %v2250_v17 = vld [vmem:[%s13211_s25 + $0x1c08] sm:$0xff]  ;;  %v2252_v18 = vld [vmem:[%s13211_s25 + $0x1c10] sm:$0xff] }
  0xf9   : > { %2249 = vst [vmem:[%s13216_s26 + $0xe80] sm:$0xff] %v2248_v16  ;;  %v2254_v19 = vld [vmem:[%s13211_s25 + $0x1c18] sm:$0xff]  ;;  %2251 = vst [vmem:[%s13216_s26 + $0xe88] sm:$0xff] %v2250_v17  ;;  %v2256_v20 = vld [vmem:[%s13211_s25 + $0x1c20] sm:$0xff] }
  0xfa   : > { %2253 = vst [vmem:[%s13216_s26 + $0xe90] sm:$0xff] %v2252_v18  ;;  %2255 = vst [vmem:[%s13216_s26 + $0xe98] sm:$0xff] %v2254_v19  ;;  %v2258_v21 = vld [vmem:[%s13211_s25 + $0x1c28] sm:$0xff]  ;;  %v2260_v22 = vld [vmem:[%s13211_s25 + $0x1c30] sm:$0xff] }
  0xfb   : > { %2257 = vst [vmem:[%s13216_s26 + $0xea0] sm:$0xff] %v2256_v20  ;;  %2259 = vst [vmem:[%s13216_s26 + $0xea8] sm:$0xff] %v2258_v21  ;;  %v2262_v23 = vld [vmem:[%s13211_s25 + $0x1c38] sm:$0xff]  ;;  %v2264_v24 = vld [vmem:[%s13211_s25 + $0x1c40] sm:$0xff] }
  0xfc   : > { %2261 = vst [vmem:[%s13216_s26 + $0xeb0] sm:$0xff] %v2260_v22  ;;  %v2266_v25 = vld [vmem:[%s13211_s25 + $0x1c48] sm:$0xff]  ;;  %2263 = vst [vmem:[%s13216_s26 + $0xeb8] sm:$0xff] %v2262_v23  ;;  %v2268_v26 = vld [vmem:[%s13211_s25 + $0x1c50] sm:$0xff] }
  0xfd   : > { %2265 = vst [vmem:[%s13216_s26 + $0xec0] sm:$0xff] %v2264_v24  ;;  %2267 = vst [vmem:[%s13216_s26 + $0xec8] sm:$0xff] %v2266_v25  ;;  %v2270_v27 = vld [vmem:[%s13211_s25 + $0x1c58] sm:$0xff]  ;;  %v2272_v28 = vld [vmem:[%s13211_s25 + $0x1c60] sm:$0xff] }
  0xfe   : > { %2269 = vst [vmem:[%s13216_s26 + $0xed0] sm:$0xff] %v2268_v26  ;;  %2271 = vst [vmem:[%s13216_s26 + $0xed8] sm:$0xff] %v2270_v27  ;;  %v2274_v29 = vld [vmem:[%s13211_s25 + $0x1c68] sm:$0xff]  ;;  %v2276_v30 = vld [vmem:[%s13211_s25 + $0x1c70] sm:$0xff] }
  0xff   : > { %2273 = vst [vmem:[%s13216_s26 + $0xee0] sm:$0xff] %v2272_v28  ;;  %v2278_v31 = vld [vmem:[%s13211_s25 + $0x1c78] sm:$0xff]  ;;  %2275 = vst [vmem:[%s13216_s26 + $0xee8] sm:$0xff] %v2274_v29  ;;  %v2280_v32 = vld [vmem:[%s13211_s25 + $0x1c80] sm:$0xff] }
 0x100   : > { %2277 = vst [vmem:[%s13216_s26 + $0xef0] sm:$0xff] %v2276_v30  ;;  %2279 = vst [vmem:[%s13216_s26 + $0xef8] sm:$0xff] %v2278_v31  ;;  %v2282_v33 = vld [vmem:[%s13211_s25 + $0x1c88] sm:$0xff]  ;;  %v2284_v34 = vld [vmem:[%s13211_s25 + $0x1c90] sm:$0xff] }
 0x101   : > { %2281 = vst [vmem:[%s13216_s26 + $0xf00] sm:$0xff] %v2280_v32  ;;  %2283 = vst [vmem:[%s13216_s26 + $0xf08] sm:$0xff] %v2282_v33  ;;  %v2286_v35 = vld [vmem:[%s13211_s25 + $0x1c98] sm:$0xff]  ;;  %v2288_v36 = vld [vmem:[%s13211_s25 + $0x1ca0] sm:$0xff] }
 0x102   : > { %2285 = vst [vmem:[%s13216_s26 + $0xf10] sm:$0xff] %v2284_v34  ;;  %v2290_v37 = vld [vmem:[%s13211_s25 + $0x1ca8] sm:$0xff]  ;;  %2287 = vst [vmem:[%s13216_s26 + $0xf18] sm:$0xff] %v2286_v35  ;;  %v2292_v38 = vld [vmem:[%s13211_s25 + $0x1cb0] sm:$0xff] }
 0x103   : > { %2289 = vst [vmem:[%s13216_s26 + $0xf20] sm:$0xff] %v2288_v36  ;;  %2291 = vst [vmem:[%s13216_s26 + $0xf28] sm:$0xff] %v2290_v37  ;;  %v2294_v39 = vld [vmem:[%s13211_s25 + $0x1cb8] sm:$0xff]  ;;  %v2296_v40 = vld [vmem:[%s13211_s25 + $0x1cc0] sm:$0xff] }
 0x104   : > { %2293 = vst [vmem:[%s13216_s26 + $0xf30] sm:$0xff] %v2292_v38  ;;  %2295 = vst [vmem:[%s13216_s26 + $0xf38] sm:$0xff] %v2294_v39  ;;  %v2298_v41 = vld [vmem:[%s13211_s25 + $0x1cc8] sm:$0xff]  ;;  %v2300_v42 = vld [vmem:[%s13211_s25 + $0x1cd0] sm:$0xff] }
 0x105   : > { %2297 = vst [vmem:[%s13216_s26 + $0xf40] sm:$0xff] %v2296_v40  ;;  %v2302_v43 = vld [vmem:[%s13211_s25 + $0x1cd8] sm:$0xff]  ;;  %2299 = vst [vmem:[%s13216_s26 + $0xf48] sm:$0xff] %v2298_v41  ;;  %v2304_v44 = vld [vmem:[%s13211_s25 + $0x1ce0] sm:$0xff] }
 0x106   : > { %2301 = vst [vmem:[%s13216_s26 + $0xf50] sm:$0xff] %v2300_v42  ;;  %2303 = vst [vmem:[%s13216_s26 + $0xf58] sm:$0xff] %v2302_v43  ;;  %v2306_v45 = vld [vmem:[%s13211_s25 + $0x1ce8] sm:$0xff]  ;;  %v2308_v46 = vld [vmem:[%s13211_s25 + $0x1cf0] sm:$0xff] }
 0x107   : > { %2305 = vst [vmem:[%s13216_s26 + $0xf60] sm:$0xff] %v2304_v44  ;;  %2307 = vst [vmem:[%s13216_s26 + $0xf68] sm:$0xff] %v2306_v45  ;;  %v2310_v47 = vld [vmem:[%s13211_s25 + $0x1cf8] sm:$0xff]  ;;  %v2312_v48 = vld [vmem:[%s13211_s25 + $0x1d00] sm:$0xff] }
 0x108   : > { %2309 = vst [vmem:[%s13216_s26 + $0xf70] sm:$0xff] %v2308_v46  ;;  %v2314_v49 = vld [vmem:[%s13211_s25 + $0x1d08] sm:$0xff]  ;;  %2311 = vst [vmem:[%s13216_s26 + $0xf78] sm:$0xff] %v2310_v47  ;;  %v2316_v50 = vld [vmem:[%s13211_s25 + $0x1d10] sm:$0xff] }
 0x109   : > { %2313 = vst [vmem:[%s13216_s26 + $0xf80] sm:$0xff] %v2312_v48  ;;  %2315 = vst [vmem:[%s13216_s26 + $0xf88] sm:$0xff] %v2314_v49  ;;  %v2318_v51 = vld [vmem:[%s13211_s25 + $0x1d18] sm:$0xff]  ;;  %v2320_v52 = vld [vmem:[%s13211_s25 + $0x1d20] sm:$0xff] }
 0x10a   : > { %2317 = vst [vmem:[%s13216_s26 + $0xf90] sm:$0xff] %v2316_v50  ;;  %2319 = vst [vmem:[%s13216_s26 + $0xf98] sm:$0xff] %v2318_v51  ;;  %v2322_v53 = vld [vmem:[%s13211_s25 + $0x1d28] sm:$0xff]  ;;  %v2324_v54 = vld [vmem:[%s13211_s25 + $0x1d30] sm:$0xff] }
 0x10b   : > { %2321 = vst [vmem:[%s13216_s26 + $0xfa0] sm:$0xff] %v2320_v52  ;;  %v2326_v55 = vld [vmem:[%s13211_s25 + $0x1d38] sm:$0xff]  ;;  %2323 = vst [vmem:[%s13216_s26 + $0xfa8] sm:$0xff] %v2322_v53  ;;  %v2328_v56 = vld [vmem:[%s13211_s25 + $0x1d40] sm:$0xff] }
 0x10c   : > { %2325 = vst [vmem:[%s13216_s26 + $0xfb0] sm:$0xff] %v2324_v54  ;;  %2327 = vst [vmem:[%s13216_s26 + $0xfb8] sm:$0xff] %v2326_v55  ;;  %v2330_v57 = vld [vmem:[%s13211_s25 + $0x1d48] sm:$0xff]  ;;  %v2332_v58 = vld [vmem:[%s13211_s25 + $0x1d50] sm:$0xff] }
 0x10d   : > { %2329 = vst [vmem:[%s13216_s26 + $0xfc0] sm:$0xff] %v2328_v56  ;;  %2331 = vst [vmem:[%s13216_s26 + $0xfc8] sm:$0xff] %v2330_v57  ;;  %v2334_v59 = vld [vmem:[%s13211_s25 + $0x1d58] sm:$0xff]  ;;  %v2336_v60 = vld [vmem:[%s13211_s25 + $0x1d60] sm:$0xff] }
 0x10e   : > { %2333 = vst [vmem:[%s13216_s26 + $0xfd0] sm:$0xff] %v2332_v58  ;;  %v2338_v61 = vld [vmem:[%s13211_s25 + $0x1d68] sm:$0xff]  ;;  %2335 = vst [vmem:[%s13216_s26 + $0xfd8] sm:$0xff] %v2334_v59  ;;  %v2340_v62 = vld [vmem:[%s13211_s25 + $0x1d70] sm:$0xff] }
 0x10f   : > { %2337 = vst [vmem:[%s13216_s26 + $0xfe0] sm:$0xff] %v2336_v60  ;;  %2339 = vst [vmem:[%s13216_s26 + $0xfe8] sm:$0xff] %v2338_v61  ;;  %v2342_v63 = vld [vmem:[%s13211_s25 + $0x1d78] sm:$0xff]  ;;  %v2344_v0 = vld [vmem:[%s13211_s25 + $0x1d80] sm:$0xff] }
 0x110   : > { %2341 = vst [vmem:[%s13216_s26 + $0xff0] sm:$0xff] %v2340_v62  ;;  %2343 = vst [vmem:[%s13216_s26 + $0xff8] sm:$0xff] %v2342_v63  ;;  %v2346_v1 = vld [vmem:[%s13211_s25 + $0x1d88] sm:$0xff]  ;;  %v2348_v2 = vld [vmem:[%s13211_s25 + $0x1d90] sm:$0xff] }
 0x111   : > { %2345 = vst [vmem:[%s13216_s26 + $0x1000] sm:$0xff] %v2344_v0  ;;  %v2350_v3 = vld [vmem:[%s13211_s25 + $0x1d98] sm:$0xff]  ;;  %2347 = vst [vmem:[%s13216_s26 + $0x1008] sm:$0xff] %v2346_v1  ;;  %v2352_v4 = vld [vmem:[%s13211_s25 + $0x1da0] sm:$0xff] }
 0x112   : > { %2349 = vst [vmem:[%s13216_s26 + $0x1010] sm:$0xff] %v2348_v2  ;;  %2351 = vst [vmem:[%s13216_s26 + $0x1018] sm:$0xff] %v2350_v3  ;;  %v2354_v5 = vld [vmem:[%s13211_s25 + $0x1da8] sm:$0xff]  ;;  %v2356_v6 = vld [vmem:[%s13211_s25 + $0x1db0] sm:$0xff] }
 0x113   : > { %2353 = vst [vmem:[%s13216_s26 + $0x1020] sm:$0xff] %v2352_v4  ;;  %2355 = vst [vmem:[%s13216_s26 + $0x1028] sm:$0xff] %v2354_v5  ;;  %v2358_v7 = vld [vmem:[%s13211_s25 + $0x1db8] sm:$0xff]  ;;  %v2360_v8 = vld [vmem:[%s13211_s25 + $0x1dc0] sm:$0xff] }
 0x114   : > { %2357 = vst [vmem:[%s13216_s26 + $0x1030] sm:$0xff] %v2356_v6  ;;  %v2362_v9 = vld [vmem:[%s13211_s25 + $0x1dc8] sm:$0xff]  ;;  %2359 = vst [vmem:[%s13216_s26 + $0x1038] sm:$0xff] %v2358_v7  ;;  %v2364_v10 = vld [vmem:[%s13211_s25 + $0x1dd0] sm:$0xff] }
 0x115   : > { %2361 = vst [vmem:[%s13216_s26 + $0x1040] sm:$0xff] %v2360_v8  ;;  %2363 = vst [vmem:[%s13216_s26 + $0x1048] sm:$0xff] %v2362_v9  ;;  %v2366_v11 = vld [vmem:[%s13211_s25 + $0x1dd8] sm:$0xff]  ;;  %v2368_v12 = vld [vmem:[%s13211_s25 + $0x1de0] sm:$0xff] }
 0x116   : > { %2365 = vst [vmem:[%s13216_s26 + $0x1050] sm:$0xff] %v2364_v10  ;;  %2367 = vst [vmem:[%s13216_s26 + $0x1058] sm:$0xff] %v2366_v11  ;;  %v2370_v13 = vld [vmem:[%s13211_s25 + $0x1de8] sm:$0xff]  ;;  %v2372_v14 = vld [vmem:[%s13211_s25 + $0x1df0] sm:$0xff] }
 0x117   : > { %2369 = vst [vmem:[%s13216_s26 + $0x1060] sm:$0xff] %v2368_v12  ;;  %v2374_v15 = vld [vmem:[%s13211_s25 + $0x1df8] sm:$0xff]  ;;  %2371 = vst [vmem:[%s13216_s26 + $0x1068] sm:$0xff] %v2370_v13  ;;  %v2376_v16 = vld [vmem:[%s13211_s25 + $0x1e00] sm:$0xff] }
 0x118   : > { %2373 = vst [vmem:[%s13216_s26 + $0x1070] sm:$0xff] %v2372_v14  ;;  %2375 = vst [vmem:[%s13216_s26 + $0x1078] sm:$0xff] %v2374_v15  ;;  %v2378_v17 = vld [vmem:[%s13211_s25 + $0x1e08] sm:$0xff]  ;;  %v2380_v18 = vld [vmem:[%s13211_s25 + $0x1e10] sm:$0xff] }
 0x119   : > { %2377 = vst [vmem:[%s13216_s26 + $0x1080] sm:$0xff] %v2376_v16  ;;  %2379 = vst [vmem:[%s13216_s26 + $0x1088] sm:$0xff] %v2378_v17  ;;  %v2382_v19 = vld [vmem:[%s13211_s25 + $0x1e18] sm:$0xff]  ;;  %v2384_v20 = vld [vmem:[%s13211_s25 + $0x1e20] sm:$0xff] }
 0x11a   : > { %2381 = vst [vmem:[%s13216_s26 + $0x1090] sm:$0xff] %v2380_v18  ;;  %v2386_v21 = vld [vmem:[%s13211_s25 + $0x1e28] sm:$0xff]  ;;  %2383 = vst [vmem:[%s13216_s26 + $0x1098] sm:$0xff] %v2382_v19  ;;  %v2388_v22 = vld [vmem:[%s13211_s25 + $0x1e30] sm:$0xff] }
 0x11b   : > { %2385 = vst [vmem:[%s13216_s26 + $0x10a0] sm:$0xff] %v2384_v20  ;;  %2387 = vst [vmem:[%s13216_s26 + $0x10a8] sm:$0xff] %v2386_v21  ;;  %v2390_v23 = vld [vmem:[%s13211_s25 + $0x1e38] sm:$0xff]  ;;  %v2392_v24 = vld [vmem:[%s13211_s25 + $0x1e40] sm:$0xff] }
 0x11c   : > { %2389 = vst [vmem:[%s13216_s26 + $0x10b0] sm:$0xff] %v2388_v22  ;;  %2391 = vst [vmem:[%s13216_s26 + $0x10b8] sm:$0xff] %v2390_v23  ;;  %v2394_v25 = vld [vmem:[%s13211_s25 + $0x1e48] sm:$0xff]  ;;  %v2396_v26 = vld [vmem:[%s13211_s25 + $0x1e50] sm:$0xff] }
 0x11d   : > { %2393 = vst [vmem:[%s13216_s26 + $0x10c0] sm:$0xff] %v2392_v24  ;;  %v2398_v27 = vld [vmem:[%s13211_s25 + $0x1e58] sm:$0xff]  ;;  %2395 = vst [vmem:[%s13216_s26 + $0x10c8] sm:$0xff] %v2394_v25  ;;  %v2400_v28 = vld [vmem:[%s13211_s25 + $0x1e60] sm:$0xff] }
 0x11e   : > { %2397 = vst [vmem:[%s13216_s26 + $0x10d0] sm:$0xff] %v2396_v26  ;;  %2399 = vst [vmem:[%s13216_s26 + $0x10d8] sm:$0xff] %v2398_v27  ;;  %v2402_v29 = vld [vmem:[%s13211_s25 + $0x1e68] sm:$0xff]  ;;  %v2404_v30 = vld [vmem:[%s13211_s25 + $0x1e70] sm:$0xff] }
 0x11f   : > { %2401 = vst [vmem:[%s13216_s26 + $0x10e0] sm:$0xff] %v2400_v28  ;;  %2403 = vst [vmem:[%s13216_s26 + $0x10e8] sm:$0xff] %v2402_v29  ;;  %v2406_v31 = vld [vmem:[%s13211_s25 + $0x1e78] sm:$0xff]  ;;  %v2408_v32 = vld [vmem:[%s13211_s25 + $0x1e80] sm:$0xff] }
 0x120   : > { %2405 = vst [vmem:[%s13216_s26 + $0x10f0] sm:$0xff] %v2404_v30  ;;  %v2410_v33 = vld [vmem:[%s13211_s25 + $0x1e88] sm:$0xff]  ;;  %2407 = vst [vmem:[%s13216_s26 + $0x10f8] sm:$0xff] %v2406_v31  ;;  %v2412_v34 = vld [vmem:[%s13211_s25 + $0x1e90] sm:$0xff] }
 0x121   : > { %2409 = vst [vmem:[%s13216_s26 + $0x1100] sm:$0xff] %v2408_v32  ;;  %2411 = vst [vmem:[%s13216_s26 + $0x1108] sm:$0xff] %v2410_v33  ;;  %v2414_v35 = vld [vmem:[%s13211_s25 + $0x1e98] sm:$0xff]  ;;  %v2416_v36 = vld [vmem:[%s13211_s25 + $0x1ea0] sm:$0xff] }
 0x122   : > { %2413 = vst [vmem:[%s13216_s26 + $0x1110] sm:$0xff] %v2412_v34  ;;  %2415 = vst [vmem:[%s13216_s26 + $0x1118] sm:$0xff] %v2414_v35  ;;  %v2418_v37 = vld [vmem:[%s13211_s25 + $0x1ea8] sm:$0xff]  ;;  %v2420_v38 = vld [vmem:[%s13211_s25 + $0x1eb0] sm:$0xff] }
 0x123   : > { %2417 = vst [vmem:[%s13216_s26 + $0x1120] sm:$0xff] %v2416_v36  ;;  %v2422_v39 = vld [vmem:[%s13211_s25 + $0x1eb8] sm:$0xff]  ;;  %2419 = vst [vmem:[%s13216_s26 + $0x1128] sm:$0xff] %v2418_v37  ;;  %v2424_v40 = vld [vmem:[%s13211_s25 + $0x1ec0] sm:$0xff] }
 0x124   : > { %2421 = vst [vmem:[%s13216_s26 + $0x1130] sm:$0xff] %v2420_v38  ;;  %2423 = vst [vmem:[%s13216_s26 + $0x1138] sm:$0xff] %v2422_v39  ;;  %v2426_v41 = vld [vmem:[%s13211_s25 + $0x1ec8] sm:$0xff]  ;;  %v2428_v42 = vld [vmem:[%s13211_s25 + $0x1ed0] sm:$0xff] }
 0x125   : > { %2425 = vst [vmem:[%s13216_s26 + $0x1140] sm:$0xff] %v2424_v40  ;;  %2427 = vst [vmem:[%s13216_s26 + $0x1148] sm:$0xff] %v2426_v41  ;;  %v2430_v43 = vld [vmem:[%s13211_s25 + $0x1ed8] sm:$0xff]  ;;  %v2432_v44 = vld [vmem:[%s13211_s25 + $0x1ee0] sm:$0xff] }
 0x126   : > { %2429 = vst [vmem:[%s13216_s26 + $0x1150] sm:$0xff] %v2428_v42  ;;  %v2434_v45 = vld [vmem:[%s13211_s25 + $0x1ee8] sm:$0xff]  ;;  %2431 = vst [vmem:[%s13216_s26 + $0x1158] sm:$0xff] %v2430_v43  ;;  %v2436_v46 = vld [vmem:[%s13211_s25 + $0x1ef0] sm:$0xff] }
 0x127   : > { %2433 = vst [vmem:[%s13216_s26 + $0x1160] sm:$0xff] %v2432_v44  ;;  %2435 = vst [vmem:[%s13216_s26 + $0x1168] sm:$0xff] %v2434_v45  ;;  %v2438_v47 = vld [vmem:[%s13211_s25 + $0x1ef8] sm:$0xff]  ;;  %v2440_v48 = vld [vmem:[%s13211_s25 + $0x1f00] sm:$0xff] }
 0x128   : > { %2437 = vst [vmem:[%s13216_s26 + $0x1170] sm:$0xff] %v2436_v46  ;;  %2439 = vst [vmem:[%s13216_s26 + $0x1178] sm:$0xff] %v2438_v47  ;;  %v2442_v49 = vld [vmem:[%s13211_s25 + $0x1f08] sm:$0xff]  ;;  %v2444_v50 = vld [vmem:[%s13211_s25 + $0x1f10] sm:$0xff] }
 0x129   : > { %2441 = vst [vmem:[%s13216_s26 + $0x1180] sm:$0xff] %v2440_v48  ;;  %v2446_v51 = vld [vmem:[%s13211_s25 + $0x1f18] sm:$0xff]  ;;  %2443 = vst [vmem:[%s13216_s26 + $0x1188] sm:$0xff] %v2442_v49  ;;  %v2448_v52 = vld [vmem:[%s13211_s25 + $0x1f20] sm:$0xff] }
 0x12a   : > { %2445 = vst [vmem:[%s13216_s26 + $0x1190] sm:$0xff] %v2444_v50  ;;  %2447 = vst [vmem:[%s13216_s26 + $0x1198] sm:$0xff] %v2446_v51  ;;  %v2450_v53 = vld [vmem:[%s13211_s25 + $0x1f28] sm:$0xff]  ;;  %v2452_v54 = vld [vmem:[%s13211_s25 + $0x1f30] sm:$0xff] }
 0x12b   : > { %2449 = vst [vmem:[%s13216_s26 + $0x11a0] sm:$0xff] %v2448_v52  ;;  %2451 = vst [vmem:[%s13216_s26 + $0x11a8] sm:$0xff] %v2450_v53  ;;  %v2454_v55 = vld [vmem:[%s13211_s25 + $0x1f38] sm:$0xff]  ;;  %v2456_v56 = vld [vmem:[%s13211_s25 + $0x1f40] sm:$0xff] }
 0x12c   : > { %2453 = vst [vmem:[%s13216_s26 + $0x11b0] sm:$0xff] %v2452_v54  ;;  %v2458_v57 = vld [vmem:[%s13211_s25 + $0x1f48] sm:$0xff]  ;;  %2455 = vst [vmem:[%s13216_s26 + $0x11b8] sm:$0xff] %v2454_v55  ;;  %v2460_v58 = vld [vmem:[%s13211_s25 + $0x1f50] sm:$0xff] }
 0x12d   : > { %2457 = vst [vmem:[%s13216_s26 + $0x11c0] sm:$0xff] %v2456_v56  ;;  %2459 = vst [vmem:[%s13216_s26 + $0x11c8] sm:$0xff] %v2458_v57  ;;  %v2462_v59 = vld [vmem:[%s13211_s25 + $0x1f58] sm:$0xff]  ;;  %v2464_v60 = vld [vmem:[%s13211_s25 + $0x1f60] sm:$0xff] }
 0x12e   : > { %2461 = vst [vmem:[%s13216_s26 + $0x11d0] sm:$0xff] %v2460_v58  ;;  %2463 = vst [vmem:[%s13216_s26 + $0x11d8] sm:$0xff] %v2462_v59  ;;  %v2466_v61 = vld [vmem:[%s13211_s25 + $0x1f68] sm:$0xff]  ;;  %v2468_v62 = vld [vmem:[%s13211_s25 + $0x1f70] sm:$0xff] }
 0x12f   : > { %2465 = vst [vmem:[%s13216_s26 + $0x11e0] sm:$0xff] %v2464_v60  ;;  %v2470_v63 = vld [vmem:[%s13211_s25 + $0x1f78] sm:$0xff]  ;;  %2467 = vst [vmem:[%s13216_s26 + $0x11e8] sm:$0xff] %v2466_v61 }
 0x130   : > { %2469 = vst [vmem:[%s13216_s26 + $0x11f0] sm:$0xff] %v2468_v62  ;;  %2471 = vst [vmem:[%s13216_s26 + $0x11f8] sm:$0xff] %v2470_v63 }
 0x131 PF: > { %p11062_p5 = scmp.ge.s32.totalorder %s13155_s14, 1  ;;  %p4817_p6 = scmp.lt.s32.totalorder %s13155_s14, 3 }
 0x133   : > { %p4818_p7 = pnand %p11062_p5, %p4817_p6 }
 0x135   : > { %4821 = sbr.rel (%p4818_p7) target bundleno = 1101 (0x44d), region = 80 }
 0x13a   : > { %v5433_v0 = vld [vmem:[%s16868_s1 + $0x18] sm:$0x1]  ;;  %vm7163_vm0 = vcmask 1040384   ;;  %v5432_v1 = vld [vmem:[%s16868_s1 + $0x10] sm:$0xff]  ;;  %s4824_s4 = sand.u32 1, %s13147_s12   ;;  %v5431_v2 = vld [vmem:[%s16868_s1 + $0x8] sm:$0xff] }
 0x13b   : > { %12224 = vmatprep.subr.msk.mxu0 %vm7163_vm0, %v5433_v0  ;;  %13096 = vmatprep.subr.msk.mxu1 %vm7163_vm0, %v5433_v0  ;;  %s13106_s5 = smul.u32 4608, %s4824_s4  ;;  %v5430_v3 = vld [vmem:[%s16868_s1] sm:$0xff]  ;;  %vm5434_vm1 = vcmask 203776   ;;  %vm10839_vm2 = vcmask 80896  }
 0x13c   : > { %12225 = vmatpush3.msk.msra.mxu0 %vm7163_vm0, %v5433_v0  ;;  %13100 = vmatpush3.msk.msra.mxu1 %vm7163_vm0, %v5433_v0  ;;  %s4848_s11 = smul.u32 144, %s11055_s15 }
 0x13d   : > { %12226 = vmatprep.subr.mxu0 %v5432_v1  ;;  %13097 = vmatprep.subr.mxu1 %v5432_v1  ;;  %s14382_s10 = scalar_lea.vmem [#allocation2], %s13106_s5 }
 0x13e   : > { %12227 = vmatpush3.msra.mxu0 %v5432_v1  ;;  %13101 = vmatpush3.msra.mxu1 %v5432_v1  ;;  %v4854_v4 = vld [vmem:[%s14382_s10] sm:$0xff]  ;;  %v4855_v6 = vld [vmem:[%s14382_s10 + $0x8] sm:$0xff]  ;;  %v4856_v8 = vld [vmem:[%s14382_s10 + $0x10] sm:$0xff]  ;;  %p4849_p8 = scmp.lt.s32.totalorder %s4848_s11, 287 }
 0x13f   : > { %12228 = vmatprep.subr.mxu0 %v5431_v2  ;;  %13098 = vmatprep.subr.mxu1 %v5431_v2  ;;  %v5142_v5 = vld [vmem:[%s14382_s10 + $0x900] sm:$0xff]  ;;  %v5143_v7 = vld [vmem:[%s14382_s10 + $0x908] sm:$0xff]  ;;  %v5144_v9 = vld [vmem:[%s14382_s10 + $0x910] sm:$0xff] }
 0x140   : > { %12229 = vmatpush3.msra.mxu0 %v5431_v2  ;;  %13102 = vmatpush3.msra.mxu1 %v5431_v2  ;;  %v4857_v10 = vld [vmem:[%s14382_s10 + $0x18] sm:$0xff]  ;;  %v4858_v12 = vld [vmem:[%s14382_s10 + $0x20] sm:$0xff]  ;;  %v4859_v14 = vld [vmem:[%s14382_s10 + $0x28] sm:$0xff]  ;;  %s17353_s11 = smov (!%p4849_p8, %s4848_s11), 287 }
 0x141   : > { %12230 = vmatprep.subr.mxu0 %v5430_v3  ;;  %13099 = vmatprep.subr.mxu1 %v5430_v3  ;;  %v5145_v11 = vld [vmem:[%s14382_s10 + $0x918] sm:$0xff]  ;;  %v5146_v13 = vld [vmem:[%s14382_s10 + $0x920] sm:$0xff]  ;;  %v5147_v15 = vld [vmem:[%s14382_s10 + $0x928] sm:$0xff]  ;;  %s11063_s15 = sshll.u32 %s17353_s11, 3 }
 0x142   : > { %12231 = vmatpush3.msra.mxu0 %v5430_v3  ;;  %13103 = vmatpush3.msra.mxu1 %v5430_v3  ;;  %v4860_v16 = vld [vmem:[%s14382_s10 + $0x30] sm:$0xff]  ;;  %v4861_v18 = vld [vmem:[%s14382_s10 + $0x38] sm:$0xff]  ;;  %v4862_v20 = vld [vmem:[%s14382_s10 + $0x40] sm:$0xff]  ;;  %s15961_s20 = scalar_lea.vmem %s16870_s3, %s11063_s15 }
 0x143   : > { %12232 = vmatprep.mubr.msk.f32.mxu0 %vm5434_vm1, %v4854_v4  ;;  %12664 = vmatprep.mubr.msk.f32.mxu1 %vm5434_vm1, %v5142_v5  ;;  %v5148_v17 = vld [vmem:[%s14382_s10 + $0x930] sm:$0xff]  ;;  %v5149_v19 = vld [vmem:[%s14382_s10 + $0x938] sm:$0xff]  ;;  %v5150_v21 = vld [vmem:[%s14382_s10 + $0x940] sm:$0xff] }
 0x144   : > { %12233 = vmatmul.mubr.msk.f32.vlgmr.msra.gmra.mxu0 %vm5434_vm1, %v4855_v6  ;;  %12665 = vmatmul.mubr.msk.f32.vlgmr.msra.gmra.mxu1 %vm5434_vm1, %v5143_v7  ;;  %v4863_v22 = vld [vmem:[%s14382_s10 + $0x48] sm:$0xff]  ;;  %v4864_v24 = vld [vmem:[%s14382_s10 + $0x50] sm:$0xff]  ;;  %v4865_v26 = vld [vmem:[%s14382_s10 + $0x58] sm:$0xff] }
 0x145   : > { %12235 = vmatprep.mubr.msk.f32.mxu0 %vm5434_vm1, %v4856_v8  ;;  %12667 = vmatprep.mubr.msk.f32.mxu1 %vm5434_vm1, %v5144_v9  ;;  %v5151_v23 = vld [vmem:[%s14382_s10 + $0x948] sm:$0xff]  ;;  %v5152_v25 = vld [vmem:[%s14382_s10 + $0x950] sm:$0xff]  ;;  %v5153_v27 = vld [vmem:[%s14382_s10 + $0x958] sm:$0xff] }
 0x146   : > { %v4866_v28 = vld [vmem:[%s14382_s10 + $0x60] sm:$0xff]  ;;  %v4867_v30 = vld [vmem:[%s14382_s10 + $0x68] sm:$0xff]  ;;  %v4868_v32 = vld [vmem:[%s14382_s10 + $0x70] sm:$0xff] }
 0x147   : > { %v5154_v29 = vld [vmem:[%s14382_s10 + $0x960] sm:$0xff]  ;;  %v5155_v31 = vld [vmem:[%s14382_s10 + $0x968] sm:$0xff]  ;;  %v5156_v33 = vld [vmem:[%s14382_s10 + $0x970] sm:$0xff] }
 0x148   : > { %12236 = vmatmul.mubr.msk.f32.gmra.mxu0 %vm5434_vm1, %v4857_v10  ;;  %12668 = vmatmul.mubr.msk.f32.gmra.mxu1 %vm5434_vm1, %v5145_v11  ;;  %v4869_v34 = vld [vmem:[%s14382_s10 + $0x78] sm:$0xff]  ;;  %v4870_v36 = vld [vmem:[%s14382_s10 + $0x80] sm:$0xff]  ;;  %v4871_v38 = vld [vmem:[%s14382_s10 + $0x88] sm:$0xff] }
 0x149   : > { %12238 = vmatprep.mubr.msk.f32.mxu0 %vm5434_vm1, %v4858_v12  ;;  %12670 = vmatprep.mubr.msk.f32.mxu1 %vm5434_vm1, %v5146_v13  ;;  %v5157_v35 = vld [vmem:[%s14382_s10 + $0x978] sm:$0xff]  ;;  %v5158_v37 = vld [vmem:[%s14382_s10 + $0x980] sm:$0xff]  ;;  %v5159_v39 = vld [vmem:[%s14382_s10 + $0x988] sm:$0xff] }
 0x14a   : > { %v4872_v40 = vld [vmem:[%s14382_s10 + $0x90] sm:$0xff]  ;;  %v4873_v42 = vld [vmem:[%s14382_s10 + $0x98] sm:$0xff]  ;;  %v4874_v44 = vld [vmem:[%s14382_s10 + $0xa0] sm:$0xff] }
 0x14b   : > { %v5160_v41 = vld [vmem:[%s14382_s10 + $0x990] sm:$0xff]  ;;  %v5161_v43 = vld [vmem:[%s14382_s10 + $0x998] sm:$0xff]  ;;  %v5162_v45 = vld [vmem:[%s14382_s10 + $0x9a0] sm:$0xff] }
 0x14c   : > { %12239 = vmatmul.mubr.msk.f32.gmra.mxu0 %vm5434_vm1, %v4859_v14  ;;  %12671 = vmatmul.mubr.msk.f32.gmra.mxu1 %vm5434_vm1, %v5147_v15  ;;  %v4875_v46 = vld [vmem:[%s14382_s10 + $0xa8] sm:$0xff]  ;;  %v4876_v48 = vld [vmem:[%s14382_s10 + $0xb0] sm:$0xff]  ;;  %v4877_v50 = vld [vmem:[%s14382_s10 + $0xb8] sm:$0xff] }
 0x14d   : > { %12241 = vmatprep.mubr.msk.f32.mxu0 %vm5434_vm1, %v4860_v16  ;;  %12673 = vmatprep.mubr.msk.f32.mxu1 %vm5434_vm1, %v5148_v17  ;;  %v5163_v47 = vld [vmem:[%s14382_s10 + $0x9a8] sm:$0xff]  ;;  %v5164_v49 = vld [vmem:[%s14382_s10 + $0x9b0] sm:$0xff]  ;;  %v5165_v51 = vld [vmem:[%s14382_s10 + $0x9b8] sm:$0xff] }
 0x14e   : > { %v4878_v52 = vld [vmem:[%s14382_s10 + $0xc0] sm:$0xff]  ;;  %v4879_v54 = vld [vmem:[%s14382_s10 + $0xc8] sm:$0xff]  ;;  %v4880_v56 = vld [vmem:[%s14382_s10 + $0xd0] sm:$0xff] }
 0x14f   : > { %v5166_v53 = vld [vmem:[%s14382_s10 + $0x9c0] sm:$0xff]  ;;  %v5167_v55 = vld [vmem:[%s14382_s10 + $0x9c8] sm:$0xff]  ;;  %v5168_v57 = vld [vmem:[%s14382_s10 + $0x9d0] sm:$0xff] }
 0x150   : > { %12242 = vmatmul.mubr.msk.f32.gmra.mxu0 %vm5434_vm1, %v4861_v18  ;;  %12674 = vmatmul.mubr.msk.f32.gmra.mxu1 %vm5434_vm1, %v5149_v19  ;;  %v4881_v58 = vld [vmem:[%s14382_s10 + $0xd8] sm:$0xff]  ;;  %v4882_v60 = vld [vmem:[%s14382_s10 + $0xe0] sm:$0xff]  ;;  %v4883_v62 = vld [vmem:[%s14382_s10 + $0xe8] sm:$0xff] }
 0x151   : > { %12244 = vmatprep.mubr.msk.f32.mxu0 %vm5434_vm1, %v4862_v20  ;;  %12676 = vmatprep.mubr.msk.f32.mxu1 %vm5434_vm1, %v5150_v21  ;;  %v5169_v59 = vld [vmem:[%s14382_s10 + $0x9d8] sm:$0xff]  ;;  %v5170_v61 = vld [vmem:[%s14382_s10 + $0x9e0] sm:$0xff]  ;;  %v5171_v63 = vld [vmem:[%s14382_s10 + $0x9e8] sm:$0xff] }
 0x152   : > { %v4884_v0 = vld [vmem:[%s14382_s10 + $0xf0] sm:$0xff]  ;;  %v4885_v2 = vld [vmem:[%s14382_s10 + $0xf8] sm:$0xff]  ;;  %v4886_v4 = vld [vmem:[%s14382_s10 + $0x100] sm:$0xff] }
 0x153   : > { %v5172_v1 = vld [vmem:[%s14382_s10 + $0x9f0] sm:$0xff]  ;;  %v5173_v3 = vld [vmem:[%s14382_s10 + $0x9f8] sm:$0xff]  ;;  %v5174_v5 = vld [vmem:[%s14382_s10 + $0xa00] sm:$0xff] }
 0x154   : > { %12245 = vmatmul.mubr.msk.f32.gmra.mxu0 %vm5434_vm1, %v4863_v22  ;;  %12677 = vmatmul.mubr.msk.f32.gmra.mxu1 %vm5434_vm1, %v5151_v23  ;;  %v4887_v6 = vld [vmem:[%s14382_s10 + $0x108] sm:$0xff]  ;;  %v4888_v8 = vld [vmem:[%s14382_s10 + $0x110] sm:$0xff]  ;;  %v4889_v10 = vld [vmem:[%s14382_s10 + $0x118] sm:$0xff] }
 0x155   : > { %12247 = vmatprep.mubr.msk.f32.mxu0 %vm5434_vm1, %v4864_v24  ;;  %12679 = vmatprep.mubr.msk.f32.mxu1 %vm5434_vm1, %v5152_v25  ;;  %v5175_v7 = vld [vmem:[%s14382_s10 + $0xa08] sm:$0xff]  ;;  %v5176_v9 = vld [vmem:[%s14382_s10 + $0xa10] sm:$0xff]  ;;  %v5177_v11 = vld [vmem:[%s14382_s10 + $0xa18] sm:$0xff] }
 0x156   : > { %v4890_v12 = vld [vmem:[%s14382_s10 + $0x120] sm:$0xff]  ;;  %v4891_v14 = vld [vmem:[%s14382_s10 + $0x128] sm:$0xff]  ;;  %v4892_v16 = vld [vmem:[%s14382_s10 + $0x130] sm:$0xff] }
 0x157   : > { %v5178_v13 = vld [vmem:[%s14382_s10 + $0xa20] sm:$0xff]  ;;  %v5179_v15 = vld [vmem:[%s14382_s10 + $0xa28] sm:$0xff]  ;;  %v5180_v17 = vld [vmem:[%s14382_s10 + $0xa30] sm:$0xff] }
 0x158   : > { %12248 = vmatmul.mubr.msk.f32.gmra.mxu0 %vm5434_vm1, %v4865_v26  ;;  %12680 = vmatmul.mubr.msk.f32.gmra.mxu1 %vm5434_vm1, %v5153_v27  ;;  %v4893_v18 = vld [vmem:[%s14382_s10 + $0x138] sm:$0xff]  ;;  %v4894_v20 = vld [vmem:[%s14382_s10 + $0x140] sm:$0xff]  ;;  %v4895_v22 = vld [vmem:[%s14382_s10 + $0x148] sm:$0xff] }
 0x159   : > { %12250 = vmatprep.mubr.msk.f32.mxu0 %vm5434_vm1, %v4866_v28  ;;  %12682 = vmatprep.mubr.msk.f32.mxu1 %vm5434_vm1, %v5154_v29  ;;  %v5181_v19 = vld [vmem:[%s14382_s10 + $0xa38] sm:$0xff]  ;;  %v5182_v21 = vld [vmem:[%s14382_s10 + $0xa40] sm:$0xff]  ;;  %v5183_v23 = vld [vmem:[%s14382_s10 + $0xa48] sm:$0xff] }
 0x15a   : > { %v4896_v24 = vld [vmem:[%s14382_s10 + $0x150] sm:$0xff]  ;;  %v4897_v26 = vld [vmem:[%s14382_s10 + $0x158] sm:$0xff]  ;;  %v4898_v28 = vld [vmem:[%s14382_s10 + $0x160] sm:$0xff] }
 0x15b   : > { %v5184_v25 = vld [vmem:[%s14382_s10 + $0xa50] sm:$0xff]  ;;  %v5185_v27 = vld [vmem:[%s14382_s10 + $0xa58] sm:$0xff]  ;;  %v5186_v29 = vld [vmem:[%s14382_s10 + $0xa60] sm:$0xff] }
 0x15c   : > { %12251 = vmatmul.mubr.msk.f32.gmra.mxu0 %vm5434_vm1, %v4867_v30  ;;  %12683 = vmatmul.mubr.msk.f32.gmra.mxu1 %vm5434_vm1, %v5155_v31  ;;  %v4899_v30 = vld [vmem:[%s14382_s10 + $0x168] sm:$0xff] }
 0x15d   : > { %12253 = vmatprep.mubr.msk.f32.mxu0 %vm5434_vm1, %v4868_v32  ;;  %12685 = vmatprep.mubr.msk.f32.mxu1 %vm5434_vm1, %v5156_v33  ;;  %v5187_v31 = vld [vmem:[%s14382_s10 + $0xa68] sm:$0xff]  ;;  %v4900_v32 = vld [vmem:[%s14382_s10 + $0x170] sm:$0xff] }
 0x15e   : > { %v5188_v33 = vld [vmem:[%s14382_s10 + $0xa70] sm:$0xff] }
 0x160   : > { %12254 = vmatmul.mubr.msk.f32.gmra.mxu0 %vm5434_vm1, %v4869_v34  ;;  %12686 = vmatmul.mubr.msk.f32.gmra.mxu1 %vm5434_vm1, %v5157_v35  ;;  %v4901_v34 = vld [vmem:[%s14382_s10 + $0x178] sm:$0xff] }
 0x161   : > { %12256 = vmatprep.mubr.msk.f32.mxu0 %vm5434_vm1, %v4870_v36  ;;  %12688 = vmatprep.mubr.msk.f32.mxu1 %vm5434_vm1, %v5158_v37  ;;  %v5189_v35 = vld [vmem:[%s14382_s10 + $0xa78] sm:$0xff]  ;;  %v4902_v36 = vld [vmem:[%s14382_s10 + $0x180] sm:$0xff] }
 0x162   : > { %v5190_v37 = vld [vmem:[%s14382_s10 + $0xa80] sm:$0xff] }
 0x164   : > { %12257 = vmatmul.mubr.msk.f32.gmra.mxu0 %vm5434_vm1, %v4871_v38  ;;  %12689 = vmatmul.mubr.msk.f32.gmra.mxu1 %vm5434_vm1, %v5159_v39  ;;  %v4903_v38 = vld [vmem:[%s14382_s10 + $0x188] sm:$0xff] }
 0x165   : > { %12259 = vmatprep.mubr.msk.f32.mxu0 %vm5434_vm1, %v4872_v40  ;;  %12691 = vmatprep.mubr.msk.f32.mxu1 %vm5434_vm1, %v5160_v41  ;;  %v5191_v39 = vld [vmem:[%s14382_s10 + $0xa88] sm:$0xff]  ;;  %v4904_v40 = vld [vmem:[%s14382_s10 + $0x190] sm:$0xff] }
 0x166   : > { %v5192_v41 = vld [vmem:[%s14382_s10 + $0xa90] sm:$0xff] }
 0x168   : > { %12260 = vmatmul.mubr.msk.f32.gmra.mxu0 %vm5434_vm1, %v4873_v42  ;;  %12692 = vmatmul.mubr.msk.f32.gmra.mxu1 %vm5434_vm1, %v5161_v43  ;;  %v4905_v42 = vld [vmem:[%s14382_s10 + $0x198] sm:$0xff] }
 0x169   : > { %12262 = vmatprep.mubr.msk.f32.mxu0 %vm5434_vm1, %v4874_v44  ;;  %12694 = vmatprep.mubr.msk.f32.mxu1 %vm5434_vm1, %v5162_v45  ;;  %v5193_v43 = vld [vmem:[%s14382_s10 + $0xa98] sm:$0xff]  ;;  %v4906_v44 = vld [vmem:[%s14382_s10 + $0x1a0] sm:$0xff] }
 0x16a   : > { %v5194_v45 = vld [vmem:[%s14382_s10 + $0xaa0] sm:$0xff] }
 0x16c   : > { %12263 = vmatmul.mubr.msk.f32.gmra.mxu0 %vm5434_vm1, %v4875_v46  ;;  %12695 = vmatmul.mubr.msk.f32.gmra.mxu1 %vm5434_vm1, %v5163_v47  ;;  %v4907_v46 = vld [vmem:[%s14382_s10 + $0x1a8] sm:$0xff] }
 0x16d   : > { %12265 = vmatprep.mubr.msk.f32.mxu0 %vm5434_vm1, %v4876_v48  ;;  %12697 = vmatprep.mubr.msk.f32.mxu1 %vm5434_vm1, %v5164_v49  ;;  %v5195_v47 = vld [vmem:[%s14382_s10 + $0xaa8] sm:$0xff]  ;;  %v4908_v48 = vld [vmem:[%s14382_s10 + $0x1b0] sm:$0xff] }
 0x16e   : > { %v5196_v49 = vld [vmem:[%s14382_s10 + $0xab0] sm:$0xff] }
 0x170   : > { %12266 = vmatmul.mubr.msk.f32.gmra.mxu0 %vm5434_vm1, %v4877_v50  ;;  %12698 = vmatmul.mubr.msk.f32.gmra.mxu1 %vm5434_vm1, %v5165_v51  ;;  %v4909_v50 = vld [vmem:[%s14382_s10 + $0x1b8] sm:$0xff] }
 0x171   : > { %12268 = vmatprep.mubr.msk.f32.mxu0 %vm5434_vm1, %v4878_v52  ;;  %12700 = vmatprep.mubr.msk.f32.mxu1 %vm5434_vm1, %v5166_v53  ;;  %v5197_v51 = vld [vmem:[%s14382_s10 + $0xab8] sm:$0xff]  ;;  %v4910_v52 = vld [vmem:[%s14382_s10 + $0x1c0] sm:$0xff] }
 0x172   : > { %v5198_v53 = vld [vmem:[%s14382_s10 + $0xac0] sm:$0xff] }
 0x174   : > { %12269 = vmatmul.mubr.msk.f32.gmra.mxu0 %vm5434_vm1, %v4879_v54  ;;  %12701 = vmatmul.mubr.msk.f32.gmra.mxu1 %vm5434_vm1, %v5167_v55  ;;  %v4911_v54 = vld [vmem:[%s14382_s10 + $0x1c8] sm:$0xff] }
 0x175   : > { %12271 = vmatprep.mubr.msk.f32.mxu0 %vm5434_vm1, %v4880_v56  ;;  %12703 = vmatprep.mubr.msk.f32.mxu1 %vm5434_vm1, %v5168_v57  ;;  %v5199_v55 = vld [vmem:[%s14382_s10 + $0xac8] sm:$0xff]  ;;  %v4912_v56 = vld [vmem:[%s14382_s10 + $0x1d0] sm:$0xff] }
 0x176   : > { %v5200_v57 = vld [vmem:[%s14382_s10 + $0xad0] sm:$0xff] }
 0x178   : > { %12272 = vmatmul.mubr.msk.f32.gmra.mxu0 %vm5434_vm1, %v4881_v58  ;;  %12704 = vmatmul.mubr.msk.f32.gmra.mxu1 %vm5434_vm1, %v5169_v59  ;;  %v4913_v58 = vld [vmem:[%s14382_s10 + $0x1d8] sm:$0xff] }
 0x179   : > { %12274 = vmatprep.mubr.msk.f32.mxu0 %vm5434_vm1, %v4882_v60  ;;  %12706 = vmatprep.mubr.msk.f32.mxu1 %vm5434_vm1, %v5170_v61  ;;  %v5201_v59 = vld [vmem:[%s14382_s10 + $0xad8] sm:$0xff]  ;;  %v4914_v60 = vld [vmem:[%s14382_s10 + $0x1e0] sm:$0xff] }
 0x17a   : > { %v5202_v61 = vld [vmem:[%s14382_s10 + $0xae0] sm:$0xff] }
 0x17c   : > { %12275 = vmatmul.mubr.msk.f32.gmra.mxu0 %vm5434_vm1, %v4883_v62  ;;  %12707 = vmatmul.mubr.msk.f32.gmra.mxu1 %vm5434_vm1, %v5171_v63  ;;  %v4915_v62 = vld [vmem:[%s14382_s10 + $0x1e8] sm:$0xff] }
 0x17d   : > { %12277 = vmatprep.mubr.msk.f32.mxu0 %vm5434_vm1, %v4884_v0  ;;  %12709 = vmatprep.mubr.msk.f32.mxu1 %vm5434_vm1, %v5172_v1  ;;  %v5203_v63 = vld [vmem:[%s14382_s10 + $0xae8] sm:$0xff]  ;;  %v4916_v0 = vld [vmem:[%s14382_s10 + $0x1f0] sm:$0xff] }
 0x17e   : > { %v5204_v1 = vld [vmem:[%s14382_s10 + $0xaf0] sm:$0xff] }
 0x180   : > { %12278 = vmatmul.mubr.msk.f32.gmra.mxu0 %vm5434_vm1, %v4885_v2  ;;  %12710 = vmatmul.mubr.msk.f32.gmra.mxu1 %vm5434_vm1, %v5173_v3  ;;  %v4917_v2 = vld [vmem:[%s14382_s10 + $0x1f8] sm:$0xff] }
 0x181   : > { %12280 = vmatprep.mubr.msk.f32.mxu0 %vm5434_vm1, %v4886_v4  ;;  %12712 = vmatprep.mubr.msk.f32.mxu1 %vm5434_vm1, %v5174_v5  ;;  %v5205_v3 = vld [vmem:[%s14382_s10 + $0xaf8] sm:$0xff]  ;;  %v4918_v4 = vld [vmem:[%s14382_s10 + $0x200] sm:$0xff] }
 0x182   : > { %v5206_v5 = vld [vmem:[%s14382_s10 + $0xb00] sm:$0xff] }
 0x184   : > { %12281 = vmatmul.mubr.msk.f32.gmra.mxu0 %vm5434_vm1, %v4887_v6  ;;  %12713 = vmatmul.mubr.msk.f32.gmra.mxu1 %vm5434_vm1, %v5175_v7  ;;  %v4919_v6 = vld [vmem:[%s14382_s10 + $0x208] sm:$0xff] }
 0x185   : > { %12283 = vmatprep.mubr.msk.f32.mxu0 %vm5434_vm1, %v4888_v8  ;;  %12715 = vmatprep.mubr.msk.f32.mxu1 %vm5434_vm1, %v5176_v9  ;;  %v5207_v7 = vld [vmem:[%s14382_s10 + $0xb08] sm:$0xff]  ;;  %v4920_v8 = vld [vmem:[%s14382_s10 + $0x210] sm:$0xff] }
 0x186   : > { %v5208_v9 = vld [vmem:[%s14382_s10 + $0xb10] sm:$0xff] }
 0x188   : > { %12284 = vmatmul.mubr.msk.f32.gmra.mxu0 %vm5434_vm1, %v4889_v10  ;;  %12716 = vmatmul.mubr.msk.f32.gmra.mxu1 %vm5434_vm1, %v5177_v11  ;;  %v4921_v10 = vld [vmem:[%s14382_s10 + $0x218] sm:$0xff] }
 0x189   : > { %12286 = vmatprep.mubr.msk.f32.mxu0 %vm5434_vm1, %v4890_v12  ;;  %12718 = vmatprep.mubr.msk.f32.mxu1 %vm5434_vm1, %v5178_v13  ;;  %v5209_v11 = vld [vmem:[%s14382_s10 + $0xb18] sm:$0xff]  ;;  %v4922_v12 = vld [vmem:[%s14382_s10 + $0x220] sm:$0xff] }
 0x18a   : > { %v5210_v13 = vld [vmem:[%s14382_s10 + $0xb20] sm:$0xff] }
 0x18c   : > { %12287 = vmatmul.mubr.msk.f32.gmra.mxu0 %vm5434_vm1, %v4891_v14  ;;  %12719 = vmatmul.mubr.msk.f32.gmra.mxu1 %vm5434_vm1, %v5179_v15  ;;  %v4923_v14 = vld [vmem:[%s14382_s10 + $0x228] sm:$0xff] }
 0x18d   : > { %12289 = vmatprep.mubr.msk.f32.mxu0 %vm5434_vm1, %v4892_v16  ;;  %12721 = vmatprep.mubr.msk.f32.mxu1 %vm5434_vm1, %v5180_v17  ;;  %v5211_v15 = vld [vmem:[%s14382_s10 + $0xb28] sm:$0xff]  ;;  %v4924_v16 = vld [vmem:[%s14382_s10 + $0x230] sm:$0xff] }
 0x18e   : > { %v5212_v17 = vld [vmem:[%s14382_s10 + $0xb30] sm:$0xff] }
 0x190   : > { %12290 = vmatmul.mubr.msk.f32.gmra.mxu0 %vm5434_vm1, %v4893_v18  ;;  %12722 = vmatmul.mubr.msk.f32.gmra.mxu1 %vm5434_vm1, %v5181_v19  ;;  %v4925_v18 = vld [vmem:[%s14382_s10 + $0x238] sm:$0xff] }
 0x191   : > { %12292 = vmatprep.mubr.msk.f32.mxu0 %vm5434_vm1, %v4894_v20  ;;  %12724 = vmatprep.mubr.msk.f32.mxu1 %vm5434_vm1, %v5182_v21  ;;  %v5213_v19 = vld [vmem:[%s14382_s10 + $0xb38] sm:$0xff]  ;;  %v4926_v20 = vld [vmem:[%s14382_s10 + $0x240] sm:$0xff] }
 0x192   : > { %v5214_v21 = vld [vmem:[%s14382_s10 + $0xb40] sm:$0xff] }
 0x194   : > { %12293 = vmatmul.mubr.msk.f32.gmra.mxu0 %vm5434_vm1, %v4895_v22  ;;  %12725 = vmatmul.mubr.msk.f32.gmra.mxu1 %vm5434_vm1, %v5183_v23  ;;  %v4927_v22 = vld [vmem:[%s14382_s10 + $0x248] sm:$0xff] }
 0x195   : > { %12295 = vmatprep.mubr.msk.f32.mxu0 %vm5434_vm1, %v4896_v24  ;;  %12727 = vmatprep.mubr.msk.f32.mxu1 %vm5434_vm1, %v5184_v25  ;;  %v5215_v23 = vld [vmem:[%s14382_s10 + $0xb48] sm:$0xff]  ;;  %v4928_v24 = vld [vmem:[%s14382_s10 + $0x250] sm:$0xff] }
 0x196   : > { %v5216_v25 = vld [vmem:[%s14382_s10 + $0xb50] sm:$0xff] }
 0x198   : > { %12296 = vmatmul.mubr.msk.f32.gmra.mxu0 %vm5434_vm1, %v4897_v26  ;;  %12728 = vmatmul.mubr.msk.f32.gmra.mxu1 %vm5434_vm1, %v5185_v27  ;;  %v4929_v26 = vld [vmem:[%s14382_s10 + $0x258] sm:$0xff] }
 0x199   : > { %12298 = vmatprep.mubr.msk.f32.mxu0 %vm5434_vm1, %v4898_v28  ;;  %12730 = vmatprep.mubr.msk.f32.mxu1 %vm5434_vm1, %v5186_v29  ;;  %v5217_v27 = vld [vmem:[%s14382_s10 + $0xb58] sm:$0xff]  ;;  %v4930_v28 = vld [vmem:[%s14382_s10 + $0x260] sm:$0xff] }
 0x19a   : > { %v5218_v29 = vld [vmem:[%s14382_s10 + $0xb60] sm:$0xff] }
 0x19c   : > { %12299 = vmatmul.mubr.msk.f32.gmra.mxu0 %vm5434_vm1, %v4899_v30  ;;  %12731 = vmatmul.mubr.msk.f32.gmra.mxu1 %vm5434_vm1, %v5187_v31  ;;  %v4931_v30 = vld [vmem:[%s14382_s10 + $0x268] sm:$0xff] }
 0x19d   : > { %12301 = vmatprep.mubr.msk.f32.mxu0 %vm5434_vm1, %v4900_v32  ;;  %12733 = vmatprep.mubr.msk.f32.mxu1 %vm5434_vm1, %v5188_v33  ;;  %v5219_v31 = vld [vmem:[%s14382_s10 + $0xb68] sm:$0xff]  ;;  %v4932_v32 = vld [vmem:[%s14382_s10 + $0x270] sm:$0xff] }
 0x19e   : > { %v5220_v33 = vld [vmem:[%s14382_s10 + $0xb70] sm:$0xff] }
 0x1a0   : > { %12302 = vmatmul.mubr.msk.f32.gmra.mxu0 %vm5434_vm1, %v4901_v34  ;;  %12734 = vmatmul.mubr.msk.f32.gmra.mxu1 %vm5434_vm1, %v5189_v35  ;;  %v4933_v34 = vld [vmem:[%s14382_s10 + $0x278] sm:$0xff] }
 0x1a1   : > { %12304 = vmatprep.mubr.msk.f32.mxu0 %vm5434_vm1, %v4902_v36  ;;  %12736 = vmatprep.mubr.msk.f32.mxu1 %vm5434_vm1, %v5190_v37  ;;  %v5221_v35 = vld [vmem:[%s14382_s10 + $0xb78] sm:$0xff]  ;;  %v4934_v36 = vld [vmem:[%s14382_s10 + $0x280] sm:$0xff] }
 0x1a2   : > { %v5222_v37 = vld [vmem:[%s14382_s10 + $0xb80] sm:$0xff] }
 0x1a4   : > { %12305 = vmatmul.mubr.msk.f32.gmra.mxu0 %vm5434_vm1, %v4903_v38  ;;  %12737 = vmatmul.mubr.msk.f32.gmra.mxu1 %vm5434_vm1, %v5191_v39  ;;  %v4935_v38 = vld [vmem:[%s14382_s10 + $0x288] sm:$0xff] }
 0x1a5   : > { %12307 = vmatprep.mubr.msk.f32.mxu0 %vm5434_vm1, %v4904_v40  ;;  %12739 = vmatprep.mubr.msk.f32.mxu1 %vm5434_vm1, %v5192_v41  ;;  %v5223_v39 = vld [vmem:[%s14382_s10 + $0xb88] sm:$0xff]  ;;  %v4936_v40 = vld [vmem:[%s14382_s10 + $0x290] sm:$0xff] }
 0x1a6   : > { %v5224_v41 = vld [vmem:[%s14382_s10 + $0xb90] sm:$0xff] }
 0x1a8   : > { %12308 = vmatmul.mubr.msk.f32.gmra.mxu0 %vm5434_vm1, %v4905_v42  ;;  %12740 = vmatmul.mubr.msk.f32.gmra.mxu1 %vm5434_vm1, %v5193_v43  ;;  %v4937_v42 = vld [vmem:[%s14382_s10 + $0x298] sm:$0xff] }
 0x1a9   : > { %12310 = vmatprep.mubr.msk.f32.mxu0 %vm5434_vm1, %v4906_v44  ;;  %12742 = vmatprep.mubr.msk.f32.mxu1 %vm5434_vm1, %v5194_v45  ;;  %v5225_v43 = vld [vmem:[%s14382_s10 + $0xb98] sm:$0xff]  ;;  %v4938_v44 = vld [vmem:[%s14382_s10 + $0x2a0] sm:$0xff] }
 0x1aa   : > { %v5226_v45 = vld [vmem:[%s14382_s10 + $0xba0] sm:$0xff] }
 0x1ac   : > { %12311 = vmatmul.mubr.msk.f32.gmra.mxu0 %vm5434_vm1, %v4907_v46  ;;  %12743 = vmatmul.mubr.msk.f32.gmra.mxu1 %vm5434_vm1, %v5195_v47  ;;  %v4939_v46 = vld [vmem:[%s14382_s10 + $0x2a8] sm:$0xff] }
 0x1ad   : > { %12313 = vmatprep.mubr.msk.f32.mxu0 %vm5434_vm1, %v4908_v48  ;;  %12745 = vmatprep.mubr.msk.f32.mxu1 %vm5434_vm1, %v5196_v49  ;;  %v5227_v47 = vld [vmem:[%s14382_s10 + $0xba8] sm:$0xff]  ;;  %v4940_v48 = vld [vmem:[%s14382_s10 + $0x2b0] sm:$0xff] }
 0x1ae   : > { %v5228_v49 = vld [vmem:[%s14382_s10 + $0xbb0] sm:$0xff] }
 0x1b0   : > { %12314 = vmatmul.mubr.msk.f32.gmra.mxu0 %vm5434_vm1, %v4909_v50  ;;  %12746 = vmatmul.mubr.msk.f32.gmra.mxu1 %vm5434_vm1, %v5197_v51  ;;  %v4941_v50 = vld [vmem:[%s14382_s10 + $0x2b8] sm:$0xff] }
 0x1b1   : > { %12316 = vmatprep.mubr.msk.f32.mxu0 %vm5434_vm1, %v4910_v52  ;;  %12748 = vmatprep.mubr.msk.f32.mxu1 %vm5434_vm1, %v5198_v53  ;;  %v5229_v51 = vld [vmem:[%s14382_s10 + $0xbb8] sm:$0xff]  ;;  %v4942_v52 = vld [vmem:[%s14382_s10 + $0x2c0] sm:$0xff] }
 0x1b2   : > { %v5230_v53 = vld [vmem:[%s14382_s10 + $0xbc0] sm:$0xff] }
 0x1b4   : > { %12317 = vmatmul.mubr.msk.f32.gmra.mxu0 %vm5434_vm1, %v4911_v54  ;;  %12749 = vmatmul.mubr.msk.f32.gmra.mxu1 %vm5434_vm1, %v5199_v55  ;;  %v4943_v54 = vld [vmem:[%s14382_s10 + $0x2c8] sm:$0xff] }
 0x1b5   : > { %12319 = vmatprep.mubr.msk.f32.mxu0 %vm5434_vm1, %v4912_v56  ;;  %12751 = vmatprep.mubr.msk.f32.mxu1 %vm5434_vm1, %v5200_v57  ;;  %v5231_v55 = vld [vmem:[%s14382_s10 + $0xbc8] sm:$0xff]  ;;  %v4944_v56 = vld [vmem:[%s14382_s10 + $0x2d0] sm:$0xff] }
 0x1b6   : > { %v5232_v57 = vld [vmem:[%s14382_s10 + $0xbd0] sm:$0xff] }
 0x1b8   : > { %12320 = vmatmul.mubr.msk.f32.gmra.mxu0 %vm5434_vm1, %v4913_v58  ;;  %12752 = vmatmul.mubr.msk.f32.gmra.mxu1 %vm5434_vm1, %v5201_v59  ;;  %v4945_v58 = vld [vmem:[%s14382_s10 + $0x2d8] sm:$0xff] }
 0x1b9   : > { %12322 = vmatprep.mubr.msk.f32.mxu0 %vm5434_vm1, %v4914_v60  ;;  %12754 = vmatprep.mubr.msk.f32.mxu1 %vm5434_vm1, %v5202_v61  ;;  %v5233_v59 = vld [vmem:[%s14382_s10 + $0xbd8] sm:$0xff]  ;;  %v4946_v60 = vld [vmem:[%s14382_s10 + $0x2e0] sm:$0xff] }
 0x1ba   : > { %v5234_v61 = vld [vmem:[%s14382_s10 + $0xbe0] sm:$0xff] }
 0x1bc   : > { %12323 = vmatmul.mubr.msk.f32.gmra.mxu0 %vm5434_vm1, %v4915_v62  ;;  %12755 = vmatmul.mubr.msk.f32.gmra.mxu1 %vm5434_vm1, %v5203_v63  ;;  %v4947_v62 = vld [vmem:[%s14382_s10 + $0x2e8] sm:$0xff] }
 0x1bd   : > { %12325 = vmatprep.mubr.msk.f32.mxu0 %vm5434_vm1, %v4916_v0  ;;  %12757 = vmatprep.mubr.msk.f32.mxu1 %vm5434_vm1, %v5204_v1  ;;  %v5235_v63 = vld [vmem:[%s14382_s10 + $0xbe8] sm:$0xff]  ;;  %v4948_v0 = vld [vmem:[%s14382_s10 + $0x2f0] sm:$0xff] }
 0x1be   : > { %v5236_v1 = vld [vmem:[%s14382_s10 + $0xbf0] sm:$0xff] }
 0x1c0   : > { %12326 = vmatmul.mubr.msk.f32.gmra.mxu0 %vm5434_vm1, %v4917_v2  ;;  %12758 = vmatmul.mubr.msk.f32.gmra.mxu1 %vm5434_vm1, %v5205_v3  ;;  %v4949_v2 = vld [vmem:[%s14382_s10 + $0x2f8] sm:$0xff] }
 0x1c1   : > { %12328 = vmatprep.mubr.msk.f32.mxu0 %vm5434_vm1, %v4918_v4  ;;  %12760 = vmatprep.mubr.msk.f32.mxu1 %vm5434_vm1, %v5206_v5  ;;  %v5237_v3 = vld [vmem:[%s14382_s10 + $0xbf8] sm:$0xff]  ;;  %v4950_v4 = vld [vmem:[%s14382_s10 + $0x300] sm:$0xff] }
 0x1c2   : > { %v5238_v5 = vld [vmem:[%s14382_s10 + $0xc00] sm:$0xff] }
 0x1c4   : > { %12329 = vmatmul.mubr.msk.f32.gmra.mxu0 %vm5434_vm1, %v4919_v6  ;;  %12761 = vmatmul.mubr.msk.f32.gmra.mxu1 %vm5434_vm1, %v5207_v7  ;;  %v4951_v6 = vld [vmem:[%s14382_s10 + $0x308] sm:$0xff] }
 0x1c5   : > { %12331 = vmatprep.mubr.msk.f32.mxu0 %vm5434_vm1, %v4920_v8  ;;  %12763 = vmatprep.mubr.msk.f32.mxu1 %vm5434_vm1, %v5208_v9  ;;  %v5239_v7 = vld [vmem:[%s14382_s10 + $0xc08] sm:$0xff]  ;;  %v4952_v8 = vld [vmem:[%s14382_s10 + $0x310] sm:$0xff] }
 0x1c6   : > { %v5240_v9 = vld [vmem:[%s14382_s10 + $0xc10] sm:$0xff] }
 0x1c8   : > { %12332 = vmatmul.mubr.msk.f32.gmra.mxu0 %vm5434_vm1, %v4921_v10  ;;  %12764 = vmatmul.mubr.msk.f32.gmra.mxu1 %vm5434_vm1, %v5209_v11 }
 0x1c9   : > { %12334 = vmatprep.mubr.msk.f32.mxu0 %vm5434_vm1, %v4922_v12  ;;  %12766 = vmatprep.mubr.msk.f32.mxu1 %vm5434_vm1, %v5210_v13  ;;  %v4953_v12 = vld [vmem:[%s14382_s10 + $0x318] sm:$0xff] }
 0x1ca   : > { %v5241_v13 = vld [vmem:[%s14382_s10 + $0xc18] sm:$0xff] }
 0x1cc   : > { %12335 = vmatmul.mubr.msk.f32.gmra.mxu0 %vm5434_vm1, %v4923_v14  ;;  %12767 = vmatmul.mubr.msk.f32.gmra.mxu1 %vm5434_vm1, %v5211_v15 }
 0x1cd   : > { %12337 = vmatprep.mubr.msk.f32.mxu0 %vm5434_vm1, %v4924_v16  ;;  %12769 = vmatprep.mubr.msk.f32.mxu1 %vm5434_vm1, %v5212_v17  ;;  %v4954_v16 = vld [vmem:[%s14382_s10 + $0x320] sm:$0xff] }
 0x1ce   : > { %v5242_v17 = vld [vmem:[%s14382_s10 + $0xc20] sm:$0xff] }
 0x1d0   : > { %12338 = vmatmul.mubr.msk.f32.gmra.mxu0 %vm5434_vm1, %v4925_v18  ;;  %12770 = vmatmul.mubr.msk.f32.gmra.mxu1 %vm5434_vm1, %v5213_v19 }
 0x1d1   : > { %12340 = vmatprep.mubr.msk.f32.mxu0 %vm5434_vm1, %v4926_v20  ;;  %12772 = vmatprep.mubr.msk.f32.mxu1 %vm5434_vm1, %v5214_v21  ;;  %v4955_v20 = vld [vmem:[%s14382_s10 + $0x328] sm:$0xff] }
 0x1d2   : > { %v5243_v21 = vld [vmem:[%s14382_s10 + $0xc28] sm:$0xff] }
 0x1d4   : > { %12341 = vmatmul.mubr.msk.f32.gmra.mxu0 %vm5434_vm1, %v4927_v22  ;;  %12773 = vmatmul.mubr.msk.f32.gmra.mxu1 %vm5434_vm1, %v5215_v23 }
 0x1d5   : > { %12343 = vmatprep.mubr.msk.f32.mxu0 %vm5434_vm1, %v4928_v24  ;;  %12775 = vmatprep.mubr.msk.f32.mxu1 %vm5434_vm1, %v5216_v25  ;;  %v4956_v24 = vld [vmem:[%s14382_s10 + $0x330] sm:$0xff] }
 0x1d6   : > { %v5244_v25 = vld [vmem:[%s14382_s10 + $0xc30] sm:$0xff] }
 0x1d8   : > { %12344 = vmatmul.mubr.msk.f32.gmra.mxu0 %vm5434_vm1, %v4929_v26  ;;  %12776 = vmatmul.mubr.msk.f32.gmra.mxu1 %vm5434_vm1, %v5217_v27 }
 0x1d9   : > { %12346 = vmatprep.mubr.msk.f32.mxu0 %vm5434_vm1, %v4930_v28  ;;  %12778 = vmatprep.mubr.msk.f32.mxu1 %vm5434_vm1, %v5218_v29  ;;  %v4957_v28 = vld [vmem:[%s14382_s10 + $0x338] sm:$0xff] }
 0x1da   : > { %v5245_v29 = vld [vmem:[%s14382_s10 + $0xc38] sm:$0xff] }
 0x1dc   : > { %12347 = vmatmul.mubr.msk.f32.gmra.mxu0 %vm5434_vm1, %v4931_v30  ;;  %12779 = vmatmul.mubr.msk.f32.gmra.mxu1 %vm5434_vm1, %v5219_v31 }
 0x1dd   : > { %12349 = vmatprep.mubr.msk.f32.mxu0 %vm5434_vm1, %v4932_v32  ;;  %12781 = vmatprep.mubr.msk.f32.mxu1 %vm5434_vm1, %v5220_v33  ;;  %v4958_v32 = vld [vmem:[%s14382_s10 + $0x340] sm:$0xff] }
 0x1de   : > { %v5246_v33 = vld [vmem:[%s14382_s10 + $0xc40] sm:$0xff] }
 0x1e0   : > { %12350 = vmatmul.mubr.msk.f32.gmra.mxu0 %vm5434_vm1, %v4933_v34  ;;  %12782 = vmatmul.mubr.msk.f32.gmra.mxu1 %vm5434_vm1, %v5221_v35 }
 0x1e1   : > { %12352 = vmatprep.mubr.msk.f32.mxu0 %vm5434_vm1, %v4934_v36  ;;  %12784 = vmatprep.mubr.msk.f32.mxu1 %vm5434_vm1, %v5222_v37  ;;  %v4959_v36 = vld [vmem:[%s14382_s10 + $0x348] sm:$0xff] }
 0x1e2   : > { %v5247_v37 = vld [vmem:[%s14382_s10 + $0xc48] sm:$0xff] }
 0x1e4   : > { %12353 = vmatmul.mubr.msk.f32.gmra.mxu0 %vm5434_vm1, %v4935_v38  ;;  %12785 = vmatmul.mubr.msk.f32.gmra.mxu1 %vm5434_vm1, %v5223_v39 }
 0x1e5   : > { %12355 = vmatprep.mubr.msk.f32.mxu0 %vm5434_vm1, %v4936_v40  ;;  %12787 = vmatprep.mubr.msk.f32.mxu1 %vm5434_vm1, %v5224_v41  ;;  %v4960_v40 = vld [vmem:[%s14382_s10 + $0x350] sm:$0xff] }
 0x1e6   : > { %v5248_v41 = vld [vmem:[%s14382_s10 + $0xc50] sm:$0xff] }
 0x1e8   : > { %12356 = vmatmul.mubr.msk.f32.gmra.mxu0 %vm5434_vm1, %v4937_v42  ;;  %12788 = vmatmul.mubr.msk.f32.gmra.mxu1 %vm5434_vm1, %v5225_v43 }
 0x1e9   : > { %12358 = vmatprep.mubr.msk.f32.mxu0 %vm5434_vm1, %v4938_v44  ;;  %12790 = vmatprep.mubr.msk.f32.mxu1 %vm5434_vm1, %v5226_v45  ;;  %v4961_v44 = vld [vmem:[%s14382_s10 + $0x358] sm:$0xff] }
 0x1ea   : > { %v5249_v45 = vld [vmem:[%s14382_s10 + $0xc58] sm:$0xff] }
 0x1ec   : > { %12359 = vmatmul.mubr.msk.f32.gmra.mxu0 %vm5434_vm1, %v4939_v46  ;;  %12791 = vmatmul.mubr.msk.f32.gmra.mxu1 %vm5434_vm1, %v5227_v47 }
 0x1ed   : > { %12361 = vmatprep.mubr.msk.f32.mxu0 %vm5434_vm1, %v4940_v48  ;;  %12793 = vmatprep.mubr.msk.f32.mxu1 %vm5434_vm1, %v5228_v49  ;;  %v4962_v48 = vld [vmem:[%s14382_s10 + $0x360] sm:$0xff] }
 0x1ee   : > { %v5250_v49 = vld [vmem:[%s14382_s10 + $0xc60] sm:$0xff] }
 0x1f0   : > { %12362 = vmatmul.mubr.msk.f32.gmra.mxu0 %vm5434_vm1, %v4941_v50  ;;  %12794 = vmatmul.mubr.msk.f32.gmra.mxu1 %vm5434_vm1, %v5229_v51 }
 0x1f1   : > { %12364 = vmatprep.mubr.msk.f32.mxu0 %vm5434_vm1, %v4942_v52  ;;  %12796 = vmatprep.mubr.msk.f32.mxu1 %vm5434_vm1, %v5230_v53  ;;  %v4963_v52 = vld [vmem:[%s14382_s10 + $0x368] sm:$0xff] }
 0x1f2   : > { %v5251_v53 = vld [vmem:[%s14382_s10 + $0xc68] sm:$0xff] }
 0x1f4   : > { %12365 = vmatmul.mubr.msk.f32.gmra.mxu0 %vm5434_vm1, %v4943_v54  ;;  %12797 = vmatmul.mubr.msk.f32.gmra.mxu1 %vm5434_vm1, %v5231_v55 }
 0x1f5   : > { %12367 = vmatprep.mubr.msk.f32.mxu0 %vm5434_vm1, %v4944_v56  ;;  %12799 = vmatprep.mubr.msk.f32.mxu1 %vm5434_vm1, %v5232_v57  ;;  %v4964_v56 = vld [vmem:[%s14382_s10 + $0x370] sm:$0xff] }
 0x1f6   : > { %v5252_v57 = vld [vmem:[%s14382_s10 + $0xc70] sm:$0xff] }
 0x1f8   : > { %12368 = vmatmul.mubr.msk.f32.gmra.mxu0 %vm5434_vm1, %v4945_v58  ;;  %12800 = vmatmul.mubr.msk.f32.gmra.mxu1 %vm5434_vm1, %v5233_v59 }
 0x1f9   : > { %12370 = vmatprep.mubr.msk.f32.mxu0 %vm5434_vm1, %v4946_v60  ;;  %12802 = vmatprep.mubr.msk.f32.mxu1 %vm5434_vm1, %v5234_v61  ;;  %v4965_v60 = vld [vmem:[%s14382_s10 + $0x378] sm:$0xff] }
 0x1fa   : > { %v5253_v61 = vld [vmem:[%s14382_s10 + $0xc78] sm:$0xff] }
 0x1fc   : > { %12371 = vmatmul.mubr.msk.f32.gmra.mxu0 %vm5434_vm1, %v4947_v62  ;;  %12803 = vmatmul.mubr.msk.f32.gmra.mxu1 %vm5434_vm1, %v5235_v63 }
 0x1fd   : > { %12373 = vmatprep.mubr.msk.f32.mxu0 %vm5434_vm1, %v4948_v0  ;;  %12805 = vmatprep.mubr.msk.f32.mxu1 %vm5434_vm1, %v5236_v1  ;;  %v4966_v0 = vld [vmem:[%s14382_s10 + $0x380] sm:$0xff] }
 0x1fe   : > { %v5254_v1 = vld [vmem:[%s14382_s10 + $0xc80] sm:$0xff] }
 0x200   : > { %12374 = vmatmul.mubr.msk.f32.gmra.mxu0 %vm5434_vm1, %v4949_v2  ;;  %12806 = vmatmul.mubr.msk.f32.gmra.mxu1 %vm5434_vm1, %v5237_v3 }
 0x201   : > { %12376 = vmatprep.mubr.msk.f32.mxu0 %vm5434_vm1, %v4950_v4  ;;  %12808 = vmatprep.mubr.msk.f32.mxu1 %vm5434_vm1, %v5238_v5  ;;  %v4967_v4 = vld [vmem:[%s14382_s10 + $0x388] sm:$0xff] }
 0x202   : > { %v5255_v5 = vld [vmem:[%s14382_s10 + $0xc88] sm:$0xff] }
 0x204   : > { %v14776_v10 = vpop.f32.mrf.mxu0  ;;  %12377 = vmatmul.mubr.msk.f32.gmra.mxu0 %vm5434_vm1, %v4951_v6  ;;  %v14779_v11 = vpop.f32.mrf.mxu1  ;;  %12809 = vmatmul.mubr.msk.f32.gmra.mxu1 %vm5434_vm1, %v5239_v7 }
 0x205   : > { %12379 = vmatprep.mubr.msk.f32.mxu0 %vm5434_vm1, %v4952_v8  ;;  %12811 = vmatprep.mubr.msk.f32.mxu1 %vm5434_vm1, %v5240_v9  ;;  %v4968_v8 = vld [vmem:[%s14382_s10 + $0x390] sm:$0xff] }
 0x206   : > { %v14786_v14 = vpop.f32.mrf.mxu0  ;;  %v14788_v15 = vpop.f32.mrf.mxu1  ;;  %v5256_v9 = vld [vmem:[%s14382_s10 + $0xc90] sm:$0xff] }
 0x208   : > { %v14792_v18 = vpop.f32.mrf.mxu0  ;;  %12380 = vmatmul.mubr.msk.f32.gmra.mxu0 %vm5434_vm1, %v4953_v12  ;;  %v14795_v19 = vpop.f32.mrf.mxu1  ;;  %12812 = vmatmul.mubr.msk.f32.gmra.mxu1 %vm5434_vm1, %v5241_v13 }
 0x209   : > { %12382 = vmatprep.mubr.msk.f32.mxu0 %vm5434_vm1, %v4954_v16  ;;  %12814 = vmatprep.mubr.msk.f32.mxu1 %vm5434_vm1, %v5242_v17  ;;  %v4969_v16 = vld [vmem:[%s14382_s10 + $0x398] sm:$0xff] }
 0x20a   : > { %v14802_v22 = vpop.f32.mrf.mxu0  ;;  %v14804_v23 = vpop.f32.mrf.mxu1  ;;  %v5257_v17 = vld [vmem:[%s14382_s10 + $0xc98] sm:$0xff] }
 0x20c   : > { %v14808_v26 = vpop.f32.mrf.mxu0  ;;  %12383 = vmatmul.mubr.msk.f32.gmra.mxu0 %vm5434_vm1, %v4955_v20  ;;  %v14811_v27 = vpop.f32.mrf.mxu1  ;;  %12815 = vmatmul.mubr.msk.f32.gmra.mxu1 %vm5434_vm1, %v5243_v21 }
 0x20d   : > { %12385 = vmatprep.mubr.msk.f32.mxu0 %vm5434_vm1, %v4956_v24  ;;  %12817 = vmatprep.mubr.msk.f32.mxu1 %vm5434_vm1, %v5244_v25  ;;  %v4970_v24 = vld [vmem:[%s14382_s10 + $0x3a0] sm:$0xff] }
 0x20e   : > { %v14818_v30 = vpop.f32.mrf.mxu0  ;;  %v14820_v31 = vpop.f32.mrf.mxu1  ;;  %v5258_v25 = vld [vmem:[%s14382_s10 + $0xca0] sm:$0xff] }
 0x210   : > { %v14824_v34 = vpop.f32.mrf.mxu0  ;;  %12386 = vmatmul.mubr.msk.f32.gmra.mxu0 %vm5434_vm1, %v4957_v28  ;;  %v14827_v35 = vpop.f32.mrf.mxu1  ;;  %12818 = vmatmul.mubr.msk.f32.gmra.mxu1 %vm5434_vm1, %v5245_v29 }
 0x211   : > { %12388 = vmatprep.mubr.msk.f32.mxu0 %vm5434_vm1, %v4958_v32  ;;  %12820 = vmatprep.mubr.msk.f32.mxu1 %vm5434_vm1, %v5246_v33  ;;  %v4971_v32 = vld [vmem:[%s14382_s10 + $0x3a8] sm:$0xff] }
 0x212   : > { %v14834_v38 = vpop.f32.mrf.mxu0  ;;  %v14836_v39 = vpop.f32.mrf.mxu1  ;;  %v5259_v33 = vld [vmem:[%s14382_s10 + $0xca8] sm:$0xff] }
 0x214   : > { %v14840_v42 = vpop.f32.mrf.mxu0  ;;  %12389 = vmatmul.mubr.msk.f32.gmra.mxu0 %vm5434_vm1, %v4959_v36  ;;  %v14843_v43 = vpop.f32.mrf.mxu1  ;;  %12821 = vmatmul.mubr.msk.f32.gmra.mxu1 %vm5434_vm1, %v5247_v37 }
 0x215   : > { %12391 = vmatprep.mubr.msk.f32.mxu0 %vm5434_vm1, %v4960_v40  ;;  %12823 = vmatprep.mubr.msk.f32.mxu1 %vm5434_vm1, %v5248_v41  ;;  %v4972_v40 = vld [vmem:[%s14382_s10 + $0x3b0] sm:$0xff] }
 0x216   : > { %v14850_v46 = vpop.f32.mrf.mxu0  ;;  %v14852_v47 = vpop.f32.mrf.mxu1  ;;  %v5260_v41 = vld [vmem:[%s14382_s10 + $0xcb0] sm:$0xff] }
 0x218   : > { %v14856_v50 = vpop.f32.mrf.mxu0  ;;  %12392 = vmatmul.mubr.msk.f32.gmra.mxu0 %vm5434_vm1, %v4961_v44  ;;  %v14859_v51 = vpop.f32.mrf.mxu1  ;;  %12824 = vmatmul.mubr.msk.f32.gmra.mxu1 %vm5434_vm1, %v5249_v45 }
 0x219   : > { %12394 = vmatprep.mubr.msk.f32.mxu0 %vm5434_vm1, %v4962_v48  ;;  %12826 = vmatprep.mubr.msk.f32.mxu1 %vm5434_vm1, %v5250_v49  ;;  %v4973_v48 = vld [vmem:[%s14382_s10 + $0x3b8] sm:$0xff] }
 0x21a   : > { %v14866_v54 = vpop.f32.mrf.mxu0  ;;  %v14868_v55 = vpop.f32.mrf.mxu1  ;;  %v5261_v49 = vld [vmem:[%s14382_s10 + $0xcb8] sm:$0xff] }
 0x21c   : > { %v14872_v58 = vpop.f32.mrf.mxu0  ;;  %12395 = vmatmul.mubr.msk.f32.gmra.mxu0 %vm5434_vm1, %v4963_v52  ;;  %v14875_v59 = vpop.f32.mrf.mxu1  ;;  %12827 = vmatmul.mubr.msk.f32.gmra.mxu1 %vm5434_vm1, %v5251_v53 }
 0x21d   : > { %12397 = vmatprep.mubr.msk.f32.mxu0 %vm5434_vm1, %v4964_v56  ;;  %12829 = vmatprep.mubr.msk.f32.mxu1 %vm5434_vm1, %v5252_v57  ;;  %v4974_v56 = vld [vmem:[%s14382_s10 + $0x3c0] sm:$0xff] }
 0x21e   : > { %v14882_v62 = vpop.f32.mrf.mxu0  ;;  %v14884_v63 = vpop.f32.mrf.mxu1  ;;  %v5262_v57 = vld [vmem:[%s14382_s10 + $0xcc0] sm:$0xff] }
 0x220   : > { %v14888_v2 = vpop.f32.mrf.mxu0  ;;  %12398 = vmatmul.mubr.msk.f32.gmra.mxu0 %vm5434_vm1, %v4965_v60  ;;  %v14891_v3 = vpop.f32.mrf.mxu1  ;;  %12830 = vmatmul.mubr.msk.f32.gmra.mxu1 %vm5434_vm1, %v5253_v61 }
 0x221   : > { %12400 = vmatprep.mubr.msk.f32.mxu0 %vm5434_vm1, %v4966_v0  ;;  %12832 = vmatprep.mubr.msk.f32.mxu1 %vm5434_vm1, %v5254_v1  ;;  %v4975_v0 = vld [vmem:[%s14382_s10 + $0x3c8] sm:$0xff] }
 0x222   : > { %v14898_v6 = vpop.f32.mrf.mxu0  ;;  %v14900_v7 = vpop.f32.mrf.mxu1  ;;  %v5263_v1 = vld [vmem:[%s14382_s10 + $0xcc8] sm:$0xff] }
 0x224   : > { %v14904_v12 = vpop.f32.mrf.mxu0  ;;  %12401 = vmatmul.mubr.msk.f32.gmra.mxu0 %vm5434_vm1, %v4967_v4  ;;  %v14907_v13 = vpop.f32.mrf.mxu1  ;;  %12833 = vmatmul.mubr.msk.f32.gmra.mxu1 %vm5434_vm1, %v5255_v5 }
 0x225   : > { %12403 = vmatprep.mubr.msk.f32.mxu0 %vm5434_vm1, %v4968_v8  ;;  %12835 = vmatprep.mubr.msk.f32.mxu1 %vm5434_vm1, %v5256_v9  ;;  %v4976_v8 = vld [vmem:[%s14382_s10 + $0x3d0] sm:$0xff] }
 0x226   : > { %v14914_v20 = vpop.f32.mrf.mxu0  ;;  %v14916_v21 = vpop.f32.mrf.mxu1  ;;  %v5264_v9 = vld [vmem:[%s14382_s10 + $0xcd0] sm:$0xff] }
 0x228   : > { %v14920_v28 = vpop.f32.mrf.mxu0  ;;  %12404 = vmatmul.mubr.msk.f32.gmra.mxu0 %vm5434_vm1, %v4969_v16  ;;  %v14923_v29 = vpop.f32.mrf.mxu1  ;;  %12836 = vmatmul.mubr.msk.f32.gmra.mxu1 %vm5434_vm1, %v5257_v17 }
 0x229   : > { %12406 = vmatprep.mubr.msk.f32.mxu0 %vm5434_vm1, %v4970_v24  ;;  %12838 = vmatprep.mubr.msk.f32.mxu1 %vm5434_vm1, %v5258_v25  ;;  %v4977_v24 = vld [vmem:[%s14382_s10 + $0x3d8] sm:$0xff] }
 0x22a   : > { %v14930_v36 = vpop.f32.mrf.mxu0  ;;  %v14932_v37 = vpop.f32.mrf.mxu1  ;;  %v5265_v25 = vld [vmem:[%s14382_s10 + $0xcd8] sm:$0xff] }
 0x22c   : > { %v14936_v44 = vpop.f32.mrf.mxu0  ;;  %12407 = vmatmul.mubr.msk.f32.gmra.mxu0 %vm5434_vm1, %v4971_v32  ;;  %v14939_v45 = vpop.f32.mrf.mxu1  ;;  %12839 = vmatmul.mubr.msk.f32.gmra.mxu1 %vm5434_vm1, %v5259_v33 }
 0x22d   : > { %12409 = vmatprep.mubr.msk.f32.mxu0 %vm5434_vm1, %v4972_v40  ;;  %12841 = vmatprep.mubr.msk.f32.mxu1 %vm5434_vm1, %v5260_v41  ;;  %v4978_v40 = vld [vmem:[%s14382_s10 + $0x3e0] sm:$0xff] }
 0x22e   : > { %v14946_v52 = vpop.f32.mrf.mxu0  ;;  %v14948_v53 = vpop.f32.mrf.mxu1  ;;  %v5266_v41 = vld [vmem:[%s14382_s10 + $0xce0] sm:$0xff] }
 0x230   : > { %v14952_v60 = vpop.f32.mrf.mxu0  ;;  %12410 = vmatmul.mubr.msk.f32.gmra.mxu0 %vm5434_vm1, %v4973_v48  ;;  %v14955_v61 = vpop.f32.mrf.mxu1  ;;  %12842 = vmatmul.mubr.msk.f32.gmra.mxu1 %vm5434_vm1, %v5261_v49 }
 0x231   : > { %12412 = vmatprep.mubr.msk.f32.mxu0 %vm5434_vm1, %v4974_v56  ;;  %12844 = vmatprep.mubr.msk.f32.mxu1 %vm5434_vm1, %v5262_v57  ;;  %v4979_v56 = vld [vmem:[%s14382_s10 + $0x3e8] sm:$0xff] }
 0x232   : > { %v14962_v4 = vpop.f32.mrf.mxu0  ;;  %v14964_v5 = vpop.f32.mrf.mxu1  ;;  %v5267_v57 = vld [vmem:[%s14382_s10 + $0xce8] sm:$0xff] }
 0x234   : > { %v14968_v16 = vpop.f32.mrf.mxu0  ;;  %12413 = vmatmul.mubr.msk.f32.gmra.mxu0 %vm5434_vm1, %v4975_v0  ;;  %v14971_v17 = vpop.f32.mrf.mxu1  ;;  %12845 = vmatmul.mubr.msk.f32.gmra.mxu1 %vm5434_vm1, %v5263_v1 }
 0x235   : > { %16871 = vst [vmem:[#allocation3_spill] sm:$0xff] %v14971_v17  ;;  %12415 = vmatprep.mubr.msk.f32.mxu0 %vm5434_vm1, %v4976_v8  ;;  %12847 = vmatprep.mubr.msk.f32.mxu1 %vm5434_vm1, %v5264_v9  ;;  %v4980_v8 = vld [vmem:[%s14382_s10 + $0x3f0] sm:$0xff] }
 0x236   : > { %v14978_v32 = vpop.f32.mrf.mxu0  ;;  %v14980_v33 = vpop.f32.mrf.mxu1  ;;  %v5268_v9 = vld [vmem:[%s14382_s10 + $0xcf0] sm:$0xff] }
 0x237   : > { %16872 = vst [vmem:[#allocation4_spill] sm:$0xff] %v14978_v32  ;;  %16873 = vst [vmem:[#allocation5_spill] sm:$0xff] %v14980_v33  ;;  %v5098_v33 = vld [vmem:[%s14382_s10 + $0x7a0] sm:$0xff] }
 0x238   : > { %v14984_v48 = vpop.f32.mrf.mxu0  ;;  %12416 = vmatmul.mubr.msk.f32.gmra.mxu0 %vm5434_vm1, %v4977_v24  ;;  %v14987_v49 = vpop.f32.mrf.mxu1  ;;  %12848 = vmatmul.mubr.msk.f32.gmra.mxu1 %vm5434_vm1, %v5265_v25 }
 0x239   : > { %16874 = vst [vmem:[#allocation6_spill] sm:$0xff] %v14984_v48  ;;  %16875 = vst [vmem:[#allocation7_spill] sm:$0xff] %v14987_v49  ;;  %12418 = vmatprep.mubr.msk.f32.mxu0 %vm5434_vm1, %v4978_v40  ;;  %12850 = vmatprep.mubr.msk.f32.mxu1 %vm5434_vm1, %v5266_v41  ;;  %v4981_v40 = vld [vmem:[%s14382_s10 + $0x3f8] sm:$0xff] }
 0x23a   : > { %v14994_v0 = vpop.f32.mrf.mxu0  ;;  %v14996_v1 = vpop.f32.mrf.mxu1  ;;  %v5269_v41 = vld [vmem:[%s14382_s10 + $0xcf8] sm:$0xff] }
 0x23b   : > { %16876 = vst [vmem:[#allocation8_spill] sm:$0xff] %v14994_v0  ;;  %16877 = vst [vmem:[#allocation9_spill] sm:$0xff] %v14996_v1 }
 0x23c   : > { %v15000_v24 = vpop.f32.mrf.mxu0  ;;  %12419 = vmatmul.mubr.msk.f32.gmra.mxu0 %vm5434_vm1, %v4979_v56  ;;  %v15003_v25 = vpop.f32.mrf.mxu1  ;;  %12851 = vmatmul.mubr.msk.f32.gmra.mxu1 %vm5434_vm1, %v5267_v57  ;;  %v5270_v56 = vld [vmem:[%s14382_s10 + $0xd00] sm:$0xff] }
 0x23d   : > { %16878 = vst [vmem:[#allocation10_spill] sm:$0xff] %v15000_v24  ;;  %16879 = vst [vmem:[#allocation11_spill] sm:$0xff] %v15003_v25  ;;  %12421 = vmatprep.mubr.msk.f32.mxu0 %vm5434_vm1, %v4980_v8  ;;  %12853 = vmatprep.mubr.msk.f32.mxu1 %vm5434_vm1, %v5268_v9  ;;  %v4982_v24 = vld [vmem:[%s14382_s10 + $0x400] sm:$0xff]  ;;  %v4983_v8 = vld [vmem:[%s14382_s10 + $0x408] sm:$0xff] }
 0x23e   : > { %v15010_v1 = vpop.f32.mrf.mxu0  ;;  %v15012_v0 = vpop.f32.mrf.mxu1  ;;  %v5271_v9 = vld [vmem:[%s14382_s10 + $0xd08] sm:$0xff] }
 0x23f   : > { %16880 = vst [vmem:[#allocation12_spill] sm:$0xff] %v15010_v1  ;;  %16881 = vst [vmem:[#allocation13_spill] sm:$0xff] %v15012_v0 }
 0x240   : > { %v15016_v49 = vpop.f32.mrf.mxu0  ;;  %12422 = vmatmul.mubr.msk.f32.gmra.mxu0 %vm5434_vm1, %v4981_v40  ;;  %v15019_v57 = vpop.f32.mrf.mxu1  ;;  %12854 = vmatmul.mubr.msk.f32.gmra.mxu1 %vm5434_vm1, %v5269_v41  ;;  %v5272_v40 = vld [vmem:[%s14382_s10 + $0xd10] sm:$0xff] }
 0x241   : > { %16882 = vst [vmem:[#allocation14_spill] sm:$0xff] %v15016_v49  ;;  %16883 = vst [vmem:[#allocation15_spill] sm:$0xff] %v15019_v57  ;;  %12424 = vmatprep.mubr.msk.f32.mxu0 %vm5434_vm1, %v4982_v24  ;;  %12856 = vmatprep.mubr.msk.f32.mxu1 %vm5434_vm1, %v5270_v56  ;;  %v4984_v49 = vld [vmem:[%s14382_s10 + $0x410] sm:$0xff]  ;;  %v4985_v24 = vld [vmem:[%s14382_s10 + $0x418] sm:$0xff] }
 0x242   : > { %v15026_v0 = vpop.f32.mrf.mxu0  ;;  %v15028_v1 = vpop.f32.mrf.mxu1  ;;  %v5273_v56 = vld [vmem:[%s14382_s10 + $0xd18] sm:$0xff] }
 0x243   : > { %16884 = vst [vmem:[#allocation16_spill] sm:$0xff] %v15026_v0  ;;  %16885 = vst [vmem:[#allocation17_spill] sm:$0xff] %v15028_v1 }
 0x244   : > { %v15032_v25 = vpop.f32.mrf.mxu0  ;;  %12425 = vmatmul.mubr.msk.f32.gmra.mxu0 %vm5434_vm1, %v4983_v8  ;;  %v15035_v41 = vpop.f32.mrf.mxu1  ;;  %12857 = vmatmul.mubr.msk.f32.gmra.mxu1 %vm5434_vm1, %v5271_v9  ;;  %v5274_v8 = vld [vmem:[%s14382_s10 + $0xd20] sm:$0xff] }
 0x245   : > { %16886 = vst [vmem:[#allocation18_spill] sm:$0xff] %v15032_v25  ;;  %16887 = vst [vmem:[#allocation19_spill] sm:$0xff] %v15035_v41  ;;  %12427 = vmatprep.mubr.msk.f32.mxu0 %vm5434_vm1, %v4984_v49  ;;  %12859 = vmatprep.mubr.msk.f32.mxu1 %vm5434_vm1, %v5272_v40  ;;  %v4986_v25 = vld [vmem:[%s14382_s10 + $0x420] sm:$0xff]  ;;  %v4987_v49 = vld [vmem:[%s14382_s10 + $0x428] sm:$0xff] }
 0x246   : > { %v15042_v1 = vpop.f32.mrf.mxu0  ;;  %v15044_v0 = vpop.f32.mrf.mxu1  ;;  %v5275_v40 = vld [vmem:[%s14382_s10 + $0xd28] sm:$0xff] }
 0x247   : > { %16888 = vst [vmem:[#allocation20_spill] sm:$0xff] %v15042_v1  ;;  %16889 = vst [vmem:[#allocation21_spill] sm:$0xff] %v15044_v0 }
 0x248   : > { %v15048_v57 = vpop.f32.mrf.mxu0  ;;  %12428 = vmatmul.mubr.msk.f32.gmra.mxu0 %vm5434_vm1, %v4985_v24  ;;  %v15051_v9 = vpop.f32.mrf.mxu1  ;;  %12860 = vmatmul.mubr.msk.f32.gmra.mxu1 %vm5434_vm1, %v5273_v56  ;;  %v5276_v24 = vld [vmem:[%s14382_s10 + $0xd30] sm:$0xff] }
 0x249   : > { %16890 = vst [vmem:[#allocation22_spill] sm:$0xff] %v15048_v57  ;;  %16891 = vst [vmem:[#allocation23_spill] sm:$0xff] %v15051_v9  ;;  %12430 = vmatprep.mubr.msk.f32.mxu0 %vm5434_vm1, %v4986_v25  ;;  %12862 = vmatprep.mubr.msk.f32.mxu1 %vm5434_vm1, %v5274_v8  ;;  %v4988_v57 = vld [vmem:[%s14382_s10 + $0x430] sm:$0xff]  ;;  %v4989_v25 = vld [vmem:[%s14382_s10 + $0x438] sm:$0xff] }
 0x24a   : > { %v15058_v0 = vpop.f32.mrf.mxu0  ;;  %v15060_v1 = vpop.f32.mrf.mxu1  ;;  %v5277_v8 = vld [vmem:[%s14382_s10 + $0xd38] sm:$0xff] }
 0x24b   : > { %16892 = vst [vmem:[#allocation24_spill] sm:$0xff] %v15058_v0  ;;  %16893 = vst [vmem:[#allocation25_spill] sm:$0xff] %v15060_v1 }
 0x24c   : > { %v15064_v41 = vpop.f32.mrf.mxu0  ;;  %12431 = vmatmul.mubr.msk.f32.gmra.mxu0 %vm5434_vm1, %v4987_v49  ;;  %v15067_v56 = vpop.f32.mrf.mxu1  ;;  %12863 = vmatmul.mubr.msk.f32.gmra.mxu1 %vm5434_vm1, %v5275_v40  ;;  %v5278_v49 = vld [vmem:[%s14382_s10 + $0xd40] sm:$0xff] }
 0x24d   : > { %16894 = vst [vmem:[#allocation26_spill] sm:$0xff] %v15064_v41  ;;  %16895 = vst [vmem:[#allocation27_spill] sm:$0xff] %v15067_v56  ;;  %12433 = vmatprep.mubr.msk.f32.mxu0 %vm5434_vm1, %v4988_v57  ;;  %12865 = vmatprep.mubr.msk.f32.mxu1 %vm5434_vm1, %v5276_v24  ;;  %v4990_v41 = vld [vmem:[%s14382_s10 + $0x440] sm:$0xff]  ;;  %v4991_v57 = vld [vmem:[%s14382_s10 + $0x448] sm:$0xff] }
 0x24e   : > { %v15074_v1 = vpop.f32.mrf.mxu0  ;;  %v15076_v0 = vpop.f32.mrf.mxu1  ;;  %v5279_v24 = vld [vmem:[%s14382_s10 + $0xd48] sm:$0xff] }
 0x24f   : > { %16896 = vst [vmem:[#allocation28_spill] sm:$0xff] %v15074_v1  ;;  %16897 = vst [vmem:[#allocation29_spill] sm:$0xff] %v15076_v0 }
 0x250   : > { %v15080_v9 = vpop.f32.mrf.mxu0  ;;  %12434 = vmatmul.mubr.msk.f32.gmra.mxu0 %vm5434_vm1, %v4989_v25  ;;  %v15083_v40 = vpop.f32.mrf.mxu1  ;;  %12866 = vmatmul.mubr.msk.f32.gmra.mxu1 %vm5434_vm1, %v5277_v8  ;;  %v5280_v25 = vld [vmem:[%s14382_s10 + $0xd50] sm:$0xff] }
 0x251   : > { %16898 = vst [vmem:[#allocation30_spill] sm:$0xff] %v15080_v9  ;;  %16899 = vst [vmem:[#allocation31_spill] sm:$0xff] %v15083_v40  ;;  %12436 = vmatprep.mubr.msk.f32.mxu0 %vm5434_vm1, %v4990_v41  ;;  %12868 = vmatprep.mubr.msk.f32.mxu1 %vm5434_vm1, %v5278_v49  ;;  %v4992_v9 = vld [vmem:[%s14382_s10 + $0x450] sm:$0xff]  ;;  %v4993_v41 = vld [vmem:[%s14382_s10 + $0x458] sm:$0xff] }
 0x252   : > { %v15090_v0 = vpop.f32.mrf.mxu0  ;;  %v15092_v1 = vpop.f32.mrf.mxu1  ;;  %v5281_v49 = vld [vmem:[%s14382_s10 + $0xd58] sm:$0xff] }
 0x253   : > { %16900 = vst [vmem:[#allocation32_spill] sm:$0xff] %v15090_v0  ;;  %16901 = vst [vmem:[#allocation33_spill] sm:$0xff] %v15092_v1 }
 0x254   : > { %v15096_v56 = vpop.f32.mrf.mxu0  ;;  %12437 = vmatmul.mubr.msk.f32.gmra.mxu0 %vm5434_vm1, %v4991_v57  ;;  %v15099_v8 = vpop.f32.mrf.mxu1  ;;  %12869 = vmatmul.mubr.msk.f32.gmra.mxu1 %vm5434_vm1, %v5279_v24  ;;  %v5282_v57 = vld [vmem:[%s14382_s10 + $0xd60] sm:$0xff] }
 0x255   : > { %16902 = vst [vmem:[#allocation34_spill] sm:$0xff] %v15096_v56  ;;  %16903 = vst [vmem:[#allocation35_spill] sm:$0xff] %v15099_v8  ;;  %12439 = vmatprep.mubr.msk.f32.mxu0 %vm5434_vm1, %v4992_v9  ;;  %12871 = vmatprep.mubr.msk.f32.mxu1 %vm5434_vm1, %v5280_v25  ;;  %v4994_v56 = vld [vmem:[%s14382_s10 + $0x460] sm:$0xff]  ;;  %v4995_v9 = vld [vmem:[%s14382_s10 + $0x468] sm:$0xff] }
 0x256   : > { %v15106_v1 = vpop.f32.mrf.mxu0  ;;  %v15108_v0 = vpop.f32.mrf.mxu1  ;;  %v5283_v25 = vld [vmem:[%s14382_s10 + $0xd68] sm:$0xff] }
 0x257   : > { %16904 = vst [vmem:[#allocation36_spill] sm:$0xff] %v15106_v1  ;;  %16905 = vst [vmem:[#allocation37_spill] sm:$0xff] %v15108_v0 }
 0x258   : > { %v15112_v40 = vpop.f32.mrf.mxu0  ;;  %12440 = vmatmul.mubr.msk.f32.gmra.mxu0 %vm5434_vm1, %v4993_v41  ;;  %v15115_v24 = vpop.f32.mrf.mxu1  ;;  %12872 = vmatmul.mubr.msk.f32.gmra.mxu1 %vm5434_vm1, %v5281_v49  ;;  %v5284_v41 = vld [vmem:[%s14382_s10 + $0xd70] sm:$0xff] }
 0x259   : > { %16906 = vst [vmem:[#allocation38_spill] sm:$0xff] %v15112_v40  ;;  %16907 = vst [vmem:[#allocation39_spill] sm:$0xff] %v15115_v24  ;;  %12442 = vmatprep.mubr.msk.f32.mxu0 %vm5434_vm1, %v4994_v56  ;;  %12874 = vmatprep.mubr.msk.f32.mxu1 %vm5434_vm1, %v5282_v57  ;;  %v4996_v40 = vld [vmem:[%s14382_s10 + $0x470] sm:$0xff]  ;;  %v4997_v56 = vld [vmem:[%s14382_s10 + $0x478] sm:$0xff] }
 0x25a   : > { %v15122_v0 = vpop.f32.mrf.mxu0  ;;  %v15124_v1 = vpop.f32.mrf.mxu1  ;;  %v5285_v57 = vld [vmem:[%s14382_s10 + $0xd78] sm:$0xff] }
 0x25b   : > { %16908 = vst [vmem:[#allocation40_spill] sm:$0xff] %v15122_v0  ;;  %16909 = vst [vmem:[#allocation41_spill] sm:$0xff] %v15124_v1 }
 0x25c   : > { %v15128_v8 = vpop.f32.mrf.mxu0  ;;  %12443 = vmatmul.mubr.msk.f32.gmra.mxu0 %vm5434_vm1, %v4995_v9  ;;  %v15131_v49 = vpop.f32.mrf.mxu1  ;;  %12875 = vmatmul.mubr.msk.f32.gmra.mxu1 %vm5434_vm1, %v5283_v25  ;;  %v5286_v9 = vld [vmem:[%s14382_s10 + $0xd80] sm:$0xff] }
 0x25d   : > { %16910 = vst [vmem:[#allocation42_spill] sm:$0xff] %v15128_v8  ;;  %16911 = vst [vmem:[#allocation43_spill] sm:$0xff] %v15131_v49  ;;  %12445 = vmatprep.mubr.msk.f32.mxu0 %vm5434_vm1, %v4996_v40  ;;  %12877 = vmatprep.mubr.msk.f32.mxu1 %vm5434_vm1, %v5284_v41  ;;  %v4998_v8 = vld [vmem:[%s14382_s10 + $0x480] sm:$0xff]  ;;  %v4999_v40 = vld [vmem:[%s14382_s10 + $0x488] sm:$0xff] }
 0x25e   : > { %v15138_v1 = vpop.f32.mrf.mxu0  ;;  %v15140_v0 = vpop.f32.mrf.mxu1  ;;  %v5287_v41 = vld [vmem:[%s14382_s10 + $0xd88] sm:$0xff] }
 0x25f   : > { %16912 = vst [vmem:[#allocation44_spill] sm:$0xff] %v15138_v1  ;;  %16913 = vst [vmem:[#allocation45_spill] sm:$0xff] %v15140_v0 }
 0x260   : > { %v15144_v24 = vpop.f32.mrf.mxu0  ;;  %12446 = vmatmul.mubr.msk.f32.gmra.mxu0 %vm5434_vm1, %v4997_v56  ;;  %v15147_v25 = vpop.f32.mrf.mxu1  ;;  %12878 = vmatmul.mubr.msk.f32.gmra.mxu1 %vm5434_vm1, %v5285_v57  ;;  %v5288_v56 = vld [vmem:[%s14382_s10 + $0xd90] sm:$0xff] }
 0x261   : > { %16914 = vst [vmem:[#allocation46_spill] sm:$0xff] %v15144_v24  ;;  %16915 = vst [vmem:[#allocation47_spill] sm:$0xff] %v15147_v25  ;;  %12448 = vmatprep.mubr.msk.f32.mxu0 %vm5434_vm1, %v4998_v8  ;;  %12880 = vmatprep.mubr.msk.f32.mxu1 %vm5434_vm1, %v5286_v9  ;;  %v5000_v24 = vld [vmem:[%s14382_s10 + $0x490] sm:$0xff]  ;;  %v5001_v8 = vld [vmem:[%s14382_s10 + $0x498] sm:$0xff] }
 0x262   : > { %v15154_v0 = vpop.f32.mrf.mxu0  ;;  %v15156_v1 = vpop.f32.mrf.mxu1  ;;  %v5289_v9 = vld [vmem:[%s14382_s10 + $0xd98] sm:$0xff] }
 0x263   : > { %16916 = vst [vmem:[#allocation48_spill] sm:$0xff] %v15154_v0  ;;  %16917 = vst [vmem:[#allocation49_spill] sm:$0xff] %v15156_v1 }
 0x264   : > { %v15160_v49 = vpop.f32.mrf.mxu0  ;;  %12449 = vmatmul.mubr.msk.f32.gmra.mxu0 %vm5434_vm1, %v4999_v40  ;;  %v15163_v57 = vpop.f32.mrf.mxu1  ;;  %12881 = vmatmul.mubr.msk.f32.gmra.mxu1 %vm5434_vm1, %v5287_v41  ;;  %v5290_v40 = vld [vmem:[%s14382_s10 + $0xda0] sm:$0xff] }
 0x265   : > { %16918 = vst [vmem:[#allocation50_spill] sm:$0xff] %v15160_v49  ;;  %16919 = vst [vmem:[#allocation51_spill] sm:$0xff] %v15163_v57  ;;  %12451 = vmatprep.mubr.msk.f32.mxu0 %vm5434_vm1, %v5000_v24  ;;  %12883 = vmatprep.mubr.msk.f32.mxu1 %vm5434_vm1, %v5288_v56  ;;  %v5002_v49 = vld [vmem:[%s14382_s10 + $0x4a0] sm:$0xff]  ;;  %v5003_v24 = vld [vmem:[%s14382_s10 + $0x4a8] sm:$0xff] }
 0x266   : > { %v15170_v1 = vpop.f32.mrf.mxu0  ;;  %v15172_v0 = vpop.f32.mrf.mxu1  ;;  %v5291_v56 = vld [vmem:[%s14382_s10 + $0xda8] sm:$0xff] }
 0x267   : > { %16920 = vst [vmem:[#allocation52_spill] sm:$0xff] %v15170_v1  ;;  %16921 = vst [vmem:[#allocation53_spill] sm:$0xff] %v15172_v0 }
 0x268   : > { %v15176_v25 = vpop.f32.mrf.mxu0  ;;  %12452 = vmatmul.mubr.msk.f32.gmra.mxu0 %vm5434_vm1, %v5001_v8  ;;  %v15179_v41 = vpop.f32.mrf.mxu1  ;;  %12884 = vmatmul.mubr.msk.f32.gmra.mxu1 %vm5434_vm1, %v5289_v9  ;;  %v5292_v8 = vld [vmem:[%s14382_s10 + $0xdb0] sm:$0xff] }
 0x269   : > { %16922 = vst [vmem:[#allocation54_spill] sm:$0xff] %v15176_v25  ;;  %16923 = vst [vmem:[#allocation55_spill] sm:$0xff] %v15179_v41  ;;  %12454 = vmatprep.mubr.msk.f32.mxu0 %vm5434_vm1, %v5002_v49  ;;  %12886 = vmatprep.mubr.msk.f32.mxu1 %vm5434_vm1, %v5290_v40  ;;  %v5004_v25 = vld [vmem:[%s14382_s10 + $0x4b0] sm:$0xff]  ;;  %v5005_v49 = vld [vmem:[%s14382_s10 + $0x4b8] sm:$0xff] }
 0x26a   : > { %v15186_v0 = vpop.f32.mrf.mxu0  ;;  %v15188_v1 = vpop.f32.mrf.mxu1  ;;  %v5293_v40 = vld [vmem:[%s14382_s10 + $0xdb8] sm:$0xff] }
 0x26b   : > { %16924 = vst [vmem:[#allocation56_spill] sm:$0xff] %v15186_v0  ;;  %16925 = vst [vmem:[#allocation57_spill] sm:$0xff] %v15188_v1 }
 0x26c   : > { %v15192_v57 = vpop.f32.mrf.mxu0  ;;  %12455 = vmatmul.mubr.msk.f32.gmra.mxu0 %vm5434_vm1, %v5003_v24  ;;  %v15195_v9 = vpop.f32.mrf.mxu1  ;;  %12887 = vmatmul.mubr.msk.f32.gmra.mxu1 %vm5434_vm1, %v5291_v56  ;;  %v5294_v24 = vld [vmem:[%s14382_s10 + $0xdc0] sm:$0xff] }
 0x26d   : > { %16926 = vst [vmem:[#allocation58_spill] sm:$0xff] %v15192_v57  ;;  %16927 = vst [vmem:[#allocation59_spill] sm:$0xff] %v15195_v9  ;;  %12457 = vmatprep.mubr.msk.f32.mxu0 %vm5434_vm1, %v5004_v25  ;;  %12889 = vmatprep.mubr.msk.f32.mxu1 %vm5434_vm1, %v5292_v8  ;;  %v5006_v57 = vld [vmem:[%s14382_s10 + $0x4c0] sm:$0xff]  ;;  %v5007_v25 = vld [vmem:[%s14382_s10 + $0x4c8] sm:$0xff] }
 0x26e   : > { %v15202_v1 = vpop.f32.mrf.mxu0  ;;  %v15204_v0 = vpop.f32.mrf.mxu1  ;;  %v5295_v8 = vld [vmem:[%s14382_s10 + $0xdc8] sm:$0xff] }
 0x26f   : > { %16928 = vst [vmem:[#allocation60_spill] sm:$0xff] %v15202_v1  ;;  %16929 = vst [vmem:[#allocation61_spill] sm:$0xff] %v15204_v0 }
 0x270   : > { %v15208_v41 = vpop.f32.mrf.mxu0  ;;  %12458 = vmatmul.mubr.msk.f32.gmra.mxu0 %vm5434_vm1, %v5005_v49  ;;  %v15211_v56 = vpop.f32.mrf.mxu1  ;;  %12890 = vmatmul.mubr.msk.f32.gmra.mxu1 %vm5434_vm1, %v5293_v40  ;;  %v5296_v49 = vld [vmem:[%s14382_s10 + $0xdd0] sm:$0xff] }
 0x271   : > { %16930 = vst [vmem:[#allocation62_spill] sm:$0xff] %v15208_v41  ;;  %16931 = vst [vmem:[#allocation63_spill] sm:$0xff] %v15211_v56  ;;  %12460 = vmatprep.mubr.msk.f32.mxu0 %vm5434_vm1, %v5006_v57  ;;  %12892 = vmatprep.mubr.msk.f32.mxu1 %vm5434_vm1, %v5294_v24  ;;  %v5008_v41 = vld [vmem:[%s14382_s10 + $0x4d0] sm:$0xff]  ;;  %v5009_v57 = vld [vmem:[%s14382_s10 + $0x4d8] sm:$0xff] }
 0x272   : > { %v15218_v0 = vpop.f32.mrf.mxu0  ;;  %v15220_v1 = vpop.f32.mrf.mxu1  ;;  %v5297_v24 = vld [vmem:[%s14382_s10 + $0xdd8] sm:$0xff] }
 0x273   : > { %16932 = vst [vmem:[#allocation64_spill] sm:$0xff] %v15218_v0  ;;  %16933 = vst [vmem:[#allocation65_spill] sm:$0xff] %v15220_v1 }
 0x274   : > { %v15224_v9 = vpop.f32.mrf.mxu0  ;;  %12461 = vmatmul.mubr.msk.f32.gmra.mxu0 %vm5434_vm1, %v5007_v25  ;;  %v15227_v40 = vpop.f32.mrf.mxu1  ;;  %12893 = vmatmul.mubr.msk.f32.gmra.mxu1 %vm5434_vm1, %v5295_v8  ;;  %v5298_v25 = vld [vmem:[%s14382_s10 + $0xde0] sm:$0xff] }
 0x275   : > { %16934 = vst [vmem:[#allocation66_spill] sm:$0xff] %v15224_v9  ;;  %16935 = vst [vmem:[#allocation67_spill] sm:$0xff] %v15227_v40  ;;  %12463 = vmatprep.mubr.msk.f32.mxu0 %vm5434_vm1, %v5008_v41  ;;  %12895 = vmatprep.mubr.msk.f32.mxu1 %vm5434_vm1, %v5296_v49  ;;  %v5010_v9 = vld [vmem:[%s14382_s10 + $0x4e0] sm:$0xff]  ;;  %v5011_v41 = vld [vmem:[%s14382_s10 + $0x4e8] sm:$0xff] }
 0x276   : > { %v15234_v1 = vpop.f32.mrf.mxu0  ;;  %v15236_v0 = vpop.f32.mrf.mxu1  ;;  %v5299_v49 = vld [vmem:[%s14382_s10 + $0xde8] sm:$0xff] }
 0x277   : > { %16936 = vst [vmem:[#allocation68_spill] sm:$0xff] %v15234_v1  ;;  %16937 = vst [vmem:[#allocation69_spill] sm:$0xff] %v15236_v0 }
 0x278   : > { %v15240_v56 = vpop.f32.mrf.mxu0  ;;  %12464 = vmatmul.mubr.msk.f32.gmra.mxu0 %vm5434_vm1, %v5009_v57  ;;  %v15243_v8 = vpop.f32.mrf.mxu1  ;;  %12896 = vmatmul.mubr.msk.f32.gmra.mxu1 %vm5434_vm1, %v5297_v24  ;;  %v5300_v57 = vld [vmem:[%s14382_s10 + $0xdf0] sm:$0xff] }
 0x279   : > { %16938 = vst [vmem:[#allocation70_spill] sm:$0xff] %v15240_v56  ;;  %16939 = vst [vmem:[#allocation71_spill] sm:$0xff] %v15243_v8  ;;  %12466 = vmatprep.mubr.msk.f32.mxu0 %vm5434_vm1, %v5010_v9  ;;  %12898 = vmatprep.mubr.msk.f32.mxu1 %vm5434_vm1, %v5298_v25  ;;  %v5012_v56 = vld [vmem:[%s14382_s10 + $0x4f0] sm:$0xff]  ;;  %v5013_v9 = vld [vmem:[%s14382_s10 + $0x4f8] sm:$0xff] }
 0x27a   : > { %v15250_v0 = vpop.f32.mrf.mxu0  ;;  %v15252_v1 = vpop.f32.mrf.mxu1  ;;  %v5301_v25 = vld [vmem:[%s14382_s10 + $0xdf8] sm:$0xff] }
 0x27b   : > { %16940 = vst [vmem:[#allocation72_spill] sm:$0xff] %v15250_v0  ;;  %16941 = vst [vmem:[#allocation73_spill] sm:$0xff] %v15252_v1 }
 0x27c   : > { %v15256_v40 = vpop.f32.mrf.mxu0  ;;  %12467 = vmatmul.mubr.msk.f32.gmra.mxu0 %vm5434_vm1, %v5011_v41  ;;  %v15259_v24 = vpop.f32.mrf.mxu1  ;;  %12899 = vmatmul.mubr.msk.f32.gmra.mxu1 %vm5434_vm1, %v5299_v49  ;;  %v5302_v41 = vld [vmem:[%s14382_s10 + $0xe00] sm:$0xff] }
 0x27d   : > { %16942 = vst [vmem:[#allocation74_spill] sm:$0xff] %v15256_v40  ;;  %16943 = vst [vmem:[#allocation75_spill] sm:$0xff] %v15259_v24  ;;  %12469 = vmatprep.mubr.msk.f32.mxu0 %vm5434_vm1, %v5012_v56  ;;  %12901 = vmatprep.mubr.msk.f32.mxu1 %vm5434_vm1, %v5300_v57  ;;  %v5014_v40 = vld [vmem:[%s14382_s10 + $0x500] sm:$0xff]  ;;  %v5015_v56 = vld [vmem:[%s14382_s10 + $0x508] sm:$0xff] }
 0x27e   : > { %v15266_v1 = vpop.f32.mrf.mxu0  ;;  %v15268_v0 = vpop.f32.mrf.mxu1  ;;  %v5303_v57 = vld [vmem:[%s14382_s10 + $0xe08] sm:$0xff] }
 0x27f   : > { %16944 = vst [vmem:[#allocation76_spill] sm:$0xff] %v15266_v1  ;;  %16945 = vst [vmem:[#allocation77_spill] sm:$0xff] %v15268_v0 }
 0x280   : > { %v15272_v8 = vpop.f32.mrf.mxu0  ;;  %12470 = vmatmul.mubr.msk.f32.gmra.mxu0 %vm5434_vm1, %v5013_v9  ;;  %v15275_v49 = vpop.f32.mrf.mxu1  ;;  %12902 = vmatmul.mubr.msk.f32.gmra.mxu1 %vm5434_vm1, %v5301_v25  ;;  %v5304_v9 = vld [vmem:[%s14382_s10 + $0xe10] sm:$0xff] }
 0x281   : > { %16946 = vst [vmem:[#allocation78_spill] sm:$0xff] %v15272_v8  ;;  %16947 = vst [vmem:[#allocation79_spill] sm:$0xff] %v15275_v49  ;;  %12472 = vmatprep.mubr.msk.f32.mxu0 %vm5434_vm1, %v5014_v40  ;;  %12904 = vmatprep.mubr.msk.f32.mxu1 %vm5434_vm1, %v5302_v41  ;;  %v5016_v8 = vld [vmem:[%s14382_s10 + $0x510] sm:$0xff]  ;;  %v5017_v40 = vld [vmem:[%s14382_s10 + $0x518] sm:$0xff] }
 0x282   : > { %v15282_v0 = vpop.f32.mrf.mxu0  ;;  %v15284_v1 = vpop.f32.mrf.mxu1  ;;  %v5305_v41 = vld [vmem:[%s14382_s10 + $0xe18] sm:$0xff] }
 0x283   : > { %16948 = vst [vmem:[#allocation80_spill] sm:$0xff] %v15282_v0  ;;  %16949 = vst [vmem:[#allocation81_spill] sm:$0xff] %v15284_v1 }
 0x284   : > { %v15288_v24 = vpop.f32.mrf.mxu0  ;;  %12473 = vmatmul.mubr.msk.f32.gmra.mxu0 %vm5434_vm1, %v5015_v56  ;;  %v15291_v25 = vpop.f32.mrf.mxu1  ;;  %12905 = vmatmul.mubr.msk.f32.gmra.mxu1 %vm5434_vm1, %v5303_v57  ;;  %v5306_v56 = vld [vmem:[%s14382_s10 + $0xe20] sm:$0xff] }
 0x285   : > { %16950 = vst [vmem:[#allocation82_spill] sm:$0xff] %v15288_v24  ;;  %16951 = vst [vmem:[#allocation83_spill] sm:$0xff] %v15291_v25  ;;  %12475 = vmatprep.mubr.msk.f32.mxu0 %vm5434_vm1, %v5016_v8  ;;  %12907 = vmatprep.mubr.msk.f32.mxu1 %vm5434_vm1, %v5304_v9  ;;  %v5018_v24 = vld [vmem:[%s14382_s10 + $0x520] sm:$0xff]  ;;  %v5019_v8 = vld [vmem:[%s14382_s10 + $0x528] sm:$0xff] }
 0x286   : > { %v15298_v1 = vpop.f32.mrf.mxu0  ;;  %v15300_v0 = vpop.f32.mrf.mxu1  ;;  %v5307_v9 = vld [vmem:[%s14382_s10 + $0xe28] sm:$0xff] }
 0x287   : > { %16952 = vst [vmem:[#allocation84_spill] sm:$0xff] %v15298_v1  ;;  %16953 = vst [vmem:[#allocation85_spill] sm:$0xff] %v15300_v0 }
 0x288   : > { %v15304_v49 = vpop.f32.mrf.mxu0  ;;  %12476 = vmatmul.mubr.msk.f32.gmra.mxu0 %vm5434_vm1, %v5017_v40  ;;  %v15307_v57 = vpop.f32.mrf.mxu1  ;;  %12908 = vmatmul.mubr.msk.f32.gmra.mxu1 %vm5434_vm1, %v5305_v41  ;;  %v5308_v40 = vld [vmem:[%s14382_s10 + $0xe30] sm:$0xff] }
 0x289   : > { %16954 = vst [vmem:[#allocation86_spill] sm:$0xff] %v15304_v49  ;;  %16955 = vst [vmem:[#allocation87_spill] sm:$0xff] %v15307_v57  ;;  %12478 = vmatprep.mubr.msk.f32.mxu0 %vm5434_vm1, %v5018_v24  ;;  %12910 = vmatprep.mubr.msk.f32.mxu1 %vm5434_vm1, %v5306_v56  ;;  %v5020_v49 = vld [vmem:[%s14382_s10 + $0x530] sm:$0xff]  ;;  %v5021_v24 = vld [vmem:[%s14382_s10 + $0x538] sm:$0xff] }
 0x28a   : > { %v15314_v0 = vpop.f32.mrf.mxu0  ;;  %v15316_v1 = vpop.f32.mrf.mxu1  ;;  %v5309_v56 = vld [vmem:[%s14382_s10 + $0xe38] sm:$0xff] }
 0x28b   : > { %16956 = vst [vmem:[#allocation88_spill] sm:$0xff] %v15314_v0  ;;  %16957 = vst [vmem:[#allocation89_spill] sm:$0xff] %v15316_v1 }
 0x28c   : > { %v15320_v25 = vpop.f32.mrf.mxu0  ;;  %12479 = vmatmul.mubr.msk.f32.gmra.mxu0 %vm5434_vm1, %v5019_v8  ;;  %v15323_v41 = vpop.f32.mrf.mxu1  ;;  %12911 = vmatmul.mubr.msk.f32.gmra.mxu1 %vm5434_vm1, %v5307_v9  ;;  %v5310_v8 = vld [vmem:[%s14382_s10 + $0xe40] sm:$0xff] }
 0x28d   : > { %16958 = vst [vmem:[#allocation90_spill] sm:$0xff] %v15320_v25  ;;  %16959 = vst [vmem:[#allocation91_spill] sm:$0xff] %v15323_v41  ;;  %12481 = vmatprep.mubr.msk.f32.mxu0 %vm5434_vm1, %v5020_v49  ;;  %12913 = vmatprep.mubr.msk.f32.mxu1 %vm5434_vm1, %v5308_v40  ;;  %v5022_v25 = vld [vmem:[%s14382_s10 + $0x540] sm:$0xff]  ;;  %v5023_v49 = vld [vmem:[%s14382_s10 + $0x548] sm:$0xff] }
 0x28e   : > { %v15330_v1 = vpop.f32.mrf.mxu0  ;;  %v15332_v0 = vpop.f32.mrf.mxu1  ;;  %v5311_v40 = vld [vmem:[%s14382_s10 + $0xe48] sm:$0xff] }
 0x28f   : > { %16960 = vst [vmem:[#allocation92_spill] sm:$0xff] %v15330_v1  ;;  %16961 = vst [vmem:[#allocation93_spill] sm:$0xff] %v15332_v0 }
 0x290   : > { %v15336_v57 = vpop.f32.mrf.mxu0  ;;  %12482 = vmatmul.mubr.msk.f32.gmra.mxu0 %vm5434_vm1, %v5021_v24  ;;  %v15339_v9 = vpop.f32.mrf.mxu1  ;;  %12914 = vmatmul.mubr.msk.f32.gmra.mxu1 %vm5434_vm1, %v5309_v56  ;;  %v5312_v24 = vld [vmem:[%s14382_s10 + $0xe50] sm:$0xff] }
 0x291   : > { %16962 = vst [vmem:[#allocation94_spill] sm:$0xff] %v15336_v57  ;;  %16963 = vst [vmem:[#allocation95_spill] sm:$0xff] %v15339_v9  ;;  %12484 = vmatprep.mubr.msk.f32.mxu0 %vm5434_vm1, %v5022_v25  ;;  %12916 = vmatprep.mubr.msk.f32.mxu1 %vm5434_vm1, %v5310_v8  ;;  %v5024_v57 = vld [vmem:[%s14382_s10 + $0x550] sm:$0xff]  ;;  %v5025_v25 = vld [vmem:[%s14382_s10 + $0x558] sm:$0xff] }
 0x292   : > { %v15346_v0 = vpop.f32.mrf.mxu0  ;;  %v15348_v1 = vpop.f32.mrf.mxu1  ;;  %v5313_v8 = vld [vmem:[%s14382_s10 + $0xe58] sm:$0xff] }
 0x293   : > { %16964 = vst [vmem:[#allocation96_spill] sm:$0xff] %v15346_v0  ;;  %16965 = vst [vmem:[#allocation97_spill] sm:$0xff] %v15348_v1 }
 0x294   : > { %v15352_v41 = vpop.f32.mrf.mxu0  ;;  %12485 = vmatmul.mubr.msk.f32.gmra.mxu0 %vm5434_vm1, %v5023_v49  ;;  %v15355_v56 = vpop.f32.mrf.mxu1  ;;  %12917 = vmatmul.mubr.msk.f32.gmra.mxu1 %vm5434_vm1, %v5311_v40  ;;  %v5314_v49 = vld [vmem:[%s14382_s10 + $0xe60] sm:$0xff] }
 0x295   : > { %16966 = vst [vmem:[#allocation98_spill] sm:$0xff] %v15352_v41  ;;  %16967 = vst [vmem:[#allocation99_spill] sm:$0xff] %v15355_v56  ;;  %12487 = vmatprep.mubr.msk.f32.mxu0 %vm5434_vm1, %v5024_v57  ;;  %12919 = vmatprep.mubr.msk.f32.mxu1 %vm5434_vm1, %v5312_v24  ;;  %v5026_v41 = vld [vmem:[%s14382_s10 + $0x560] sm:$0xff]  ;;  %v5027_v57 = vld [vmem:[%s14382_s10 + $0x568] sm:$0xff] }
 0x296   : > { %v15362_v1 = vpop.f32.mrf.mxu0  ;;  %v15364_v0 = vpop.f32.mrf.mxu1  ;;  %v5315_v24 = vld [vmem:[%s14382_s10 + $0xe68] sm:$0xff] }
 0x297   : > { %16968 = vst [vmem:[#allocation100_spill] sm:$0xff] %v15362_v1  ;;  %16969 = vst [vmem:[#allocation101_spill] sm:$0xff] %v15364_v0 }
 0x298   : > { %v15368_v9 = vpop.f32.mrf.mxu0  ;;  %12488 = vmatmul.mubr.msk.f32.gmra.mxu0 %vm5434_vm1, %v5025_v25  ;;  %v15371_v40 = vpop.f32.mrf.mxu1  ;;  %12920 = vmatmul.mubr.msk.f32.gmra.mxu1 %vm5434_vm1, %v5313_v8  ;;  %v5316_v25 = vld [vmem:[%s14382_s10 + $0xe70] sm:$0xff] }
 0x299   : > { %16970 = vst [vmem:[#allocation102_spill] sm:$0xff] %v15368_v9  ;;  %16971 = vst [vmem:[#allocation103_spill] sm:$0xff] %v15371_v40  ;;  %12490 = vmatprep.mubr.msk.f32.mxu0 %vm5434_vm1, %v5026_v41  ;;  %12922 = vmatprep.mubr.msk.f32.mxu1 %vm5434_vm1, %v5314_v49  ;;  %v5028_v9 = vld [vmem:[%s14382_s10 + $0x570] sm:$0xff]  ;;  %v5029_v41 = vld [vmem:[%s14382_s10 + $0x578] sm:$0xff] }
 0x29a   : > { %v15378_v0 = vpop.f32.mrf.mxu0  ;;  %v15380_v1 = vpop.f32.mrf.mxu1  ;;  %v5317_v49 = vld [vmem:[%s14382_s10 + $0xe78] sm:$0xff] }
 0x29b   : > { %16972 = vst [vmem:[#allocation104_spill] sm:$0xff] %v15378_v0  ;;  %16973 = vst [vmem:[#allocation105_spill] sm:$0xff] %v15380_v1 }
 0x29c   : > { %v15384_v56 = vpop.f32.mrf.mxu0  ;;  %12491 = vmatmul.mubr.msk.f32.gmra.mxu0 %vm5434_vm1, %v5027_v57  ;;  %v15387_v8 = vpop.f32.mrf.mxu1  ;;  %12923 = vmatmul.mubr.msk.f32.gmra.mxu1 %vm5434_vm1, %v5315_v24  ;;  %v5318_v57 = vld [vmem:[%s14382_s10 + $0xe80] sm:$0xff] }
 0x29d   : > { %16974 = vst [vmem:[#allocation106_spill] sm:$0xff] %v15384_v56  ;;  %16975 = vst [vmem:[#allocation107_spill] sm:$0xff] %v15387_v8  ;;  %12493 = vmatprep.mubr.msk.f32.mxu0 %vm5434_vm1, %v5028_v9  ;;  %12925 = vmatprep.mubr.msk.f32.mxu1 %vm5434_vm1, %v5316_v25  ;;  %v5030_v56 = vld [vmem:[%s14382_s10 + $0x580] sm:$0xff]  ;;  %v5031_v9 = vld [vmem:[%s14382_s10 + $0x588] sm:$0xff] }
 0x29e   : > { %v15394_v1 = vpop.f32.mrf.mxu0  ;;  %v15396_v0 = vpop.f32.mrf.mxu1  ;;  %v5319_v25 = vld [vmem:[%s14382_s10 + $0xe88] sm:$0xff] }
 0x29f   : > { %16976 = vst [vmem:[#allocation108_spill] sm:$0xff] %v15394_v1  ;;  %16977 = vst [vmem:[#allocation109_spill] sm:$0xff] %v15396_v0 }
 0x2a0   : > { %v15400_v40 = vpop.f32.mrf.mxu0  ;;  %12494 = vmatmul.mubr.msk.f32.gmra.mxu0 %vm5434_vm1, %v5029_v41  ;;  %v15403_v24 = vpop.f32.mrf.mxu1  ;;  %12926 = vmatmul.mubr.msk.f32.gmra.mxu1 %vm5434_vm1, %v5317_v49  ;;  %v5320_v41 = vld [vmem:[%s14382_s10 + $0xe90] sm:$0xff] }
 0x2a1   : > { %16978 = vst [vmem:[#allocation110_spill] sm:$0xff] %v15400_v40  ;;  %16979 = vst [vmem:[#allocation111_spill] sm:$0xff] %v15403_v24  ;;  %12496 = vmatprep.mubr.msk.f32.mxu0 %vm5434_vm1, %v5030_v56  ;;  %12928 = vmatprep.mubr.msk.f32.mxu1 %vm5434_vm1, %v5318_v57  ;;  %v5032_v40 = vld [vmem:[%s14382_s10 + $0x590] sm:$0xff]  ;;  %v5033_v56 = vld [vmem:[%s14382_s10 + $0x598] sm:$0xff] }
 0x2a2   : > { %v15410_v0 = vpop.f32.mrf.mxu0  ;;  %v15412_v1 = vpop.f32.mrf.mxu1  ;;  %v5321_v57 = vld [vmem:[%s14382_s10 + $0xe98] sm:$0xff] }
 0x2a3   : > { %16980 = vst [vmem:[#allocation112_spill] sm:$0xff] %v15410_v0  ;;  %16981 = vst [vmem:[#allocation113_spill] sm:$0xff] %v15412_v1 }
 0x2a4   : > { %v15416_v8 = vpop.f32.mrf.mxu0  ;;  %12497 = vmatmul.mubr.msk.f32.gmra.mxu0 %vm5434_vm1, %v5031_v9  ;;  %v15419_v49 = vpop.f32.mrf.mxu1  ;;  %12929 = vmatmul.mubr.msk.f32.gmra.mxu1 %vm5434_vm1, %v5319_v25  ;;  %v5322_v9 = vld [vmem:[%s14382_s10 + $0xea0] sm:$0xff] }
 0x2a5   : > { %16982 = vst [vmem:[#allocation114_spill] sm:$0xff] %v15416_v8  ;;  %16983 = vst [vmem:[#allocation115_spill] sm:$0xff] %v15419_v49  ;;  %12499 = vmatprep.mubr.msk.f32.mxu0 %vm5434_vm1, %v5032_v40  ;;  %12931 = vmatprep.mubr.msk.f32.mxu1 %vm5434_vm1, %v5320_v41  ;;  %v5034_v8 = vld [vmem:[%s14382_s10 + $0x5a0] sm:$0xff]  ;;  %v5035_v40 = vld [vmem:[%s14382_s10 + $0x5a8] sm:$0xff] }
 0x2a6   : > { %v15426_v1 = vpop.f32.mrf.mxu0  ;;  %v15428_v0 = vpop.f32.mrf.mxu1  ;;  %v5323_v41 = vld [vmem:[%s14382_s10 + $0xea8] sm:$0xff] }
 0x2a7   : > { %16984 = vst [vmem:[#allocation116_spill] sm:$0xff] %v15426_v1  ;;  %16985 = vst [vmem:[#allocation117_spill] sm:$0xff] %v15428_v0 }
 0x2a8   : > { %v15432_v24 = vpop.f32.mrf.mxu0  ;;  %12500 = vmatmul.mubr.msk.f32.gmra.mxu0 %vm5434_vm1, %v5033_v56  ;;  %v15435_v25 = vpop.f32.mrf.mxu1  ;;  %12932 = vmatmul.mubr.msk.f32.gmra.mxu1 %vm5434_vm1, %v5321_v57  ;;  %v5324_v56 = vld [vmem:[%s14382_s10 + $0xeb0] sm:$0xff] }
 0x2a9   : > { %16986 = vst [vmem:[#allocation118_spill] sm:$0xff] %v15432_v24  ;;  %16987 = vst [vmem:[#allocation119_spill] sm:$0xff] %v15435_v25  ;;  %12502 = vmatprep.mubr.msk.f32.mxu0 %vm5434_vm1, %v5034_v8  ;;  %12934 = vmatprep.mubr.msk.f32.mxu1 %vm5434_vm1, %v5322_v9  ;;  %v5036_v24 = vld [vmem:[%s14382_s10 + $0x5b0] sm:$0xff]  ;;  %v5037_v8 = vld [vmem:[%s14382_s10 + $0x5b8] sm:$0xff] }
 0x2aa   : > { %v15442_v0 = vpop.f32.mrf.mxu0  ;;  %v15444_v1 = vpop.f32.mrf.mxu1  ;;  %v5325_v9 = vld [vmem:[%s14382_s10 + $0xeb8] sm:$0xff] }
 0x2ab   : > { %16988 = vst [vmem:[#allocation120_spill] sm:$0xff] %v15442_v0  ;;  %16989 = vst [vmem:[#allocation121_spill] sm:$0xff] %v15444_v1 }
 0x2ac   : > { %v15448_v49 = vpop.f32.mrf.mxu0  ;;  %12503 = vmatmul.mubr.msk.f32.gmra.mxu0 %vm5434_vm1, %v5035_v40  ;;  %v15451_v57 = vpop.f32.mrf.mxu1  ;;  %12935 = vmatmul.mubr.msk.f32.gmra.mxu1 %vm5434_vm1, %v5323_v41  ;;  %v5326_v40 = vld [vmem:[%s14382_s10 + $0xec0] sm:$0xff] }
 0x2ad   : > { %16990 = vst [vmem:[#allocation122_spill] sm:$0xff] %v15448_v49  ;;  %16991 = vst [vmem:[#allocation123_spill] sm:$0xff] %v15451_v57  ;;  %12505 = vmatprep.mubr.msk.f32.mxu0 %vm5434_vm1, %v5036_v24  ;;  %12937 = vmatprep.mubr.msk.f32.mxu1 %vm5434_vm1, %v5324_v56  ;;  %v5038_v49 = vld [vmem:[%s14382_s10 + $0x5c0] sm:$0xff]  ;;  %v5039_v24 = vld [vmem:[%s14382_s10 + $0x5c8] sm:$0xff] }
 0x2ae   : > { %v15458_v1 = vpop.f32.mrf.mxu0  ;;  %v15460_v0 = vpop.f32.mrf.mxu1  ;;  %v5327_v56 = vld [vmem:[%s14382_s10 + $0xec8] sm:$0xff] }
 0x2af   : > { %16992 = vst [vmem:[#allocation124_spill] sm:$0xff] %v15458_v1  ;;  %16993 = vst [vmem:[#allocation125_spill] sm:$0xff] %v15460_v0 }
 0x2b0   : > { %v15464_v25 = vpop.f32.mrf.mxu0  ;;  %12506 = vmatmul.mubr.msk.f32.gmra.mxu0 %vm5434_vm1, %v5037_v8  ;;  %v15467_v41 = vpop.f32.mrf.mxu1  ;;  %12938 = vmatmul.mubr.msk.f32.gmra.mxu1 %vm5434_vm1, %v5325_v9  ;;  %v5328_v8 = vld [vmem:[%s14382_s10 + $0xed0] sm:$0xff] }
 0x2b1   : > { %16994 = vst [vmem:[#allocation126_spill] sm:$0xff] %v15464_v25  ;;  %16995 = vst [vmem:[#allocation127_spill] sm:$0xff] %v15467_v41  ;;  %12508 = vmatprep.mubr.msk.f32.mxu0 %vm5434_vm1, %v5038_v49  ;;  %12940 = vmatprep.mubr.msk.f32.mxu1 %vm5434_vm1, %v5326_v40  ;;  %v5040_v25 = vld [vmem:[%s14382_s10 + $0x5d0] sm:$0xff]  ;;  %v5041_v49 = vld [vmem:[%s14382_s10 + $0x5d8] sm:$0xff] }
 0x2b2   : > { %v15474_v0 = vpop.f32.mrf.mxu0  ;;  %v15476_v1 = vpop.f32.mrf.mxu1  ;;  %v5329_v40 = vld [vmem:[%s14382_s10 + $0xed8] sm:$0xff] }
 0x2b3   : > { %16996 = vst [vmem:[#allocation128_spill] sm:$0xff] %v15474_v0  ;;  %16997 = vst [vmem:[#allocation129_spill] sm:$0xff] %v15476_v1 }
 0x2b4   : > { %v15480_v57 = vpop.f32.mrf.mxu0  ;;  %12509 = vmatmul.mubr.msk.f32.gmra.mxu0 %vm5434_vm1, %v5039_v24  ;;  %v15483_v9 = vpop.f32.mrf.mxu1  ;;  %12941 = vmatmul.mubr.msk.f32.gmra.mxu1 %vm5434_vm1, %v5327_v56  ;;  %v5330_v24 = vld [vmem:[%s14382_s10 + $0xee0] sm:$0xff] }
 0x2b5   : > { %16998 = vst [vmem:[#allocation130_spill] sm:$0xff] %v15480_v57  ;;  %16999 = vst [vmem:[#allocation131_spill] sm:$0xff] %v15483_v9  ;;  %12511 = vmatprep.mubr.msk.f32.mxu0 %vm5434_vm1, %v5040_v25  ;;  %12943 = vmatprep.mubr.msk.f32.mxu1 %vm5434_vm1, %v5328_v8  ;;  %v5042_v57 = vld [vmem:[%s14382_s10 + $0x5e0] sm:$0xff]  ;;  %v5043_v25 = vld [vmem:[%s14382_s10 + $0x5e8] sm:$0xff] }
 0x2b6   : > { %v15490_v1 = vpop.f32.mrf.mxu0  ;;  %v15492_v0 = vpop.f32.mrf.mxu1  ;;  %v5331_v8 = vld [vmem:[%s14382_s10 + $0xee8] sm:$0xff] }
 0x2b7   : > { %17000 = vst [vmem:[#allocation132_spill] sm:$0xff] %v15490_v1  ;;  %17001 = vst [vmem:[#allocation133_spill] sm:$0xff] %v15492_v0 }
 0x2b8   : > { %v15496_v41 = vpop.f32.mrf.mxu0  ;;  %12512 = vmatmul.mubr.msk.f32.gmra.mxu0 %vm5434_vm1, %v5041_v49  ;;  %v15499_v56 = vpop.f32.mrf.mxu1  ;;  %12944 = vmatmul.mubr.msk.f32.gmra.mxu1 %vm5434_vm1, %v5329_v40  ;;  %v5332_v49 = vld [vmem:[%s14382_s10 + $0xef0] sm:$0xff] }
 0x2b9   : > { %17002 = vst [vmem:[#allocation134_spill] sm:$0xff] %v15496_v41  ;;  %17003 = vst [vmem:[#allocation135_spill] sm:$0xff] %v15499_v56  ;;  %12514 = vmatprep.mubr.msk.f32.mxu0 %vm5434_vm1, %v5042_v57  ;;  %12946 = vmatprep.mubr.msk.f32.mxu1 %vm5434_vm1, %v5330_v24  ;;  %v5044_v41 = vld [vmem:[%s14382_s10 + $0x5f0] sm:$0xff]  ;;  %v5045_v57 = vld [vmem:[%s14382_s10 + $0x5f8] sm:$0xff] }
 0x2ba   : > { %v15506_v0 = vpop.f32.mrf.mxu0  ;;  %v15508_v1 = vpop.f32.mrf.mxu1  ;;  %v5333_v24 = vld [vmem:[%s14382_s10 + $0xef8] sm:$0xff] }
 0x2bb   : > { %17004 = vst [vmem:[#allocation136_spill] sm:$0xff] %v15506_v0  ;;  %17005 = vst [vmem:[#allocation137_spill] sm:$0xff] %v15508_v1 }
 0x2bc   : > { %v15512_v9 = vpop.f32.mrf.mxu0  ;;  %12515 = vmatmul.mubr.msk.f32.gmra.mxu0 %vm5434_vm1, %v5043_v25  ;;  %v15515_v40 = vpop.f32.mrf.mxu1  ;;  %12947 = vmatmul.mubr.msk.f32.gmra.mxu1 %vm5434_vm1, %v5331_v8  ;;  %v5334_v25 = vld [vmem:[%s14382_s10 + $0xf00] sm:$0xff] }
 0x2bd   : > { %17006 = vst [vmem:[#allocation138_spill] sm:$0xff] %v15512_v9  ;;  %17007 = vst [vmem:[#allocation139_spill] sm:$0xff] %v15515_v40  ;;  %12517 = vmatprep.mubr.msk.f32.mxu0 %vm5434_vm1, %v5044_v41  ;;  %12949 = vmatprep.mubr.msk.f32.mxu1 %vm5434_vm1, %v5332_v49  ;;  %v5046_v9 = vld [vmem:[%s14382_s10 + $0x600] sm:$0xff]  ;;  %v5047_v41 = vld [vmem:[%s14382_s10 + $0x608] sm:$0xff] }
 0x2be   : > { %v15522_v1 = vpop.f32.mrf.mxu0  ;;  %v15524_v0 = vpop.f32.mrf.mxu1  ;;  %v5335_v49 = vld [vmem:[%s14382_s10 + $0xf08] sm:$0xff] }
 0x2bf   : > { %17008 = vst [vmem:[#allocation140_spill] sm:$0xff] %v15522_v1  ;;  %17009 = vst [vmem:[#allocation141_spill] sm:$0xff] %v15524_v0 }
 0x2c0   : > { %v15528_v56 = vpop.f32.mrf.mxu0  ;;  %12518 = vmatmul.mubr.msk.f32.gmra.mxu0 %vm5434_vm1, %v5045_v57  ;;  %v15531_v8 = vpop.f32.mrf.mxu1  ;;  %12950 = vmatmul.mubr.msk.f32.gmra.mxu1 %vm5434_vm1, %v5333_v24  ;;  %v5336_v57 = vld [vmem:[%s14382_s10 + $0xf10] sm:$0xff] }
 0x2c1   : > { %17010 = vst [vmem:[#allocation142_spill] sm:$0xff] %v15528_v56  ;;  %17011 = vst [vmem:[#allocation143_spill] sm:$0xff] %v15531_v8  ;;  %12520 = vmatprep.mubr.msk.f32.mxu0 %vm5434_vm1, %v5046_v9  ;;  %12952 = vmatprep.mubr.msk.f32.mxu1 %vm5434_vm1, %v5334_v25  ;;  %v5048_v56 = vld [vmem:[%s14382_s10 + $0x610] sm:$0xff]  ;;  %v5049_v9 = vld [vmem:[%s14382_s10 + $0x618] sm:$0xff] }
 0x2c2   : > { %v15538_v0 = vpop.f32.mrf.mxu0  ;;  %v15540_v1 = vpop.f32.mrf.mxu1  ;;  %v5337_v25 = vld [vmem:[%s14382_s10 + $0xf18] sm:$0xff] }
 0x2c3   : > { %17012 = vst [vmem:[#allocation144_spill] sm:$0xff] %v15538_v0  ;;  %17013 = vst [vmem:[#allocation145_spill] sm:$0xff] %v15540_v1 }
 0x2c4   : > { %v15544_v40 = vpop.f32.mrf.mxu0  ;;  %12521 = vmatmul.mubr.msk.f32.gmra.mxu0 %vm5434_vm1, %v5047_v41  ;;  %v15547_v24 = vpop.f32.mrf.mxu1  ;;  %12953 = vmatmul.mubr.msk.f32.gmra.mxu1 %vm5434_vm1, %v5335_v49  ;;  %v5338_v41 = vld [vmem:[%s14382_s10 + $0xf20] sm:$0xff] }
 0x2c5   : > { %17014 = vst [vmem:[#allocation146_spill] sm:$0xff] %v15544_v40  ;;  %17015 = vst [vmem:[#allocation147_spill] sm:$0xff] %v15547_v24  ;;  %12523 = vmatprep.mubr.msk.f32.mxu0 %vm5434_vm1, %v5048_v56  ;;  %12955 = vmatprep.mubr.msk.f32.mxu1 %vm5434_vm1, %v5336_v57  ;;  %v5050_v40 = vld [vmem:[%s14382_s10 + $0x620] sm:$0xff]  ;;  %v5051_v56 = vld [vmem:[%s14382_s10 + $0x628] sm:$0xff] }
 0x2c6   : > { %v15554_v1 = vpop.f32.mrf.mxu0  ;;  %v15556_v0 = vpop.f32.mrf.mxu1  ;;  %v5339_v57 = vld [vmem:[%s14382_s10 + $0xf28] sm:$0xff] }
 0x2c7   : > { %17016 = vst [vmem:[#allocation148_spill] sm:$0xff] %v15554_v1  ;;  %17017 = vst [vmem:[#allocation149_spill] sm:$0xff] %v15556_v0 }
 0x2c8   : > { %v15560_v8 = vpop.f32.mrf.mxu0  ;;  %12524 = vmatmul.mubr.msk.f32.gmra.mxu0 %vm5434_vm1, %v5049_v9  ;;  %v15563_v49 = vpop.f32.mrf.mxu1  ;;  %12956 = vmatmul.mubr.msk.f32.gmra.mxu1 %vm5434_vm1, %v5337_v25  ;;  %v5340_v9 = vld [vmem:[%s14382_s10 + $0xf30] sm:$0xff] }
 0x2c9   : > { %17018 = vst [vmem:[#allocation150_spill] sm:$0xff] %v15560_v8  ;;  %17019 = vst [vmem:[#allocation151_spill] sm:$0xff] %v15563_v49  ;;  %12526 = vmatprep.mubr.msk.f32.mxu0 %vm5434_vm1, %v5050_v40  ;;  %12958 = vmatprep.mubr.msk.f32.mxu1 %vm5434_vm1, %v5338_v41  ;;  %v5052_v8 = vld [vmem:[%s14382_s10 + $0x630] sm:$0xff]  ;;  %v5053_v40 = vld [vmem:[%s14382_s10 + $0x638] sm:$0xff] }
 0x2ca   : > { %v15570_v0 = vpop.f32.mrf.mxu0  ;;  %v15572_v1 = vpop.f32.mrf.mxu1  ;;  %v5341_v41 = vld [vmem:[%s14382_s10 + $0xf38] sm:$0xff] }
 0x2cb   : > { %17020 = vst [vmem:[#allocation152_spill] sm:$0xff] %v15570_v0  ;;  %17021 = vst [vmem:[#allocation153_spill] sm:$0xff] %v15572_v1 }
 0x2cc   : > { %v15576_v24 = vpop.f32.mrf.mxu0  ;;  %12527 = vmatmul.mubr.msk.f32.gmra.mxu0 %vm5434_vm1, %v5051_v56  ;;  %v15579_v25 = vpop.f32.mrf.mxu1  ;;  %12959 = vmatmul.mubr.msk.f32.gmra.mxu1 %vm5434_vm1, %v5339_v57  ;;  %v5342_v56 = vld [vmem:[%s14382_s10 + $0xf40] sm:$0xff] }
 0x2cd   : > { %17022 = vst [vmem:[#allocation154_spill] sm:$0xff] %v15576_v24  ;;  %17023 = vst [vmem:[#allocation155_spill] sm:$0xff] %v15579_v25  ;;  %12529 = vmatprep.mubr.msk.f32.mxu0 %vm5434_vm1, %v5052_v8  ;;  %12961 = vmatprep.mubr.msk.f32.mxu1 %vm5434_vm1, %v5340_v9  ;;  %v5054_v24 = vld [vmem:[%s14382_s10 + $0x640] sm:$0xff]  ;;  %v5055_v8 = vld [vmem:[%s14382_s10 + $0x648] sm:$0xff] }
 0x2ce   : > { %v15586_v1 = vpop.f32.mrf.mxu0  ;;  %v15588_v0 = vpop.f32.mrf.mxu1  ;;  %v5343_v9 = vld [vmem:[%s14382_s10 + $0xf48] sm:$0xff] }
 0x2cf   : > { %17024 = vst [vmem:[#allocation156_spill] sm:$0xff] %v15586_v1  ;;  %17025 = vst [vmem:[#allocation157_spill] sm:$0xff] %v15588_v0 }
 0x2d0   : > { %v15592_v49 = vpop.f32.mrf.mxu0  ;;  %12530 = vmatmul.mubr.msk.f32.gmra.mxu0 %vm5434_vm1, %v5053_v40  ;;  %v15595_v57 = vpop.f32.mrf.mxu1  ;;  %12962 = vmatmul.mubr.msk.f32.gmra.mxu1 %vm5434_vm1, %v5341_v41  ;;  %v5344_v40 = vld [vmem:[%s14382_s10 + $0xf50] sm:$0xff] }
 0x2d1   : > { %17026 = vst [vmem:[#allocation158_spill] sm:$0xff] %v15592_v49  ;;  %17027 = vst [vmem:[#allocation159_spill] sm:$0xff] %v15595_v57  ;;  %12532 = vmatprep.mubr.msk.f32.mxu0 %vm5434_vm1, %v5054_v24  ;;  %12964 = vmatprep.mubr.msk.f32.mxu1 %vm5434_vm1, %v5342_v56  ;;  %v5056_v49 = vld [vmem:[%s14382_s10 + $0x650] sm:$0xff]  ;;  %v5057_v24 = vld [vmem:[%s14382_s10 + $0x658] sm:$0xff] }
 0x2d2   : > { %v15602_v0 = vpop.f32.mrf.mxu0  ;;  %v15604_v1 = vpop.f32.mrf.mxu1  ;;  %v5345_v56 = vld [vmem:[%s14382_s10 + $0xf58] sm:$0xff] }
 0x2d3   : > { %17028 = vst [vmem:[#allocation160_spill] sm:$0xff] %v15602_v0  ;;  %17029 = vst [vmem:[#allocation161_spill] sm:$0xff] %v15604_v1 }
 0x2d4   : > { %v15608_v25 = vpop.f32.mrf.mxu0  ;;  %12533 = vmatmul.mubr.msk.f32.gmra.mxu0 %vm5434_vm1, %v5055_v8  ;;  %v15611_v41 = vpop.f32.mrf.mxu1  ;;  %12965 = vmatmul.mubr.msk.f32.gmra.mxu1 %vm5434_vm1, %v5343_v9  ;;  %v5346_v8 = vld [vmem:[%s14382_s10 + $0xf60] sm:$0xff] }
 0x2d5   : > { %17030 = vst [vmem:[#allocation162_spill] sm:$0xff] %v15608_v25  ;;  %17031 = vst [vmem:[#allocation163_spill] sm:$0xff] %v15611_v41  ;;  %12535 = vmatprep.mubr.msk.f32.mxu0 %vm5434_vm1, %v5056_v49  ;;  %12967 = vmatprep.mubr.msk.f32.mxu1 %vm5434_vm1, %v5344_v40  ;;  %v5058_v25 = vld [vmem:[%s14382_s10 + $0x660] sm:$0xff]  ;;  %v5059_v49 = vld [vmem:[%s14382_s10 + $0x668] sm:$0xff] }
 0x2d6   : > { %v15618_v1 = vpop.f32.mrf.mxu0  ;;  %v15620_v0 = vpop.f32.mrf.mxu1  ;;  %v5347_v40 = vld [vmem:[%s14382_s10 + $0xf68] sm:$0xff] }
 0x2d7   : > { %17032 = vst [vmem:[#allocation164_spill] sm:$0xff] %v15618_v1  ;;  %17033 = vst [vmem:[#allocation165_spill] sm:$0xff] %v15620_v0 }
 0x2d8   : > { %v15624_v57 = vpop.f32.mrf.mxu0  ;;  %12536 = vmatmul.mubr.msk.f32.gmra.mxu0 %vm5434_vm1, %v5057_v24  ;;  %v15627_v9 = vpop.f32.mrf.mxu1  ;;  %12968 = vmatmul.mubr.msk.f32.gmra.mxu1 %vm5434_vm1, %v5345_v56  ;;  %v5348_v24 = vld [vmem:[%s14382_s10 + $0xf70] sm:$0xff] }
 0x2d9   : > { %17034 = vst [vmem:[#allocation166_spill] sm:$0xff] %v15624_v57  ;;  %17035 = vst [vmem:[#allocation167_spill] sm:$0xff] %v15627_v9  ;;  %12538 = vmatprep.mubr.msk.f32.mxu0 %vm5434_vm1, %v5058_v25  ;;  %12970 = vmatprep.mubr.msk.f32.mxu1 %vm5434_vm1, %v5346_v8  ;;  %v5060_v57 = vld [vmem:[%s14382_s10 + $0x670] sm:$0xff]  ;;  %v5061_v25 = vld [vmem:[%s14382_s10 + $0x678] sm:$0xff] }
 0x2da   : > { %v15634_v0 = vpop.f32.mrf.mxu0  ;;  %v15636_v1 = vpop.f32.mrf.mxu1  ;;  %v5349_v8 = vld [vmem:[%s14382_s10 + $0xf78] sm:$0xff] }
 0x2db   : > { %17036 = vst [vmem:[#allocation168_spill] sm:$0xff] %v15634_v0  ;;  %17037 = vst [vmem:[#allocation169_spill] sm:$0xff] %v15636_v1 }
 0x2dc   : > { %v15640_v41 = vpop.f32.mrf.mxu0  ;;  %12539 = vmatmul.mubr.msk.f32.gmra.mxu0 %vm5434_vm1, %v5059_v49  ;;  %v15643_v56 = vpop.f32.mrf.mxu1  ;;  %12971 = vmatmul.mubr.msk.f32.gmra.mxu1 %vm5434_vm1, %v5347_v40  ;;  %v5350_v49 = vld [vmem:[%s14382_s10 + $0xf80] sm:$0xff] }
 0x2dd   : > { %17038 = vst [vmem:[#allocation170_spill] sm:$0xff] %v15640_v41  ;;  %17039 = vst [vmem:[#allocation171_spill] sm:$0xff] %v15643_v56  ;;  %12541 = vmatprep.mubr.msk.f32.mxu0 %vm5434_vm1, %v5060_v57  ;;  %12973 = vmatprep.mubr.msk.f32.mxu1 %vm5434_vm1, %v5348_v24  ;;  %v5062_v41 = vld [vmem:[%s14382_s10 + $0x680] sm:$0xff]  ;;  %v5063_v57 = vld [vmem:[%s14382_s10 + $0x688] sm:$0xff] }
 0x2de   : > { %v15650_v1 = vpop.f32.mrf.mxu0  ;;  %v15652_v0 = vpop.f32.mrf.mxu1  ;;  %v5351_v24 = vld [vmem:[%s14382_s10 + $0xf88] sm:$0xff] }
 0x2df   : > { %17040 = vst [vmem:[#allocation172_spill] sm:$0xff] %v15650_v1  ;;  %17041 = vst [vmem:[#allocation173_spill] sm:$0xff] %v15652_v0 }
 0x2e0   : > { %v15656_v9 = vpop.f32.mrf.mxu0  ;;  %12542 = vmatmul.mubr.msk.f32.gmra.mxu0 %vm5434_vm1, %v5061_v25  ;;  %v15659_v40 = vpop.f32.mrf.mxu1  ;;  %12974 = vmatmul.mubr.msk.f32.gmra.mxu1 %vm5434_vm1, %v5349_v8  ;;  %v5352_v25 = vld [vmem:[%s14382_s10 + $0xf90] sm:$0xff] }
 0x2e1   : > { %17042 = vst [vmem:[#allocation174_spill] sm:$0xff] %v15656_v9  ;;  %17043 = vst [vmem:[#allocation175_spill] sm:$0xff] %v15659_v40  ;;  %12544 = vmatprep.mubr.msk.f32.mxu0 %vm5434_vm1, %v5062_v41  ;;  %12976 = vmatprep.mubr.msk.f32.mxu1 %vm5434_vm1, %v5350_v49  ;;  %v5064_v9 = vld [vmem:[%s14382_s10 + $0x690] sm:$0xff]  ;;  %v5065_v41 = vld [vmem:[%s14382_s10 + $0x698] sm:$0xff] }
 0x2e2   : > { %v15666_v0 = vpop.f32.mrf.mxu0  ;;  %v15668_v1 = vpop.f32.mrf.mxu1  ;;  %v5353_v49 = vld [vmem:[%s14382_s10 + $0xf98] sm:$0xff] }
 0x2e3   : > { %17044 = vst [vmem:[#allocation176_spill] sm:$0xff] %v15666_v0  ;;  %17045 = vst [vmem:[#allocation177_spill] sm:$0xff] %v15668_v1 }
 0x2e4   : > { %v15672_v56 = vpop.f32.mrf.mxu0  ;;  %12545 = vmatmul.mubr.msk.f32.gmra.mxu0 %vm5434_vm1, %v5063_v57  ;;  %v15675_v8 = vpop.f32.mrf.mxu1  ;;  %12977 = vmatmul.mubr.msk.f32.gmra.mxu1 %vm5434_vm1, %v5351_v24  ;;  %v5354_v57 = vld [vmem:[%s14382_s10 + $0xfa0] sm:$0xff] }
 0x2e5   : > { %17046 = vst [vmem:[#allocation178_spill] sm:$0xff] %v15672_v56  ;;  %17047 = vst [vmem:[#allocation179_spill] sm:$0xff] %v15675_v8  ;;  %12547 = vmatprep.mubr.msk.f32.mxu0 %vm5434_vm1, %v5064_v9  ;;  %12979 = vmatprep.mubr.msk.f32.mxu1 %vm5434_vm1, %v5352_v25  ;;  %v5066_v56 = vld [vmem:[%s14382_s10 + $0x6a0] sm:$0xff]  ;;  %v5067_v9 = vld [vmem:[%s14382_s10 + $0x6a8] sm:$0xff] }
 0x2e6   : > { %v15682_v1 = vpop.f32.mrf.mxu0  ;;  %v15684_v0 = vpop.f32.mrf.mxu1  ;;  %v5355_v25 = vld [vmem:[%s14382_s10 + $0xfa8] sm:$0xff] }
 0x2e7   : > { %17048 = vst [vmem:[#allocation180_spill] sm:$0xff] %v15682_v1  ;;  %17049 = vst [vmem:[#allocation181_spill] sm:$0xff] %v15684_v0 }
 0x2e8   : > { %v15688_v40 = vpop.f32.mrf.mxu0  ;;  %12548 = vmatmul.mubr.msk.f32.gmra.mxu0 %vm5434_vm1, %v5065_v41  ;;  %v15691_v24 = vpop.f32.mrf.mxu1  ;;  %12980 = vmatmul.mubr.msk.f32.gmra.mxu1 %vm5434_vm1, %v5353_v49  ;;  %v5356_v41 = vld [vmem:[%s14382_s10 + $0xfb0] sm:$0xff] }
 0x2e9   : > { %17050 = vst [vmem:[#allocation182_spill] sm:$0xff] %v15688_v40  ;;  %17051 = vst [vmem:[#allocation183_spill] sm:$0xff] %v15691_v24  ;;  %12550 = vmatprep.mubr.msk.f32.mxu0 %vm5434_vm1, %v5066_v56  ;;  %12982 = vmatprep.mubr.msk.f32.mxu1 %vm5434_vm1, %v5354_v57  ;;  %v5068_v40 = vld [vmem:[%s14382_s10 + $0x6b0] sm:$0xff]  ;;  %v5069_v56 = vld [vmem:[%s14382_s10 + $0x6b8] sm:$0xff] }
 0x2ea   : > { %v15698_v0 = vpop.f32.mrf.mxu0  ;;  %v15700_v1 = vpop.f32.mrf.mxu1  ;;  %v5357_v57 = vld [vmem:[%s14382_s10 + $0xfb8] sm:$0xff] }
 0x2eb   : > { %17052 = vst [vmem:[#allocation184_spill] sm:$0xff] %v15698_v0  ;;  %17053 = vst [vmem:[#allocation185_spill] sm:$0xff] %v15700_v1 }
 0x2ec   : > { %v15704_v8 = vpop.f32.mrf.mxu0  ;;  %12551 = vmatmul.mubr.msk.f32.gmra.mxu0 %vm5434_vm1, %v5067_v9  ;;  %v15707_v49 = vpop.f32.mrf.mxu1  ;;  %12983 = vmatmul.mubr.msk.f32.gmra.mxu1 %vm5434_vm1, %v5355_v25  ;;  %v5358_v9 = vld [vmem:[%s14382_s10 + $0xfc0] sm:$0xff] }
 0x2ed   : > { %17054 = vst [vmem:[#allocation186_spill] sm:$0xff] %v15704_v8  ;;  %17055 = vst [vmem:[#allocation187_spill] sm:$0xff] %v15707_v49  ;;  %12553 = vmatprep.mubr.msk.f32.mxu0 %vm5434_vm1, %v5068_v40  ;;  %12985 = vmatprep.mubr.msk.f32.mxu1 %vm5434_vm1, %v5356_v41  ;;  %v5070_v8 = vld [vmem:[%s14382_s10 + $0x6c0] sm:$0xff]  ;;  %v5071_v40 = vld [vmem:[%s14382_s10 + $0x6c8] sm:$0xff] }
 0x2ee   : > { %v15714_v1 = vpop.f32.mrf.mxu0  ;;  %v15716_v0 = vpop.f32.mrf.mxu1  ;;  %v5359_v41 = vld [vmem:[%s14382_s10 + $0xfc8] sm:$0xff] }
 0x2ef   : > { %17056 = vst [vmem:[#allocation188_spill] sm:$0xff] %v15714_v1  ;;  %17057 = vst [vmem:[#allocation189_spill] sm:$0xff] %v15716_v0 }
 0x2f0   : > { %v15720_v24 = vpop.f32.mrf.mxu0  ;;  %12554 = vmatmul.mubr.msk.f32.gmra.mxu0 %vm5434_vm1, %v5069_v56  ;;  %v15723_v25 = vpop.f32.mrf.mxu1  ;;  %12986 = vmatmul.mubr.msk.f32.gmra.mxu1 %vm5434_vm1, %v5357_v57  ;;  %v5360_v56 = vld [vmem:[%s14382_s10 + $0xfd0] sm:$0xff] }
 0x2f1   : > { %17058 = vst [vmem:[#allocation190_spill] sm:$0xff] %v15720_v24  ;;  %17059 = vst [vmem:[#allocation191_spill] sm:$0xff] %v15723_v25  ;;  %12556 = vmatprep.mubr.msk.f32.mxu0 %vm5434_vm1, %v5070_v8  ;;  %12988 = vmatprep.mubr.msk.f32.mxu1 %vm5434_vm1, %v5358_v9  ;;  %v5072_v24 = vld [vmem:[%s14382_s10 + $0x6d0] sm:$0xff]  ;;  %v5073_v8 = vld [vmem:[%s14382_s10 + $0x6d8] sm:$0xff] }
 0x2f2   : > { %v15730_v0 = vpop.f32.mrf.mxu0  ;;  %v15732_v1 = vpop.f32.mrf.mxu1  ;;  %v5361_v9 = vld [vmem:[%s14382_s10 + $0xfd8] sm:$0xff] }
 0x2f3   : > { %17060 = vst [vmem:[#allocation192_spill] sm:$0xff] %v15730_v0  ;;  %17061 = vst [vmem:[#allocation193_spill] sm:$0xff] %v15732_v1 }
 0x2f4   : > { %v15736_v49 = vpop.f32.mrf.mxu0  ;;  %12557 = vmatmul.mubr.msk.f32.gmra.mxu0 %vm5434_vm1, %v5071_v40  ;;  %v15739_v57 = vpop.f32.mrf.mxu1  ;;  %12989 = vmatmul.mubr.msk.f32.gmra.mxu1 %vm5434_vm1, %v5359_v41  ;;  %v5362_v40 = vld [vmem:[%s14382_s10 + $0xfe0] sm:$0xff] }
 0x2f5   : > { %17062 = vst [vmem:[#allocation194_spill] sm:$0xff] %v15736_v49  ;;  %17063 = vst [vmem:[#allocation195_spill] sm:$0xff] %v15739_v57  ;;  %12559 = vmatprep.mubr.msk.f32.mxu0 %vm5434_vm1, %v5072_v24  ;;  %12991 = vmatprep.mubr.msk.f32.mxu1 %vm5434_vm1, %v5360_v56  ;;  %v5074_v49 = vld [vmem:[%s14382_s10 + $0x6e0] sm:$0xff]  ;;  %v5075_v24 = vld [vmem:[%s14382_s10 + $0x6e8] sm:$0xff] }
 0x2f6   : > { %v15746_v1 = vpop.f32.mrf.mxu0  ;;  %v15748_v0 = vpop.f32.mrf.mxu1  ;;  %v5363_v56 = vld [vmem:[%s14382_s10 + $0xfe8] sm:$0xff] }
 0x2f7   : > { %17064 = vst [vmem:[#allocation196_spill] sm:$0xff] %v15746_v1  ;;  %17065 = vst [vmem:[#allocation197_spill] sm:$0xff] %v15748_v0 }
 0x2f8   : > { %v15752_v25 = vpop.f32.mrf.mxu0  ;;  %12560 = vmatmul.mubr.msk.f32.gmra.mxu0 %vm5434_vm1, %v5073_v8  ;;  %v15755_v41 = vpop.f32.mrf.mxu1  ;;  %12992 = vmatmul.mubr.msk.f32.gmra.mxu1 %vm5434_vm1, %v5361_v9  ;;  %v5364_v8 = vld [vmem:[%s14382_s10 + $0xff0] sm:$0xff] }
 0x2f9   : > { %17066 = vst [vmem:[#allocation198_spill] sm:$0xff] %v15752_v25  ;;  %17067 = vst [vmem:[#allocation199_spill] sm:$0xff] %v15755_v41  ;;  %12562 = vmatprep.mubr.msk.f32.mxu0 %vm5434_vm1, %v5074_v49  ;;  %12994 = vmatprep.mubr.msk.f32.mxu1 %vm5434_vm1, %v5362_v40  ;;  %v5076_v25 = vld [vmem:[%s14382_s10 + $0x6f0] sm:$0xff]  ;;  %v5077_v49 = vld [vmem:[%s14382_s10 + $0x6f8] sm:$0xff] }
 0x2fa   : > { %v15762_v0 = vpop.f32.mrf.mxu0  ;;  %v15764_v1 = vpop.f32.mrf.mxu1  ;;  %v5365_v40 = vld [vmem:[%s14382_s10 + $0xff8] sm:$0xff] }
 0x2fb   : > { %17068 = vst [vmem:[#allocation200_spill] sm:$0xff] %v15762_v0  ;;  %17069 = vst [vmem:[#allocation201_spill] sm:$0xff] %v15764_v1 }
 0x2fc   : > { %v15768_v57 = vpop.f32.mrf.mxu0  ;;  %12563 = vmatmul.mubr.msk.f32.gmra.mxu0 %vm5434_vm1, %v5075_v24  ;;  %v15771_v9 = vpop.f32.mrf.mxu1  ;;  %12995 = vmatmul.mubr.msk.f32.gmra.mxu1 %vm5434_vm1, %v5363_v56  ;;  %v5366_v24 = vld [vmem:[%s14382_s10 + $0x1000] sm:$0xff] }
 0x2fd   : > { %17070 = vst [vmem:[#allocation202_spill] sm:$0xff] %v15768_v57  ;;  %17071 = vst [vmem:[#allocation203_spill] sm:$0xff] %v15771_v9  ;;  %12565 = vmatprep.mubr.msk.f32.mxu0 %vm5434_vm1, %v5076_v25  ;;  %12997 = vmatprep.mubr.msk.f32.mxu1 %vm5434_vm1, %v5364_v8  ;;  %v5078_v57 = vld [vmem:[%s14382_s10 + $0x700] sm:$0xff]  ;;  %v5079_v25 = vld [vmem:[%s14382_s10 + $0x708] sm:$0xff] }
 0x2fe   : > { %v15778_v1 = vpop.f32.mrf.mxu0  ;;  %v15780_v0 = vpop.f32.mrf.mxu1  ;;  %v5367_v8 = vld [vmem:[%s14382_s10 + $0x1008] sm:$0xff] }
 0x2ff   : > { %17072 = vst [vmem:[#allocation204_spill] sm:$0xff] %v15778_v1  ;;  %17073 = vst [vmem:[#allocation205_spill] sm:$0xff] %v15780_v0 }
 0x300   : > { %v15784_v41 = vpop.f32.mrf.mxu0  ;;  %12566 = vmatmul.mubr.msk.f32.gmra.mxu0 %vm5434_vm1, %v5077_v49  ;;  %v15787_v56 = vpop.f32.mrf.mxu1  ;;  %12998 = vmatmul.mubr.msk.f32.gmra.mxu1 %vm5434_vm1, %v5365_v40  ;;  %v5368_v49 = vld [vmem:[%s14382_s10 + $0x1010] sm:$0xff] }
 0x301   : > { %17074 = vst [vmem:[#allocation206_spill] sm:$0xff] %v15784_v41  ;;  %17075 = vst [vmem:[#allocation207_spill] sm:$0xff] %v15787_v56  ;;  %12568 = vmatprep.mubr.msk.f32.mxu0 %vm5434_vm1, %v5078_v57  ;;  %13000 = vmatprep.mubr.msk.f32.mxu1 %vm5434_vm1, %v5366_v24  ;;  %v5080_v41 = vld [vmem:[%s14382_s10 + $0x710] sm:$0xff]  ;;  %v5081_v57 = vld [vmem:[%s14382_s10 + $0x718] sm:$0xff] }
 0x302   : > { %v15794_v0 = vpop.f32.mrf.mxu0  ;;  %v15796_v1 = vpop.f32.mrf.mxu1  ;;  %v5369_v24 = vld [vmem:[%s14382_s10 + $0x1018] sm:$0xff] }
 0x303   : > { %17076 = vst [vmem:[#allocation208_spill] sm:$0xff] %v15794_v0  ;;  %17077 = vst [vmem:[#allocation209_spill] sm:$0xff] %v15796_v1 }
 0x304   : > { %v15800_v9 = vpop.f32.mrf.mxu0  ;;  %12569 = vmatmul.mubr.msk.f32.gmra.mxu0 %vm5434_vm1, %v5079_v25  ;;  %v15803_v40 = vpop.f32.mrf.mxu1  ;;  %13001 = vmatmul.mubr.msk.f32.gmra.mxu1 %vm5434_vm1, %v5367_v8  ;;  %v5370_v25 = vld [vmem:[%s14382_s10 + $0x1020] sm:$0xff] }
 0x305   : > { %17078 = vst [vmem:[#allocation210_spill] sm:$0xff] %v15800_v9  ;;  %17079 = vst [vmem:[#allocation211_spill] sm:$0xff] %v15803_v40  ;;  %12571 = vmatprep.mubr.msk.f32.mxu0 %vm5434_vm1, %v5080_v41  ;;  %13003 = vmatprep.mubr.msk.f32.mxu1 %vm5434_vm1, %v5368_v49  ;;  %v5082_v9 = vld [vmem:[%s14382_s10 + $0x720] sm:$0xff]  ;;  %v5083_v41 = vld [vmem:[%s14382_s10 + $0x728] sm:$0xff] }
 0x306   : > { %v15810_v1 = vpop.f32.mrf.mxu0  ;;  %v15812_v0 = vpop.f32.mrf.mxu1  ;;  %v5371_v49 = vld [vmem:[%s14382_s10 + $0x1028] sm:$0xff] }
 0x307   : > { %17080 = vst [vmem:[#allocation212_spill] sm:$0xff] %v15810_v1  ;;  %17081 = vst [vmem:[#allocation213_spill] sm:$0xff] %v15812_v0 }
 0x308   : > { %v15816_v56 = vpop.f32.mrf.mxu0  ;;  %12572 = vmatmul.mubr.msk.f32.gmra.mxu0 %vm5434_vm1, %v5081_v57  ;;  %v15819_v8 = vpop.f32.mrf.mxu1  ;;  %13004 = vmatmul.mubr.msk.f32.gmra.mxu1 %vm5434_vm1, %v5369_v24  ;;  %v5372_v57 = vld [vmem:[%s14382_s10 + $0x1030] sm:$0xff] }
 0x309   : > { %17082 = vst [vmem:[#allocation214_spill] sm:$0xff] %v15816_v56  ;;  %17083 = vst [vmem:[#allocation215_spill] sm:$0xff] %v15819_v8  ;;  %12574 = vmatprep.mubr.msk.f32.mxu0 %vm5434_vm1, %v5082_v9  ;;  %13006 = vmatprep.mubr.msk.f32.mxu1 %vm5434_vm1, %v5370_v25  ;;  %v5084_v56 = vld [vmem:[%s14382_s10 + $0x730] sm:$0xff]  ;;  %v5085_v9 = vld [vmem:[%s14382_s10 + $0x738] sm:$0xff] }
 0x30a   : > { %v15826_v0 = vpop.f32.mrf.mxu0  ;;  %v15828_v1 = vpop.f32.mrf.mxu1  ;;  %v5373_v25 = vld [vmem:[%s14382_s10 + $0x1038] sm:$0xff] }
 0x30b   : > { %17084 = vst [vmem:[#allocation216_spill] sm:$0xff] %v15826_v0  ;;  %17085 = vst [vmem:[#allocation217_spill] sm:$0xff] %v15828_v1 }
 0x30c   : > { %v15832_v40 = vpop.f32.mrf.mxu0  ;;  %12575 = vmatmul.mubr.msk.f32.gmra.mxu0 %vm5434_vm1, %v5083_v41  ;;  %v15835_v24 = vpop.f32.mrf.mxu1  ;;  %13007 = vmatmul.mubr.msk.f32.gmra.mxu1 %vm5434_vm1, %v5371_v49  ;;  %v5374_v41 = vld [vmem:[%s14382_s10 + $0x1040] sm:$0xff] }
 0x30d   : > { %17086 = vst [vmem:[#allocation218_spill] sm:$0xff] %v15832_v40  ;;  %17087 = vst [vmem:[#allocation219_spill] sm:$0xff] %v15835_v24  ;;  %12577 = vmatprep.mubr.msk.f32.mxu0 %vm5434_vm1, %v5084_v56  ;;  %13009 = vmatprep.mubr.msk.f32.mxu1 %vm5434_vm1, %v5372_v57  ;;  %v5086_v40 = vld [vmem:[%s14382_s10 + $0x740] sm:$0xff]  ;;  %v5087_v56 = vld [vmem:[%s14382_s10 + $0x748] sm:$0xff] }
 0x30e   : > { %v15842_v1 = vpop.f32.mrf.mxu0  ;;  %v15844_v0 = vpop.f32.mrf.mxu1  ;;  %v5375_v57 = vld [vmem:[%s14382_s10 + $0x1048] sm:$0xff] }
 0x30f   : > { %17088 = vst [vmem:[#allocation220_spill] sm:$0xff] %v15842_v1  ;;  %17089 = vst [vmem:[#allocation221_spill] sm:$0xff] %v15844_v0 }
 0x310   : > { %v15848_v8 = vpop.f32.mrf.mxu0  ;;  %12578 = vmatmul.mubr.msk.f32.gmra.mxu0 %vm5434_vm1, %v5085_v9  ;;  %v15851_v49 = vpop.f32.mrf.mxu1  ;;  %13010 = vmatmul.mubr.msk.f32.gmra.mxu1 %vm5434_vm1, %v5373_v25  ;;  %v5376_v9 = vld [vmem:[%s14382_s10 + $0x1050] sm:$0xff] }
 0x311   : > { %17090 = vst [vmem:[#allocation222_spill] sm:$0xff] %v15848_v8  ;;  %17091 = vst [vmem:[#allocation223_spill] sm:$0xff] %v15851_v49  ;;  %12580 = vmatprep.mubr.msk.f32.mxu0 %vm5434_vm1, %v5086_v40  ;;  %13012 = vmatprep.mubr.msk.f32.mxu1 %vm5434_vm1, %v5374_v41  ;;  %v5088_v8 = vld [vmem:[%s14382_s10 + $0x750] sm:$0xff]  ;;  %v5089_v40 = vld [vmem:[%s14382_s10 + $0x758] sm:$0xff] }
 0x312   : > { %v15858_v0 = vpop.f32.mrf.mxu0  ;;  %v15860_v1 = vpop.f32.mrf.mxu1  ;;  %v5377_v41 = vld [vmem:[%s14382_s10 + $0x1058] sm:$0xff]  ;;  %v5096_v49 = vld [vmem:[%s14382_s10 + $0x790] sm:$0xff] }
 0x313   : > { %17092 = vst [vmem:[#allocation224_spill] sm:$0xff] %v15858_v0  ;;  %17093 = vst [vmem:[#allocation225_spill] sm:$0xff] %v15860_v1  ;;  %v5378_v0 = vld [vmem:[%s14382_s10 + $0x1060] sm:$0xff] }
 0x314   : > { %v15864_v24 = vpop.f32.mrf.mxu0  ;;  %12581 = vmatmul.mubr.msk.f32.gmra.mxu0 %vm5434_vm1, %v5087_v56  ;;  %v15867_v25 = vpop.f32.mrf.mxu1  ;;  %13013 = vmatmul.mubr.msk.f32.gmra.mxu1 %vm5434_vm1, %v5375_v57  ;;  %v5090_v56 = vld [vmem:[%s14382_s10 + $0x760] sm:$0xff] }
 0x315   : > { %17094 = vst [vmem:[#allocation226_spill] sm:$0xff] %v15864_v24  ;;  %17095 = vst [vmem:[#allocation227_spill] sm:$0xff] %v15867_v25  ;;  %12583 = vmatprep.mubr.msk.f32.mxu0 %vm5434_vm1, %v5088_v8  ;;  %13015 = vmatprep.mubr.msk.f32.mxu1 %vm5434_vm1, %v5376_v9  ;;  %v5091_v8 = vld [vmem:[%s14382_s10 + $0x768] sm:$0xff] }
 0x316   : > { %v15874_v1 = vpop.f32.mrf.mxu0  ;;  %v15876_v24 = vpop.f32.mrf.mxu1  ;;  %v5379_v9 = vld [vmem:[%s14382_s10 + $0x1068] sm:$0xff] }
 0x317   : > { %17096 = vst [vmem:[#allocation228_spill] sm:$0xff] %v15874_v1  ;;  %17097 = vst [vmem:[#allocation229_spill] sm:$0xff] %v15876_v24 }
 0x318   : > { %v15880_v25 = vpop.f32.mrf.mxu0  ;;  %12584 = vmatmul.mubr.msk.f32.gmra.mxu0 %vm5434_vm1, %v5089_v40  ;;  %v15883_v57 = vpop.f32.mrf.mxu1  ;;  %13016 = vmatmul.mubr.msk.f32.gmra.mxu1 %vm5434_vm1, %v5377_v41  ;;  %v5380_v40 = vld [vmem:[%s14382_s10 + $0x1070] sm:$0xff] }
 0x319   : > { %17098 = vst [vmem:[#allocation230_spill] sm:$0xff] %v15880_v25  ;;  %17099 = vst [vmem:[#allocation231_spill] sm:$0xff] %v15883_v57  ;;  %12586 = vmatprep.mubr.msk.f32.mxu0 %vm5434_vm1, %v5090_v56  ;;  %13018 = vmatprep.mubr.msk.f32.mxu1 %vm5434_vm1, %v5378_v0  ;;  %v5092_v25 = vld [vmem:[%s14382_s10 + $0x770] sm:$0xff]  ;;  %v5093_v0 = vld [vmem:[%s14382_s10 + $0x778] sm:$0xff] }
 0x31a   : > { %v15890_v24 = vpop.f32.mrf.mxu0  ;;  %v15892_v1 = vpop.f32.mrf.mxu1  ;;  %v5381_v56 = vld [vmem:[%s14382_s10 + $0x1078] sm:$0xff] }
 0x31b   : > { %17100 = vst [vmem:[#allocation232_spill] sm:$0xff] %v15890_v24  ;;  %17101 = vst [vmem:[#allocation233_spill] sm:$0xff] %v15892_v1 }
 0x31c   : > { %v15898_v57 = vpop.f32.mrf.mxu0  ;;  %12587 = vmatmul.mubr.msk.f32.gmra.mxu0 %vm5434_vm1, %v5091_v8  ;;  %v15901_v41 = vpop.f32.mrf.mxu1  ;;  %13019 = vmatmul.mubr.msk.f32.gmra.mxu1 %vm5434_vm1, %v5379_v9  ;;  %v5382_v8 = vld [vmem:[%s14382_s10 + $0x1080] sm:$0xff] }
 0x31d   : > { %17102 = vst [vmem:[#allocation234_spill] sm:$0xff] %v15898_v57  ;;  %17103 = vst [vmem:[#allocation235_spill] sm:$0xff] %v15901_v41  ;;  %12589 = vmatprep.mubr.msk.f32.mxu0 %vm5434_vm1, %v5092_v25  ;;  %13021 = vmatprep.mubr.msk.f32.mxu1 %vm5434_vm1, %v5380_v40  ;;  %v5094_v57 = vld [vmem:[%s14382_s10 + $0x780] sm:$0xff]  ;;  %v5095_v25 = vld [vmem:[%s14382_s10 + $0x788] sm:$0xff] }
 0x31e   : > { %v15908_v1 = vpop.f32.mrf.mxu0  ;;  %v15910_v24 = vpop.f32.mrf.mxu1  ;;  %v5383_v40 = vld [vmem:[%s14382_s10 + $0x1088] sm:$0xff] }
 0x31f   : > { %17104 = vst [vmem:[#allocation236_spill] sm:$0xff] %v15908_v1  ;;  %17105 = vst [vmem:[#allocation237_spill] sm:$0xff] %v15910_v24 }
 0x320   : > { %v15914_v41 = vpop.f32.mrf.mxu0  ;;  %12590 = vmatmul.mubr.msk.f32.gmra.mxu0 %vm5434_vm1, %v5093_v0  ;;  %v15917_v9 = vpop.f32.mrf.mxu1  ;;  %13022 = vmatmul.mubr.msk.f32.gmra.mxu1 %vm5434_vm1, %v5381_v56 }
 0x321   : > { %17106 = vst [vmem:[#allocation238_spill] sm:$0xff] %v15914_v41  ;;  %17107 = vst [vmem:[#allocation239_spill] sm:$0xff] %v15917_v9  ;;  %12592 = vmatprep.mubr.msk.f32.mxu0 %vm5434_vm1, %v5094_v57  ;;  %13024 = vmatprep.mubr.msk.f32.mxu1 %vm5434_vm1, %v5382_v8  ;;  %v5384_v41 = vld [vmem:[%s14382_s10 + $0x1090] sm:$0xff]  ;;  %v15943_v9 = vld [vmem:[%s16869_s2] ss:$0 sm:$0xff] }
 0x322   : > { %v15924_v24 = vpop.f32.mrf.mxu0  ;;  %v15926_v1 = vpop.f32.mrf.mxu1 }
 0x323   : > { %17108 = vst [vmem:[#allocation240_spill] sm:$0xff] %v15924_v24  ;;  %17109 = vst [vmem:[#allocation241_spill] sm:$0xff] %v15926_v1  ;;  %v5097_v1 = vld [vmem:[%s14382_s10 + $0x798] sm:$0xff] }
 0x324   : > { %v12450_v0 = vpop.f32.mrf.mxu0  ;;  %12593 = vmatmul.mubr.msk.f32.gmra.mxu0 %vm5434_vm1, %v5095_v25  ;;  %v12882_v57 = vpop.f32.mrf.mxu1  ;;  %13025 = vmatmul.mubr.msk.f32.gmra.mxu1 %vm5434_vm1, %v5383_v40  ;;  %v5385_v24 = vld [vmem:[%s14382_s10 + $0x1098] sm:$0xff]  ;;  %v5386_v40 = vld [vmem:[%s14382_s10 + $0x10a0] sm:$0xff] }
 0x325   : > { %v10113_v56 = vmax.f32 %v14776_v10, %v12450_v0  ;;  %v10257_v8 = vmax.f32 %v14779_v11, %v12882_v57  ;;  %12595 = vmatprep.mubr.msk.f32.mxu0 %vm5434_vm1, %v5096_v49  ;;  %13027 = vmatprep.mubr.msk.f32.mxu1 %vm5434_vm1, %v5384_v41 }
 0x326   : > { %v7953_v25 = vpop.f32.mrf.mxu0  ;;  %v9393_v48 = vpop.f32.mrf.mxu1 }
 0x327   : > { %v10401_v10 = vmax.f32 %v10113_v56, %v10257_v8  ;;  %v10112_v11 = vmax.f32 %v14786_v14, %v7953_v25  ;;  %v10256_v49 = vmax.f32 %v14788_v15, %v9393_v48  ;;  %v5099_v14 = vld [vmem:[%s14382_s10 + $0x7a8] sm:$0xff]  ;;  %v5388_v8 = vld [vmem:[%s14382_s10 + $0x10b0] sm:$0xff] }
 0x328   : > { %v12453_v41 = vpop.f32.mrf.mxu0  ;;  %12596 = vmatmul.mubr.msk.f32.gmra.mxu0 %vm5434_vm1, %v5097_v1  ;;  %v12885_v0 = vpop.f32.mrf.mxu1  ;;  %13028 = vmatmul.mubr.msk.f32.gmra.mxu1 %vm5434_vm1, %v5385_v24  ;;  %v5387_v15 = vld [vmem:[%s14382_s10 + $0x10a8] sm:$0xff]  ;;  %v5100_v24 = vld [vmem:[%s14382_s10 + $0x7b0] sm:$0xff] }
 0x329   : > { %v10552_v57 = vadd.f32 %v15943_v9, %v10401_v10  ;;  %v10400_v32 = vmax.f32 %v10112_v11, %v10256_v49  ;;  %v10115_v17 = vmax.f32 %v14792_v18, %v12453_v41  ;;  %v10259_v56 = vmax.f32 %v14795_v19, %v12885_v0  ;;  %12598 = vmatprep.mubr.msk.f32.mxu0 %vm5434_vm1, %v5098_v33 }
 0x32a   : > { %v7963_v48 = vpop.f32.mrf.mxu0  ;;  %v9403_v1 = vpop.f32.mrf.mxu1  ;;  %13030 = vmatprep.mubr.msk.f32.mxu1 %vm5434_vm1, %v5386_v40 }
 0x32b   : > { %v10696_v18 = vmax.f32 %v10552_v57, 0.0  ;;  %v10551_v19 = vadd.f32 %v15943_v9, %v10400_v32  ;;  %v10403_v33 = vmax.f32 %v10115_v17, %v10259_v56  ;;  %v10114_v25 = vmax.f32 %v14802_v22, %v7963_v48  ;;  %v5389_v32 = vld [vmem:[%s14382_s10 + $0x10b8] sm:$0xff] }
 0x32c   : > { %v10258_v10 = vmax.f32 %v14804_v23, %v9403_v1  ;;  %v12456_v11 = vpop.f32.mrf.mxu0  ;;  %12599 = vmatmul.mubr.msk.f32.gmra.mxu0 %vm5434_vm1, %v5099_v14  ;;  %v12888_v49 = vpop.f32.mrf.mxu1  ;;  %13031 = vmatmul.mubr.msk.f32.gmra.mxu1 %vm5434_vm1, %v5387_v15  ;;  %v5101_v23 = vld [vmem:[%s14382_s10 + $0x7b8] sm:$0xff]  ;;  %v5102_v14 = vld [vmem:[%s14382_s10 + $0x7c0] sm:$0xff] }
 0x32d   : > { %10841 = vst.msk [vmem:[%s15961_s20 + $0x8] sm:$0xff] %vm10839_vm2, %v10696_v18  ;;  %v10695_v40 = vmax.f32 %v10551_v19, 0.0  ;;  %v10554_v41 = vadd.f32 %v15943_v9, %v10403_v33  ;;  %v10117_v17 = vmax.f32 %v14808_v26, %v12456_v11  ;;  %v10261_v22 = vmax.f32 %v14811_v27, %v12888_v49  ;;  %12601 = vmatprep.mubr.msk.f32.mxu0 %vm5434_vm1, %v5100_v24  ;;  %v5390_v1 = vld [vmem:[%s14382_s10 + $0x10c0] sm:$0xff] }
 0x32e   : > { %13033 = vmatprep.mubr.msk.f32.mxu1 %vm5434_vm1, %v5388_v8  ;;  %v10402_v0 = vmax.f32 %v10114_v25, %v10258_v10  ;;  %v7973_v57 = vpop.f32.mrf.mxu0  ;;  %v9413_v56 = vpop.f32.mrf.mxu1  ;;  %v5103_v25 = vld [vmem:[%s14382_s10 + $0x7c8] sm:$0xff] }
 0x32f   : > { %10840 = vst.msk [vmem:[%s15961_s20] sm:$0xff] %vm10839_vm2, %v10695_v40  ;;  %v10698_v15 = vmax.f32 %v10554_v41, 0.0  ;;  %v10405_v48 = vmax.f32 %v10117_v17, %v10261_v22  ;;  %v10116_v26 = vmax.f32 %v14818_v30, %v7973_v57  ;;  %v10260_v27 = vmax.f32 %v14820_v31, %v9413_v56  ;;  %v5391_v10 = vld [vmem:[%s14382_s10 + $0x10c8] sm:$0xff]  ;;  %v5104_v41 = vld [vmem:[%s14382_s10 + $0x7d0] sm:$0xff] }
 0x330   : > { %v10553_v24 = vadd.f32 %v15943_v9, %v10402_v0  ;;  %v12459_v8 = vpop.f32.mrf.mxu0  ;;  %12602 = vmatmul.mubr.msk.f32.gmra.mxu0 %vm5434_vm1, %v5101_v23  ;;  %v12891_v18 = vpop.f32.mrf.mxu1  ;;  %13034 = vmatmul.mubr.msk.f32.gmra.mxu1 %vm5434_vm1, %v5389_v32  ;;  %v5392_v17 = vld [vmem:[%s14382_s10 + $0x10d0] sm:$0xff] }
 0x331   : > { %10843 = vst.msk [vmem:[%s15961_s20 + $0x18] sm:$0xff] %vm10839_vm2, %v10698_v15  ;;  %v10556_v19 = vadd.f32 %v15943_v9, %v10405_v48  ;;  %v10404_v33 = vmax.f32 %v10116_v26, %v10260_v27  ;;  %v10119_v30 = vmax.f32 %v14824_v34, %v12459_v8  ;;  %v10263_v31 = vmax.f32 %v14827_v35, %v12891_v18  ;;  %v5393_v48 = vld [vmem:[%s14382_s10 + $0x10d8] sm:$0xff] }
 0x332   : > { %12604 = vmatprep.mubr.msk.f32.mxu0 %vm5434_vm1, %v5102_v14  ;;  %v10697_v11 = vmax.f32 %v10553_v24, 0.0  ;;  %v7983_v49 = vpop.f32.mrf.mxu0  ;;  %v9423_v40 = vpop.f32.mrf.mxu1  ;;  %13036 = vmatprep.mubr.msk.f32.mxu1 %vm5434_vm1, %v5390_v1  ;;  %v5106_v24 = vld [vmem:[%s14382_s10 + $0x7e0] sm:$0xff] }
 0x333   : > { %v10700_v22 = vmax.f32 %v10556_v19, 0.0  ;;  %v10555_v23 = vadd.f32 %v15943_v9, %v10404_v33  ;;  %v10407_v32 = vmax.f32 %v10119_v30, %v10263_v31  ;;  %v10118_v34 = vmax.f32 %v14834_v38, %v7983_v49  ;;  %v5394_v19 = vld [vmem:[%s14382_s10 + $0x10e0] sm:$0xff]  ;;  %v5395_v49 = vld [vmem:[%s14382_s10 + $0x10e8] sm:$0xff] }
 0x334   : > { %10842 = vst.msk [vmem:[%s15961_s20 + $0x10] sm:$0xff] %vm10839_vm2, %v10697_v11  ;;  %v10262_v35 = vmax.f32 %v14836_v39, %v9423_v40  ;;  %v12462_v0 = vpop.f32.mrf.mxu0  ;;  %12605 = vmatmul.mubr.msk.f32.gmra.mxu0 %vm5434_vm1, %v5103_v25  ;;  %v12894_v57 = vpop.f32.mrf.mxu1  ;;  %13037 = vmatmul.mubr.msk.f32.gmra.mxu1 %vm5434_vm1, %v5391_v10  ;;  %v5105_v39 = vld [vmem:[%s14382_s10 + $0x7d8] sm:$0xff]  ;;  %v5107_v11 = vld [vmem:[%s14382_s10 + $0x7e8] sm:$0xff] }
 0x335   : > { %10845 = vst.msk [vmem:[%s15961_s20 + $0x28] sm:$0xff] %vm10839_vm2, %v10700_v22  ;;  %v10699_v56 = vmax.f32 %v10555_v23, 0.0  ;;  %v10558_v14 = vadd.f32 %v15943_v9, %v10407_v32  ;;  %v10121_v38 = vmax.f32 %v14840_v42, %v12462_v0  ;;  %v10265_v15 = vmax.f32 %v14843_v43, %v12894_v57  ;;  %12607 = vmatprep.mubr.msk.f32.mxu0 %vm5434_vm1, %v5104_v41  ;;  %v5108_v22 = vld [vmem:[%s14382_s10 + $0x7f0] sm:$0xff] }
 0x336   : > { %13039 = vmatprep.mubr.msk.f32.mxu1 %vm5434_vm1, %v5392_v17  ;;  %v10406_v26 = vmax.f32 %v10118_v34, %v10262_v35  ;;  %v7993_v27 = vpop.f32.mrf.mxu0  ;;  %v9433_v1 = vpop.f32.mrf.mxu1  ;;  %v5396_v23 = vld [vmem:[%s14382_s10 + $0x10f0] sm:$0xff] }
 0x337   : > { %10844 = vst.msk [vmem:[%s15961_s20 + $0x20] sm:$0xff] %vm10839_vm2, %v10699_v56  ;;  %v10702_v8 = vmax.f32 %v10558_v14, 0.0  ;;  %v10409_v18 = vmax.f32 %v10121_v38, %v10265_v15  ;;  %v10120_v42 = vmax.f32 %v14850_v46, %v7993_v27  ;;  %v10264_v43 = vmax.f32 %v14852_v47, %v9433_v1  ;;  %v5397_v15 = vld [vmem:[%s14382_s10 + $0x10f8] sm:$0xff]  ;;  %v5110_v27 = vld [vmem:[%s14382_s10 + $0x800] sm:$0xff] }
 0x338   : > { %v10557_v33 = vadd.f32 %v15943_v9, %v10406_v26  ;;  %v12465_v30 = vpop.f32.mrf.mxu0  ;;  %12608 = vmatmul.mubr.msk.f32.gmra.mxu0 %vm5434_vm1, %v5105_v39  ;;  %v12897_v31 = vpop.f32.mrf.mxu1  ;;  %13040 = vmatmul.mubr.msk.f32.gmra.mxu1 %vm5434_vm1, %v5393_v48 }
 0x339   : > { %10847 = vst.msk [vmem:[%s15961_s20 + $0x38] sm:$0xff] %vm10839_vm2, %v10702_v8  ;;  %v10560_v25 = vadd.f32 %v15943_v9, %v10409_v18  ;;  %v10408_v10 = vmax.f32 %v10120_v42, %v10264_v43  ;;  %v10123_v46 = vmax.f32 %v14856_v50, %v12465_v30  ;;  %v10267_v47 = vmax.f32 %v14859_v51, %v12897_v31  ;;  %v5398_v8 = vld [vmem:[%s14382_s10 + $0x1100] sm:$0xff]  ;;  %v5111_v30 = vld [vmem:[%s14382_s10 + $0x808] sm:$0xff] }
 0x33a   : > { %12610 = vmatprep.mubr.msk.f32.mxu0 %vm5434_vm1, %v5106_v24  ;;  %v10701_v40 = vmax.f32 %v10557_v33, 0.0  ;;  %v8003_v41 = vpop.f32.mrf.mxu0  ;;  %v9443_v17 = vpop.f32.mrf.mxu1  ;;  %13042 = vmatprep.mubr.msk.f32.mxu1 %vm5434_vm1, %v5394_v19  ;;  %v5399_v31 = vld [vmem:[%s14382_s10 + $0x1108] sm:$0xff] }
 0x33b   : > { %v10704_v32 = vmax.f32 %v10560_v25, 0.0  ;;  %v10559_v34 = vadd.f32 %v15943_v9, %v10408_v10  ;;  %v10411_v35 = vmax.f32 %v10123_v46, %v10267_v47  ;;  %v10122_v50 = vmax.f32 %v14866_v54, %v8003_v41  ;;  %v5112_v47 = vld [vmem:[%s14382_s10 + $0x810] sm:$0xff] }
 0x33c   : > { %10846 = vst.msk [vmem:[%s15961_s20 + $0x30] sm:$0xff] %vm10839_vm2, %v10701_v40  ;;  %v10266_v51 = vmax.f32 %v14868_v55, %v9443_v17  ;;  %v12468_v0 = vpop.f32.mrf.mxu0  ;;  %12611 = vmatmul.mubr.msk.f32.gmra.mxu0 %vm5434_vm1, %v5107_v11  ;;  %v12900_v57 = vpop.f32.mrf.mxu1  ;;  %13043 = vmatmul.mubr.msk.f32.gmra.mxu1 %vm5434_vm1, %v5395_v49  ;;  %v5109_v55 = vld [vmem:[%s14382_s10 + $0x7f8] sm:$0xff]  ;;  %v5400_v11 = vld [vmem:[%s14382_s10 + $0x1110] sm:$0xff] }
 0x33d   : > { %10849 = vst.msk [vmem:[%s15961_s20 + $0x48] sm:$0xff] %vm10839_vm2, %v10704_v32  ;;  %v10703_v56 = vmax.f32 %v10559_v34, 0.0  ;;  %v10562_v14 = vadd.f32 %v15943_v9, %v10411_v35  ;;  %v10125_v54 = vmax.f32 %v14872_v58, %v12468_v0  ;;  %v10269_v38 = vmax.f32 %v14875_v59, %v12900_v57  ;;  %12613 = vmatprep.mubr.msk.f32.mxu0 %vm5434_vm1, %v5108_v22  ;;  %v5401_v35 = vld [vmem:[%s14382_s10 + $0x1118] sm:$0xff]  ;;  %v5114_v57 = vld [vmem:[%s14382_s10 + $0x820] sm:$0xff] }
 0x33e   : > { %13045 = vmatprep.mubr.msk.f32.mxu1 %vm5434_vm1, %v5396_v23  ;;  %v10410_v39 = vmax.f32 %v10122_v50, %v10266_v51  ;;  %v8013_v48 = vpop.f32.mrf.mxu0  ;;  %v9453_v26 = vpop.f32.mrf.mxu1 }
 0x33f   : > { %10848 = vst.msk [vmem:[%s15961_s20 + $0x40] sm:$0xff] %vm10839_vm2, %v10703_v56  ;;  %v10706_v1 = vmax.f32 %v10562_v14, 0.0  ;;  %v10413_v24 = vmax.f32 %v10125_v54, %v10269_v38  ;;  %v10124_v58 = vmax.f32 %v14882_v62, %v8013_v48  ;;  %v10268_v59 = vmax.f32 %v14884_v63, %v9453_v26  ;;  %v5402_v54 = vld [vmem:[%s14382_s10 + $0x1120] sm:$0xff]  ;;  %v5115_v26 = vld [vmem:[%s14382_s10 + $0x828] sm:$0xff] }
 0x340   : > { %v10561_v18 = vadd.f32 %v15943_v9, %v10410_v39  ;;  %v12471_v42 = vpop.f32.mrf.mxu0  ;;  %12614 = vmatmul.mubr.msk.f32.gmra.mxu0 %vm5434_vm1, %v5109_v55  ;;  %v12903_v43 = vpop.f32.mrf.mxu1  ;;  %13046 = vmatmul.mubr.msk.f32.gmra.mxu1 %vm5434_vm1, %v5397_v15 }
 0x341   : > { %10851 = vst.msk [vmem:[%s15961_s20 + $0x58] sm:$0xff] %vm10839_vm2, %v10706_v1  ;;  %v10564_v19 = vadd.f32 %v15943_v9, %v10413_v24  ;;  %v10412_v33 = vmax.f32 %v10124_v58, %v10268_v59  ;;  %v10127_v62 = vmax.f32 %v14888_v2, %v12471_v42  ;;  %v10271_v63 = vmax.f32 %v14891_v3, %v12903_v43  ;;  %v5116_v59 = vld [vmem:[%s14382_s10 + $0x830] sm:$0xff] }
 0x342   : > { %12616 = vmatprep.mubr.msk.f32.mxu0 %vm5434_vm1, %v5110_v27  ;;  %v10705_v25 = vmax.f32 %v10561_v18, 0.0  ;;  %v8023_v10 = vpop.f32.mrf.mxu0  ;;  %v9463_v46 = vpop.f32.mrf.mxu1  ;;  %13048 = vmatprep.mubr.msk.f32.mxu1 %vm5434_vm1, %v5398_v8  ;;  %v5403_v27 = vld [vmem:[%s14382_s10 + $0x1128] sm:$0xff]  ;;  %v5404_v8 = vld [vmem:[%s14382_s10 + $0x1130] sm:$0xff] }
 0x343   : > { %v10708_v49 = vmax.f32 %v10564_v19, 0.0  ;;  %v10563_v40 = vadd.f32 %v15943_v9, %v10412_v33  ;;  %v10415_v41 = vmax.f32 %v10127_v62, %v10271_v63  ;;  %v10126_v2 = vmax.f32 %v14898_v6, %v8023_v10 }
 0x344   : > { %10850 = vst.msk [vmem:[%s15961_s20 + $0x50] sm:$0xff] %vm10839_vm2, %v10705_v25  ;;  %v10270_v3 = vmax.f32 %v14900_v7, %v9463_v46  ;;  %v12474_v17 = vpop.f32.mrf.mxu0  ;;  %12617 = vmatmul.mubr.msk.f32.gmra.mxu0 %vm5434_vm1, %v5111_v30  ;;  %v12906_v22 = vpop.f32.mrf.mxu1  ;;  %13049 = vmatmul.mubr.msk.f32.gmra.mxu1 %vm5434_vm1, %v5399_v31  ;;  %v5113_v7 = vld [vmem:[%s14382_s10 + $0x818] sm:$0xff] }
 0x345   : > { %10853 = vst.msk [vmem:[%s15961_s20 + $0x68] sm:$0xff] %vm10839_vm2, %v10708_v49  ;;  %v10707_v23 = vmax.f32 %v10563_v40, 0.0  ;;  %v10566_v32 = vadd.f32 %v15943_v9, %v10415_v41  ;;  %v10129_v6 = vmax.f32 %v14904_v12, %v12474_v17  ;;  %v10273_v34 = vmax.f32 %v14907_v13, %v12906_v22  ;;  %12619 = vmatprep.mubr.msk.f32.mxu0 %vm5434_vm1, %v5112_v47  ;;  %v5405_v31 = vld [vmem:[%s14382_s10 + $0x1138] sm:$0xff]  ;;  %v5118_v47 = vld [vmem:[%s14382_s10 + $0x840] sm:$0xff] }
 0x346   : > { %13051 = vmatprep.mubr.msk.f32.mxu1 %vm5434_vm1, %v5400_v11  ;;  %v10414_v50 = vmax.f32 %v10126_v2, %v10270_v3  ;;  %v8033_v51 = vpop.f32.mrf.mxu0  ;;  %v9473_v0 = vpop.f32.mrf.mxu1  ;;  %v5406_v40 = vld [vmem:[%s14382_s10 + $0x1140] sm:$0xff] }
 0x347   : > { %10852 = vst.msk [vmem:[%s15961_s20 + $0x60] sm:$0xff] %vm10839_vm2, %v10707_v23  ;;  %v10710_v56 = vmax.f32 %v10566_v32, 0.0  ;;  %v10417_v14 = vmax.f32 %v10129_v6, %v10273_v34  ;;  %v10128_v12 = vmax.f32 %v14914_v20, %v8033_v51  ;;  %v10272_v13 = vmax.f32 %v14916_v21, %v9473_v0  ;;  %v5119_v23 = vld [vmem:[%s14382_s10 + $0x848] sm:$0xff] }
 0x348   : > { %v10565_v38 = vadd.f32 %v15943_v9, %v10414_v50  ;;  %v12477_v55 = vpop.f32.mrf.mxu0  ;;  %12620 = vmatmul.mubr.msk.f32.gmra.mxu0 %vm5434_vm1, %v5113_v7  ;;  %v12909_v15 = vpop.f32.mrf.mxu1  ;;  %13052 = vmatmul.mubr.msk.f32.gmra.mxu1 %vm5434_vm1, %v5401_v35  ;;  %v5407_v32 = vld [vmem:[%s14382_s10 + $0x1148] sm:$0xff]  ;;  %v5120_v35 = vld [vmem:[%s14382_s10 + $0x850] sm:$0xff] }
 0x349   : > { %10855 = vst.msk [vmem:[%s15961_s20 + $0x78] sm:$0xff] %vm10839_vm2, %v10710_v56  ;;  %v10568_v39 = vadd.f32 %v15943_v9, %v10417_v14  ;;  %v10416_v48 = vmax.f32 %v10128_v12, %v10272_v13  ;;  %v10131_v20 = vmax.f32 %v14920_v28, %v12477_v55  ;;  %v10275_v21 = vmax.f32 %v14923_v29, %v12909_v15  ;;  %v5408_v50 = vld [vmem:[%s14382_s10 + $0x1150] sm:$0xff]  ;;  %v5409_v55 = vld [vmem:[%s14382_s10 + $0x1158] sm:$0xff] }
 0x34a   : > { %12622 = vmatprep.mubr.msk.f32.mxu0 %vm5434_vm1, %v5114_v57  ;;  %v10709_v1 = vmax.f32 %v10565_v38, 0.0  ;;  %v8043_v24 = vpop.f32.mrf.mxu0  ;;  %v9483_v58 = vpop.f32.mrf.mxu1  ;;  %13054 = vmatprep.mubr.msk.f32.mxu1 %vm5434_vm1, %v5402_v54  ;;  %v17110_v54 = vld [vmem:[#allocation3_spill] sm:$0xff] }
 0x34b   : > { %v10712_v18 = vmax.f32 %v10568_v39, 0.0  ;;  %v10567_v42 = vadd.f32 %v15943_v9, %v10416_v48  ;;  %v10419_v43 = vmax.f32 %v10131_v20, %v10275_v21  ;;  %v10130_v28 = vmax.f32 %v14930_v36, %v8043_v24  ;;  %v5122_v20 = vld [vmem:[%s14382_s10 + $0x860] sm:$0xff] }
 0x34c   : > { %10854 = vst.msk [vmem:[%s15961_s20 + $0x70] sm:$0xff] %vm10839_vm2, %v10709_v1  ;;  %v10274_v29 = vmax.f32 %v14932_v37, %v9483_v58  ;;  %v12480_v19 = vpop.f32.mrf.mxu0  ;;  %12623 = vmatmul.mubr.msk.f32.gmra.mxu0 %vm5434_vm1, %v5115_v26  ;;  %v12912_v33 = vpop.f32.mrf.mxu1  ;;  %13055 = vmatmul.mubr.msk.f32.gmra.mxu1 %vm5434_vm1, %v5403_v27  ;;  %v5117_v37 = vld [vmem:[%s14382_s10 + $0x838] sm:$0xff]  ;;  %v17111_v27 = vld [vmem:[#allocation4_spill] sm:$0xff]  ;;  %v17112_v1 = vld [vmem:[#allocation5_spill] sm:$0xff] }
 0x34d   : > { %10857 = vst.msk [vmem:[%s15961_s20 + $0x88] sm:$0xff] %vm10839_vm2, %v10712_v18  ;;  %v10711_v62 = vmax.f32 %v10567_v42, 0.0  ;;  %v10570_v63 = vadd.f32 %v15943_v9, %v10419_v43  ;;  %v10133_v36 = vmax.f32 %v14936_v44, %v12480_v19  ;;  %v10277_v30 = vmax.f32 %v14939_v45, %v12912_v33  ;;  %12625 = vmatprep.mubr.msk.f32.mxu0 %vm5434_vm1, %v5116_v59  ;;  %v5410_v58 = vld [vmem:[%s14382_s10 + $0x1160] sm:$0xff] }
 0x34e   : > { %13057 = vmatprep.mubr.msk.f32.mxu1 %vm5434_vm1, %v5404_v8  ;;  %v10418_v25 = vmax.f32 %v10130_v28, %v10274_v29  ;;  %v8053_v10 = vpop.f32.mrf.mxu0  ;;  %v9493_v46 = vpop.f32.mrf.mxu1  ;;  %v17113_v28 = vld [vmem:[#allocation6_spill] sm:$0xff]  ;;  %v17114_v19 = vld [vmem:[#allocation7_spill] sm:$0xff] }
 0x34f   : > { %10856 = vst.msk [vmem:[%s15961_s20 + $0x80] sm:$0xff] %vm10839_vm2, %v10711_v62  ;;  %v10714_v11 = vmax.f32 %v10570_v63, 0.0  ;;  %v10421_v49 = vmax.f32 %v10133_v36, %v10277_v30  ;;  %v10132_v44 = vmax.f32 %v14946_v52, %v8053_v10  ;;  %v10276_v45 = vmax.f32 %v14948_v53, %v9493_v46  ;;  %v5123_v62 = vld [vmem:[%s14382_s10 + $0x868] sm:$0xff] }
 0x350   : > { %v10569_v41 = vadd.f32 %v15943_v9, %v10418_v25  ;;  %v12483_v2 = vpop.f32.mrf.mxu0  ;;  %12626 = vmatmul.mubr.msk.f32.gmra.mxu0 %vm5434_vm1, %v5117_v37  ;;  %v12915_v3 = vpop.f32.mrf.mxu1  ;;  %13058 = vmatmul.mubr.msk.f32.gmra.mxu1 %vm5434_vm1, %v5405_v31  ;;  %v5411_v63 = vld [vmem:[%s14382_s10 + $0x1168] sm:$0xff]  ;;  %v5124_v31 = vld [vmem:[%s14382_s10 + $0x870] sm:$0xff] }
 0x351   : > { %10859 = vst.msk [vmem:[%s15961_s20 + $0x98] sm:$0xff] %vm10839_vm2, %v10714_v11  ;;  %v10572_v17 = vadd.f32 %v15943_v9, %v10421_v49  ;;  %v10420_v22 = vmax.f32 %v10132_v44, %v10276_v45  ;;  %v10135_v52 = vmax.f32 %v14952_v60, %v12483_v2  ;;  %v10279_v53 = vmax.f32 %v14955_v61, %v12915_v3  ;;  %v5412_v25 = vld [vmem:[%s14382_s10 + $0x1170] sm:$0xff]  ;;  %v17115_v11 = vld [vmem:[#allocation8_spill] sm:$0xff] }
 0x352   : > { %12628 = vmatprep.mubr.msk.f32.mxu0 %vm5434_vm1, %v5118_v47  ;;  %v10713_v6 = vmax.f32 %v10569_v41, 0.0  ;;  %v8063_v34 = vpop.f32.mrf.mxu0  ;;  %v9503_v7 = vpop.f32.mrf.mxu1  ;;  %13060 = vmatprep.mubr.msk.f32.mxu1 %vm5434_vm1, %v5406_v40  ;;  %v17116_v44 = vld [vmem:[#allocation9_spill] sm:$0xff] }
 0x353   : > { %v10716_v51 = vmax.f32 %v10572_v17, 0.0  ;;  %v10571_v0 = vadd.f32 %v15943_v9, %v10420_v22  ;;  %v10423_v57 = vmax.f32 %v10135_v52, %v10279_v53  ;;  %v10134_v60 = vmax.f32 %v14962_v4, %v8063_v34  ;;  %v17117_v17 = vld [vmem:[#allocation10_spill] sm:$0xff]  ;;  %v17118_v52 = vld [vmem:[#allocation11_spill] sm:$0xff] }
 0x354   : > { %10858 = vst.msk [vmem:[%s15961_s20 + $0x90] sm:$0xff] %vm10839_vm2, %v10713_v6  ;;  %v10278_v61 = vmax.f32 %v14964_v5, %v9503_v7  ;;  %v12486_v56 = vpop.f32.mrf.mxu0  ;;  %12629 = vmatmul.mubr.msk.f32.gmra.mxu0 %vm5434_vm1, %v5119_v23  ;;  %v12918_v14 = vpop.f32.mrf.mxu1  ;;  %13061 = vmatmul.mubr.msk.f32.gmra.mxu1 %vm5434_vm1, %v5407_v32  ;;  %v5121_v5 = vld [vmem:[%s14382_s10 + $0x858] sm:$0xff] }
 0x355   : > { %10861 = vst.msk [vmem:[%s15961_s20 + $0xa8] sm:$0xff] %vm10839_vm2, %v10716_v51  ;;  %v10715_v12 = vmax.f32 %v10571_v0, 0.0  ;;  %v10574_v13 = vadd.f32 %v15943_v9, %v10423_v57  ;;  %v10137_v4 = vmax.f32 %v14968_v16, %v12486_v56  ;;  %v10281_v38 = vmax.f32 %v17110_v54, %v12918_v14  ;;  %12631 = vmatprep.mubr.msk.f32.mxu0 %vm5434_vm1, %v5120_v35  ;;  %v5125_v23 = vld [vmem:[%s14382_s10 + $0x878] sm:$0xff]  ;;  %v5126_v35 = vld [vmem:[%s14382_s10 + $0x880] sm:$0xff]  ;;  %v17119_v0 = vld [vmem:[#allocation12_spill] sm:$0xff] }
 0x356   : > { %13063 = vmatprep.mubr.msk.f32.mxu1 %vm5434_vm1, %v5408_v50  ;;  %v10422_v15 = vmax.f32 %v10134_v60, %v10278_v61  ;;  %v8073_v39 = vpop.f32.mrf.mxu0  ;;  %v9513_v48 = vpop.f32.mrf.mxu1  ;;  %v5413_v32 = vld [vmem:[%s14382_s10 + $0x1178] sm:$0xff]  ;;  %v17120_v60 = vld [vmem:[#allocation13_spill] sm:$0xff]  ;;  %v5414_v56 = vld [vmem:[%s14382_s10 + $0x1180] sm:$0xff] }
 0x357   : > { %10860 = vst.msk [vmem:[%s15961_s20 + $0xa0] sm:$0xff] %vm10839_vm2, %v10715_v12  ;;  %v10718_v21 = vmax.f32 %v10574_v13, 0.0  ;;  %v10425_v26 = vmax.f32 %v10137_v4, %v10281_v38  ;;  %v10136_v16 = vmax.f32 %v17111_v27, %v8073_v39  ;;  %v10280_v24 = vmax.f32 %v17112_v1, %v9513_v48  ;;  %v17121_v38 = vld [vmem:[#allocation14_spill] sm:$0xff]  ;;  %v5127_v39 = vld [vmem:[%s14382_s10 + $0x888] sm:$0xff]  ;;  %v5128_v27 = vld [vmem:[%s14382_s10 + $0x890] sm:$0xff] }
 0x358   : > { %v10573_v59 = vadd.f32 %v15943_v9, %v10422_v15  ;;  %v12489_v8 = vpop.f32.mrf.mxu0  ;;  %12632 = vmatmul.mubr.msk.f32.gmra.mxu0 %vm5434_vm1, %v5121_v5  ;;  %v12921_v18 = vpop.f32.mrf.mxu1  ;;  %13064 = vmatmul.mubr.msk.f32.gmra.mxu1 %vm5434_vm1, %v5409_v55  ;;  %v17122_v55 = vld [vmem:[#allocation15_spill] sm:$0xff]  ;;  %v5415_v48 = vld [vmem:[%s14382_s10 + $0x1188] sm:$0xff] }
 0x359   : > { %10863 = vst.msk [vmem:[%s15961_s20 + $0xb8] sm:$0xff] %vm10839_vm2, %v10718_v21  ;;  %v10576_v42 = vadd.f32 %v15943_v9, %v10425_v26  ;;  %v10424_v43 = vmax.f32 %v10136_v16, %v10280_v24  ;;  %v10139_v29 = vmax.f32 %v17113_v28, %v12489_v8  ;;  %v10283_v33 = vmax.f32 %v17114_v19, %v12921_v18  ;;  %v5416_v16 = vld [vmem:[%s14382_s10 + $0x1190] sm:$0xff] }
 0x35a   : > { %12634 = vmatprep.mubr.msk.f32.mxu0 %vm5434_vm1, %v5122_v20  ;;  %v10717_v36 = vmax.f32 %v10573_v59, 0.0  ;;  %v8083_v30 = vpop.f32.mrf.mxu0  ;;  %v9523_v37 = vpop.f32.mrf.mxu1  ;;  %13066 = vmatprep.mubr.msk.f32.mxu1 %vm5434_vm1, %v5410_v58  ;;  %v17123_v59 = vld [vmem:[#allocation16_spill] sm:$0xff]  ;;  %v17124_v18 = vld [vmem:[#allocation17_spill] sm:$0xff] }
 0x35b   : > { %v10720_v10 = vmax.f32 %v10576_v42, 0.0  ;;  %v10575_v46 = vadd.f32 %v15943_v9, %v10424_v43  ;;  %v10427_v47 = vmax.f32 %v10139_v29, %v10283_v33  ;;  %v10138_v49 = vmax.f32 %v17115_v11, %v8083_v30  ;;  %v17125_v33 = vld [vmem:[#allocation18_spill] sm:$0xff] }
 0x35c   : > { %10862 = vst.msk [vmem:[%s15961_s20 + $0xb0] sm:$0xff] %vm10839_vm2, %v10717_v36  ;;  %v10282_v45 = vmax.f32 %v17116_v44, %v9523_v37  ;;  %v12492_v40 = vpop.f32.mrf.mxu0  ;;  %12635 = vmatmul.mubr.msk.f32.gmra.mxu0 %vm5434_vm1, %v5123_v62  ;;  %v12924_v41 = vpop.f32.mrf.mxu1  ;;  %13067 = vmatmul.mubr.msk.f32.gmra.mxu1 %vm5434_vm1, %v5411_v63  ;;  %v17126_v63 = vld [vmem:[#allocation19_spill] sm:$0xff]  ;;  %v5129_v30 = vld [vmem:[%s14382_s10 + $0x898] sm:$0xff] }
 0x35d   : > { %10865 = vst.msk [vmem:[%s15961_s20 + $0xc8] sm:$0xff] %vm10839_vm2, %v10720_v10  ;;  %v10719_v2 = vmax.f32 %v10575_v46, 0.0  ;;  %v10578_v3 = vadd.f32 %v15943_v9, %v10427_v47  ;;  %v10141_v22 = vmax.f32 %v17117_v17, %v12492_v40  ;;  %v10285_v53 = vmax.f32 %v17118_v52, %v12924_v41  ;;  %12637 = vmatprep.mubr.msk.f32.mxu0 %vm5434_vm1, %v5124_v31  ;;  %v5417_v37 = vld [vmem:[%s14382_s10 + $0x1198] sm:$0xff]  ;;  %v5130_v46 = vld [vmem:[%s14382_s10 + $0x8a0] sm:$0xff] }
 0x35e   : > { %13069 = vmatprep.mubr.msk.f32.mxu1 %vm5434_vm1, %v5412_v25  ;;  %v10426_v6 = vmax.f32 %v10138_v49, %v10282_v45  ;;  %v8093_v34 = vpop.f32.mrf.mxu0  ;;  %v9533_v7 = vpop.f32.mrf.mxu1  ;;  %v17127_v49 = vld [vmem:[#allocation20_spill] sm:$0xff]  ;;  %v17128_v45 = vld [vmem:[#allocation21_spill] sm:$0xff]  ;;  %v5418_v41 = vld [vmem:[%s14382_s10 + $0x11a0] sm:$0xff] }
 0x35f   : > { %10864 = vst.msk [vmem:[%s15961_s20 + $0xc0] sm:$0xff] %vm10839_vm2, %v10719_v2  ;;  %v10722_v50 = vmax.f32 %v10578_v3, 0.0  ;;  %v10429_v51 = vmax.f32 %v10141_v22, %v10285_v53  ;;  %v10140_v57 = vmax.f32 %v17119_v0, %v8093_v34  ;;  %v10284_v61 = vmax.f32 %v17120_v60, %v9533_v7  ;;  %v17129_v53 = vld [vmem:[#allocation22_spill] sm:$0xff]  ;;  %v5131_v34 = vld [vmem:[%s14382_s10 + $0x8a8] sm:$0xff]  ;;  %v5132_v0 = vld [vmem:[%s14382_s10 + $0x8b0] sm:$0xff] }
 0x360   : > { %v10577_v14 = vadd.f32 %v15943_v9, %v10426_v6  ;;  %v12495_v12 = vpop.f32.mrf.mxu0  ;;  %12638 = vmatmul.mubr.msk.f32.gmra.mxu0 %vm5434_vm1, %v5125_v23  ;;  %v12927_v13 = vpop.f32.mrf.mxu1  ;;  %13070 = vmatmul.mubr.msk.f32.gmra.mxu1 %vm5434_vm1, %v5413_v32  ;;  %v17130_v32 = vld [vmem:[#allocation23_spill] sm:$0xff]  ;;  %v5419_v7 = vld [vmem:[%s14382_s10 + $0x11a8] sm:$0xff] }
 0x361   : > { %10867 = vst.msk [vmem:[%s15961_s20 + $0xd8] sm:$0xff] %vm10839_vm2, %v10722_v50  ;;  %v10580_v4 = vadd.f32 %v15943_v9, %v10429_v51  ;;  %v10428_v54 = vmax.f32 %v10140_v57, %v10284_v61  ;;  %v10143_v5 = vmax.f32 %v17121_v38, %v12495_v12  ;;  %v10287_v15 = vmax.f32 %v17122_v55, %v12927_v13  ;;  %v5420_v57 = vld [vmem:[%s14382_s10 + $0x11b0] sm:$0xff] }
 0x362   : > { %12640 = vmatprep.mubr.msk.f32.mxu0 %vm5434_vm1, %v5126_v35  ;;  %v10721_v20 = vmax.f32 %v10577_v14, 0.0  ;;  %v8103_v21 = vpop.f32.mrf.mxu0  ;;  %v9543_v26 = vpop.f32.mrf.mxu1  ;;  %13072 = vmatprep.mubr.msk.f32.mxu1 %vm5434_vm1, %v5414_v56  ;;  %v17131_v14 = vld [vmem:[#allocation24_spill] sm:$0xff]  ;;  %v17132_v13 = vld [vmem:[#allocation25_spill] sm:$0xff] }
 0x363   : > { %v10724_v1 = vmax.f32 %v10580_v4, 0.0  ;;  %v10579_v24 = vadd.f32 %v15943_v9, %v10428_v54  ;;  %v10431_v58 = vmax.f32 %v10143_v5, %v10287_v15  ;;  %v10142_v8 = vmax.f32 %v17123_v59, %v8103_v21  ;;  %v17133_v15 = vld [vmem:[#allocation26_spill] sm:$0xff] }
 0x364   : > { %10866 = vst.msk [vmem:[%s15961_s20 + $0xd0] sm:$0xff] %vm10839_vm2, %v10721_v20  ;;  %v10286_v42 = vmax.f32 %v17124_v18, %v9543_v26  ;;  %v12498_v43 = vpop.f32.mrf.mxu0  ;;  %12641 = vmatmul.mubr.msk.f32.gmra.mxu0 %vm5434_vm1, %v5127_v39  ;;  %v12930_v28 = vpop.f32.mrf.mxu1  ;;  %13073 = vmatmul.mubr.msk.f32.gmra.mxu1 %vm5434_vm1, %v5415_v48  ;;  %v17134_v48 = vld [vmem:[#allocation27_spill] sm:$0xff]  ;;  %v5133_v21 = vld [vmem:[%s14382_s10 + $0x8b8] sm:$0xff] }
 0x365   : > { %10869 = vst.msk [vmem:[%s15961_s20 + $0xe8] sm:$0xff] %vm10839_vm2, %v10724_v1  ;;  %v10723_v29 = vmax.f32 %v10579_v24, 0.0  ;;  %v10582_v19 = vadd.f32 %v15943_v9, %v10431_v58  ;;  %v10145_v62 = vmax.f32 %v17125_v33, %v12498_v43  ;;  %v10289_v36 = vmax.f32 %v17126_v63, %v12930_v28  ;;  %12643 = vmatprep.mubr.msk.f32.mxu0 %vm5434_vm1, %v5128_v27  ;;  %v5421_v26 = vld [vmem:[%s14382_s10 + $0x11b8] sm:$0xff]  ;;  %v5134_v24 = vld [vmem:[%s14382_s10 + $0x8c0] sm:$0xff] }
 0x366   : > { %13075 = vmatprep.mubr.msk.f32.mxu1 %vm5434_vm1, %v5416_v16  ;;  %v10430_v31 = vmax.f32 %v10142_v8, %v10286_v42  ;;  %v8113_v25 = vpop.f32.mrf.mxu0  ;;  %v9553_v10 = vpop.f32.mrf.mxu1  ;;  %v17135_v8 = vld [vmem:[#allocation28_spill] sm:$0xff]  ;;  %v17136_v42 = vld [vmem:[#allocation29_spill] sm:$0xff]  ;;  %v5422_v28 = vld [vmem:[%s14382_s10 + $0x11c0] sm:$0xff] }
 0x367   : > { %10868 = vst.msk [vmem:[%s15961_s20 + $0xe0] sm:$0xff] %vm10839_vm2, %v10723_v29  ;;  %v10726_v47 = vmax.f32 %v10582_v19, 0.0  ;;  %v10433_v11 = vmax.f32 %v10145_v62, %v10289_v36  ;;  %v10144_v44 = vmax.f32 %v17127_v49, %v8113_v25  ;;  %v10288_v40 = vmax.f32 %v17128_v45, %v9553_v10  ;;  %v17137_v36 = vld [vmem:[#allocation30_spill] sm:$0xff]  ;;  %v5135_v25 = vld [vmem:[%s14382_s10 + $0x8c8] sm:$0xff]  ;;  %v5136_v49 = vld [vmem:[%s14382_s10 + $0x8d0] sm:$0xff] }
 0x368   : > { %v10581_v2 = vadd.f32 %v15943_v9, %v10430_v31  ;;  %v12501_v3 = vpop.f32.mrf.mxu0  ;;  %12644 = vmatmul.mubr.msk.f32.gmra.mxu0 %vm5434_vm1, %v5129_v30  ;;  %v12933_v17 = vpop.f32.mrf.mxu1  ;;  %13076 = vmatmul.mubr.msk.f32.gmra.mxu1 %vm5434_vm1, %v5417_v37  ;;  %v17138_v37 = vld [vmem:[#allocation31_spill] sm:$0xff]  ;;  %v5423_v10 = vld [vmem:[%s14382_s10 + $0x11c8] sm:$0xff] }
 0x369   : > { %10871 = vst.msk [vmem:[%s15961_s20 + $0xf8] sm:$0xff] %vm10839_vm2, %v10726_v47  ;;  %v10584_v22 = vadd.f32 %v15943_v9, %v10433_v11  ;;  %v10432_v52 = vmax.f32 %v10144_v44, %v10288_v40  ;;  %v10147_v23 = vmax.f32 %v17129_v53, %v12501_v3  ;;  %v10291_v6 = vmax.f32 %v17130_v32, %v12933_v17  ;;  %v5424_v44 = vld [vmem:[%s14382_s10 + $0x11d0] sm:$0xff] }
 0x36a   : > { %12646 = vmatprep.mubr.msk.f32.mxu0 %vm5434_vm1, %v5130_v46  ;;  %v10725_v35 = vmax.f32 %v10581_v2, 0.0  ;;  %v8123_v50 = vpop.f32.mrf.mxu0  ;;  %v9563_v51 = vpop.f32.mrf.mxu1  ;;  %13078 = vmatprep.mubr.msk.f32.mxu1 %vm5434_vm1, %v5418_v41  ;;  %v17139_v2 = vld [vmem:[#allocation32_spill] sm:$0xff]  ;;  %v17140_v17 = vld [vmem:[#allocation33_spill] sm:$0xff] }
 0x36b   : > { %v10728_v60 = vmax.f32 %v10584_v22, 0.0  ;;  %v10583_v61 = vadd.f32 %v15943_v9, %v10432_v52  ;;  %v10435_v56 = vmax.f32 %v10147_v23, %v10291_v6  ;;  %v10146_v12 = vmax.f32 %v17131_v14, %v8123_v50  ;;  %v17141_v6 = vld [vmem:[#allocation34_spill] sm:$0xff] }
 0x36c   : > { %10870 = vst.msk [vmem:[%s15961_s20 + $0xf0] sm:$0xff] %vm10839_vm2, %v10725_v35  ;;  %v10290_v4 = vmax.f32 %v17132_v13, %v9563_v51  ;;  %v12504_v54 = vpop.f32.mrf.mxu0  ;;  %12647 = vmatmul.mubr.msk.f32.gmra.mxu0 %vm5434_vm1, %v5131_v34  ;;  %v12936_v38 = vpop.f32.mrf.mxu1  ;;  %13079 = vmatmul.mubr.msk.f32.gmra.mxu1 %vm5434_vm1, %v5419_v7  ;;  %v17142_v7 = vld [vmem:[#allocation35_spill] sm:$0xff]  ;;  %v5137_v50 = vld [vmem:[%s14382_s10 + $0x8d8] sm:$0xff] }
 0x36d   : > { %10873 = vst.msk [vmem:[%s15961_s20 + $0x108] sm:$0xff] %vm10839_vm2, %v10728_v60  ;;  %v10727_v5 = vmax.f32 %v10583_v61, 0.0  ;;  %v10586_v55 = vadd.f32 %v15943_v9, %v10435_v56  ;;  %v10149_v39 = vmax.f32 %v17133_v15, %v12504_v54  ;;  %v10293_v20 = vmax.f32 %v17134_v48, %v12936_v38  ;;  %12649 = vmatprep.mubr.msk.f32.mxu0 %vm5434_vm1, %v5132_v0  ;;  %v5425_v51 = vld [vmem:[%s14382_s10 + $0x11d8] sm:$0xff]  ;;  %v5138_v61 = vld [vmem:[%s14382_s10 + $0x8e0] sm:$0xff] }
 0x36e   : > { %13081 = vmatprep.mubr.msk.f32.mxu1 %vm5434_vm1, %v5420_v57  ;;  %v10434_v27 = vmax.f32 %v10146_v12, %v10290_v4  ;;  %v8133_v16 = vpop.f32.mrf.mxu0  ;;  %v9573_v1 = vpop.f32.mrf.mxu1  ;;  %v17143_v12 = vld [vmem:[#allocation36_spill] sm:$0xff]  ;;  %v17144_v4 = vld [vmem:[#allocation37_spill] sm:$0xff]  ;;  %v5426_v38 = vld [vmem:[%s14382_s10 + $0x11e0] sm:$0xff] }
 0x36f   : > { %10872 = vst.msk [vmem:[%s15961_s20 + $0x100] sm:$0xff] %vm10839_vm2, %v10727_v5  ;;  %v10730_v58 = vmax.f32 %v10586_v55, 0.0  ;;  %v10437_v59 = vmax.f32 %v10149_v39, %v10293_v20  ;;  %v10148_v18 = vmax.f32 %v17135_v8, %v8133_v16  ;;  %v10292_v43 = vmax.f32 %v17136_v42, %v9573_v1  ;;  %v17145_v20 = vld [vmem:[#allocation38_spill] sm:$0xff]  ;;  %v5139_v16 = vld [vmem:[%s14382_s10 + $0x8e8] sm:$0xff]  ;;  %v5140_v8 = vld [vmem:[%s14382_s10 + $0x8f0] sm:$0xff] }
 0x370   : > { %v10585_v29 = vadd.f32 %v15943_v9, %v10434_v27  ;;  %v12507_v19 = vpop.f32.mrf.mxu0  ;;  %12650 = vmatmul.mubr.msk.f32.gmra.mxu0 %vm5434_vm1, %v5133_v21  ;;  %v12939_v33 = vpop.f32.mrf.mxu1  ;;  %13082 = vmatmul.mubr.msk.f32.gmra.mxu1 %vm5434_vm1, %v5421_v26  ;;  %v17146_v26 = vld [vmem:[#allocation39_spill] sm:$0xff]  ;;  %v5427_v1 = vld [vmem:[%s14382_s10 + $0x11e8] sm:$0xff] }
 0x371   : > { %10875 = vst.msk [vmem:[%s15961_s20 + $0x118] sm:$0xff] %vm10839_vm2, %v10730_v58  ;;  %v10588_v62 = vadd.f32 %v15943_v9, %v10437_v59  ;;  %v10436_v63 = vmax.f32 %v10148_v18, %v10292_v43  ;;  %v10151_v30 = vmax.f32 %v17137_v36, %v12507_v19  ;;  %v10295_v31 = vmax.f32 %v17138_v37, %v12939_v33  ;;  %v5428_v18 = vld [vmem:[%s14382_s10 + $0x11f0] sm:$0xff] }
 0x372   : > { %12652 = vmatprep.mubr.msk.f32.mxu0 %vm5434_vm1, %v5134_v24  ;;  %v10729_v46 = vmax.f32 %v10585_v29, 0.0  ;;  %v8143_v47 = vpop.f32.mrf.mxu0  ;;  %v9583_v11 = vpop.f32.mrf.mxu1  ;;  %13084 = vmatprep.mubr.msk.f32.mxu1 %vm5434_vm1, %v5422_v28  ;;  %v17147_v29 = vld [vmem:[#allocation40_spill] sm:$0xff]  ;;  %v17148_v33 = vld [vmem:[#allocation41_spill] sm:$0xff] }
 0x373   : > { %v10732_v45 = vmax.f32 %v10588_v62, 0.0  ;;  %v10587_v40 = vadd.f32 %v15943_v9, %v10436_v63  ;;  %v10439_v41 = vmax.f32 %v10151_v30, %v10295_v31  ;;  %v10150_v3 = vmax.f32 %v17139_v2, %v8143_v47  ;;  %v17149_v31 = vld [vmem:[#allocation42_spill] sm:$0xff]  ;;  %v17151_v2 = vld [vmem:[#allocation44_spill] sm:$0xff] }
 0x374   : > { %10874 = vst.msk [vmem:[%s15961_s20 + $0x110] sm:$0xff] %vm10839_vm2, %v10729_v46  ;;  %v10294_v22 = vmax.f32 %v17140_v17, %v9583_v11  ;;  %v12510_v52 = vpop.f32.mrf.mxu0  ;;  %12653 = vmatmul.mubr.msk.f32.gmra.mxu0 %vm5434_vm1, %v5135_v25  ;;  %v12942_v53 = vpop.f32.mrf.mxu1  ;;  %13085 = vmatmul.mubr.msk.f32.gmra.mxu1 %vm5434_vm1, %v5423_v10  ;;  %v17150_v10 = vld [vmem:[#allocation43_spill] sm:$0xff]  ;;  %v5141_v47 = vld [vmem:[%s14382_s10 + $0x8f8] sm:$0xff]  ;;  %v17152_v17 = vld [vmem:[#allocation45_spill] sm:$0xff] }
 0x375   : > { %10877 = vst.msk [vmem:[%s15961_s20 + $0x128] sm:$0xff] %vm10839_vm2, %v10732_v45  ;;  %v10731_v23 = vmax.f32 %v10587_v40, 0.0  ;;  %v10590_v32 = vadd.f32 %v15943_v9, %v10439_v41  ;;  %v10153_v34 = vmax.f32 %v17141_v6, %v12510_v52  ;;  %v10297_v35 = vmax.f32 %v17142_v7, %v12942_v53  ;;  %12655 = vmatprep.mubr.msk.f32.mxu0 %vm5434_vm1, %v5136_v49  ;;  %v5429_v11 = vld [vmem:[%s14382_s10 + $0x11f8] sm:$0xff] }
 0x376   : > { %13087 = vmatprep.mubr.msk.f32.mxu1 %vm5434_vm1, %v5424_v44  ;;  %v10438_v0 = vmax.f32 %v10150_v3, %v10294_v22  ;;  %v8153_v57 = vpop.f32.mrf.mxu0  ;;  %v9593_v60 = vpop.f32.mrf.mxu1 }
 0x377   : > { %10876 = vst.msk [vmem:[%s15961_s20 + $0x120] sm:$0xff] %vm10839_vm2, %v10731_v23  ;;  %v10734_v56 = vmax.f32 %v10590_v32, 0.0  ;;  %v10441_v14 = vmax.f32 %v10153_v34, %v10297_v35  ;;  %v10152_v13 = vmax.f32 %v17143_v12, %v8153_v57  ;;  %v10296_v54 = vmax.f32 %v17144_v4, %v9593_v60  ;;  %v17153_v34 = vld [vmem:[#allocation46_spill] sm:$0xff]  ;;  %v17154_v35 = vld [vmem:[#allocation47_spill] sm:$0xff] }
 0x378   : > { %v10589_v5 = vadd.f32 %v15943_v9, %v10438_v0  ;;  %v12513_v55 = vpop.f32.mrf.mxu0  ;;  %12656 = vmatmul.mubr.msk.f32.gmra.mxu0 %vm5434_vm1, %v5137_v50  ;;  %v12945_v15 = vpop.f32.mrf.mxu1  ;;  %13088 = vmatmul.mubr.msk.f32.gmra.mxu1 %vm5434_vm1, %v5425_v51 }
 0x379   : > { %10879 = vst.msk [vmem:[%s15961_s20 + $0x138] sm:$0xff] %vm10839_vm2, %v10734_v56  ;;  %v10592_v39 = vadd.f32 %v15943_v9, %v10441_v14  ;;  %v10440_v48 = vmax.f32 %v10152_v13, %v10296_v54  ;;  %v10155_v21 = vmax.f32 %v17145_v20, %v12513_v55  ;;  %v10299_v27 = vmax.f32 %v17146_v26, %v12945_v15  ;;  %v17155_v14 = vld [vmem:[#allocation48_spill] sm:$0xff]  ;;  %v17156_v13 = vld [vmem:[#allocation49_spill] sm:$0xff]  ;;  %v17157_v15 = vld [vmem:[#allocation50_spill] sm:$0xff] }
 0x37a   : > { %12658 = vmatprep.mubr.msk.f32.mxu0 %vm5434_vm1, %v5138_v61  ;;  %v10733_v24 = vmax.f32 %v10589_v5, 0.0  ;;  %v8163_v58 = vpop.f32.mrf.mxu0  ;;  %v9603_v59 = vpop.f32.mrf.mxu1  ;;  %13090 = vmatprep.mubr.msk.f32.mxu1 %vm5434_vm1, %v5426_v38 }
 0x37b   : > { %v10736_v42 = vmax.f32 %v10592_v39, 0.0  ;;  %v10591_v43 = vadd.f32 %v15943_v9, %v10440_v48  ;;  %v10443_v28 = vmax.f32 %v10155_v21, %v10299_v27  ;;  %v10154_v19 = vmax.f32 %v17147_v29, %v8163_v58  ;;  %v16336_v9 = vld [vmem:[%s16869_s2] ss:$0 sm:$0xff] }
 0x37c   : > { %10878 = vst.msk [vmem:[%s15961_s20 + $0x130] sm:$0xff] %vm10839_vm2, %v10733_v24  ;;  %v10298_v62 = vmax.f32 %v17148_v33, %v9603_v59  ;;  %v12516_v63 = vpop.f32.mrf.mxu0  ;;  %12659 = vmatmul.mubr.msk.f32.gmra.mxu0 %vm5434_vm1, %v5139_v16  ;;  %v12948_v36 = vpop.f32.mrf.mxu1  ;;  %13091 = vmatmul.mubr.msk.f32.gmra.mxu1 %vm5434_vm1, %v5427_v1  ;;  %v17158_v48 = vld [vmem:[#allocation51_spill] sm:$0xff]  ;;  %v17159_v24 = vld [vmem:[#allocation52_spill] sm:$0xff]  ;;  %v17160_v59 = vld [vmem:[#allocation53_spill] sm:$0xff] }
 0x37d   : > { %10881 = vst.msk [vmem:[%s15961_s20 + $0x148] sm:$0xff] %vm10839_vm2, %v10736_v42  ;;  %v10735_v30 = vmax.f32 %v10591_v43, 0.0  ;;  %v10594_v37 = vadd.f32 %v16336_v9, %v10443_v28  ;;  %v10157_v25 = vmax.f32 %v17149_v31, %v12516_v63  ;;  %v10301_v46 = vmax.f32 %v17150_v10, %v12948_v36  ;;  %12661 = vmatprep.mubr.msk.f32.mxu0 %vm5434_vm1, %v5140_v8 }
 0x37e   : > { %13093 = vmatprep.mubr.msk.f32.mxu1 %vm5434_vm1, %v5428_v18  ;;  %v10442_v49 = vmax.f32 %v10154_v19, %v10298_v62  ;;  %v8173_v44 = vpop.f32.mrf.mxu0  ;;  %v9613_v45 = vpop.f32.mrf.mxu1  ;;  %v17161_v19 = vld [vmem:[#allocation54_spill] sm:$0xff]  ;;  %v17162_v62 = vld [vmem:[#allocation55_spill] sm:$0xff] }
 0x37f   : > { %10880 = vst.msk [vmem:[%s15961_s20 + $0x140] sm:$0xff] %vm10839_vm2, %v10735_v30  ;;  %v10738_v40 = vmax.f32 %v10594_v37, 0.0  ;;  %v10445_v41 = vmax.f32 %v10157_v25, %v10301_v46  ;;  %v10156_v3 = vmax.f32 %v17151_v2, %v8173_v44  ;;  %v10300_v22 = vmax.f32 %v17152_v17, %v9613_v45  ;;  %v17163_v46 = vld [vmem:[#allocation56_spill] sm:$0xff]  ;;  %v17165_v2 = vld [vmem:[#allocation58_spill] sm:$0xff]  ;;  %v17166_v17 = vld [vmem:[#allocation59_spill] sm:$0xff] }
 0x380   : > { %v10593_v52 = vadd.f32 %v16336_v9, %v10442_v49  ;;  %v12519_v53 = vpop.f32.mrf.mxu0  ;;  %12662 = vmatmul.mubr.msk.f32.gmra.mxu0 %vm5434_vm1, %v5141_v47  ;;  %v12951_v23 = vpop.f32.mrf.mxu1  ;;  %13094 = vmatmul.mubr.msk.f32.gmra.mxu1 %vm5434_vm1, %v5429_v11  ;;  %v17164_v11 = vld [vmem:[#allocation57_spill] sm:$0xff] }
 0x381   : > { %10883 = vst.msk [vmem:[%s15961_s20 + $0x158] sm:$0xff] %vm10839_vm2, %v10738_v40  ;;  %v10596_v32 = vadd.f32 %v16336_v9, %v10445_v41  ;;  %v10444_v6 = vmax.f32 %v10156_v3, %v10300_v22  ;;  %v10159_v7 = vmax.f32 %v17153_v34, %v12519_v53  ;;  %v10303_v50 = vmax.f32 %v17154_v35, %v12951_v23  ;;  %v17167_v34 = vld [vmem:[#allocation60_spill] sm:$0xff]  ;;  %v17168_v35 = vld [vmem:[#allocation61_spill] sm:$0xff] }
 0x382   : > { %v10737_v51 = vmax.f32 %v10593_v52, 0.0  ;;  %v8183_v0 = vpop.f32.mrf.mxu0  ;;  %v9623_v57 = vpop.f32.mrf.mxu1 }
 0x383   : > { %v10740_v60 = vmax.f32 %v10596_v32, 0.0  ;;  %v10595_v61 = vadd.f32 %v16336_v9, %v10444_v6  ;;  %v10447_v56 = vmax.f32 %v10159_v7, %v10303_v50  ;;  %v10158_v12 = vmax.f32 %v17155_v14, %v8183_v0 }
 0x384   : > { %10882 = vst.msk [vmem:[%s15961_s20 + $0x150] sm:$0xff] %vm10839_vm2, %v10737_v51  ;;  %v10302_v4 = vmax.f32 %v17156_v13, %v9623_v57  ;;  %v12522_v54 = vpop.f32.mrf.mxu0  ;;  %v12954_v38 = vpop.f32.mrf.mxu1 }
 0x385   : > { %10885 = vst.msk [vmem:[%s15961_s20 + $0x168] sm:$0xff] %vm10839_vm2, %v10740_v60  ;;  %v10739_v5 = vmax.f32 %v10595_v61, 0.0  ;;  %v10598_v55 = vadd.f32 %v16336_v9, %v10447_v56  ;;  %v10161_v39 = vmax.f32 %v17157_v15, %v12522_v54  ;;  %v10305_v20 = vmax.f32 %v17158_v48, %v12954_v38  ;;  %v17169_v56 = vld [vmem:[#allocation62_spill] sm:$0xff] }
 0x386   : > { %v10446_v21 = vmax.f32 %v10158_v12, %v10302_v4  ;;  %v8193_v26 = vpop.f32.mrf.mxu0  ;;  %v9633_v27 = vpop.f32.mrf.mxu1  ;;  %v17170_v12 = vld [vmem:[#allocation63_spill] sm:$0xff] }
 0x387   : > { %10884 = vst.msk [vmem:[%s15961_s20 + $0x160] sm:$0xff] %vm10839_vm2, %v10739_v5  ;;  %v10742_v16 = vmax.f32 %v10598_v55, 0.0  ;;  %v10449_v1 = vmax.f32 %v10161_v39, %v10305_v20  ;;  %v10160_v58 = vmax.f32 %v17159_v24, %v8193_v26  ;;  %v10304_v8 = vmax.f32 %v17160_v59, %v9633_v27  ;;  %v17171_v39 = vld [vmem:[#allocation64_spill] sm:$0xff]  ;;  %v17172_v20 = vld [vmem:[#allocation65_spill] sm:$0xff]  ;;  %v17173_v24 = vld [vmem:[#allocation66_spill] sm:$0xff] }
 0x388   : > { %v10597_v18 = vadd.f32 %v16336_v9, %v10446_v21  ;;  %v12525_v42 = vpop.f32.mrf.mxu0  ;;  %v12957_v43 = vpop.f32.mrf.mxu1  ;;  %v17174_v59 = vld [vmem:[#allocation67_spill] sm:$0xff] }
 0x389   : > { %10887 = vst.msk [vmem:[%s15961_s20 + $0x178] sm:$0xff] %vm10839_vm2, %v10742_v16  ;;  %v10600_v28 = vadd.f32 %v16336_v9, %v10449_v1  ;;  %v10448_v29 = vmax.f32 %v10160_v58, %v10304_v8  ;;  %v10163_v33 = vmax.f32 %v17161_v19, %v12525_v42  ;;  %v10307_v63 = vmax.f32 %v17162_v62, %v12957_v43  ;;  %v17175_v19 = vld [vmem:[#allocation68_spill] sm:$0xff]  ;;  %v17176_v62 = vld [vmem:[#allocation69_spill] sm:$0xff] }
 0x38a   : > { %v10741_v36 = vmax.f32 %v10597_v18, 0.0  ;;  %v8203_v30 = vpop.f32.mrf.mxu0  ;;  %v9643_v37 = vpop.f32.mrf.mxu1 }
 0x38b   : > { %v10744_v31 = vmax.f32 %v10600_v28, 0.0  ;;  %v10599_v25 = vadd.f32 %v16336_v9, %v10448_v29  ;;  %v10451_v10 = vmax.f32 %v10163_v33, %v10307_v63  ;;  %v10162_v47 = vmax.f32 %v17163_v46, %v8203_v30 }
 0x38c   : > { %10886 = vst.msk [vmem:[%s15961_s20 + $0x170] sm:$0xff] %vm10839_vm2, %v10741_v36  ;;  %v10306_v49 = vmax.f32 %v17164_v11, %v9643_v37  ;;  %v12528_v44 = vpop.f32.mrf.mxu0  ;;  %v12960_v45 = vpop.f32.mrf.mxu1 }
 0x38d   : > { %10889 = vst.msk [vmem:[%s15961_s20 + $0x188] sm:$0xff] %vm10839_vm2, %v10744_v31  ;;  %v10743_v40 = vmax.f32 %v10599_v25, 0.0  ;;  %v10602_v41 = vadd.f32 %v16336_v9, %v10451_v10  ;;  %v10165_v3 = vmax.f32 %v17165_v2, %v12528_v44  ;;  %v10309_v22 = vmax.f32 %v17166_v17, %v12960_v45  ;;  %v17177_v10 = vld [vmem:[#allocation70_spill] sm:$0xff] }
 0x38e   : > { %v10450_v52 = vmax.f32 %v10162_v47, %v10306_v49  ;;  %v8213_v53 = vpop.f32.mrf.mxu0  ;;  %v9653_v23 = vpop.f32.mrf.mxu1  ;;  %v17178_v47 = vld [vmem:[#allocation71_spill] sm:$0xff] }
 0x38f   : > { %10888 = vst.msk [vmem:[%s15961_s20 + $0x180] sm:$0xff] %vm10839_vm2, %v10743_v40  ;;  %v10746_v32 = vmax.f32 %v10602_v41, 0.0  ;;  %v10453_v6 = vmax.f32 %v10165_v3, %v10309_v22  ;;  %v10164_v7 = vmax.f32 %v17167_v34, %v8213_v53  ;;  %v10308_v50 = vmax.f32 %v17168_v35, %v9653_v23  ;;  %v17179_v3 = vld [vmem:[#allocation72_spill] sm:$0xff]  ;;  %v17180_v22 = vld [vmem:[#allocation73_spill] sm:$0xff]  ;;  %v17181_v34 = vld [vmem:[#allocation74_spill] sm:$0xff] }
 0x390   : > { %v10601_v51 = vadd.f32 %v16336_v9, %v10450_v52  ;;  %v12531_v0 = vpop.f32.mrf.mxu0  ;;  %v12963_v57 = vpop.f32.mrf.mxu1  ;;  %v17182_v35 = vld [vmem:[#allocation75_spill] sm:$0xff] }
 0x391   : > { %10891 = vst.msk [vmem:[%s15961_s20 + $0x198] sm:$0xff] %vm10839_vm2, %v10746_v32  ;;  %v10604_v60 = vadd.f32 %v16336_v9, %v10453_v6  ;;  %v10452_v61 = vmax.f32 %v10164_v7, %v10308_v50  ;;  %v10167_v14 = vmax.f32 %v17169_v56, %v12531_v0  ;;  %v10311_v13 = vmax.f32 %v17170_v12, %v12963_v57  ;;  %v17183_v56 = vld [vmem:[#allocation76_spill] sm:$0xff]  ;;  %v17184_v12 = vld [vmem:[#allocation77_spill] sm:$0xff] }
 0x392   : > { %v10745_v4 = vmax.f32 %v10601_v51, 0.0  ;;  %v8223_v54 = vpop.f32.mrf.mxu0  ;;  %v9663_v38 = vpop.f32.mrf.mxu1 }
 0x393   : > { %v10748_v5 = vmax.f32 %v10604_v60, 0.0  ;;  %v10603_v55 = vadd.f32 %v16336_v9, %v10452_v61  ;;  %v10455_v15 = vmax.f32 %v10167_v14, %v10311_v13  ;;  %v10166_v48 = vmax.f32 %v17171_v39, %v8223_v54 }
 0x394   : > { %10890 = vst.msk [vmem:[%s15961_s20 + $0x190] sm:$0xff] %vm10839_vm2, %v10745_v4  ;;  %v10310_v21 = vmax.f32 %v17172_v20, %v9663_v38  ;;  %v12534_v26 = vpop.f32.mrf.mxu0  ;;  %v12966_v27 = vpop.f32.mrf.mxu1 }
 0x395   : > { %10893 = vst.msk [vmem:[%s15961_s20 + $0x1a8] sm:$0xff] %vm10839_vm2, %v10748_v5  ;;  %v10747_v16 = vmax.f32 %v10603_v55, 0.0  ;;  %v10606_v1 = vadd.f32 %v16336_v9, %v10455_v15  ;;  %v10169_v58 = vmax.f32 %v17173_v24, %v12534_v26  ;;  %v10313_v8 = vmax.f32 %v17174_v59, %v12966_v27  ;;  %v17185_v15 = vld [vmem:[#allocation78_spill] sm:$0xff] }
 0x396   : > { %v10454_v18 = vmax.f32 %v10166_v48, %v10310_v21  ;;  %v8233_v42 = vpop.f32.mrf.mxu0  ;;  %v9673_v43 = vpop.f32.mrf.mxu1  ;;  %v17186_v48 = vld [vmem:[#allocation79_spill] sm:$0xff] }
 0x397   : > { %10892 = vst.msk [vmem:[%s15961_s20 + $0x1a0] sm:$0xff] %vm10839_vm2, %v10747_v16  ;;  %v10750_v28 = vmax.f32 %v10606_v1, 0.0  ;;  %v10457_v29 = vmax.f32 %v10169_v58, %v10313_v8  ;;  %v10168_v33 = vmax.f32 %v17175_v19, %v8233_v42  ;;  %v10312_v63 = vmax.f32 %v17176_v62, %v9673_v43  ;;  %v17187_v58 = vld [vmem:[#allocation80_spill] sm:$0xff]  ;;  %v17188_v8 = vld [vmem:[#allocation81_spill] sm:$0xff]  ;;  %v17189_v19 = vld [vmem:[#allocation82_spill] sm:$0xff] }
 0x398   : > { %v10605_v36 = vadd.f32 %v16336_v9, %v10454_v18  ;;  %v12537_v30 = vpop.f32.mrf.mxu0  ;;  %v12969_v37 = vpop.f32.mrf.mxu1  ;;  %v17190_v62 = vld [vmem:[#allocation83_spill] sm:$0xff] }
 0x399   : > { %10895 = vst.msk [vmem:[%s15961_s20 + $0x1b8] sm:$0xff] %vm10839_vm2, %v10750_v28  ;;  %v10608_v31 = vadd.f32 %v16336_v9, %v10457_v29  ;;  %v10456_v25 = vmax.f32 %v10168_v33, %v10312_v63  ;;  %v10171_v46 = vmax.f32 %v17177_v10, %v12537_v30  ;;  %v10315_v11 = vmax.f32 %v17178_v47, %v12969_v37  ;;  %v17191_v10 = vld [vmem:[#allocation84_spill] sm:$0xff]  ;;  %v17192_v47 = vld [vmem:[#allocation85_spill] sm:$0xff] }
 0x39a   : > { %v10749_v49 = vmax.f32 %v10605_v36, 0.0  ;;  %v8243_v44 = vpop.f32.mrf.mxu0  ;;  %v9683_v45 = vpop.f32.mrf.mxu1 }
 0x39b   : > { %v10752_v40 = vmax.f32 %v10608_v31, 0.0  ;;  %v10607_v41 = vadd.f32 %v16336_v9, %v10456_v25  ;;  %v10459_v2 = vmax.f32 %v10171_v46, %v10315_v11  ;;  %v10170_v17 = vmax.f32 %v17179_v3, %v8243_v44 }
 0x39c   : > { %10894 = vst.msk [vmem:[%s15961_s20 + $0x1b0] sm:$0xff] %vm10839_vm2, %v10749_v49  ;;  %v10314_v52 = vmax.f32 %v17180_v22, %v9683_v45  ;;  %v12540_v53 = vpop.f32.mrf.mxu0  ;;  %v12972_v23 = vpop.f32.mrf.mxu1 }
 0x39d   : > { %10897 = vst.msk [vmem:[%s15961_s20 + $0x1c8] sm:$0xff] %vm10839_vm2, %v10752_v40  ;;  %v10751_v32 = vmax.f32 %v10607_v41, 0.0  ;;  %v10610_v6 = vadd.f32 %v16336_v9, %v10459_v2  ;;  %v10173_v7 = vmax.f32 %v17181_v34, %v12540_v53  ;;  %v10317_v50 = vmax.f32 %v17182_v35, %v12972_v23  ;;  %v17193_v2 = vld [vmem:[#allocation86_spill] sm:$0xff] }
 0x39e   : > { %v10458_v51 = vmax.f32 %v10170_v17, %v10314_v52  ;;  %v8253_v0 = vpop.f32.mrf.mxu0  ;;  %v9693_v57 = vpop.f32.mrf.mxu1  ;;  %v17194_v17 = vld [vmem:[#allocation87_spill] sm:$0xff] }
 0x39f   : > { %10896 = vst.msk [vmem:[%s15961_s20 + $0x1c0] sm:$0xff] %vm10839_vm2, %v10751_v32  ;;  %v10754_v60 = vmax.f32 %v10610_v6, 0.0  ;;  %v10461_v61 = vmax.f32 %v10173_v7, %v10317_v50  ;;  %v10172_v14 = vmax.f32 %v17183_v56, %v8253_v0  ;;  %v10316_v13 = vmax.f32 %v17184_v12, %v9693_v57  ;;  %v17195_v7 = vld [vmem:[#allocation88_spill] sm:$0xff]  ;;  %v17196_v50 = vld [vmem:[#allocation89_spill] sm:$0xff]  ;;  %v17197_v56 = vld [vmem:[#allocation90_spill] sm:$0xff] }
 0x3a0   : > { %v10609_v4 = vadd.f32 %v16336_v9, %v10458_v51  ;;  %v12543_v54 = vpop.f32.mrf.mxu0  ;;  %v12975_v38 = vpop.f32.mrf.mxu1  ;;  %v17198_v12 = vld [vmem:[#allocation91_spill] sm:$0xff] }
 0x3a1   : > { %10899 = vst.msk [vmem:[%s15961_s20 + $0x1d8] sm:$0xff] %vm10839_vm2, %v10754_v60  ;;  %v10612_v5 = vadd.f32 %v16336_v9, %v10461_v61  ;;  %v10460_v55 = vmax.f32 %v10172_v14, %v10316_v13  ;;  %v10175_v39 = vmax.f32 %v17185_v15, %v12543_v54  ;;  %v10319_v20 = vmax.f32 %v17186_v48, %v12975_v38  ;;  %v17199_v15 = vld [vmem:[#allocation92_spill] sm:$0xff]  ;;  %v17200_v48 = vld [vmem:[#allocation93_spill] sm:$0xff] }
 0x3a2   : > { %v10753_v21 = vmax.f32 %v10609_v4, 0.0  ;;  %v8263_v26 = vpop.f32.mrf.mxu0  ;;  %v9703_v27 = vpop.f32.mrf.mxu1 }
 0x3a3   : > { %v10756_v16 = vmax.f32 %v10612_v5, 0.0  ;;  %v10611_v1 = vadd.f32 %v16336_v9, %v10460_v55  ;;  %v10463_v24 = vmax.f32 %v10175_v39, %v10319_v20  ;;  %v10174_v59 = vmax.f32 %v17187_v58, %v8263_v26 }
 0x3a4   : > { %10898 = vst.msk [vmem:[%s15961_s20 + $0x1d0] sm:$0xff] %vm10839_vm2, %v10753_v21  ;;  %v10318_v18 = vmax.f32 %v17188_v8, %v9703_v27  ;;  %v12546_v42 = vpop.f32.mrf.mxu0  ;;  %v12978_v43 = vpop.f32.mrf.mxu1 }
 0x3a5   : > { %10901 = vst.msk [vmem:[%s15961_s20 + $0x1e8] sm:$0xff] %vm10839_vm2, %v10756_v16  ;;  %v10755_v28 = vmax.f32 %v10611_v1, 0.0  ;;  %v10614_v29 = vadd.f32 %v16336_v9, %v10463_v24  ;;  %v10177_v33 = vmax.f32 %v17189_v19, %v12546_v42  ;;  %v10321_v63 = vmax.f32 %v17190_v62, %v12978_v43  ;;  %v17201_v24 = vld [vmem:[#allocation94_spill] sm:$0xff] }
 0x3a6   : > { %v10462_v36 = vmax.f32 %v10174_v59, %v10318_v18  ;;  %v8273_v30 = vpop.f32.mrf.mxu0  ;;  %v9713_v37 = vpop.f32.mrf.mxu1  ;;  %v17202_v59 = vld [vmem:[#allocation95_spill] sm:$0xff] }
 0x3a7   : > { %10900 = vst.msk [vmem:[%s15961_s20 + $0x1e0] sm:$0xff] %vm10839_vm2, %v10755_v28  ;;  %v10758_v31 = vmax.f32 %v10614_v29, 0.0  ;;  %v10465_v25 = vmax.f32 %v10177_v33, %v10321_v63  ;;  %v10176_v46 = vmax.f32 %v17191_v10, %v8273_v30  ;;  %v10320_v11 = vmax.f32 %v17192_v47, %v9713_v37  ;;  %v17203_v33 = vld [vmem:[#allocation96_spill] sm:$0xff]  ;;  %v17204_v63 = vld [vmem:[#allocation97_spill] sm:$0xff]  ;;  %v17205_v10 = vld [vmem:[#allocation98_spill] sm:$0xff] }
 0x3a8   : > { %v10613_v49 = vadd.f32 %v16336_v9, %v10462_v36  ;;  %v12549_v44 = vpop.f32.mrf.mxu0  ;;  %v12981_v45 = vpop.f32.mrf.mxu1  ;;  %v17206_v47 = vld [vmem:[#allocation99_spill] sm:$0xff] }
 0x3a9   : > { %10903 = vst.msk [vmem:[%s15961_s20 + $0x1f8] sm:$0xff] %vm10839_vm2, %v10758_v31  ;;  %v10616_v40 = vadd.f32 %v16336_v9, %v10465_v25  ;;  %v10464_v41 = vmax.f32 %v10176_v46, %v10320_v11  ;;  %v10179_v3 = vmax.f32 %v17193_v2, %v12549_v44  ;;  %v10323_v22 = vmax.f32 %v17194_v17, %v12981_v45  ;;  %v17207_v2 = vld [vmem:[#allocation100_spill] sm:$0xff]  ;;  %v17208_v17 = vld [vmem:[#allocation101_spill] sm:$0xff] }
 0x3aa   : > { %v10757_v52 = vmax.f32 %v10613_v49, 0.0  ;;  %v8283_v53 = vpop.f32.mrf.mxu0  ;;  %v9723_v23 = vpop.f32.mrf.mxu1 }
 0x3ab   : > { %v10760_v32 = vmax.f32 %v10616_v40, 0.0  ;;  %v10615_v6 = vadd.f32 %v16336_v9, %v10464_v41  ;;  %v10467_v34 = vmax.f32 %v10179_v3, %v10323_v22  ;;  %v10178_v35 = vmax.f32 %v17195_v7, %v8283_v53 }
 0x3ac   : > { %10902 = vst.msk [vmem:[%s15961_s20 + $0x1f0] sm:$0xff] %vm10839_vm2, %v10757_v52  ;;  %v10322_v51 = vmax.f32 %v17196_v50, %v9723_v23  ;;  %v12552_v0 = vpop.f32.mrf.mxu0  ;;  %v12984_v57 = vpop.f32.mrf.mxu1 }
 0x3ad   : > { %10905 = vst.msk [vmem:[%s15961_s20 + $0x208] sm:$0xff] %vm10839_vm2, %v10760_v32  ;;  %v10759_v60 = vmax.f32 %v10615_v6, 0.0  ;;  %v10618_v61 = vadd.f32 %v16336_v9, %v10467_v34  ;;  %v10181_v14 = vmax.f32 %v17197_v56, %v12552_v0  ;;  %v10325_v13 = vmax.f32 %v17198_v12, %v12984_v57  ;;  %v17209_v34 = vld [vmem:[#allocation102_spill] sm:$0xff] }
 0x3ae   : > { %v10466_v4 = vmax.f32 %v10178_v35, %v10322_v51  ;;  %v8293_v54 = vpop.f32.mrf.mxu0  ;;  %v9733_v38 = vpop.f32.mrf.mxu1  ;;  %v17210_v35 = vld [vmem:[#allocation103_spill] sm:$0xff] }
 0x3af   : > { %10904 = vst.msk [vmem:[%s15961_s20 + $0x200] sm:$0xff] %vm10839_vm2, %v10759_v60  ;;  %v10762_v5 = vmax.f32 %v10618_v61, 0.0  ;;  %v10469_v55 = vmax.f32 %v10181_v14, %v10325_v13  ;;  %v10180_v39 = vmax.f32 %v17199_v15, %v8293_v54  ;;  %v10324_v20 = vmax.f32 %v17200_v48, %v9733_v38  ;;  %v17211_v14 = vld [vmem:[#allocation104_spill] sm:$0xff]  ;;  %v17212_v13 = vld [vmem:[#allocation105_spill] sm:$0xff]  ;;  %v17213_v15 = vld [vmem:[#allocation106_spill] sm:$0xff] }
 0x3b0   : > { %v10617_v21 = vadd.f32 %v16336_v9, %v10466_v4  ;;  %v12555_v26 = vpop.f32.mrf.mxu0  ;;  %v12987_v27 = vpop.f32.mrf.mxu1  ;;  %v17214_v48 = vld [vmem:[#allocation107_spill] sm:$0xff] }
 0x3b1   : > { %10907 = vst.msk [vmem:[%s15961_s20 + $0x218] sm:$0xff] %vm10839_vm2, %v10762_v5  ;;  %v10620_v16 = vadd.f32 %v16336_v9, %v10469_v55  ;;  %v10468_v1 = vmax.f32 %v10180_v39, %v10324_v20  ;;  %v10183_v58 = vmax.f32 %v17201_v24, %v12555_v26  ;;  %v10327_v8 = vmax.f32 %v17202_v59, %v12987_v27  ;;  %v17215_v24 = vld [vmem:[#allocation108_spill] sm:$0xff]  ;;  %v17216_v59 = vld [vmem:[#allocation109_spill] sm:$0xff] }
 0x3b2   : > { %v10761_v18 = vmax.f32 %v10617_v21, 0.0  ;;  %v8303_v42 = vpop.f32.mrf.mxu0  ;;  %v9743_v43 = vpop.f32.mrf.mxu1 }
 0x3b3   : > { %v10764_v28 = vmax.f32 %v10620_v16, 0.0  ;;  %v10619_v29 = vadd.f32 %v16336_v9, %v10468_v1  ;;  %v10471_v19 = vmax.f32 %v10183_v58, %v10327_v8  ;;  %v10182_v62 = vmax.f32 %v17203_v33, %v8303_v42 }
 0x3b4   : > { %10906 = vst.msk [vmem:[%s15961_s20 + $0x210] sm:$0xff] %vm10839_vm2, %v10761_v18  ;;  %v10326_v36 = vmax.f32 %v17204_v63, %v9743_v43  ;;  %v12558_v30 = vpop.f32.mrf.mxu0  ;;  %v12990_v37 = vpop.f32.mrf.mxu1 }
 0x3b5   : > { %10909 = vst.msk [vmem:[%s15961_s20 + $0x228] sm:$0xff] %vm10839_vm2, %v10764_v28  ;;  %v10763_v31 = vmax.f32 %v10619_v29, 0.0  ;;  %v10622_v25 = vadd.f32 %v16336_v9, %v10471_v19  ;;  %v10185_v46 = vmax.f32 %v17205_v10, %v12558_v30  ;;  %v10329_v11 = vmax.f32 %v17206_v47, %v12990_v37  ;;  %v17217_v19 = vld [vmem:[#allocation110_spill] sm:$0xff] }
 0x3b6   : > { %v10470_v49 = vmax.f32 %v10182_v62, %v10326_v36  ;;  %v8313_v44 = vpop.f32.mrf.mxu0  ;;  %v9753_v45 = vpop.f32.mrf.mxu1  ;;  %v17218_v62 = vld [vmem:[#allocation111_spill] sm:$0xff] }
 0x3b7   : > { %10908 = vst.msk [vmem:[%s15961_s20 + $0x220] sm:$0xff] %vm10839_vm2, %v10763_v31  ;;  %v10766_v40 = vmax.f32 %v10622_v25, 0.0  ;;  %v10473_v41 = vmax.f32 %v10185_v46, %v10329_v11  ;;  %v10184_v3 = vmax.f32 %v17207_v2, %v8313_v44  ;;  %v10328_v22 = vmax.f32 %v17208_v17, %v9753_v45  ;;  %v17219_v46 = vld [vmem:[#allocation112_spill] sm:$0xff]  ;;  %v17220_v11 = vld [vmem:[#allocation113_spill] sm:$0xff]  ;;  %v17221_v2 = vld [vmem:[#allocation114_spill] sm:$0xff] }
 0x3b8   : > { %v10621_v52 = vadd.f32 %v16336_v9, %v10470_v49  ;;  %v12561_v53 = vpop.f32.mrf.mxu0  ;;  %v12993_v23 = vpop.f32.mrf.mxu1  ;;  %v17222_v17 = vld [vmem:[#allocation115_spill] sm:$0xff] }
 0x3b9   : > { %10911 = vst.msk [vmem:[%s15961_s20 + $0x238] sm:$0xff] %vm10839_vm2, %v10766_v40  ;;  %v10624_v32 = vadd.f32 %v16336_v9, %v10473_v41  ;;  %v10472_v6 = vmax.f32 %v10184_v3, %v10328_v22  ;;  %v10187_v7 = vmax.f32 %v17209_v34, %v12561_v53  ;;  %v10331_v50 = vmax.f32 %v17210_v35, %v12993_v23  ;;  %v17223_v34 = vld [vmem:[#allocation116_spill] sm:$0xff]  ;;  %v17224_v35 = vld [vmem:[#allocation117_spill] sm:$0xff] }
 0x3ba   : > { %v10765_v51 = vmax.f32 %v10621_v52, 0.0  ;;  %v8323_v0 = vpop.f32.mrf.mxu0  ;;  %v9763_v57 = vpop.f32.mrf.mxu1 }
 0x3bb   : > { %v10768_v60 = vmax.f32 %v10624_v32, 0.0  ;;  %v10623_v61 = vadd.f32 %v16336_v9, %v10472_v6  ;;  %v10475_v56 = vmax.f32 %v10187_v7, %v10331_v50  ;;  %v10186_v12 = vmax.f32 %v17211_v14, %v8323_v0 }
 0x3bc   : > { %10910 = vst.msk [vmem:[%s15961_s20 + $0x230] sm:$0xff] %vm10839_vm2, %v10765_v51  ;;  %v10330_v4 = vmax.f32 %v17212_v13, %v9763_v57  ;;  %v12564_v54 = vpop.f32.mrf.mxu0  ;;  %v12996_v38 = vpop.f32.mrf.mxu1 }
 0x3bd   : > { %10913 = vst.msk [vmem:[%s15961_s20 + $0x248] sm:$0xff] %vm10839_vm2, %v10768_v60  ;;  %v10767_v5 = vmax.f32 %v10623_v61, 0.0  ;;  %v10626_v55 = vadd.f32 %v16336_v9, %v10475_v56  ;;  %v10189_v39 = vmax.f32 %v17213_v15, %v12564_v54  ;;  %v10333_v20 = vmax.f32 %v17214_v48, %v12996_v38  ;;  %v17225_v56 = vld [vmem:[#allocation118_spill] sm:$0xff] }
 0x3be   : > { %v10474_v21 = vmax.f32 %v10186_v12, %v10330_v4  ;;  %v8333_v26 = vpop.f32.mrf.mxu0  ;;  %v9773_v27 = vpop.f32.mrf.mxu1  ;;  %v17226_v12 = vld [vmem:[#allocation119_spill] sm:$0xff] }
 0x3bf   : > { %10912 = vst.msk [vmem:[%s15961_s20 + $0x240] sm:$0xff] %vm10839_vm2, %v10767_v5  ;;  %v10770_v16 = vmax.f32 %v10626_v55, 0.0  ;;  %v10477_v1 = vmax.f32 %v10189_v39, %v10333_v20  ;;  %v10188_v58 = vmax.f32 %v17215_v24, %v8333_v26  ;;  %v10332_v8 = vmax.f32 %v17216_v59, %v9773_v27  ;;  %v17227_v39 = vld [vmem:[#allocation120_spill] sm:$0xff]  ;;  %v17228_v20 = vld [vmem:[#allocation121_spill] sm:$0xff]  ;;  %v17229_v24 = vld [vmem:[#allocation122_spill] sm:$0xff] }
 0x3c0   : > { %v10625_v18 = vadd.f32 %v16336_v9, %v10474_v21  ;;  %v12567_v42 = vpop.f32.mrf.mxu0  ;;  %v12999_v43 = vpop.f32.mrf.mxu1  ;;  %v17230_v59 = vld [vmem:[#allocation123_spill] sm:$0xff] }
 0x3c1   : > { %10915 = vst.msk [vmem:[%s15961_s20 + $0x258] sm:$0xff] %vm10839_vm2, %v10770_v16  ;;  %v10628_v28 = vadd.f32 %v16336_v9, %v10477_v1  ;;  %v10476_v29 = vmax.f32 %v10188_v58, %v10332_v8  ;;  %v10191_v33 = vmax.f32 %v17217_v19, %v12567_v42  ;;  %v10335_v63 = vmax.f32 %v17218_v62, %v12999_v43  ;;  %v17231_v19 = vld [vmem:[#allocation124_spill] sm:$0xff]  ;;  %v17232_v62 = vld [vmem:[#allocation125_spill] sm:$0xff] }
 0x3c2   : > { %v10769_v36 = vmax.f32 %v10625_v18, 0.0  ;;  %v8343_v30 = vpop.f32.mrf.mxu0  ;;  %v9783_v37 = vpop.f32.mrf.mxu1 }
 0x3c3   : > { %v10772_v31 = vmax.f32 %v10628_v28, 0.0  ;;  %v10627_v25 = vadd.f32 %v16336_v9, %v10476_v29  ;;  %v10479_v10 = vmax.f32 %v10191_v33, %v10335_v63  ;;  %v10190_v47 = vmax.f32 %v17219_v46, %v8343_v30 }
 0x3c4   : > { %10914 = vst.msk [vmem:[%s15961_s20 + $0x250] sm:$0xff] %vm10839_vm2, %v10769_v36  ;;  %v10334_v49 = vmax.f32 %v17220_v11, %v9783_v37  ;;  %v12570_v44 = vpop.f32.mrf.mxu0  ;;  %v13002_v45 = vpop.f32.mrf.mxu1 }
 0x3c5   : > { %10917 = vst.msk [vmem:[%s15961_s20 + $0x268] sm:$0xff] %vm10839_vm2, %v10772_v31  ;;  %v10771_v40 = vmax.f32 %v10627_v25, 0.0  ;;  %v10630_v41 = vadd.f32 %v16336_v9, %v10479_v10  ;;  %v10193_v3 = vmax.f32 %v17221_v2, %v12570_v44  ;;  %v10337_v22 = vmax.f32 %v17222_v17, %v13002_v45  ;;  %v17233_v10 = vld [vmem:[#allocation126_spill] sm:$0xff] }
 0x3c6   : > { %v10478_v52 = vmax.f32 %v10190_v47, %v10334_v49  ;;  %v8353_v53 = vpop.f32.mrf.mxu0  ;;  %v9793_v23 = vpop.f32.mrf.mxu1  ;;  %v17234_v47 = vld [vmem:[#allocation127_spill] sm:$0xff] }
 0x3c7   : > { %10916 = vst.msk [vmem:[%s15961_s20 + $0x260] sm:$0xff] %vm10839_vm2, %v10771_v40  ;;  %v10774_v32 = vmax.f32 %v10630_v41, 0.0  ;;  %v10481_v6 = vmax.f32 %v10193_v3, %v10337_v22  ;;  %v10192_v7 = vmax.f32 %v17223_v34, %v8353_v53  ;;  %v10336_v50 = vmax.f32 %v17224_v35, %v9793_v23  ;;  %v17235_v3 = vld [vmem:[#allocation128_spill] sm:$0xff]  ;;  %v17236_v22 = vld [vmem:[#allocation129_spill] sm:$0xff]  ;;  %v17237_v34 = vld [vmem:[#allocation130_spill] sm:$0xff] }
 0x3c8   : > { %v10629_v51 = vadd.f32 %v16336_v9, %v10478_v52  ;;  %v12573_v0 = vpop.f32.mrf.mxu0  ;;  %v13005_v57 = vpop.f32.mrf.mxu1  ;;  %v17238_v35 = vld [vmem:[#allocation131_spill] sm:$0xff] }
 0x3c9   : > { %10919 = vst.msk [vmem:[%s15961_s20 + $0x278] sm:$0xff] %vm10839_vm2, %v10774_v32  ;;  %v10632_v60 = vadd.f32 %v16336_v9, %v10481_v6  ;;  %v10480_v61 = vmax.f32 %v10192_v7, %v10336_v50  ;;  %v10195_v14 = vmax.f32 %v17225_v56, %v12573_v0  ;;  %v10339_v13 = vmax.f32 %v17226_v12, %v13005_v57  ;;  %v17239_v56 = vld [vmem:[#allocation132_spill] sm:$0xff]  ;;  %v17240_v12 = vld [vmem:[#allocation133_spill] sm:$0xff] }
 0x3ca   : > { %v10773_v4 = vmax.f32 %v10629_v51, 0.0  ;;  %v8363_v54 = vpop.f32.mrf.mxu0  ;;  %v9803_v38 = vpop.f32.mrf.mxu1 }
 0x3cb   : > { %v10776_v5 = vmax.f32 %v10632_v60, 0.0  ;;  %v10631_v55 = vadd.f32 %v16336_v9, %v10480_v61  ;;  %v10483_v15 = vmax.f32 %v10195_v14, %v10339_v13  ;;  %v10194_v48 = vmax.f32 %v17227_v39, %v8363_v54 }
 0x3cc   : > { %10918 = vst.msk [vmem:[%s15961_s20 + $0x270] sm:$0xff] %vm10839_vm2, %v10773_v4  ;;  %v10338_v21 = vmax.f32 %v17228_v20, %v9803_v38  ;;  %v12576_v26 = vpop.f32.mrf.mxu0  ;;  %v13008_v27 = vpop.f32.mrf.mxu1 }
 0x3cd   : > { %10921 = vst.msk [vmem:[%s15961_s20 + $0x288] sm:$0xff] %vm10839_vm2, %v10776_v5  ;;  %v10775_v16 = vmax.f32 %v10631_v55, 0.0  ;;  %v10634_v1 = vadd.f32 %v16336_v9, %v10483_v15  ;;  %v10197_v58 = vmax.f32 %v17229_v24, %v12576_v26  ;;  %v10341_v8 = vmax.f32 %v17230_v59, %v13008_v27  ;;  %v17241_v15 = vld [vmem:[#allocation134_spill] sm:$0xff] }
 0x3ce   : > { %v10482_v18 = vmax.f32 %v10194_v48, %v10338_v21  ;;  %v8373_v42 = vpop.f32.mrf.mxu0  ;;  %v9813_v43 = vpop.f32.mrf.mxu1  ;;  %v17242_v48 = vld [vmem:[#allocation135_spill] sm:$0xff] }
 0x3cf   : > { %10920 = vst.msk [vmem:[%s15961_s20 + $0x280] sm:$0xff] %vm10839_vm2, %v10775_v16  ;;  %v10778_v28 = vmax.f32 %v10634_v1, 0.0  ;;  %v10485_v29 = vmax.f32 %v10197_v58, %v10341_v8  ;;  %v10196_v33 = vmax.f32 %v17231_v19, %v8373_v42  ;;  %v10340_v63 = vmax.f32 %v17232_v62, %v9813_v43  ;;  %v17243_v58 = vld [vmem:[#allocation136_spill] sm:$0xff]  ;;  %v17244_v8 = vld [vmem:[#allocation137_spill] sm:$0xff]  ;;  %v17245_v19 = vld [vmem:[#allocation138_spill] sm:$0xff] }
 0x3d0   : > { %v10633_v36 = vadd.f32 %v16336_v9, %v10482_v18  ;;  %v12579_v30 = vpop.f32.mrf.mxu0  ;;  %v13011_v37 = vpop.f32.mrf.mxu1  ;;  %v17246_v62 = vld [vmem:[#allocation139_spill] sm:$0xff] }
 0x3d1   : > { %10923 = vst.msk [vmem:[%s15961_s20 + $0x298] sm:$0xff] %vm10839_vm2, %v10778_v28  ;;  %v10636_v31 = vadd.f32 %v16336_v9, %v10485_v29  ;;  %v10484_v25 = vmax.f32 %v10196_v33, %v10340_v63  ;;  %v10199_v46 = vmax.f32 %v17233_v10, %v12579_v30  ;;  %v10343_v11 = vmax.f32 %v17234_v47, %v13011_v37  ;;  %v17247_v10 = vld [vmem:[#allocation140_spill] sm:$0xff]  ;;  %v17248_v47 = vld [vmem:[#allocation141_spill] sm:$0xff] }
 0x3d2   : > { %v10777_v49 = vmax.f32 %v10633_v36, 0.0  ;;  %v8383_v44 = vpop.f32.mrf.mxu0  ;;  %v9823_v45 = vpop.f32.mrf.mxu1 }
 0x3d3   : > { %v10780_v40 = vmax.f32 %v10636_v31, 0.0  ;;  %v10635_v41 = vadd.f32 %v16336_v9, %v10484_v25  ;;  %v10487_v2 = vmax.f32 %v10199_v46, %v10343_v11  ;;  %v10198_v17 = vmax.f32 %v17235_v3, %v8383_v44 }
 0x3d4   : > { %10922 = vst.msk [vmem:[%s15961_s20 + $0x290] sm:$0xff] %vm10839_vm2, %v10777_v49  ;;  %v10342_v52 = vmax.f32 %v17236_v22, %v9823_v45  ;;  %v12582_v53 = vpop.f32.mrf.mxu0  ;;  %v13014_v23 = vpop.f32.mrf.mxu1 }
 0x3d5   : > { %10925 = vst.msk [vmem:[%s15961_s20 + $0x2a8] sm:$0xff] %vm10839_vm2, %v10780_v40  ;;  %v10779_v32 = vmax.f32 %v10635_v41, 0.0  ;;  %v10638_v6 = vadd.f32 %v16336_v9, %v10487_v2  ;;  %v10201_v7 = vmax.f32 %v17237_v34, %v12582_v53  ;;  %v10345_v50 = vmax.f32 %v17238_v35, %v13014_v23  ;;  %v17249_v2 = vld [vmem:[#allocation142_spill] sm:$0xff] }
 0x3d6   : > { %v10486_v51 = vmax.f32 %v10198_v17, %v10342_v52  ;;  %v8393_v0 = vpop.f32.mrf.mxu0  ;;  %v9833_v57 = vpop.f32.mrf.mxu1  ;;  %v17250_v17 = vld [vmem:[#allocation143_spill] sm:$0xff] }
 0x3d7   : > { %10924 = vst.msk [vmem:[%s15961_s20 + $0x2a0] sm:$0xff] %vm10839_vm2, %v10779_v32  ;;  %v10782_v60 = vmax.f32 %v10638_v6, 0.0  ;;  %v10489_v61 = vmax.f32 %v10201_v7, %v10345_v50  ;;  %v10200_v14 = vmax.f32 %v17239_v56, %v8393_v0  ;;  %v10344_v13 = vmax.f32 %v17240_v12, %v9833_v57  ;;  %v17251_v7 = vld [vmem:[#allocation144_spill] sm:$0xff]  ;;  %v17252_v50 = vld [vmem:[#allocation145_spill] sm:$0xff]  ;;  %v17253_v56 = vld [vmem:[#allocation146_spill] sm:$0xff] }
 0x3d8   : > { %v10637_v4 = vadd.f32 %v16336_v9, %v10486_v51  ;;  %v12585_v54 = vpop.f32.mrf.mxu0  ;;  %v13017_v38 = vpop.f32.mrf.mxu1  ;;  %v17254_v12 = vld [vmem:[#allocation147_spill] sm:$0xff] }
 0x3d9   : > { %10927 = vst.msk [vmem:[%s15961_s20 + $0x2b8] sm:$0xff] %vm10839_vm2, %v10782_v60  ;;  %v10640_v5 = vadd.f32 %v16336_v9, %v10489_v61  ;;  %v10488_v55 = vmax.f32 %v10200_v14, %v10344_v13  ;;  %v10203_v39 = vmax.f32 %v17241_v15, %v12585_v54  ;;  %v10347_v20 = vmax.f32 %v17242_v48, %v13017_v38  ;;  %v17255_v15 = vld [vmem:[#allocation148_spill] sm:$0xff]  ;;  %v17256_v48 = vld [vmem:[#allocation149_spill] sm:$0xff] }
 0x3da   : > { %v10781_v21 = vmax.f32 %v10637_v4, 0.0  ;;  %v8403_v26 = vpop.f32.mrf.mxu0  ;;  %v9843_v27 = vpop.f32.mrf.mxu1 }
 0x3db   : > { %v10784_v16 = vmax.f32 %v10640_v5, 0.0  ;;  %v10639_v1 = vadd.f32 %v16336_v9, %v10488_v55  ;;  %v10491_v24 = vmax.f32 %v10203_v39, %v10347_v20  ;;  %v10202_v59 = vmax.f32 %v17243_v58, %v8403_v26 }
 0x3dc   : > { %10926 = vst.msk [vmem:[%s15961_s20 + $0x2b0] sm:$0xff] %vm10839_vm2, %v10781_v21  ;;  %v10346_v18 = vmax.f32 %v17244_v8, %v9843_v27  ;;  %v12588_v42 = vpop.f32.mrf.mxu0  ;;  %v13020_v43 = vpop.f32.mrf.mxu1 }
 0x3dd   : > { %10929 = vst.msk [vmem:[%s15961_s20 + $0x2c8] sm:$0xff] %vm10839_vm2, %v10784_v16  ;;  %v10783_v28 = vmax.f32 %v10639_v1, 0.0  ;;  %v10642_v29 = vadd.f32 %v16336_v9, %v10491_v24  ;;  %v10205_v33 = vmax.f32 %v17245_v19, %v12588_v42  ;;  %v10349_v63 = vmax.f32 %v17246_v62, %v13020_v43  ;;  %v17257_v24 = vld [vmem:[#allocation150_spill] sm:$0xff] }
 0x3de   : > { %v10490_v36 = vmax.f32 %v10202_v59, %v10346_v18  ;;  %v8413_v30 = vpop.f32.mrf.mxu0  ;;  %v9853_v37 = vpop.f32.mrf.mxu1  ;;  %v17258_v59 = vld [vmem:[#allocation151_spill] sm:$0xff] }
 0x3df   : > { %10928 = vst.msk [vmem:[%s15961_s20 + $0x2c0] sm:$0xff] %vm10839_vm2, %v10783_v28  ;;  %v10786_v31 = vmax.f32 %v10642_v29, 0.0  ;;  %v10493_v25 = vmax.f32 %v10205_v33, %v10349_v63  ;;  %v10204_v46 = vmax.f32 %v17247_v10, %v8413_v30  ;;  %v10348_v11 = vmax.f32 %v17248_v47, %v9853_v37  ;;  %v17259_v33 = vld [vmem:[#allocation152_spill] sm:$0xff]  ;;  %v17260_v63 = vld [vmem:[#allocation153_spill] sm:$0xff]  ;;  %v17261_v10 = vld [vmem:[#allocation154_spill] sm:$0xff] }
 0x3e0   : > { %v10641_v49 = vadd.f32 %v16336_v9, %v10490_v36  ;;  %v12591_v44 = vpop.f32.mrf.mxu0  ;;  %v13023_v45 = vpop.f32.mrf.mxu1  ;;  %v17262_v47 = vld [vmem:[#allocation155_spill] sm:$0xff] }
 0x3e1   : > { %10931 = vst.msk [vmem:[%s15961_s20 + $0x2d8] sm:$0xff] %vm10839_vm2, %v10786_v31  ;;  %v10644_v40 = vadd.f32 %v16336_v9, %v10493_v25  ;;  %v10492_v41 = vmax.f32 %v10204_v46, %v10348_v11  ;;  %v10207_v3 = vmax.f32 %v17249_v2, %v12591_v44  ;;  %v10351_v22 = vmax.f32 %v17250_v17, %v13023_v45  ;;  %v17263_v2 = vld [vmem:[#allocation156_spill] sm:$0xff]  ;;  %v17264_v17 = vld [vmem:[#allocation157_spill] sm:$0xff] }
 0x3e2   : > { %v10785_v52 = vmax.f32 %v10641_v49, 0.0  ;;  %v8423_v53 = vpop.f32.mrf.mxu0  ;;  %v9863_v23 = vpop.f32.mrf.mxu1 }
 0x3e3   : > { %v10788_v32 = vmax.f32 %v10644_v40, 0.0  ;;  %v10643_v6 = vadd.f32 %v16336_v9, %v10492_v41  ;;  %v10495_v34 = vmax.f32 %v10207_v3, %v10351_v22  ;;  %v10206_v35 = vmax.f32 %v17251_v7, %v8423_v53 }
 0x3e4   : > { %10930 = vst.msk [vmem:[%s15961_s20 + $0x2d0] sm:$0xff] %vm10839_vm2, %v10785_v52  ;;  %v10350_v51 = vmax.f32 %v17252_v50, %v9863_v23  ;;  %v12594_v0 = vpop.f32.mrf.mxu0  ;;  %v13026_v57 = vpop.f32.mrf.mxu1 }
 0x3e5   : > { %10933 = vst.msk [vmem:[%s15961_s20 + $0x2e8] sm:$0xff] %vm10839_vm2, %v10788_v32  ;;  %v10787_v60 = vmax.f32 %v10643_v6, 0.0  ;;  %v10646_v61 = vadd.f32 %v16336_v9, %v10495_v34  ;;  %v10209_v14 = vmax.f32 %v17253_v56, %v12594_v0  ;;  %v10353_v13 = vmax.f32 %v17254_v12, %v13026_v57  ;;  %v17265_v34 = vld [vmem:[#allocation158_spill] sm:$0xff] }
 0x3e6   : > { %v10494_v4 = vmax.f32 %v10206_v35, %v10350_v51  ;;  %v8433_v54 = vpop.f32.mrf.mxu0  ;;  %v9873_v38 = vpop.f32.mrf.mxu1  ;;  %v17266_v35 = vld [vmem:[#allocation159_spill] sm:$0xff] }
 0x3e7   : > { %10932 = vst.msk [vmem:[%s15961_s20 + $0x2e0] sm:$0xff] %vm10839_vm2, %v10787_v60  ;;  %v10790_v5 = vmax.f32 %v10646_v61, 0.0  ;;  %v10497_v55 = vmax.f32 %v10209_v14, %v10353_v13  ;;  %v10208_v39 = vmax.f32 %v17255_v15, %v8433_v54  ;;  %v10352_v20 = vmax.f32 %v17256_v48, %v9873_v38  ;;  %v17267_v14 = vld [vmem:[#allocation160_spill] sm:$0xff]  ;;  %v17268_v13 = vld [vmem:[#allocation161_spill] sm:$0xff]  ;;  %v17269_v15 = vld [vmem:[#allocation162_spill] sm:$0xff] }
 0x3e8   : > { %v10645_v21 = vadd.f32 %v16336_v9, %v10494_v4  ;;  %v12597_v26 = vpop.f32.mrf.mxu0  ;;  %v13029_v27 = vpop.f32.mrf.mxu1  ;;  %v17270_v48 = vld [vmem:[#allocation163_spill] sm:$0xff] }
 0x3e9   : > { %10935 = vst.msk [vmem:[%s15961_s20 + $0x2f8] sm:$0xff] %vm10839_vm2, %v10790_v5  ;;  %v10648_v16 = vadd.f32 %v16336_v9, %v10497_v55  ;;  %v10496_v1 = vmax.f32 %v10208_v39, %v10352_v20  ;;  %v10211_v58 = vmax.f32 %v17257_v24, %v12597_v26  ;;  %v10355_v8 = vmax.f32 %v17258_v59, %v13029_v27  ;;  %v17271_v24 = vld [vmem:[#allocation164_spill] sm:$0xff]  ;;  %v17272_v59 = vld [vmem:[#allocation165_spill] sm:$0xff] }
 0x3ea   : > { %v10789_v18 = vmax.f32 %v10645_v21, 0.0  ;;  %v8443_v42 = vpop.f32.mrf.mxu0  ;;  %v9883_v43 = vpop.f32.mrf.mxu1 }
 0x3eb   : > { %v10792_v28 = vmax.f32 %v10648_v16, 0.0  ;;  %v10647_v29 = vadd.f32 %v16336_v9, %v10496_v1  ;;  %v10499_v19 = vmax.f32 %v10211_v58, %v10355_v8  ;;  %v10210_v62 = vmax.f32 %v17259_v33, %v8443_v42 }
 0x3ec   : > { %10934 = vst.msk [vmem:[%s15961_s20 + $0x2f0] sm:$0xff] %vm10839_vm2, %v10789_v18  ;;  %v10354_v36 = vmax.f32 %v17260_v63, %v9883_v43  ;;  %v12600_v30 = vpop.f32.mrf.mxu0  ;;  %v13032_v37 = vpop.f32.mrf.mxu1 }
 0x3ed   : > { %10937 = vst.msk [vmem:[%s15961_s20 + $0x308] sm:$0xff] %vm10839_vm2, %v10792_v28  ;;  %v10791_v31 = vmax.f32 %v10647_v29, 0.0  ;;  %v10650_v25 = vadd.f32 %v16336_v9, %v10499_v19  ;;  %v10213_v46 = vmax.f32 %v17261_v10, %v12600_v30  ;;  %v10357_v11 = vmax.f32 %v17262_v47, %v13032_v37  ;;  %v17273_v19 = vld [vmem:[#allocation166_spill] sm:$0xff] }
 0x3ee   : > { %v10498_v49 = vmax.f32 %v10210_v62, %v10354_v36  ;;  %v8453_v44 = vpop.f32.mrf.mxu0  ;;  %v9893_v45 = vpop.f32.mrf.mxu1  ;;  %v17274_v62 = vld [vmem:[#allocation167_spill] sm:$0xff] }
 0x3ef   : > { %10936 = vst.msk [vmem:[%s15961_s20 + $0x300] sm:$0xff] %vm10839_vm2, %v10791_v31  ;;  %v10794_v40 = vmax.f32 %v10650_v25, 0.0  ;;  %v10501_v41 = vmax.f32 %v10213_v46, %v10357_v11  ;;  %v10212_v3 = vmax.f32 %v17263_v2, %v8453_v44  ;;  %v10356_v22 = vmax.f32 %v17264_v17, %v9893_v45  ;;  %v17275_v46 = vld [vmem:[#allocation168_spill] sm:$0xff]  ;;  %v17276_v11 = vld [vmem:[#allocation169_spill] sm:$0xff]  ;;  %v17277_v2 = vld [vmem:[#allocation170_spill] sm:$0xff] }
 0x3f0   : > { %v10649_v52 = vadd.f32 %v16336_v9, %v10498_v49  ;;  %v12603_v53 = vpop.f32.mrf.mxu0  ;;  %v13035_v23 = vpop.f32.mrf.mxu1  ;;  %v17278_v17 = vld [vmem:[#allocation171_spill] sm:$0xff] }
 0x3f1   : > { %10939 = vst.msk [vmem:[%s15961_s20 + $0x318] sm:$0xff] %vm10839_vm2, %v10794_v40  ;;  %v10652_v32 = vadd.f32 %v16336_v9, %v10501_v41  ;;  %v10500_v6 = vmax.f32 %v10212_v3, %v10356_v22  ;;  %v10215_v7 = vmax.f32 %v17265_v34, %v12603_v53  ;;  %v10359_v50 = vmax.f32 %v17266_v35, %v13035_v23  ;;  %v16667_v41 = vld [vmem:[%s16869_s2] ss:$0 sm:$0xff]  ;;  %v17279_v34 = vld [vmem:[#allocation172_spill] sm:$0xff]  ;;  %v17280_v35 = vld [vmem:[#allocation173_spill] sm:$0xff] }
 0x3f2   : > { %v10793_v51 = vmax.f32 %v10649_v52, 0.0  ;;  %v8463_v0 = vpop.f32.mrf.mxu0  ;;  %v9903_v57 = vpop.f32.mrf.mxu1 }
 0x3f3   : > { %v10796_v60 = vmax.f32 %v10652_v32, 0.0  ;;  %v10651_v61 = vadd.f32 %v16336_v9, %v10500_v6  ;;  %v10503_v56 = vmax.f32 %v10215_v7, %v10359_v50  ;;  %v10214_v12 = vmax.f32 %v17267_v14, %v8463_v0 }
 0x3f4   : > { %10938 = vst.msk [vmem:[%s15961_s20 + $0x310] sm:$0xff] %vm10839_vm2, %v10793_v51  ;;  %v10358_v4 = vmax.f32 %v17268_v13, %v9903_v57  ;;  %v12606_v54 = vpop.f32.mrf.mxu0  ;;  %v13038_v38 = vpop.f32.mrf.mxu1 }
 0x3f5   : > { %10941 = vst.msk [vmem:[%s15961_s20 + $0x328] sm:$0xff] %vm10839_vm2, %v10796_v60  ;;  %v10795_v5 = vmax.f32 %v10651_v61, 0.0  ;;  %v10654_v55 = vadd.f32 %v16336_v9, %v10503_v56  ;;  %v10217_v39 = vmax.f32 %v17269_v15, %v12606_v54  ;;  %v10361_v20 = vmax.f32 %v17270_v48, %v13038_v38  ;;  %v17281_v56 = vld [vmem:[#allocation174_spill] sm:$0xff] }
 0x3f6   : > { %v10502_v21 = vmax.f32 %v10214_v12, %v10358_v4  ;;  %v8473_v26 = vpop.f32.mrf.mxu0  ;;  %v9913_v27 = vpop.f32.mrf.mxu1  ;;  %v17282_v12 = vld [vmem:[#allocation175_spill] sm:$0xff] }
 0x3f7   : > { %10940 = vst.msk [vmem:[%s15961_s20 + $0x320] sm:$0xff] %vm10839_vm2, %v10795_v5  ;;  %v10798_v16 = vmax.f32 %v10654_v55, 0.0  ;;  %v10505_v1 = vmax.f32 %v10217_v39, %v10361_v20  ;;  %v10216_v58 = vmax.f32 %v17271_v24, %v8473_v26  ;;  %v10360_v8 = vmax.f32 %v17272_v59, %v9913_v27  ;;  %v17283_v39 = vld [vmem:[#allocation176_spill] sm:$0xff]  ;;  %v17284_v20 = vld [vmem:[#allocation177_spill] sm:$0xff]  ;;  %v17285_v24 = vld [vmem:[#allocation178_spill] sm:$0xff] }
 0x3f8   : > { %v10653_v18 = vadd.f32 %v16336_v9, %v10502_v21  ;;  %v12609_v42 = vpop.f32.mrf.mxu0  ;;  %v13041_v43 = vpop.f32.mrf.mxu1  ;;  %v17286_v59 = vld [vmem:[#allocation179_spill] sm:$0xff] }
 0x3f9   : > { %10943 = vst.msk [vmem:[%s15961_s20 + $0x338] sm:$0xff] %vm10839_vm2, %v10798_v16  ;;  %v10656_v28 = vadd.f32 %v16336_v9, %v10505_v1  ;;  %v10504_v29 = vmax.f32 %v10216_v58, %v10360_v8  ;;  %v10219_v33 = vmax.f32 %v17273_v19, %v12609_v42  ;;  %v10363_v63 = vmax.f32 %v17274_v62, %v13041_v43  ;;  %v17287_v19 = vld [vmem:[#allocation180_spill] sm:$0xff]  ;;  %v17288_v62 = vld [vmem:[#allocation181_spill] sm:$0xff] }
 0x3fa   : > { %v10797_v36 = vmax.f32 %v10653_v18, 0.0  ;;  %v8483_v30 = vpop.f32.mrf.mxu0  ;;  %v9923_v37 = vpop.f32.mrf.mxu1 }
 0x3fb   : > { %v10800_v31 = vmax.f32 %v10656_v28, 0.0  ;;  %v10655_v25 = vadd.f32 %v16336_v9, %v10504_v29  ;;  %v10507_v10 = vmax.f32 %v10219_v33, %v10363_v63  ;;  %v10218_v47 = vmax.f32 %v17275_v46, %v8483_v30 }
 0x3fc   : > { %10942 = vst.msk [vmem:[%s15961_s20 + $0x330] sm:$0xff] %vm10839_vm2, %v10797_v36  ;;  %v10362_v49 = vmax.f32 %v17276_v11, %v9923_v37  ;;  %v12612_v44 = vpop.f32.mrf.mxu0  ;;  %v13044_v45 = vpop.f32.mrf.mxu1 }
 0x3fd   : > { %10945 = vst.msk [vmem:[%s15961_s20 + $0x348] sm:$0xff] %vm10839_vm2, %v10800_v31  ;;  %v10799_v40 = vmax.f32 %v10655_v25, 0.0  ;;  %v10658_v9 = vadd.f32 %v16667_v41, %v10507_v10  ;;  %v10221_v3 = vmax.f32 %v17277_v2, %v12612_v44  ;;  %v10365_v22 = vmax.f32 %v17278_v17, %v13044_v45  ;;  %v17289_v10 = vld [vmem:[#allocation182_spill] sm:$0xff] }
 0x3fe   : > { %v10506_v52 = vmax.f32 %v10218_v47, %v10362_v49  ;;  %v8493_v53 = vpop.f32.mrf.mxu0  ;;  %v9933_v23 = vpop.f32.mrf.mxu1  ;;  %v17290_v47 = vld [vmem:[#allocation183_spill] sm:$0xff] }
 0x3ff   : > { %10944 = vst.msk [vmem:[%s15961_s20 + $0x340] sm:$0xff] %vm10839_vm2, %v10799_v40  ;;  %v10802_v32 = vmax.f32 %v10658_v9, 0.0  ;;  %v10509_v6 = vmax.f32 %v10221_v3, %v10365_v22  ;;  %v10220_v7 = vmax.f32 %v17279_v34, %v8493_v53  ;;  %v10364_v50 = vmax.f32 %v17280_v35, %v9933_v23  ;;  %v17291_v3 = vld [vmem:[#allocation184_spill] sm:$0xff]  ;;  %v17292_v22 = vld [vmem:[#allocation185_spill] sm:$0xff]  ;;  %v17293_v34 = vld [vmem:[#allocation186_spill] sm:$0xff] }
 0x400   : > { %v10657_v51 = vadd.f32 %v16667_v41, %v10506_v52  ;;  %v12615_v0 = vpop.f32.mrf.mxu0  ;;  %v13047_v57 = vpop.f32.mrf.mxu1  ;;  %v17294_v35 = vld [vmem:[#allocation187_spill] sm:$0xff] }
 0x401   : > { %10947 = vst.msk [vmem:[%s15961_s20 + $0x358] sm:$0xff] %vm10839_vm2, %v10802_v32  ;;  %v10660_v60 = vadd.f32 %v16667_v41, %v10509_v6  ;;  %v10508_v61 = vmax.f32 %v10220_v7, %v10364_v50  ;;  %v10223_v14 = vmax.f32 %v17281_v56, %v12615_v0  ;;  %v10367_v13 = vmax.f32 %v17282_v12, %v13047_v57  ;;  %v17295_v56 = vld [vmem:[#allocation188_spill] sm:$0xff]  ;;  %v17296_v12 = vld [vmem:[#allocation189_spill] sm:$0xff] }
 0x402   : > { %v10801_v4 = vmax.f32 %v10657_v51, 0.0  ;;  %v8503_v54 = vpop.f32.mrf.mxu0  ;;  %v9943_v38 = vpop.f32.mrf.mxu1 }
 0x403   : > { %v10804_v5 = vmax.f32 %v10660_v60, 0.0  ;;  %v10659_v55 = vadd.f32 %v16667_v41, %v10508_v61  ;;  %v10511_v15 = vmax.f32 %v10223_v14, %v10367_v13  ;;  %v10222_v48 = vmax.f32 %v17283_v39, %v8503_v54 }
 0x404   : > { %10946 = vst.msk [vmem:[%s15961_s20 + $0x350] sm:$0xff] %vm10839_vm2, %v10801_v4  ;;  %v10366_v21 = vmax.f32 %v17284_v20, %v9943_v38  ;;  %v12618_v26 = vpop.f32.mrf.mxu0  ;;  %v13050_v27 = vpop.f32.mrf.mxu1 }
 0x405   : > { %10949 = vst.msk [vmem:[%s15961_s20 + $0x368] sm:$0xff] %vm10839_vm2, %v10804_v5  ;;  %v10803_v16 = vmax.f32 %v10659_v55, 0.0  ;;  %v10662_v1 = vadd.f32 %v16667_v41, %v10511_v15  ;;  %v10225_v58 = vmax.f32 %v17285_v24, %v12618_v26  ;;  %v10369_v8 = vmax.f32 %v17286_v59, %v13050_v27  ;;  %v17297_v15 = vld [vmem:[#allocation190_spill] sm:$0xff] }
 0x406   : > { %v10510_v18 = vmax.f32 %v10222_v48, %v10366_v21  ;;  %v8513_v42 = vpop.f32.mrf.mxu0  ;;  %v9953_v43 = vpop.f32.mrf.mxu1  ;;  %v17298_v48 = vld [vmem:[#allocation191_spill] sm:$0xff] }
 0x407   : > { %10948 = vst.msk [vmem:[%s15961_s20 + $0x360] sm:$0xff] %vm10839_vm2, %v10803_v16  ;;  %v10806_v28 = vmax.f32 %v10662_v1, 0.0  ;;  %v10513_v29 = vmax.f32 %v10225_v58, %v10369_v8  ;;  %v10224_v33 = vmax.f32 %v17287_v19, %v8513_v42  ;;  %v10368_v63 = vmax.f32 %v17288_v62, %v9953_v43  ;;  %v17299_v58 = vld [vmem:[#allocation192_spill] sm:$0xff]  ;;  %v17300_v8 = vld [vmem:[#allocation193_spill] sm:$0xff]  ;;  %v17301_v19 = vld [vmem:[#allocation194_spill] sm:$0xff] }
 0x408   : > { %v10661_v36 = vadd.f32 %v16667_v41, %v10510_v18  ;;  %v12621_v30 = vpop.f32.mrf.mxu0  ;;  %v13053_v37 = vpop.f32.mrf.mxu1  ;;  %v17302_v62 = vld [vmem:[#allocation195_spill] sm:$0xff] }
 0x409   : > { %10951 = vst.msk [vmem:[%s15961_s20 + $0x378] sm:$0xff] %vm10839_vm2, %v10806_v28  ;;  %v10664_v31 = vadd.f32 %v16667_v41, %v10513_v29  ;;  %v10512_v25 = vmax.f32 %v10224_v33, %v10368_v63  ;;  %v10227_v46 = vmax.f32 %v17289_v10, %v12621_v30  ;;  %v10371_v11 = vmax.f32 %v17290_v47, %v13053_v37  ;;  %v17303_v10 = vld [vmem:[#allocation196_spill] sm:$0xff]  ;;  %v17304_v47 = vld [vmem:[#allocation197_spill] sm:$0xff] }
 0x40a   : > { %v10805_v49 = vmax.f32 %v10661_v36, 0.0  ;;  %v8523_v44 = vpop.f32.mrf.mxu0  ;;  %v9963_v45 = vpop.f32.mrf.mxu1 }
 0x40b   : > { %v10808_v40 = vmax.f32 %v10664_v31, 0.0  ;;  %v10663_v9 = vadd.f32 %v16667_v41, %v10512_v25  ;;  %v10515_v2 = vmax.f32 %v10227_v46, %v10371_v11  ;;  %v10226_v17 = vmax.f32 %v17291_v3, %v8523_v44 }
 0x40c   : > { %10950 = vst.msk [vmem:[%s15961_s20 + $0x370] sm:$0xff] %vm10839_vm2, %v10805_v49  ;;  %v10370_v52 = vmax.f32 %v17292_v22, %v9963_v45  ;;  %v12624_v53 = vpop.f32.mrf.mxu0  ;;  %v13056_v23 = vpop.f32.mrf.mxu1 }
 0x40d   : > { %10953 = vst.msk [vmem:[%s15961_s20 + $0x388] sm:$0xff] %vm10839_vm2, %v10808_v40  ;;  %v10807_v32 = vmax.f32 %v10663_v9, 0.0  ;;  %v10666_v6 = vadd.f32 %v16667_v41, %v10515_v2  ;;  %v10229_v7 = vmax.f32 %v17293_v34, %v12624_v53  ;;  %v10373_v50 = vmax.f32 %v17294_v35, %v13056_v23  ;;  %v17305_v2 = vld [vmem:[#allocation198_spill] sm:$0xff] }
 0x40e   : > { %v10514_v51 = vmax.f32 %v10226_v17, %v10370_v52  ;;  %v8533_v0 = vpop.f32.mrf.mxu0  ;;  %v9973_v57 = vpop.f32.mrf.mxu1  ;;  %v17306_v17 = vld [vmem:[#allocation199_spill] sm:$0xff] }
 0x40f   : > { %10952 = vst.msk [vmem:[%s15961_s20 + $0x380] sm:$0xff] %vm10839_vm2, %v10807_v32  ;;  %v10810_v60 = vmax.f32 %v10666_v6, 0.0  ;;  %v10517_v61 = vmax.f32 %v10229_v7, %v10373_v50  ;;  %v10228_v14 = vmax.f32 %v17295_v56, %v8533_v0  ;;  %v10372_v13 = vmax.f32 %v17296_v12, %v9973_v57  ;;  %v17307_v7 = vld [vmem:[#allocation200_spill] sm:$0xff]  ;;  %v17308_v50 = vld [vmem:[#allocation201_spill] sm:$0xff]  ;;  %v17309_v56 = vld [vmem:[#allocation202_spill] sm:$0xff] }
 0x410   : > { %v10665_v4 = vadd.f32 %v16667_v41, %v10514_v51  ;;  %v12627_v54 = vpop.f32.mrf.mxu0  ;;  %v13059_v38 = vpop.f32.mrf.mxu1  ;;  %v17310_v12 = vld [vmem:[#allocation203_spill] sm:$0xff] }
 0x411   : > { %10955 = vst.msk [vmem:[%s15961_s20 + $0x398] sm:$0xff] %vm10839_vm2, %v10810_v60  ;;  %v10668_v5 = vadd.f32 %v16667_v41, %v10517_v61  ;;  %v10516_v55 = vmax.f32 %v10228_v14, %v10372_v13  ;;  %v10231_v39 = vmax.f32 %v17297_v15, %v12627_v54  ;;  %v10375_v20 = vmax.f32 %v17298_v48, %v13059_v38  ;;  %v17311_v15 = vld [vmem:[#allocation204_spill] sm:$0xff]  ;;  %v17312_v48 = vld [vmem:[#allocation205_spill] sm:$0xff] }
 0x412   : > { %v10809_v21 = vmax.f32 %v10665_v4, 0.0  ;;  %v8543_v26 = vpop.f32.mrf.mxu0  ;;  %v9983_v27 = vpop.f32.mrf.mxu1 }
 0x413   : > { %v10812_v16 = vmax.f32 %v10668_v5, 0.0  ;;  %v10667_v1 = vadd.f32 %v16667_v41, %v10516_v55  ;;  %v10519_v24 = vmax.f32 %v10231_v39, %v10375_v20  ;;  %v10230_v59 = vmax.f32 %v17299_v58, %v8543_v26 }
 0x414   : > { %10954 = vst.msk [vmem:[%s15961_s20 + $0x390] sm:$0xff] %vm10839_vm2, %v10809_v21  ;;  %v10374_v18 = vmax.f32 %v17300_v8, %v9983_v27  ;;  %v12630_v42 = vpop.f32.mrf.mxu0  ;;  %v13062_v43 = vpop.f32.mrf.mxu1 }
 0x415   : > { %10957 = vst.msk [vmem:[%s15961_s20 + $0x3a8] sm:$0xff] %vm10839_vm2, %v10812_v16  ;;  %v10811_v28 = vmax.f32 %v10667_v1, 0.0  ;;  %v10670_v29 = vadd.f32 %v16667_v41, %v10519_v24  ;;  %v10233_v33 = vmax.f32 %v17301_v19, %v12630_v42  ;;  %v10377_v63 = vmax.f32 %v17302_v62, %v13062_v43  ;;  %v17313_v24 = vld [vmem:[#allocation206_spill] sm:$0xff] }
 0x416   : > { %v10518_v36 = vmax.f32 %v10230_v59, %v10374_v18  ;;  %v8553_v30 = vpop.f32.mrf.mxu0  ;;  %v9993_v37 = vpop.f32.mrf.mxu1  ;;  %v17314_v59 = vld [vmem:[#allocation207_spill] sm:$0xff] }
 0x417   : > { %10956 = vst.msk [vmem:[%s15961_s20 + $0x3a0] sm:$0xff] %vm10839_vm2, %v10811_v28  ;;  %v10814_v31 = vmax.f32 %v10670_v29, 0.0  ;;  %v10521_v25 = vmax.f32 %v10233_v33, %v10377_v63  ;;  %v10232_v46 = vmax.f32 %v17303_v10, %v8553_v30  ;;  %v10376_v11 = vmax.f32 %v17304_v47, %v9993_v37  ;;  %v17315_v33 = vld [vmem:[#allocation208_spill] sm:$0xff]  ;;  %v17316_v63 = vld [vmem:[#allocation209_spill] sm:$0xff]  ;;  %v17317_v10 = vld [vmem:[#allocation210_spill] sm:$0xff] }
 0x418   : > { %v10669_v49 = vadd.f32 %v16667_v41, %v10518_v36  ;;  %v12633_v44 = vpop.f32.mrf.mxu0  ;;  %v13065_v45 = vpop.f32.mrf.mxu1  ;;  %v17318_v47 = vld [vmem:[#allocation211_spill] sm:$0xff] }
 0x419   : > { %10959 = vst.msk [vmem:[%s15961_s20 + $0x3b8] sm:$0xff] %vm10839_vm2, %v10814_v31  ;;  %v10672_v40 = vadd.f32 %v16667_v41, %v10521_v25  ;;  %v10520_v9 = vmax.f32 %v10232_v46, %v10376_v11  ;;  %v10235_v3 = vmax.f32 %v17305_v2, %v12633_v44  ;;  %v10379_v22 = vmax.f32 %v17306_v17, %v13065_v45  ;;  %v17319_v2 = vld [vmem:[#allocation212_spill] sm:$0xff]  ;;  %v17320_v17 = vld [vmem:[#allocation213_spill] sm:$0xff] }
 0x41a   : > { %v10813_v52 = vmax.f32 %v10669_v49, 0.0  ;;  %v8563_v53 = vpop.f32.mrf.mxu0  ;;  %v10003_v23 = vpop.f32.mrf.mxu1 }
 0x41b   : > { %v10816_v32 = vmax.f32 %v10672_v40, 0.0  ;;  %v10671_v6 = vadd.f32 %v16667_v41, %v10520_v9  ;;  %v10523_v34 = vmax.f32 %v10235_v3, %v10379_v22  ;;  %v10234_v35 = vmax.f32 %v17307_v7, %v8563_v53 }
 0x41c   : > { %10958 = vst.msk [vmem:[%s15961_s20 + $0x3b0] sm:$0xff] %vm10839_vm2, %v10813_v52  ;;  %v10378_v51 = vmax.f32 %v17308_v50, %v10003_v23  ;;  %v12636_v0 = vpop.f32.mrf.mxu0  ;;  %v13068_v57 = vpop.f32.mrf.mxu1 }
 0x41d   : > { %10961 = vst.msk [vmem:[%s15961_s20 + $0x3c8] sm:$0xff] %vm10839_vm2, %v10816_v32  ;;  %v10815_v60 = vmax.f32 %v10671_v6, 0.0  ;;  %v10674_v61 = vadd.f32 %v16667_v41, %v10523_v34  ;;  %v10237_v14 = vmax.f32 %v17309_v56, %v12636_v0  ;;  %v10381_v13 = vmax.f32 %v17310_v12, %v13068_v57  ;;  %v17321_v34 = vld [vmem:[#allocation214_spill] sm:$0xff] }
 0x41e   : > { %v10522_v4 = vmax.f32 %v10234_v35, %v10378_v51  ;;  %v8573_v54 = vpop.f32.mrf.mxu0  ;;  %v10013_v38 = vpop.f32.mrf.mxu1  ;;  %v17322_v35 = vld [vmem:[#allocation215_spill] sm:$0xff] }
 0x41f   : > { %10960 = vst.msk [vmem:[%s15961_s20 + $0x3c0] sm:$0xff] %vm10839_vm2, %v10815_v60  ;;  %v10818_v5 = vmax.f32 %v10674_v61, 0.0  ;;  %v10525_v55 = vmax.f32 %v10237_v14, %v10381_v13  ;;  %v10236_v39 = vmax.f32 %v17311_v15, %v8573_v54  ;;  %v10380_v20 = vmax.f32 %v17312_v48, %v10013_v38  ;;  %v17323_v14 = vld [vmem:[#allocation216_spill] sm:$0xff]  ;;  %v17324_v13 = vld [vmem:[#allocation217_spill] sm:$0xff]  ;;  %v17325_v15 = vld [vmem:[#allocation218_spill] sm:$0xff] }
 0x420   : > { %v10673_v21 = vadd.f32 %v16667_v41, %v10522_v4  ;;  %v12639_v26 = vpop.f32.mrf.mxu0  ;;  %v13071_v27 = vpop.f32.mrf.mxu1  ;;  %v17326_v48 = vld [vmem:[#allocation219_spill] sm:$0xff] }
 0x421   : > { %10963 = vst.msk [vmem:[%s15961_s20 + $0x3d8] sm:$0xff] %vm10839_vm2, %v10818_v5  ;;  %v10676_v16 = vadd.f32 %v16667_v41, %v10525_v55  ;;  %v10524_v1 = vmax.f32 %v10236_v39, %v10380_v20  ;;  %v10239_v58 = vmax.f32 %v17313_v24, %v12639_v26  ;;  %v10383_v8 = vmax.f32 %v17314_v59, %v13071_v27  ;;  %v17327_v24 = vld [vmem:[#allocation220_spill] sm:$0xff]  ;;  %v17328_v59 = vld [vmem:[#allocation221_spill] sm:$0xff] }
 0x422   : > { %v10817_v18 = vmax.f32 %v10673_v21, 0.0  ;;  %v8583_v42 = vpop.f32.mrf.mxu0  ;;  %v10023_v43 = vpop.f32.mrf.mxu1 }
 0x423   : > { %v10820_v28 = vmax.f32 %v10676_v16, 0.0  ;;  %v10675_v29 = vadd.f32 %v16667_v41, %v10524_v1  ;;  %v10527_v19 = vmax.f32 %v10239_v58, %v10383_v8  ;;  %v10238_v62 = vmax.f32 %v17315_v33, %v8583_v42 }
 0x424   : > { %10962 = vst.msk [vmem:[%s15961_s20 + $0x3d0] sm:$0xff] %vm10839_vm2, %v10817_v18  ;;  %v10382_v36 = vmax.f32 %v17316_v63, %v10023_v43  ;;  %v12642_v30 = vpop.f32.mrf.mxu0  ;;  %v13074_v37 = vpop.f32.mrf.mxu1 }
 0x425   : > { %10965 = vst.msk [vmem:[%s15961_s20 + $0x3e8] sm:$0xff] %vm10839_vm2, %v10820_v28  ;;  %v10819_v31 = vmax.f32 %v10675_v29, 0.0  ;;  %v10678_v25 = vadd.f32 %v16667_v41, %v10527_v19  ;;  %v10241_v46 = vmax.f32 %v17317_v10, %v12642_v30  ;;  %v10385_v11 = vmax.f32 %v17318_v47, %v13074_v37  ;;  %v17329_v19 = vld [vmem:[#allocation222_spill] sm:$0xff] }
 0x426   : > { %v10526_v49 = vmax.f32 %v10238_v62, %v10382_v36  ;;  %v8593_v44 = vpop.f32.mrf.mxu0  ;;  %v10033_v45 = vpop.f32.mrf.mxu1  ;;  %v17330_v62 = vld [vmem:[#allocation223_spill] sm:$0xff] }
 0x427   : > { %10964 = vst.msk [vmem:[%s15961_s20 + $0x3e0] sm:$0xff] %vm10839_vm2, %v10819_v31  ;;  %v10822_v40 = vmax.f32 %v10678_v25, 0.0  ;;  %v10529_v9 = vmax.f32 %v10241_v46, %v10385_v11  ;;  %v10240_v3 = vmax.f32 %v17319_v2, %v8593_v44  ;;  %v10384_v22 = vmax.f32 %v17320_v17, %v10033_v45  ;;  %v17331_v46 = vld [vmem:[#allocation224_spill] sm:$0xff]  ;;  %v17332_v11 = vld [vmem:[#allocation225_spill] sm:$0xff]  ;;  %v17333_v2 = vld [vmem:[#allocation226_spill] sm:$0xff] }
 0x428   : > { %v10677_v52 = vadd.f32 %v16667_v41, %v10526_v49  ;;  %v12645_v53 = vpop.f32.mrf.mxu0  ;;  %v13077_v23 = vpop.f32.mrf.mxu1  ;;  %v17334_v17 = vld [vmem:[#allocation227_spill] sm:$0xff] }
 0x429   : > { %10967 = vst.msk [vmem:[%s15961_s20 + $0x3f8] sm:$0xff] %vm10839_vm2, %v10822_v40  ;;  %v10680_v32 = vadd.f32 %v16667_v41, %v10529_v9  ;;  %v10528_v6 = vmax.f32 %v10240_v3, %v10384_v22  ;;  %v10243_v7 = vmax.f32 %v17321_v34, %v12645_v53  ;;  %v10387_v50 = vmax.f32 %v17322_v35, %v13077_v23  ;;  %v17335_v34 = vld [vmem:[#allocation228_spill] sm:$0xff]  ;;  %v17336_v35 = vld [vmem:[#allocation229_spill] sm:$0xff] }
 0x42a   : > { %v10821_v51 = vmax.f32 %v10677_v52, 0.0  ;;  %v8603_v0 = vpop.f32.mrf.mxu0  ;;  %v10043_v57 = vpop.f32.mrf.mxu1 }
 0x42b   : > { %v10824_v60 = vmax.f32 %v10680_v32, 0.0  ;;  %v10679_v61 = vadd.f32 %v16667_v41, %v10528_v6  ;;  %v10531_v56 = vmax.f32 %v10243_v7, %v10387_v50  ;;  %v10242_v12 = vmax.f32 %v17323_v14, %v8603_v0 }
 0x42c   : > { %10966 = vst.msk [vmem:[%s15961_s20 + $0x3f0] sm:$0xff] %vm10839_vm2, %v10821_v51  ;;  %v10386_v4 = vmax.f32 %v17324_v13, %v10043_v57  ;;  %v12648_v54 = vpop.f32.mrf.mxu0  ;;  %v13080_v38 = vpop.f32.mrf.mxu1 }
 0x42d   : > { %10969 = vst.msk [vmem:[%s15961_s20 + $0x408] sm:$0xff] %vm10839_vm2, %v10824_v60  ;;  %v10823_v5 = vmax.f32 %v10679_v61, 0.0  ;;  %v10682_v55 = vadd.f32 %v16667_v41, %v10531_v56  ;;  %v10245_v39 = vmax.f32 %v17325_v15, %v12648_v54  ;;  %v10389_v20 = vmax.f32 %v17326_v48, %v13080_v38  ;;  %v17337_v56 = vld [vmem:[#allocation230_spill] sm:$0xff] }
 0x42e   : > { %v10530_v21 = vmax.f32 %v10242_v12, %v10386_v4  ;;  %v8613_v26 = vpop.f32.mrf.mxu0  ;;  %v10053_v27 = vpop.f32.mrf.mxu1  ;;  %v17338_v12 = vld [vmem:[#allocation231_spill] sm:$0xff] }
 0x42f   : > { %10968 = vst.msk [vmem:[%s15961_s20 + $0x400] sm:$0xff] %vm10839_vm2, %v10823_v5  ;;  %v10826_v16 = vmax.f32 %v10682_v55, 0.0  ;;  %v10533_v1 = vmax.f32 %v10245_v39, %v10389_v20  ;;  %v10244_v58 = vmax.f32 %v17327_v24, %v8613_v26  ;;  %v10388_v8 = vmax.f32 %v17328_v59, %v10053_v27  ;;  %v17339_v39 = vld [vmem:[#allocation232_spill] sm:$0xff]  ;;  %v17340_v20 = vld [vmem:[#allocation233_spill] sm:$0xff]  ;;  %v17341_v24 = vld [vmem:[#allocation234_spill] sm:$0xff] }
 0x430   : > { %v10681_v18 = vadd.f32 %v16667_v41, %v10530_v21  ;;  %v12651_v42 = vpop.f32.mrf.mxu0  ;;  %v13083_v43 = vpop.f32.mrf.mxu1  ;;  %v17342_v59 = vld [vmem:[#allocation235_spill] sm:$0xff] }
 0x431   : > { %10971 = vst.msk [vmem:[%s15961_s20 + $0x418] sm:$0xff] %vm10839_vm2, %v10826_v16  ;;  %v10684_v28 = vadd.f32 %v16667_v41, %v10533_v1  ;;  %v10532_v29 = vmax.f32 %v10244_v58, %v10388_v8  ;;  %v10247_v33 = vmax.f32 %v17329_v19, %v12651_v42  ;;  %v10391_v63 = vmax.f32 %v17330_v62, %v13083_v43  ;;  %v17343_v19 = vld [vmem:[#allocation236_spill] sm:$0xff]  ;;  %v17344_v62 = vld [vmem:[#allocation237_spill] sm:$0xff] }
 0x432   : > { %v10825_v36 = vmax.f32 %v10681_v18, 0.0  ;;  %v8623_v30 = vpop.f32.mrf.mxu0  ;;  %v10063_v37 = vpop.f32.mrf.mxu1 }
 0x433   : > { %v10828_v31 = vmax.f32 %v10684_v28, 0.0  ;;  %v10683_v25 = vadd.f32 %v16667_v41, %v10532_v29  ;;  %v10535_v10 = vmax.f32 %v10247_v33, %v10391_v63  ;;  %v10246_v47 = vmax.f32 %v17331_v46, %v8623_v30 }
 0x434   : > { %10970 = vst.msk [vmem:[%s15961_s20 + $0x410] sm:$0xff] %vm10839_vm2, %v10825_v36  ;;  %v10390_v49 = vmax.f32 %v17332_v11, %v10063_v37  ;;  %v12654_v44 = vpop.f32.mrf.mxu0  ;;  %v13086_v45 = vpop.f32.mrf.mxu1 }
 0x435   : > { %10973 = vst.msk [vmem:[%s15961_s20 + $0x428] sm:$0xff] %vm10839_vm2, %v10828_v31  ;;  %v10827_v40 = vmax.f32 %v10683_v25, 0.0  ;;  %v10686_v9 = vadd.f32 %v16667_v41, %v10535_v10  ;;  %v10249_v3 = vmax.f32 %v17333_v2, %v12654_v44  ;;  %v10393_v22 = vmax.f32 %v17334_v17, %v13086_v45  ;;  %v17345_v10 = vld [vmem:[#allocation238_spill] sm:$0xff] }
 0x436   : > { %v10534_v52 = vmax.f32 %v10246_v47, %v10390_v49  ;;  %v8633_v53 = vpop.f32.mrf.mxu0  ;;  %v10073_v23 = vpop.f32.mrf.mxu1  ;;  %v17346_v47 = vld [vmem:[#allocation239_spill] sm:$0xff] }
 0x437   : > { %10972 = vst.msk [vmem:[%s15961_s20 + $0x420] sm:$0xff] %vm10839_vm2, %v10827_v40  ;;  %v10830_v32 = vmax.f32 %v10686_v9, 0.0  ;;  %v10537_v6 = vmax.f32 %v10249_v3, %v10393_v22  ;;  %v10248_v7 = vmax.f32 %v17335_v34, %v8633_v53  ;;  %v10392_v50 = vmax.f32 %v17336_v35, %v10073_v23  ;;  %v17347_v3 = vld [vmem:[#allocation240_spill] sm:$0xff]  ;;  %v17348_v22 = vld [vmem:[#allocation241_spill] sm:$0xff] }
 0x438   : > { %v10685_v51 = vadd.f32 %v16667_v41, %v10534_v52  ;;  %v12657_v0 = vpop.f32.mrf.mxu0  ;;  %v13089_v57 = vpop.f32.mrf.mxu1 }
 0x439   : > { %10975 = vst.msk [vmem:[%s15961_s20 + $0x438] sm:$0xff] %vm10839_vm2, %v10830_v32  ;;  %v10688_v60 = vadd.f32 %v16667_v41, %v10537_v6  ;;  %v10536_v61 = vmax.f32 %v10248_v7, %v10392_v50  ;;  %v10251_v14 = vmax.f32 %v17337_v56, %v12657_v0  ;;  %v10395_v13 = vmax.f32 %v17338_v12, %v13089_v57 }
 0x43a   : > { %v10829_v4 = vmax.f32 %v10685_v51, 0.0  ;;  %v8643_v54 = vpop.f32.mrf.mxu0  ;;  %v10083_v38 = vpop.f32.mrf.mxu1 }
 0x43b   : > { %v10832_v5 = vmax.f32 %v10688_v60, 0.0  ;;  %v10687_v55 = vadd.f32 %v16667_v41, %v10536_v61  ;;  %v10539_v15 = vmax.f32 %v10251_v14, %v10395_v13  ;;  %v10250_v48 = vmax.f32 %v17339_v39, %v8643_v54 }
 0x43c   : > { %10974 = vst.msk [vmem:[%s15961_s20 + $0x430] sm:$0xff] %vm10839_vm2, %v10829_v4  ;;  %v10394_v21 = vmax.f32 %v17340_v20, %v10083_v38  ;;  %v12660_v26 = vpop.f32.mrf.mxu0  ;;  %v13092_v27 = vpop.f32.mrf.mxu1 }
 0x43d   : > { %10977 = vst.msk [vmem:[%s15961_s20 + $0x448] sm:$0xff] %vm10839_vm2, %v10832_v5  ;;  %v10831_v16 = vmax.f32 %v10687_v55, 0.0  ;;  %v10690_v1 = vadd.f32 %v16667_v41, %v10539_v15  ;;  %v10253_v58 = vmax.f32 %v17341_v24, %v12660_v26  ;;  %v10397_v8 = vmax.f32 %v17342_v59, %v13092_v27 }
 0x43e   : > { %v10538_v18 = vmax.f32 %v10250_v48, %v10394_v21  ;;  %v8653_v42 = vpop.f32.mrf.mxu0  ;;  %v10093_v43 = vpop.f32.mrf.mxu1 }
 0x43f   : > { %10976 = vst.msk [vmem:[%s15961_s20 + $0x440] sm:$0xff] %vm10839_vm2, %v10831_v16  ;;  %v10834_v28 = vmax.f32 %v10690_v1, 0.0  ;;  %v10541_v29 = vmax.f32 %v10253_v58, %v10397_v8  ;;  %v10252_v33 = vmax.f32 %v17343_v19, %v8653_v42  ;;  %v10396_v63 = vmax.f32 %v17344_v62, %v10093_v43 }
 0x440   : > { %v10689_v36 = vadd.f32 %v16667_v41, %v10538_v18  ;;  %v12663_v30 = vpop.f32.mrf.mxu0  ;;  %v13095_v37 = vpop.f32.mrf.mxu1 }
 0x441   : > { %10979 = vst.msk [vmem:[%s15961_s20 + $0x458] sm:$0xff] %vm10839_vm2, %v10834_v28  ;;  %v10692_v31 = vadd.f32 %v16667_v41, %v10541_v29  ;;  %v10540_v25 = vmax.f32 %v10252_v33, %v10396_v63  ;;  %v10255_v46 = vmax.f32 %v17345_v10, %v12663_v30  ;;  %v10399_v11 = vmax.f32 %v17346_v47, %v13095_v37 }
 0x442   : > { %v10833_v49 = vmax.f32 %v10689_v36, 0.0  ;;  %v8663_v44 = vpop.f32.mrf.mxu0  ;;  %v10103_v45 = vpop.f32.mrf.mxu1 }
 0x443   : > { %v10836_v40 = vmax.f32 %v10692_v31, 0.0  ;;  %v10691_v9 = vadd.f32 %v16667_v41, %v10540_v25  ;;  %v10543_v2 = vmax.f32 %v10255_v46, %v10399_v11  ;;  %v10254_v17 = vmax.f32 %v17347_v3, %v8663_v44 }
 0x444   : > { %10978 = vst.msk [vmem:[%s15961_s20 + $0x450] sm:$0xff] %vm10839_vm2, %v10833_v49  ;;  %v10398_v52 = vmax.f32 %v17348_v22, %v10103_v45 }
 0x445   : > { %10981 = vst.msk [vmem:[%s15961_s20 + $0x468] sm:$0xff] %vm10839_vm2, %v10836_v40  ;;  %v10835_v53 = vmax.f32 %v10691_v9, 0.0  ;;  %v10694_v23 = vadd.f32 %v16667_v41, %v10543_v2 }
 0x446   : > { %v10542_v32 = vmax.f32 %v10254_v17, %v10398_v52 }
 0x447   : > { %10980 = vst.msk [vmem:[%s15961_s20 + $0x460] sm:$0xff] %vm10839_vm2, %v10835_v53  ;;  %v10838_v6 = vmax.f32 %v10694_v23, 0.0 }
 0x448   : > { %v10693_v34 = vadd.f32 %v16667_v41, %v10542_v32 }
 0x449   : > { %10983 = vst.msk [vmem:[%s15961_s20 + $0x478] sm:$0xff] %vm10839_vm2, %v10838_v6 }
 0x44a   : > { %v10837_v7 = vmax.f32 %v10693_v34, 0.0 }
 0x44c   : > { %10982 = vst.msk [vmem:[%s15961_s20 + $0x470] sm:$0xff] %vm10839_vm2, %v10837_v7 }
 0x44d PF: > { %p10_p9 = scmp.ge.s32.totalorder %s13194_s16, 4   ;;  %s17349_s12 = smov %s13151_s13 }
 0x44e   : > { %s17350_s13 = smov %s13203_s19  ;;  %s17351_s14 = smov %s13194_s16 }
 0x44f   :  { %12 = sbr.rel (!%p10_p9) target bundleno = 2 (0x2), region = 125 }

// kernel: net_point_forward.3
= control target key start
LH: loop header
LB: loop body
LE: loop exit
PB: predicated region body
PF: predicated region fallthrough
CT: control target
= control target key end

     0   :  { %12 = vsyncpa [#allocation4], 0  ;;  %s4365_s0 = inlined_call_operand.vmem [shape: f32[4,16,16,256], index: 0, kind: input, shape index: {}]   ;;  %s4366_s1 = inlined_call_operand.vmem [shape: f32[256,20], index: 1, kind: input, shape index: {}]   ;;  %s4367_s2 = inlined_call_operand.vmem [shape: f32[1,20], index: 2, kind: input, shape index: {}]   ;;  %s4368_s3 = inlined_call_operand.vmem [shape: f32[16,20,50], index: 3, kind: input, shape index: {}]   ;;  %s4369_s4 = inlined_call_operand.vmem [shape: f32[1,50], index: 4, kind: input, shape index: {}]   ;;  %s4370_s5 = inlined_call_operand.vmem [shape: f32[50,128], index: 5, kind: input, shape index: {}]   ;;  %s4371_s6 = inlined_call_operand.vmem [shape: f32[1,128], index: 6, kind: input, shape index: {}]   ;;  %s4372_s7 = inlined_call_operand.hbm [shape: f32[16,128], index: 7, kind: output, shape index: {}]  }
   0x1   :  { %14 = vsyncpa [#allocation4 + $0x1], 0  ;;  %s3213_s24 = smov 0   ;;  %s3215_s25 = smov 0  }
   0x2   :  { %s3217_s26 = smov 0   ;;  %s3219_s27 = smov 0  }
   0x3 LB: > { %s2669_s28 = sadd.s32 4294967295, %s3168_s27   ;;  %s2670_s29 = sadd.s32 4294967294, %s3168_s27   ;;  %s3168_s27 = sphi %s3219_s27, %s4389_s27   ;;  %s3164_s26 = sphi %s3217_s26, %s4388_s26   ;;  %s3160_s25 = sphi %s3215_s25, %s4387_s25   ;;  %s3156_s24 = sphi %s3213_s24, %s4386_s24  }
   0x4   : > { %s3236_s30 = sadd.s32 1, %s3168_s27   ;;  %s27_s8 = sadd.s32 1, %s3164_s26 }
   0x5   : > { %s24_s9 = ssub.s32 %s3168_s27, %s3236_s30  ;;  %p34_p0 = scmp.ne.s32.totalorder %s3164_s26, %s3160_s25 }
   0x6   : > { %p25_p1 = scmp.eq.s32.totalorder %s24_s9, 0  ;;  %p35_p2 = scmp.eq.s32.totalorder %s3168_s27, 0 }
   0x7   : > { %p190_p3 = scmp.eq.s32.totalorder %s2669_s28, 1  ;;  %p195_p4 = scmp.ne.s32.totalorder %s3160_s25, %s3156_s24 }
   0x8   : > { %s3249_s10 = scalar_select %p25_p1, %s3164_s26, %s27_s8  }
   0x9   : > { %p36_p5 = por %p35_p2, %p34_p0  ;;  %p3251_p6 = por %p190_p3, %p34_p0 }
   0xa   : > { %p196_p7 = scmp.eq.s32.totalorder %s2670_s29, 1  ;;  %p4373_p9 = scmp.ge.s32.totalorder %s3168_s27, 2 }
   0xc   : > { %p3255_p8 = por %p196_p7, %p195_p4  ;;  %230 = sbr.rel (%p4373_p9) target bundleno = 85 (0x55), region = 40 }
  0x11   : > { %233 = sbr.rel (!%p36_p5) target bundleno = 85 (0x55), region = 44  ;;  %s235_s13 = sand.u32 (%p36_p5), 1, %s3164_s26  }
  0x12   : > { %s2765_s14 = sshll.u32 (%p36_p5), %s3168_s27, 4  ;;  %s2673_s15 = sshll.u32 (%p36_p5), %s235_s13, 10 }
  0x13   : > { %s3267_s18 = scalar_lea.vmem (%p36_p5), %s4365_s0, %s2765_s14  ;;  %s3272_s19 = scalar_lea.vmem (%p36_p5), [#allocation2], %s2673_s15 }
  0x14   : > { %v253_v0 = vld [vmem:[%s3267_s18] sm:$0xff] (%p36_p5)  ;;  %v255_v1 = vld [vmem:[%s3267_s18 + $0x8] sm:$0xff] (%p36_p5) }
  0x15   : > { %v257_v2 = vld [vmem:[%s3267_s18 + $0x20] sm:$0xff] (%p36_p5)  ;;  %254 = vst [vmem:[%s3272_s19] sm:$0xff] (%p36_p5), %v253_v0  ;;  %256 = vst [vmem:[%s3272_s19 + $0x8] sm:$0xff] (%p36_p5), %v255_v1  ;;  %v259_v3 = vld [vmem:[%s3267_s18 + $0x28] sm:$0xff] (%p36_p5) }
  0x16   : > { %258 = vst [vmem:[%s3272_s19 + $0x10] sm:$0xff] %v257_v2  ;;  %v261_v4 = vld [vmem:[%s3267_s18 + $0x40] sm:$0xff]  ;;  %v263_v5 = vld [vmem:[%s3267_s18 + $0x48] sm:$0xff]  ;;  %260 = vst [vmem:[%s3272_s19 + $0x18] sm:$0xff] %v259_v3 }
  0x17   : > { %262 = vst [vmem:[%s3272_s19 + $0x20] sm:$0xff] %v261_v4  ;;  %264 = vst [vmem:[%s3272_s19 + $0x28] sm:$0xff] %v263_v5  ;;  %v265_v6 = vld [vmem:[%s3267_s18 + $0x60] sm:$0xff]  ;;  %v267_v7 = vld [vmem:[%s3267_s18 + $0x68] sm:$0xff] }
  0x18   : > { %v269_v8 = vld [vmem:[%s3267_s18 + $0x80] sm:$0xff]  ;;  %266 = vst [vmem:[%s3272_s19 + $0x30] sm:$0xff] %v265_v6  ;;  %268 = vst [vmem:[%s3272_s19 + $0x38] sm:$0xff] %v267_v7  ;;  %v271_v9 = vld [vmem:[%s3267_s18 + $0x88] sm:$0xff] }
  0x19   : > { %270 = vst [vmem:[%s3272_s19 + $0x40] sm:$0xff] %v269_v8  ;;  %v273_v10 = vld [vmem:[%s3267_s18 + $0xa0] sm:$0xff]  ;;  %v275_v11 = vld [vmem:[%s3267_s18 + $0xa8] sm:$0xff]  ;;  %272 = vst [vmem:[%s3272_s19 + $0x48] sm:$0xff] %v271_v9 }
  0x1a   : > { %274 = vst [vmem:[%s3272_s19 + $0x50] sm:$0xff] %v273_v10  ;;  %276 = vst [vmem:[%s3272_s19 + $0x58] sm:$0xff] %v275_v11  ;;  %v277_v12 = vld [vmem:[%s3267_s18 + $0xc0] sm:$0xff]  ;;  %v279_v13 = vld [vmem:[%s3267_s18 + $0xc8] sm:$0xff] }
  0x1b   : > { %v281_v14 = vld [vmem:[%s3267_s18 + $0xe0] sm:$0xff]  ;;  %278 = vst [vmem:[%s3272_s19 + $0x60] sm:$0xff] %v277_v12  ;;  %280 = vst [vmem:[%s3272_s19 + $0x68] sm:$0xff] %v279_v13  ;;  %v283_v15 = vld [vmem:[%s3267_s18 + $0xe8] sm:$0xff] }
  0x1c   : > { %282 = vst [vmem:[%s3272_s19 + $0x70] sm:$0xff] %v281_v14  ;;  %v285_v16 = vld [vmem:[%s3267_s18 + $0x100] sm:$0xff]  ;;  %v287_v17 = vld [vmem:[%s3267_s18 + $0x108] sm:$0xff]  ;;  %284 = vst [vmem:[%s3272_s19 + $0x78] sm:$0xff] %v283_v15 }
  0x1d   : > { %286 = vst [vmem:[%s3272_s19 + $0x80] sm:$0xff] %v285_v16  ;;  %288 = vst [vmem:[%s3272_s19 + $0x88] sm:$0xff] %v287_v17  ;;  %v289_v18 = vld [vmem:[%s3267_s18 + $0x120] sm:$0xff]  ;;  %v291_v19 = vld [vmem:[%s3267_s18 + $0x128] sm:$0xff] }
  0x1e   : > { %v293_v20 = vld [vmem:[%s3267_s18 + $0x140] sm:$0xff]  ;;  %290 = vst [vmem:[%s3272_s19 + $0x90] sm:$0xff] %v289_v18  ;;  %292 = vst [vmem:[%s3272_s19 + $0x98] sm:$0xff] %v291_v19  ;;  %v295_v21 = vld [vmem:[%s3267_s18 + $0x148] sm:$0xff] }
  0x1f   : > { %294 = vst [vmem:[%s3272_s19 + $0xa0] sm:$0xff] %v293_v20  ;;  %v297_v22 = vld [vmem:[%s3267_s18 + $0x160] sm:$0xff]  ;;  %v299_v23 = vld [vmem:[%s3267_s18 + $0x168] sm:$0xff]  ;;  %296 = vst [vmem:[%s3272_s19 + $0xa8] sm:$0xff] %v295_v21 }
  0x20   : > { %298 = vst [vmem:[%s3272_s19 + $0xb0] sm:$0xff] %v297_v22  ;;  %300 = vst [vmem:[%s3272_s19 + $0xb8] sm:$0xff] %v299_v23  ;;  %v301_v24 = vld [vmem:[%s3267_s18 + $0x180] sm:$0xff]  ;;  %v303_v25 = vld [vmem:[%s3267_s18 + $0x188] sm:$0xff] }
  0x21   : > { %v305_v26 = vld [vmem:[%s3267_s18 + $0x1a0] sm:$0xff]  ;;  %302 = vst [vmem:[%s3272_s19 + $0xc0] sm:$0xff] %v301_v24  ;;  %304 = vst [vmem:[%s3272_s19 + $0xc8] sm:$0xff] %v303_v25  ;;  %v307_v27 = vld [vmem:[%s3267_s18 + $0x1a8] sm:$0xff] }
  0x22   : > { %306 = vst [vmem:[%s3272_s19 + $0xd0] sm:$0xff] %v305_v26  ;;  %v309_v28 = vld [vmem:[%s3267_s18 + $0x1c0] sm:$0xff]  ;;  %v311_v29 = vld [vmem:[%s3267_s18 + $0x1c8] sm:$0xff]  ;;  %308 = vst [vmem:[%s3272_s19 + $0xd8] sm:$0xff] %v307_v27 }
  0x23   : > { %310 = vst [vmem:[%s3272_s19 + $0xe0] sm:$0xff] %v309_v28  ;;  %312 = vst [vmem:[%s3272_s19 + $0xe8] sm:$0xff] %v311_v29  ;;  %v313_v30 = vld [vmem:[%s3267_s18 + $0x1e0] sm:$0xff]  ;;  %v315_v31 = vld [vmem:[%s3267_s18 + $0x1e8] sm:$0xff] }
  0x24   : > { %v317_v32 = vld [vmem:[%s3267_s18 + $0x200] sm:$0xff]  ;;  %314 = vst [vmem:[%s3272_s19 + $0xf0] sm:$0xff] %v313_v30  ;;  %316 = vst [vmem:[%s3272_s19 + $0xf8] sm:$0xff] %v315_v31  ;;  %v319_v33 = vld [vmem:[%s3267_s18 + $0x208] sm:$0xff] }
  0x25   : > { %318 = vst [vmem:[%s3272_s19 + $0x100] sm:$0xff] %v317_v32  ;;  %v321_v34 = vld [vmem:[%s3267_s18 + $0x220] sm:$0xff]  ;;  %v323_v35 = vld [vmem:[%s3267_s18 + $0x228] sm:$0xff]  ;;  %320 = vst [vmem:[%s3272_s19 + $0x108] sm:$0xff] %v319_v33 }
  0x26   : > { %322 = vst [vmem:[%s3272_s19 + $0x110] sm:$0xff] %v321_v34  ;;  %324 = vst [vmem:[%s3272_s19 + $0x118] sm:$0xff] %v323_v35  ;;  %v325_v36 = vld [vmem:[%s3267_s18 + $0x240] sm:$0xff]  ;;  %v327_v37 = vld [vmem:[%s3267_s18 + $0x248] sm:$0xff] }
  0x27   : > { %v329_v38 = vld [vmem:[%s3267_s18 + $0x260] sm:$0xff]  ;;  %326 = vst [vmem:[%s3272_s19 + $0x120] sm:$0xff] %v325_v36  ;;  %328 = vst [vmem:[%s3272_s19 + $0x128] sm:$0xff] %v327_v37  ;;  %v331_v39 = vld [vmem:[%s3267_s18 + $0x268] sm:$0xff] }
  0x28   : > { %330 = vst [vmem:[%s3272_s19 + $0x130] sm:$0xff] %v329_v38  ;;  %v333_v40 = vld [vmem:[%s3267_s18 + $0x280] sm:$0xff]  ;;  %v335_v41 = vld [vmem:[%s3267_s18 + $0x288] sm:$0xff]  ;;  %332 = vst [vmem:[%s3272_s19 + $0x138] sm:$0xff] %v331_v39 }
  0x29   : > { %334 = vst [vmem:[%s3272_s19 + $0x140] sm:$0xff] %v333_v40  ;;  %336 = vst [vmem:[%s3272_s19 + $0x148] sm:$0xff] %v335_v41  ;;  %v337_v42 = vld [vmem:[%s3267_s18 + $0x2a0] sm:$0xff]  ;;  %v339_v43 = vld [vmem:[%s3267_s18 + $0x2a8] sm:$0xff] }
  0x2a   : > { %v341_v44 = vld [vmem:[%s3267_s18 + $0x2c0] sm:$0xff]  ;;  %338 = vst [vmem:[%s3272_s19 + $0x150] sm:$0xff] %v337_v42  ;;  %340 = vst [vmem:[%s3272_s19 + $0x158] sm:$0xff] %v339_v43  ;;  %v343_v45 = vld [vmem:[%s3267_s18 + $0x2c8] sm:$0xff] }
  0x2b   : > { %342 = vst [vmem:[%s3272_s19 + $0x160] sm:$0xff] %v341_v44  ;;  %v345_v46 = vld [vmem:[%s3267_s18 + $0x2e0] sm:$0xff]  ;;  %v347_v47 = vld [vmem:[%s3267_s18 + $0x2e8] sm:$0xff]  ;;  %344 = vst [vmem:[%s3272_s19 + $0x168] sm:$0xff] %v343_v45 }
  0x2c   : > { %346 = vst [vmem:[%s3272_s19 + $0x170] sm:$0xff] %v345_v46  ;;  %348 = vst [vmem:[%s3272_s19 + $0x178] sm:$0xff] %v347_v47  ;;  %v349_v48 = vld [vmem:[%s3267_s18 + $0x300] sm:$0xff]  ;;  %v351_v49 = vld [vmem:[%s3267_s18 + $0x308] sm:$0xff] }
  0x2d   : > { %v353_v50 = vld [vmem:[%s3267_s18 + $0x320] sm:$0xff]  ;;  %350 = vst [vmem:[%s3272_s19 + $0x180] sm:$0xff] %v349_v48  ;;  %352 = vst [vmem:[%s3272_s19 + $0x188] sm:$0xff] %v351_v49  ;;  %v355_v51 = vld [vmem:[%s3267_s18 + $0x328] sm:$0xff] }
  0x2e   : > { %354 = vst [vmem:[%s3272_s19 + $0x190] sm:$0xff] %v353_v50  ;;  %v357_v52 = vld [vmem:[%s3267_s18 + $0x340] sm:$0xff]  ;;  %v359_v53 = vld [vmem:[%s3267_s18 + $0x348] sm:$0xff]  ;;  %356 = vst [vmem:[%s3272_s19 + $0x198] sm:$0xff] %v355_v51 }
  0x2f   : > { %358 = vst [vmem:[%s3272_s19 + $0x1a0] sm:$0xff] %v357_v52  ;;  %360 = vst [vmem:[%s3272_s19 + $0x1a8] sm:$0xff] %v359_v53  ;;  %v361_v54 = vld [vmem:[%s3267_s18 + $0x360] sm:$0xff]  ;;  %v363_v55 = vld [vmem:[%s3267_s18 + $0x368] sm:$0xff] }
  0x30   : > { %v365_v56 = vld [vmem:[%s3267_s18 + $0x380] sm:$0xff]  ;;  %362 = vst [vmem:[%s3272_s19 + $0x1b0] sm:$0xff] %v361_v54  ;;  %364 = vst [vmem:[%s3272_s19 + $0x1b8] sm:$0xff] %v363_v55  ;;  %v367_v57 = vld [vmem:[%s3267_s18 + $0x388] sm:$0xff] }
  0x31   : > { %366 = vst [vmem:[%s3272_s19 + $0x1c0] sm:$0xff] %v365_v56  ;;  %v369_v58 = vld [vmem:[%s3267_s18 + $0x3a0] sm:$0xff]  ;;  %v371_v59 = vld [vmem:[%s3267_s18 + $0x3a8] sm:$0xff]  ;;  %368 = vst [vmem:[%s3272_s19 + $0x1c8] sm:$0xff] %v367_v57 }
  0x32   : > { %370 = vst [vmem:[%s3272_s19 + $0x1d0] sm:$0xff] %v369_v58  ;;  %372 = vst [vmem:[%s3272_s19 + $0x1d8] sm:$0xff] %v371_v59  ;;  %v373_v60 = vld [vmem:[%s3267_s18 + $0x3c0] sm:$0xff]  ;;  %v375_v61 = vld [vmem:[%s3267_s18 + $0x3c8] sm:$0xff] }
  0x33   : > { %v377_v62 = vld [vmem:[%s3267_s18 + $0x3e0] sm:$0xff]  ;;  %374 = vst [vmem:[%s3272_s19 + $0x1e0] sm:$0xff] %v373_v60  ;;  %376 = vst [vmem:[%s3272_s19 + $0x1e8] sm:$0xff] %v375_v61  ;;  %v379_v63 = vld [vmem:[%s3267_s18 + $0x3e8] sm:$0xff] }
  0x34   : > { %378 = vst [vmem:[%s3272_s19 + $0x1f0] sm:$0xff] %v377_v62  ;;  %v381_v0 = vld [vmem:[%s3267_s18 + $0x400] sm:$0xff]  ;;  %v383_v1 = vld [vmem:[%s3267_s18 + $0x408] sm:$0xff]  ;;  %380 = vst [vmem:[%s3272_s19 + $0x1f8] sm:$0xff] %v379_v63 }
  0x35   : > { %382 = vst [vmem:[%s3272_s19 + $0x200] sm:$0xff] %v381_v0  ;;  %384 = vst [vmem:[%s3272_s19 + $0x208] sm:$0xff] %v383_v1  ;;  %v385_v2 = vld [vmem:[%s3267_s18 + $0x420] sm:$0xff]  ;;  %v387_v3 = vld [vmem:[%s3267_s18 + $0x428] sm:$0xff] }
  0x36   : > { %v389_v4 = vld [vmem:[%s3267_s18 + $0x440] sm:$0xff]  ;;  %386 = vst [vmem:[%s3272_s19 + $0x210] sm:$0xff] %v385_v2  ;;  %388 = vst [vmem:[%s3272_s19 + $0x218] sm:$0xff] %v387_v3  ;;  %v391_v5 = vld [vmem:[%s3267_s18 + $0x448] sm:$0xff] }
  0x37   : > { %390 = vst [vmem:[%s3272_s19 + $0x220] sm:$0xff] %v389_v4  ;;  %v393_v6 = vld [vmem:[%s3267_s18 + $0x460] sm:$0xff]  ;;  %v395_v7 = vld [vmem:[%s3267_s18 + $0x468] sm:$0xff]  ;;  %392 = vst [vmem:[%s3272_s19 + $0x228] sm:$0xff] %v391_v5 }
  0x38   : > { %394 = vst [vmem:[%s3272_s19 + $0x230] sm:$0xff] %v393_v6  ;;  %396 = vst [vmem:[%s3272_s19 + $0x238] sm:$0xff] %v395_v7  ;;  %v397_v8 = vld [vmem:[%s3267_s18 + $0x480] sm:$0xff]  ;;  %v399_v9 = vld [vmem:[%s3267_s18 + $0x488] sm:$0xff] }
  0x39   : > { %v401_v10 = vld [vmem:[%s3267_s18 + $0x4a0] sm:$0xff]  ;;  %398 = vst [vmem:[%s3272_s19 + $0x240] sm:$0xff] %v397_v8  ;;  %400 = vst [vmem:[%s3272_s19 + $0x248] sm:$0xff] %v399_v9  ;;  %v403_v11 = vld [vmem:[%s3267_s18 + $0x4a8] sm:$0xff] }
  0x3a   : > { %402 = vst [vmem:[%s3272_s19 + $0x250] sm:$0xff] %v401_v10  ;;  %v405_v12 = vld [vmem:[%s3267_s18 + $0x4c0] sm:$0xff]  ;;  %v407_v13 = vld [vmem:[%s3267_s18 + $0x4c8] sm:$0xff]  ;;  %404 = vst [vmem:[%s3272_s19 + $0x258] sm:$0xff] %v403_v11 }
  0x3b   : > { %406 = vst [vmem:[%s3272_s19 + $0x260] sm:$0xff] %v405_v12  ;;  %408 = vst [vmem:[%s3272_s19 + $0x268] sm:$0xff] %v407_v13  ;;  %v409_v14 = vld [vmem:[%s3267_s18 + $0x4e0] sm:$0xff]  ;;  %v411_v15 = vld [vmem:[%s3267_s18 + $0x4e8] sm:$0xff] }
  0x3c   : > { %v413_v16 = vld [vmem:[%s3267_s18 + $0x500] sm:$0xff]  ;;  %410 = vst [vmem:[%s3272_s19 + $0x270] sm:$0xff] %v409_v14  ;;  %412 = vst [vmem:[%s3272_s19 + $0x278] sm:$0xff] %v411_v15  ;;  %v415_v17 = vld [vmem:[%s3267_s18 + $0x508] sm:$0xff] }
  0x3d   : > { %414 = vst [vmem:[%s3272_s19 + $0x280] sm:$0xff] %v413_v16  ;;  %v417_v18 = vld [vmem:[%s3267_s18 + $0x520] sm:$0xff]  ;;  %v419_v19 = vld [vmem:[%s3267_s18 + $0x528] sm:$0xff]  ;;  %416 = vst [vmem:[%s3272_s19 + $0x288] sm:$0xff] %v415_v17 }
  0x3e   : > { %418 = vst [vmem:[%s3272_s19 + $0x290] sm:$0xff] %v417_v18  ;;  %420 = vst [vmem:[%s3272_s19 + $0x298] sm:$0xff] %v419_v19  ;;  %v421_v20 = vld [vmem:[%s3267_s18 + $0x540] sm:$0xff]  ;;  %v423_v21 = vld [vmem:[%s3267_s18 + $0x548] sm:$0xff] }
  0x3f   : > { %v425_v22 = vld [vmem:[%s3267_s18 + $0x560] sm:$0xff]  ;;  %422 = vst [vmem:[%s3272_s19 + $0x2a0] sm:$0xff] %v421_v20  ;;  %424 = vst [vmem:[%s3272_s19 + $0x2a8] sm:$0xff] %v423_v21  ;;  %v427_v23 = vld [vmem:[%s3267_s18 + $0x568] sm:$0xff] }
  0x40   : > { %426 = vst [vmem:[%s3272_s19 + $0x2b0] sm:$0xff] %v425_v22  ;;  %v429_v24 = vld [vmem:[%s3267_s18 + $0x580] sm:$0xff]  ;;  %v431_v25 = vld [vmem:[%s3267_s18 + $0x588] sm:$0xff]  ;;  %428 = vst [vmem:[%s3272_s19 + $0x2b8] sm:$0xff] %v427_v23 }
  0x41   : > { %430 = vst [vmem:[%s3272_s19 + $0x2c0] sm:$0xff] %v429_v24  ;;  %432 = vst [vmem:[%s3272_s19 + $0x2c8] sm:$0xff] %v431_v25  ;;  %v433_v26 = vld [vmem:[%s3267_s18 + $0x5a0] sm:$0xff]  ;;  %v435_v27 = vld [vmem:[%s3267_s18 + $0x5a8] sm:$0xff] }
  0x42   : > { %v437_v28 = vld [vmem:[%s3267_s18 + $0x5c0] sm:$0xff]  ;;  %434 = vst [vmem:[%s3272_s19 + $0x2d0] sm:$0xff] %v433_v26  ;;  %436 = vst [vmem:[%s3272_s19 + $0x2d8] sm:$0xff] %v435_v27  ;;  %v439_v29 = vld [vmem:[%s3267_s18 + $0x5c8] sm:$0xff] }
  0x43   : > { %438 = vst [vmem:[%s3272_s19 + $0x2e0] sm:$0xff] %v437_v28  ;;  %v441_v30 = vld [vmem:[%s3267_s18 + $0x5e0] sm:$0xff]  ;;  %v443_v31 = vld [vmem:[%s3267_s18 + $0x5e8] sm:$0xff]  ;;  %440 = vst [vmem:[%s3272_s19 + $0x2e8] sm:$0xff] %v439_v29 }
  0x44   : > { %442 = vst [vmem:[%s3272_s19 + $0x2f0] sm:$0xff] %v441_v30  ;;  %444 = vst [vmem:[%s3272_s19 + $0x2f8] sm:$0xff] %v443_v31  ;;  %v445_v32 = vld [vmem:[%s3267_s18 + $0x600] sm:$0xff]  ;;  %v447_v33 = vld [vmem:[%s3267_s18 + $0x608] sm:$0xff] }
  0x45   : > { %v449_v34 = vld [vmem:[%s3267_s18 + $0x620] sm:$0xff]  ;;  %446 = vst [vmem:[%s3272_s19 + $0x300] sm:$0xff] %v445_v32  ;;  %448 = vst [vmem:[%s3272_s19 + $0x308] sm:$0xff] %v447_v33  ;;  %v451_v35 = vld [vmem:[%s3267_s18 + $0x628] sm:$0xff] }
  0x46   : > { %450 = vst [vmem:[%s3272_s19 + $0x310] sm:$0xff] %v449_v34  ;;  %v453_v36 = vld [vmem:[%s3267_s18 + $0x640] sm:$0xff]  ;;  %v455_v37 = vld [vmem:[%s3267_s18 + $0x648] sm:$0xff]  ;;  %452 = vst [vmem:[%s3272_s19 + $0x318] sm:$0xff] %v451_v35 }
  0x47   : > { %454 = vst [vmem:[%s3272_s19 + $0x320] sm:$0xff] %v453_v36  ;;  %456 = vst [vmem:[%s3272_s19 + $0x328] sm:$0xff] %v455_v37  ;;  %v457_v38 = vld [vmem:[%s3267_s18 + $0x660] sm:$0xff]  ;;  %v459_v39 = vld [vmem:[%s3267_s18 + $0x668] sm:$0xff] }
  0x48   : > { %v461_v40 = vld [vmem:[%s3267_s18 + $0x680] sm:$0xff]  ;;  %458 = vst [vmem:[%s3272_s19 + $0x330] sm:$0xff] %v457_v38  ;;  %460 = vst [vmem:[%s3272_s19 + $0x338] sm:$0xff] %v459_v39  ;;  %v463_v41 = vld [vmem:[%s3267_s18 + $0x688] sm:$0xff] }
  0x49   : > { %462 = vst [vmem:[%s3272_s19 + $0x340] sm:$0xff] %v461_v40  ;;  %v465_v42 = vld [vmem:[%s3267_s18 + $0x6a0] sm:$0xff]  ;;  %v467_v43 = vld [vmem:[%s3267_s18 + $0x6a8] sm:$0xff]  ;;  %464 = vst [vmem:[%s3272_s19 + $0x348] sm:$0xff] %v463_v41 }
  0x4a   : > { %466 = vst [vmem:[%s3272_s19 + $0x350] sm:$0xff] %v465_v42  ;;  %468 = vst [vmem:[%s3272_s19 + $0x358] sm:$0xff] %v467_v43  ;;  %v469_v44 = vld [vmem:[%s3267_s18 + $0x6c0] sm:$0xff]  ;;  %v471_v45 = vld [vmem:[%s3267_s18 + $0x6c8] sm:$0xff] }
  0x4b   : > { %v473_v46 = vld [vmem:[%s3267_s18 + $0x6e0] sm:$0xff]  ;;  %470 = vst [vmem:[%s3272_s19 + $0x360] sm:$0xff] %v469_v44  ;;  %472 = vst [vmem:[%s3272_s19 + $0x368] sm:$0xff] %v471_v45  ;;  %v475_v47 = vld [vmem:[%s3267_s18 + $0x6e8] sm:$0xff] }
  0x4c   : > { %474 = vst [vmem:[%s3272_s19 + $0x370] sm:$0xff] %v473_v46  ;;  %v477_v48 = vld [vmem:[%s3267_s18 + $0x700] sm:$0xff]  ;;  %v479_v49 = vld [vmem:[%s3267_s18 + $0x708] sm:$0xff]  ;;  %476 = vst [vmem:[%s3272_s19 + $0x378] sm:$0xff] %v475_v47 }
  0x4d   : > { %478 = vst [vmem:[%s3272_s19 + $0x380] sm:$0xff] %v477_v48  ;;  %480 = vst [vmem:[%s3272_s19 + $0x388] sm:$0xff] %v479_v49  ;;  %v481_v50 = vld [vmem:[%s3267_s18 + $0x720] sm:$0xff]  ;;  %v483_v51 = vld [vmem:[%s3267_s18 + $0x728] sm:$0xff] }
  0x4e   : > { %v485_v52 = vld [vmem:[%s3267_s18 + $0x740] sm:$0xff]  ;;  %482 = vst [vmem:[%s3272_s19 + $0x390] sm:$0xff] %v481_v50  ;;  %484 = vst [vmem:[%s3272_s19 + $0x398] sm:$0xff] %v483_v51  ;;  %v487_v53 = vld [vmem:[%s3267_s18 + $0x748] sm:$0xff] }
  0x4f   : > { %486 = vst [vmem:[%s3272_s19 + $0x3a0] sm:$0xff] %v485_v52  ;;  %v489_v54 = vld [vmem:[%s3267_s18 + $0x760] sm:$0xff]  ;;  %v491_v55 = vld [vmem:[%s3267_s18 + $0x768] sm:$0xff]  ;;  %488 = vst [vmem:[%s3272_s19 + $0x3a8] sm:$0xff] %v487_v53 }
  0x50   : > { %490 = vst [vmem:[%s3272_s19 + $0x3b0] sm:$0xff] %v489_v54  ;;  %492 = vst [vmem:[%s3272_s19 + $0x3b8] sm:$0xff] %v491_v55  ;;  %v493_v56 = vld [vmem:[%s3267_s18 + $0x780] sm:$0xff]  ;;  %v495_v57 = vld [vmem:[%s3267_s18 + $0x788] sm:$0xff] }
  0x51   : > { %v497_v58 = vld [vmem:[%s3267_s18 + $0x7a0] sm:$0xff]  ;;  %494 = vst [vmem:[%s3272_s19 + $0x3c0] sm:$0xff] %v493_v56  ;;  %496 = vst [vmem:[%s3272_s19 + $0x3c8] sm:$0xff] %v495_v57  ;;  %v499_v59 = vld [vmem:[%s3267_s18 + $0x7a8] sm:$0xff] }
  0x52   : > { %498 = vst [vmem:[%s3272_s19 + $0x3d0] sm:$0xff] %v497_v58  ;;  %v501_v60 = vld [vmem:[%s3267_s18 + $0x7c0] sm:$0xff]  ;;  %v503_v61 = vld [vmem:[%s3267_s18 + $0x7c8] sm:$0xff]  ;;  %500 = vst [vmem:[%s3272_s19 + $0x3d8] sm:$0xff] %v499_v59 }
  0x53   : > { %502 = vst [vmem:[%s3272_s19 + $0x3e0] sm:$0xff] %v501_v60  ;;  %504 = vst [vmem:[%s3272_s19 + $0x3e8] sm:$0xff] %v503_v61  ;;  %v505_v62 = vld [vmem:[%s3267_s18 + $0x7e0] sm:$0xff]  ;;  %v507_v63 = vld [vmem:[%s3267_s18 + $0x7e8] sm:$0xff] }
  0x54   : > { %506 = vst [vmem:[%s3272_s19 + $0x3f0] sm:$0xff] %v505_v62  ;;  %508 = vst [vmem:[%s3272_s19 + $0x3f8] sm:$0xff] %v507_v63 }
  0x55 PF: > { %p2676_p10 = scmp.ge.s32.totalorder %s3168_s27, 1  ;;  %p513_p11 = scmp.lt.s32.totalorder %s3168_s27, 3 }
  0x57   : > { %p514_p12 = pnand %p2676_p10, %p513_p11 }
  0x58   : > { %s3538_s29 = sand.u32 (!%p514_p12), 1, %s3160_s25   ;;  %s2762_s9 = sshll.u32 (!%p514_p12), %s2669_s28, 7 }
  0x59   : > { %517 = sbr.rel (%p514_p12) target bundleno = 1300 (0x514), region = 67  ;;  %s2677_s13 = sshll.u32 (!%p514_p12), %s3538_s29, 10 }
  0x5a   : > { %s3561_s20 = scalar_lea.vmem (!%p514_p12), [#allocation2], %s2677_s13  ;;  %s2678_s8 = sshll.u32 (!%p514_p12), %s3538_s29, 3 }
  0x5b   : > { %s550_s13 = scalar_lea.vmem (!%p514_p12), [#allocation3], %s2678_s8  ;;  %s2603_s17 = scalar_lea.hbm (!%p514_p12), %s4372_s7, %s2762_s9 }
  0x5c   : > { %s2605_s14 = sshll.u32 (!%p514_p12), %s550_s13, 4  ;;  %s3172_s19 = smov (!%p514_p12), [#allocation3]   ;;  %s2606_s14 = int_to_ptr.vmem [resolvable:$true] %s2605_s14 }
  0x5d   : > { %s3108_s18 = scalar_lea.vmem (!%p514_p12), %s2606_s14, 128  ;;  %s3112_s21 = sshll.u32 (!%p514_p12), %s3172_s19, 4  ;;  %s3113_s21 = int_to_ptr.vmem [resolvable:$false] %s3112_s21 }
  0x5e   : > { %v694_v0 = vld [vmem:[%s4366_s1 + $0x78] sm:$0xff]  ;;  %v3170_v1 = vmov 0.0   ;;  %v693_v2 = vld [vmem:[%s4366_s1 + $0x70] sm:$0xff]  ;;  %v692_v3 = vld [vmem:[%s4366_s1 + $0x68] sm:$0xff]  ;;  %vm1194_vm0 = vcmask 1043456   ;;  %vm3171_vm1 = vmmov 0   ;;  %p3109_p13 = scmp.ne.s32.totalorder %s2606_s14, %s3108_s18  ;;  %p3115_p2 = scmp.lt.s32.totalorder %s2606_s14, %s3113_s21 }
  0x5f   : > { %711 = vmatprep.subr.mxu0 %v3170_v1  ;;  %2999 = vmatprep.subr.mxu1 %v3170_v1  ;;  %v691_v4 = vld [vmem:[%s4366_s1 + $0x60] sm:$0xff]  ;;  %v690_v5 = vld [vmem:[%s4366_s1 + $0x58] sm:$0xff]  ;;  %v689_v6 = vld [vmem:[%s4366_s1 + $0x50] sm:$0xff]  ;;  %vm1190_vm2 = vcmask 162816   ;;  %vm2505_vm3 = vcmask 1041408   ;;  %vm2501_vm4 = vcmask 408576  }
  0x60   : > { %712 = vmatpush1.msra.mxu0 %v694_v0  ;;  %3031 = vmatpush1.msra.mxu1 %v694_v0  ;;  %v552_v7 = vld [vmem:[%s3561_s20 + $0x8] sm:$0xff]  ;;  %v687_v9 = vld [vmem:[%s4366_s1 + $0x40] sm:$0xff]  ;;  %v686_v10 = vld [vmem:[%s4366_s1 + $0x38] sm:$0xff]  ;;  %vm2579_vm5 = vcmask 80896   ;;  %p3110_p0 = pnand %p3109_p13, %p3251_p6  ;;  %s3114_s28 = scalar_lea.vmem %s3113_s21, 256 }
  0x61   : > { %713 = vmatprep.subr.mxu0 %v3170_v1  ;;  %3000 = vmatprep.subr.mxu1 %v3170_v1  ;;  %v688_v8 = vld [vmem:[%s4366_s1 + $0x48] sm:$0xff]  ;;  %v685_v11 = vld [vmem:[%s4366_s1 + $0x30] sm:$0xff]  ;;  %v683_v13 = vld [vmem:[%s4366_s1 + $0x20] sm:$0xff]  ;;  %p3116_p3 = scmp.lt.s32.totalorder %s3114_s28, %s3108_s18 }
  0x62   : > { %714 = vmatpush1.msra.mxu0 %v693_v2  ;;  %3032 = vmatpush1.msra.mxu1 %v693_v2  ;;  %v684_v12 = vld [vmem:[%s4366_s1 + $0x28] sm:$0xff]  ;;  %v682_v14 = vld [vmem:[%s4366_s1 + $0x18] sm:$0xff]  ;;  %v681_v15 = vld [vmem:[%s4366_s1 + $0x10] sm:$0xff]  ;;  %p3111_p1 = pneg %p3110_p0 }
  0x63   : > { %715 = vmatprep.subr.mxu0 %v3170_v1  ;;  %3001 = vmatprep.subr.mxu1 %v3170_v1  ;;  %v680_v16 = vld [vmem:[%s4366_s1 + $0x8] sm:$0xff]  ;;  %v679_v17 = vld [vmem:[%s4366_s1] sm:$0xff]  ;;  %v710_v18 = vld [vmem:[%s4366_s1 + $0xf8] sm:$0xff]  ;;  %p3117_p4 = por %p3116_p3, %p3115_p2 }
  0x64   : > { %716 = vmatpush1.msra.mxu0 %v692_v3  ;;  %3033 = vmatpush1.msra.mxu1 %v692_v3  ;;  %v709_v19 = vld [vmem:[%s4366_s1 + $0xf0] sm:$0xff]  ;;  %v708_v20 = vld [vmem:[%s4366_s1 + $0xe8] sm:$0xff]  ;;  %v707_v21 = vld [vmem:[%s4366_s1 + $0xe0] sm:$0xff] }
  0x65   : > { %717 = vmatprep.subr.mxu0 %v3170_v1  ;;  %3002 = vmatprep.subr.mxu1 %v3170_v1  ;;  %v706_v22 = vld [vmem:[%s4366_s1 + $0xd8] sm:$0xff]  ;;  %v705_v23 = vld [vmem:[%s4366_s1 + $0xd0] sm:$0xff]  ;;  %v704_v24 = vld [vmem:[%s4366_s1 + $0xc8] sm:$0xff]  ;;  %p3118_p5 = pnand %p3117_p4, %p3111_p1 }
  0x66   : > { %718 = vmatpush1.msra.mxu0 %v691_v4  ;;  %3034 = vmatpush1.msra.mxu1 %v691_v4  ;;  %v703_v25 = vld [vmem:[%s4366_s1 + $0xc0] sm:$0xff]  ;;  %v702_v26 = vld [vmem:[%s4366_s1 + $0xb8] sm:$0xff]  ;;  %v701_v27 = vld [vmem:[%s4366_s1 + $0xb0] sm:$0xff] }
  0x67   : > { %719 = vmatprep.subr.mxu0 %v3170_v1  ;;  %3003 = vmatprep.subr.mxu1 %v3170_v1  ;;  %v700_v28 = vld [vmem:[%s4366_s1 + $0xa8] sm:$0xff]  ;;  %v699_v29 = vld [vmem:[%s4366_s1 + $0xa0] sm:$0xff]  ;;  %v698_v30 = vld [vmem:[%s4366_s1 + $0x98] sm:$0xff] }
  0x68   : > { %720 = vmatpush1.msra.mxu0 %v690_v5  ;;  %3035 = vmatpush1.msra.mxu1 %v690_v5  ;;  %v697_v31 = vld [vmem:[%s4366_s1 + $0x90] sm:$0xff]  ;;  %v696_v32 = vld [vmem:[%s4366_s1 + $0x88] sm:$0xff]  ;;  %v695_v33 = vld [vmem:[%s4366_s1 + $0x80] sm:$0xff] }
  0x69   : > { %721 = vmatprep.subr.mxu0 %v3170_v1  ;;  %775 = vmatprep.mubr.f32.mxu0 %v552_v7  ;;  %v551_v34 = vld [vmem:[%s3561_s20] sm:$0xff]  ;;  %v554_v35 = vld [vmem:[%s3561_s20 + $0x18] sm:$0xff]  ;;  %v644_v36 = vld [vmem:[%s3561_s20 + $0x2e8] sm:$0xff] }
  0x6a   : > { %722 = vmatpush1.msra.mxu0 %v689_v6  ;;  %3004 = vmatprep.subr.mxu1 %v3170_v1  ;;  %v643_v37 = vld [vmem:[%s3561_s20 + $0x2e0] sm:$0xff]  ;;  %v646_v38 = vld [vmem:[%s3561_s20 + $0x2f8] sm:$0xff]  ;;  %v553_v39 = vld [vmem:[%s3561_s20 + $0x10] sm:$0xff] }
  0x6b   : > { %723 = vmatprep.subr.mxu0 %v3170_v1  ;;  %3036 = vmatpush1.msra.mxu1 %v689_v6  ;;  %v556_v40 = vld [vmem:[%s3561_s20 + $0x28] sm:$0xff]  ;;  %v645_v41 = vld [vmem:[%s3561_s20 + $0x2f0] sm:$0xff]  ;;  %v555_v43 = vld [vmem:[%s3561_s20 + $0x20] sm:$0xff] }
  0x6c   : > { %724 = vmatpush1.msra.mxu0 %v688_v8  ;;  %3005 = vmatprep.subr.mxu1 %v3170_v1  ;;  %v648_v42 = vld [vmem:[%s3561_s20 + $0x308] sm:$0xff]  ;;  %v558_v44 = vld [vmem:[%s3561_s20 + $0x38] sm:$0xff]  ;;  %v647_v45 = vld [vmem:[%s3561_s20 + $0x300] sm:$0xff] }
  0x6d   : > { %725 = vmatprep.subr.mxu0 %v3170_v1  ;;  %3037 = vmatpush1.msra.mxu1 %v688_v8  ;;  %v650_v46 = vld [vmem:[%s3561_s20 + $0x318] sm:$0xff]  ;;  %v557_v47 = vld [vmem:[%s3561_s20 + $0x30] sm:$0xff]  ;;  %v560_v48 = vld [vmem:[%s3561_s20 + $0x48] sm:$0xff] }
  0x6e   : > { %726 = vmatpush1.msra.mxu0 %v687_v9  ;;  %3006 = vmatprep.subr.mxu1 %v3170_v1  ;;  %v649_v49 = vld [vmem:[%s3561_s20 + $0x310] sm:$0xff]  ;;  %v652_v50 = vld [vmem:[%s3561_s20 + $0x328] sm:$0xff]  ;;  %v559_v51 = vld [vmem:[%s3561_s20 + $0x40] sm:$0xff] }
  0x6f   : > { %727 = vmatprep.subr.mxu0 %v3170_v1  ;;  %3038 = vmatpush1.msra.mxu1 %v687_v9  ;;  %v562_v52 = vld [vmem:[%s3561_s20 + $0x58] sm:$0xff]  ;;  %v651_v53 = vld [vmem:[%s3561_s20 + $0x320] sm:$0xff]  ;;  %v561_v55 = vld [vmem:[%s3561_s20 + $0x50] sm:$0xff] }
  0x70   : > { %728 = vmatpush1.msra.mxu0 %v686_v10  ;;  %3007 = vmatprep.subr.mxu1 %v3170_v1  ;;  %v654_v54 = vld [vmem:[%s3561_s20 + $0x338] sm:$0xff]  ;;  %v564_v56 = vld [vmem:[%s3561_s20 + $0x68] sm:$0xff]  ;;  %v653_v57 = vld [vmem:[%s3561_s20 + $0x330] sm:$0xff] }
  0x71   : > { %729 = vmatprep.subr.mxu0 %v3170_v1  ;;  %3039 = vmatpush1.msra.mxu1 %v686_v10  ;;  %v656_v58 = vld [vmem:[%s3561_s20 + $0x348] sm:$0xff]  ;;  %v563_v59 = vld [vmem:[%s3561_s20 + $0x60] sm:$0xff]  ;;  %v566_v60 = vld [vmem:[%s3561_s20 + $0x78] sm:$0xff] }
  0x72   : > { %730 = vmatpush1.msra.mxu0 %v685_v11  ;;  %3008 = vmatprep.subr.mxu1 %v3170_v1  ;;  %v655_v61 = vld [vmem:[%s3561_s20 + $0x340] sm:$0xff]  ;;  %v658_v62 = vld [vmem:[%s3561_s20 + $0x358] sm:$0xff]  ;;  %v565_v63 = vld [vmem:[%s3561_s20 + $0x70] sm:$0xff] }
  0x73   : > { %731 = vmatprep.subr.mxu0 %v3170_v1  ;;  %3040 = vmatpush1.msra.mxu1 %v685_v11  ;;  %v568_v0 = vld [vmem:[%s3561_s20 + $0x88] sm:$0xff]  ;;  %v657_v2 = vld [vmem:[%s3561_s20 + $0x350] sm:$0xff]  ;;  %v567_v4 = vld [vmem:[%s3561_s20 + $0x80] sm:$0xff] }
  0x74   : > { %732 = vmatpush1.msra.mxu0 %v684_v12  ;;  %3009 = vmatprep.subr.mxu1 %v3170_v1  ;;  %v660_v3 = vld [vmem:[%s3561_s20 + $0x368] sm:$0xff]  ;;  %v570_v5 = vld [vmem:[%s3561_s20 + $0x98] sm:$0xff]  ;;  %v659_v6 = vld [vmem:[%s3561_s20 + $0x360] sm:$0xff] }
  0x75   : > { %733 = vmatprep.subr.mxu0 %v3170_v1  ;;  %3041 = vmatpush1.msra.mxu1 %v684_v12  ;;  %v662_v7 = vld [vmem:[%s3561_s20 + $0x378] sm:$0xff]  ;;  %v569_v8 = vld [vmem:[%s3561_s20 + $0x90] sm:$0xff]  ;;  %v572_v9 = vld [vmem:[%s3561_s20 + $0xa8] sm:$0xff] }
  0x76   : > { %734 = vmatpush1.msra.mxu0 %v683_v13  ;;  %3010 = vmatprep.subr.mxu1 %v3170_v1  ;;  %v661_v10 = vld [vmem:[%s3561_s20 + $0x370] sm:$0xff]  ;;  %v664_v11 = vld [vmem:[%s3561_s20 + $0x388] sm:$0xff]  ;;  %v571_v12 = vld [vmem:[%s3561_s20 + $0xa0] sm:$0xff] }
  0x77   : > { %735 = vmatprep.subr.mxu0 %v3170_v1  ;;  %3042 = vmatpush1.msra.mxu1 %v683_v13  ;;  %v574_v13 = vld [vmem:[%s3561_s20 + $0xb8] sm:$0xff] }
  0x78   : > { %736 = vmatpush1.msra.mxu0 %v682_v14  ;;  %3011 = vmatprep.subr.mxu1 %v3170_v1 }
  0x79   : > { %737 = vmatprep.subr.mxu0 %v3170_v1  ;;  %3043 = vmatpush1.msra.mxu1 %v682_v14  ;;  %v663_v14 = vld [vmem:[%s3561_s20 + $0x380] sm:$0xff] }
  0x7a   : > { %738 = vmatpush1.msra.mxu0 %v681_v15  ;;  %3012 = vmatprep.subr.mxu1 %v3170_v1 }
  0x7b   : > { %739 = vmatprep.subr.mxu0 %v3170_v1  ;;  %3044 = vmatpush1.msra.mxu1 %v681_v15  ;;  %v666_v15 = vld [vmem:[%s3561_s20 + $0x398] sm:$0xff] }
  0x7c   : > { %740 = vmatpush1.msra.mxu0 %v680_v16  ;;  %3013 = vmatprep.subr.mxu1 %v3170_v1 }
  0x7d   : > { %741 = vmatprep.subr.mxu0 %v3170_v1  ;;  %3045 = vmatpush1.msra.mxu1 %v680_v16  ;;  %v573_v16 = vld [vmem:[%s3561_s20 + $0xb0] sm:$0xff] }
  0x7e   : > { %742 = vmatpush1.msra.mxu0 %v679_v17  ;;  %3014 = vmatprep.subr.mxu1 %v3170_v1 }
  0x7f   : > { %743 = vmatprep.subr.mxu0 %v3170_v1  ;;  %3046 = vmatpush1.msra.mxu1 %v679_v17  ;;  %v576_v17 = vld [vmem:[%s3561_s20 + $0xc8] sm:$0xff] }
  0x80   : > { %744 = vmatpush2.msra.mxu0 %v710_v18  ;;  %3015 = vmatprep.subr.mxu1 %v3170_v1 }
  0x81   : > { %745 = vmatprep.subr.mxu0 %v3170_v1  ;;  %3047 = vmatpush2.msra.mxu1 %v710_v18  ;;  %v665_v18 = vld [vmem:[%s3561_s20 + $0x390] sm:$0xff] }
  0x82   : > { %746 = vmatpush2.msra.mxu0 %v709_v19  ;;  %3016 = vmatprep.subr.mxu1 %v3170_v1 }
  0x83   : > { %747 = vmatprep.subr.mxu0 %v3170_v1  ;;  %3048 = vmatpush2.msra.mxu1 %v709_v19  ;;  %v668_v19 = vld [vmem:[%s3561_s20 + $0x3a8] sm:$0xff] }
  0x84   : > { %748 = vmatpush2.msra.mxu0 %v708_v20  ;;  %3017 = vmatprep.subr.mxu1 %v3170_v1 }
  0x85   : > { %749 = vmatprep.subr.mxu0 %v3170_v1  ;;  %3049 = vmatpush2.msra.mxu1 %v708_v20  ;;  %v575_v20 = vld [vmem:[%s3561_s20 + $0xc0] sm:$0xff] }
  0x86   : > { %750 = vmatpush2.msra.mxu0 %v707_v21  ;;  %3018 = vmatprep.subr.mxu1 %v3170_v1 }
  0x87   : > { %751 = vmatprep.subr.mxu0 %v3170_v1  ;;  %3050 = vmatpush2.msra.mxu1 %v707_v21  ;;  %v578_v21 = vld [vmem:[%s3561_s20 + $0xd8] sm:$0xff] }
  0x88   : > { %752 = vmatpush2.msra.mxu0 %v706_v22  ;;  %3019 = vmatprep.subr.mxu1 %v3170_v1 }
  0x89   : > { %753 = vmatprep.subr.mxu0 %v3170_v1  ;;  %3051 = vmatpush2.msra.mxu1 %v706_v22  ;;  %v667_v22 = vld [vmem:[%s3561_s20 + $0x3a0] sm:$0xff] }
  0x8a   : > { %754 = vmatpush2.msra.mxu0 %v705_v23  ;;  %3020 = vmatprep.subr.mxu1 %v3170_v1 }
  0x8b   : > { %755 = vmatprep.subr.mxu0 %v3170_v1  ;;  %3052 = vmatpush2.msra.mxu1 %v705_v23  ;;  %v670_v23 = vld [vmem:[%s3561_s20 + $0x3b8] sm:$0xff] }
  0x8c   : > { %756 = vmatpush2.msra.mxu0 %v704_v24  ;;  %3021 = vmatprep.subr.mxu1 %v3170_v1 }
  0x8d   : > { %757 = vmatprep.subr.mxu0 %v3170_v1  ;;  %3053 = vmatpush2.msra.mxu1 %v704_v24  ;;  %v577_v24 = vld [vmem:[%s3561_s20 + $0xd0] sm:$0xff] }
  0x8e   : > { %758 = vmatpush2.msra.mxu0 %v703_v25  ;;  %3022 = vmatprep.subr.mxu1 %v3170_v1 }
  0x8f   : > { %759 = vmatprep.subr.mxu0 %v3170_v1  ;;  %3054 = vmatpush2.msra.mxu1 %v703_v25  ;;  %v580_v25 = vld [vmem:[%s3561_s20 + $0xe8] sm:$0xff] }
  0x90   : > { %760 = vmatpush2.msra.mxu0 %v702_v26  ;;  %3023 = vmatprep.subr.mxu1 %v3170_v1 }
  0x91   : > { %761 = vmatprep.subr.mxu0 %v3170_v1  ;;  %3055 = vmatpush2.msra.mxu1 %v702_v26  ;;  %v669_v26 = vld [vmem:[%s3561_s20 + $0x3b0] sm:$0xff] }
  0x92   : > { %762 = vmatpush2.msra.mxu0 %v701_v27  ;;  %3024 = vmatprep.subr.mxu1 %v3170_v1 }
  0x93   : > { %763 = vmatprep.subr.mxu0 %v3170_v1  ;;  %3056 = vmatpush2.msra.mxu1 %v701_v27  ;;  %v672_v27 = vld [vmem:[%s3561_s20 + $0x3c8] sm:$0xff] }
  0x94   : > { %764 = vmatpush2.msra.mxu0 %v700_v28  ;;  %3025 = vmatprep.subr.mxu1 %v3170_v1 }
  0x95   : > { %765 = vmatprep.subr.mxu0 %v3170_v1  ;;  %3057 = vmatpush2.msra.mxu1 %v700_v28  ;;  %v579_v28 = vld [vmem:[%s3561_s20 + $0xe0] sm:$0xff] }
  0x96   : > { %766 = vmatpush2.msra.mxu0 %v699_v29  ;;  %3026 = vmatprep.subr.mxu1 %v3170_v1 }
  0x97   : > { %767 = vmatprep.subr.mxu0 %v3170_v1  ;;  %3058 = vmatpush2.msra.mxu1 %v699_v29  ;;  %v582_v29 = vld [vmem:[%s3561_s20 + $0xf8] sm:$0xff] }
  0x98   : > { %768 = vmatpush2.msra.mxu0 %v698_v30  ;;  %3027 = vmatprep.subr.mxu1 %v3170_v1 }
  0x99   : > { %769 = vmatprep.subr.mxu0 %v3170_v1  ;;  %3059 = vmatpush2.msra.mxu1 %v698_v30  ;;  %v671_v30 = vld [vmem:[%s3561_s20 + $0x3c0] sm:$0xff] }
  0x9a   : > { %770 = vmatpush2.msra.mxu0 %v697_v31  ;;  %3028 = vmatprep.subr.mxu1 %v3170_v1 }
  0x9b   : > { %771 = vmatprep.subr.mxu0 %v3170_v1  ;;  %3060 = vmatpush2.msra.mxu1 %v697_v31  ;;  %v674_v31 = vld [vmem:[%s3561_s20 + $0x3d8] sm:$0xff] }
  0x9c   : > { %772 = vmatpush2.msra.mxu0 %v696_v32  ;;  %3029 = vmatprep.subr.mxu1 %v3170_v1 }
  0x9d   : > { %773 = vmatprep.subr.mxu0 %v3170_v1  ;;  %3061 = vmatpush2.msra.mxu1 %v696_v32  ;;  %v581_v32 = vld [vmem:[%s3561_s20 + $0xf0] sm:$0xff] }
  0x9e   : > { %774 = vmatpush2.msra.mxu0 %v695_v33  ;;  %3030 = vmatprep.subr.mxu1 %v3170_v1 }
  0x9f   : > { %776 = vmatmul.mubr.f32.vlgmr.msra.gmra.mxu0 %v551_v34  ;;  %3062 = vmatpush2.msra.mxu1 %v695_v33  ;;  %v584_v33 = vld [vmem:[%s3561_s20 + $0x108] sm:$0xff]  ;;  %v673_v34 = vld [vmem:[%s3561_s20 + $0x3d0] sm:$0xff] }
  0xa0   : > { %780 = vmatprep.mubr.f32.mxu0 %v554_v35  ;;  %1005 = vmatprep.mubr.f32.mxu1 %v644_v36  ;;  %v676_v35 = vld [vmem:[%s3561_s20 + $0x3e8] sm:$0xff]  ;;  %v583_v36 = vld [vmem:[%s3561_s20 + $0x100] sm:$0xff] }
  0xa1   : > { %1006 = vmatmul.mubr.f32.vlgmr.msra.gmra.mxu1 %v643_v37  ;;  %2838 = vmatprep.subr.mxu1 %v3170_v1  ;;  %v586_v37 = vld [vmem:[%s3561_s20 + $0x118] sm:$0xff] }
  0xa2   : > { %1010 = vmatprep.mubr.f32.mxu1 %v646_v38  ;;  %v675_v38 = vld [vmem:[%s3561_s20 + $0x3e0] sm:$0xff] }
  0xa3   : > { %781 = vmatmul.mubr.f32.gmra.mxu0 %v553_v39  ;;  %v678_v39 = vld [vmem:[%s3561_s20 + $0x3f8] sm:$0xff] }
  0xa4   : > { %785 = vmatprep.mubr.f32.mxu0 %v556_v40  ;;  %v585_v40 = vld [vmem:[%s3561_s20 + $0x110] sm:$0xff] }
  0xa5   : > { %1011 = vmatmul.mubr.f32.gmra.mxu1 %v645_v41  ;;  %v588_v41 = vld [vmem:[%s3561_s20 + $0x128] sm:$0xff] }
  0xa6   : > { %1015 = vmatprep.mubr.f32.mxu1 %v648_v42  ;;  %v677_v42 = vld [vmem:[%s3561_s20 + $0x3f0] sm:$0xff] }
  0xa7   : > { %786 = vmatmul.mubr.f32.gmra.mxu0 %v555_v43  ;;  %v587_v43 = vld [vmem:[%s3561_s20 + $0x120] sm:$0xff] }
  0xa8   : > { %790 = vmatprep.mubr.f32.mxu0 %v558_v44  ;;  %v590_v44 = vld [vmem:[%s3561_s20 + $0x138] sm:$0xff] }
  0xa9   : > { %1016 = vmatmul.mubr.f32.gmra.mxu1 %v647_v45  ;;  %v589_v45 = vld [vmem:[%s3561_s20 + $0x130] sm:$0xff] }
  0xaa   : > { %1020 = vmatprep.mubr.f32.mxu1 %v650_v46  ;;  %v592_v46 = vld [vmem:[%s3561_s20 + $0x148] sm:$0xff] }
  0xab   : > { %791 = vmatmul.mubr.f32.gmra.mxu0 %v557_v47  ;;  %v591_v47 = vld [vmem:[%s3561_s20 + $0x140] sm:$0xff] }
  0xac   : > { %795 = vmatprep.mubr.f32.mxu0 %v560_v48  ;;  %v594_v48 = vld [vmem:[%s3561_s20 + $0x158] sm:$0xff] }
  0xad   : > { %1021 = vmatmul.mubr.f32.gmra.mxu1 %v649_v49  ;;  %v593_v49 = vld [vmem:[%s3561_s20 + $0x150] sm:$0xff] }
  0xae   : > { %1025 = vmatprep.mubr.f32.mxu1 %v652_v50  ;;  %v596_v50 = vld [vmem:[%s3561_s20 + $0x168] sm:$0xff] }
  0xaf   : > { %796 = vmatmul.mubr.f32.gmra.mxu0 %v559_v51  ;;  %v595_v51 = vld [vmem:[%s3561_s20 + $0x160] sm:$0xff] }
  0xb0   : > { %800 = vmatprep.mubr.f32.mxu0 %v562_v52  ;;  %v598_v52 = vld [vmem:[%s3561_s20 + $0x178] sm:$0xff] }
  0xb1   : > { %1026 = vmatmul.mubr.f32.gmra.mxu1 %v651_v53  ;;  %v597_v53 = vld [vmem:[%s3561_s20 + $0x170] sm:$0xff] }
  0xb2   : > { %1030 = vmatprep.mubr.f32.mxu1 %v654_v54  ;;  %v600_v54 = vld [vmem:[%s3561_s20 + $0x188] sm:$0xff] }
  0xb3   : > { %801 = vmatmul.mubr.f32.gmra.mxu0 %v561_v55  ;;  %v599_v55 = vld [vmem:[%s3561_s20 + $0x180] sm:$0xff] }
  0xb4   : > { %805 = vmatprep.mubr.f32.mxu0 %v564_v56  ;;  %v602_v56 = vld [vmem:[%s3561_s20 + $0x198] sm:$0xff] }
  0xb5   : > { %1031 = vmatmul.mubr.f32.gmra.mxu1 %v653_v57  ;;  %v601_v57 = vld [vmem:[%s3561_s20 + $0x190] sm:$0xff] }
  0xb6   : > { %1035 = vmatprep.mubr.f32.mxu1 %v656_v58  ;;  %v604_v58 = vld [vmem:[%s3561_s20 + $0x1a8] sm:$0xff] }
  0xb7   : > { %806 = vmatmul.mubr.f32.gmra.mxu0 %v563_v59  ;;  %v603_v59 = vld [vmem:[%s3561_s20 + $0x1a0] sm:$0xff] }
  0xb8   : > { %810 = vmatprep.mubr.f32.mxu0 %v566_v60  ;;  %v606_v60 = vld [vmem:[%s3561_s20 + $0x1b8] sm:$0xff] }
  0xb9   : > { %1036 = vmatmul.mubr.f32.gmra.mxu1 %v655_v61  ;;  %v605_v61 = vld [vmem:[%s3561_s20 + $0x1b0] sm:$0xff] }
  0xba   : > { %1040 = vmatprep.mubr.f32.mxu1 %v658_v62  ;;  %v608_v62 = vld [vmem:[%s3561_s20 + $0x1c8] sm:$0xff] }
  0xbb   : > { %811 = vmatmul.mubr.f32.gmra.mxu0 %v565_v63  ;;  %v607_v63 = vld [vmem:[%s3561_s20 + $0x1c0] sm:$0xff] }
  0xbc   : > { %815 = vmatprep.mubr.f32.mxu0 %v568_v0  ;;  %v610_v0 = vld [vmem:[%s3561_s20 + $0x1d8] sm:$0xff] }
  0xbd   : > { %1041 = vmatmul.mubr.f32.gmra.mxu1 %v657_v2  ;;  %v609_v2 = vld [vmem:[%s3561_s20 + $0x1d0] sm:$0xff] }
  0xbe   : > { %1045 = vmatprep.mubr.f32.mxu1 %v660_v3  ;;  %v612_v3 = vld [vmem:[%s3561_s20 + $0x1e8] sm:$0xff] }
  0xbf   : > { %816 = vmatmul.mubr.f32.gmra.mxu0 %v567_v4  ;;  %v611_v4 = vld [vmem:[%s3561_s20 + $0x1e0] sm:$0xff] }
  0xc0   : > { %820 = vmatprep.mubr.f32.mxu0 %v570_v5  ;;  %v614_v5 = vld [vmem:[%s3561_s20 + $0x1f8] sm:$0xff] }
  0xc1   : > { %1046 = vmatmul.mubr.f32.gmra.mxu1 %v659_v6  ;;  %v613_v6 = vld [vmem:[%s3561_s20 + $0x1f0] sm:$0xff] }
  0xc2   : > { %1050 = vmatprep.mubr.f32.mxu1 %v662_v7  ;;  %v616_v7 = vld [vmem:[%s3561_s20 + $0x208] sm:$0xff] }
  0xc3   : > { %821 = vmatmul.mubr.f32.gmra.mxu0 %v569_v8  ;;  %v615_v8 = vld [vmem:[%s3561_s20 + $0x200] sm:$0xff] }
  0xc4   : > { %825 = vmatprep.mubr.f32.mxu0 %v572_v9  ;;  %v618_v9 = vld [vmem:[%s3561_s20 + $0x218] sm:$0xff] }
  0xc5   : > { %1051 = vmatmul.mubr.f32.gmra.mxu1 %v661_v10  ;;  %v617_v10 = vld [vmem:[%s3561_s20 + $0x210] sm:$0xff] }
  0xc6   : > { %1055 = vmatprep.mubr.f32.mxu1 %v664_v11  ;;  %v620_v11 = vld [vmem:[%s3561_s20 + $0x228] sm:$0xff] }
  0xc7   : > { %826 = vmatmul.mubr.f32.gmra.mxu0 %v571_v12  ;;  %v619_v12 = vld [vmem:[%s3561_s20 + $0x220] sm:$0xff] }
  0xc8   : > { %830 = vmatprep.mubr.f32.mxu0 %v574_v13  ;;  %v2682_v13 = vld [vmem:[%s4368_s3 + $0x28] sm:$0xf] }
  0xc9   : > { %1056 = vmatmul.mubr.f32.gmra.mxu1 %v663_v14  ;;  %v622_v14 = vld [vmem:[%s3561_s20 + $0x238] sm:$0xff] }
  0xca   : > { %1060 = vmatprep.mubr.f32.mxu1 %v666_v15  ;;  %2839 = vmatpush3.msk.msra.mxu1 %vm1194_vm0, %v2682_v13  ;;  %v621_v15 = vld [vmem:[%s3561_s20 + $0x230] sm:$0xff] }
  0xcb   : > { %831 = vmatmul.mubr.f32.gmra.mxu0 %v573_v16  ;;  %2840 = vmatprep.subr.mxu1 %v3170_v1  ;;  %v624_v16 = vld [vmem:[%s3561_s20 + $0x248] sm:$0xff] }
  0xcc   : > { %835 = vmatprep.mubr.f32.mxu0 %v576_v17  ;;  %v623_v17 = vld [vmem:[%s3561_s20 + $0x240] sm:$0xff] }
  0xcd   : > { %1061 = vmatmul.mubr.f32.gmra.mxu1 %v665_v18  ;;  %v626_v18 = vld [vmem:[%s3561_s20 + $0x258] sm:$0xff] }
  0xce   : > { %1065 = vmatprep.mubr.f32.mxu1 %v668_v19  ;;  %v625_v19 = vld [vmem:[%s3561_s20 + $0x250] sm:$0xff] }
  0xcf   : > { %836 = vmatmul.mubr.f32.gmra.mxu0 %v575_v20  ;;  %v628_v20 = vld [vmem:[%s3561_s20 + $0x268] sm:$0xff] }
  0xd0   : > { %840 = vmatprep.mubr.f32.mxu0 %v578_v21  ;;  %v627_v21 = vld [vmem:[%s3561_s20 + $0x260] sm:$0xff] }
  0xd1   : > { %1066 = vmatmul.mubr.f32.gmra.mxu1 %v667_v22  ;;  %v630_v22 = vld [vmem:[%s3561_s20 + $0x278] sm:$0xff] }
  0xd2   : > { %1070 = vmatprep.mubr.f32.mxu1 %v670_v23  ;;  %v629_v23 = vld [vmem:[%s3561_s20 + $0x270] sm:$0xff] }
  0xd3   : > { %841 = vmatmul.mubr.f32.gmra.mxu0 %v577_v24  ;;  %v632_v24 = vld [vmem:[%s3561_s20 + $0x288] sm:$0xff] }
  0xd4   : > { %845 = vmatprep.mubr.f32.mxu0 %v580_v25  ;;  %v631_v25 = vld [vmem:[%s3561_s20 + $0x280] sm:$0xff] }
  0xd5   : > { %1071 = vmatmul.mubr.f32.gmra.mxu1 %v669_v26  ;;  %v2681_v26 = vld [vmem:[%s4368_s3 + $0x20] sm:$0xff] }
  0xd6   : > { %1075 = vmatprep.mubr.f32.mxu1 %v672_v27  ;;  %v634_v27 = vld [vmem:[%s3561_s20 + $0x298] sm:$0xff]  ;;  %2841 = vmatpush3.msra.mxu1 %v2681_v26 }
  0xd7   : > { %846 = vmatmul.mubr.f32.gmra.mxu0 %v579_v28  ;;  %2842 = vmatprep.subr.mxu1 %v3170_v1  ;;  %v633_v28 = vld [vmem:[%s3561_s20 + $0x290] sm:$0xff] }
  0xd8   : > { %850 = vmatprep.mubr.f32.mxu0 %v582_v29  ;;  %v636_v29 = vld [vmem:[%s3561_s20 + $0x2a8] sm:$0xff] }
  0xd9   : > { %1076 = vmatmul.mubr.f32.gmra.mxu1 %v671_v30  ;;  %v635_v30 = vld [vmem:[%s3561_s20 + $0x2a0] sm:$0xff] }
  0xda   : > { %1080 = vmatprep.mubr.f32.mxu1 %v674_v31  ;;  %v638_v31 = vld [vmem:[%s3561_s20 + $0x2b8] sm:$0xff] }
  0xdb   : > { %851 = vmatmul.mubr.f32.gmra.mxu0 %v581_v32  ;;  %v637_v32 = vld [vmem:[%s3561_s20 + $0x2b0] sm:$0xff] }
  0xdc   : > { %855 = vmatprep.mubr.f32.mxu0 %v584_v33  ;;  %v640_v33 = vld [vmem:[%s3561_s20 + $0x2c8] sm:$0xff] }
  0xdd   : > { %1081 = vmatmul.mubr.f32.gmra.mxu1 %v673_v34  ;;  %v639_v34 = vld [vmem:[%s3561_s20 + $0x2c0] sm:$0xff] }
  0xde   : > { %1085 = vmatprep.mubr.f32.mxu1 %v676_v35  ;;  %v642_v35 = vld [vmem:[%s3561_s20 + $0x2d8] sm:$0xff] }
  0xdf   : > { %856 = vmatmul.mubr.f32.gmra.mxu0 %v583_v36  ;;  %v641_v36 = vld [vmem:[%s3561_s20 + $0x2d0] sm:$0xff]  ;;  %s2592_s20 = scalar_lea.sflag [#allocation4], %s3538_s29 }
  0xe0   : > { %860 = vmatprep.mubr.f32.mxu0 %v586_v37  ;;  %v2680_v37 = vld [vmem:[%s4368_s3 + $0x18] sm:$0xff] }
  0xe1   : > { %1086 = vmatmul.mubr.f32.gmra.mxu1 %v675_v38 }
  0xe2   : > { %1090 = vmatprep.mubr.f32.mxu1 %v678_v39  ;;  %2843 = vmatpush3.msra.mxu1 %v2680_v37 }
  0xe3   : > { %861 = vmatmul.mubr.f32.gmra.mxu0 %v585_v40  ;;  %2847 = vmatprep.subr.mxu1 %v3170_v1 }
  0xe4   : > { %865 = vmatprep.mubr.f32.mxu0 %v588_v41 }
  0xe5   : > { %1091 = vmatmul.mubr.f32.gmra.mxu1 %v677_v42 }
  0xe6   : > { %2844 = vmatprep.mubr.msk.f32.mxu1 %vm3171_vm1, %v3170_v1 }
  0xe7   : > { %866 = vmatmul.mubr.f32.gmra.mxu0 %v587_v43 }
  0xe8   : > { %870 = vmatprep.mubr.f32.mxu0 %v590_v44 }
  0xeb   : > { %871 = vmatmul.mubr.f32.gmra.mxu0 %v589_v45 }
  0xec   : > { %875 = vmatprep.mubr.f32.mxu0 %v592_v46 }
  0xef   : > { %876 = vmatmul.mubr.f32.gmra.mxu0 %v591_v47 }
  0xf0   : > { %880 = vmatprep.mubr.f32.mxu0 %v594_v48 }
  0xf3   : > { %881 = vmatmul.mubr.f32.gmra.mxu0 %v593_v49 }
  0xf4   : > { %885 = vmatprep.mubr.f32.mxu0 %v596_v50 }
  0xf7   : > { %886 = vmatmul.mubr.f32.gmra.mxu0 %v595_v51 }
  0xf8   : > { %890 = vmatprep.mubr.f32.mxu0 %v598_v52 }
  0xfb   : > { %891 = vmatmul.mubr.f32.gmra.mxu0 %v597_v53 }
  0xfc   : > { %895 = vmatprep.mubr.f32.mxu0 %v600_v54 }
  0xff   : > { %896 = vmatmul.mubr.f32.gmra.mxu0 %v599_v55 }
 0x100   : > { %900 = vmatprep.mubr.f32.mxu0 %v602_v56 }
 0x103   : > { %901 = vmatmul.mubr.f32.gmra.mxu0 %v601_v57 }
 0x104   : > { %905 = vmatprep.mubr.f32.mxu0 %v604_v58 }
 0x107   : > { %906 = vmatmul.mubr.f32.gmra.mxu0 %v603_v59 }
 0x108   : > { %910 = vmatprep.mubr.f32.mxu0 %v606_v60 }
 0x10b   : > { %911 = vmatmul.mubr.f32.gmra.mxu0 %v605_v61 }
 0x10c   : > { %915 = vmatprep.mubr.f32.mxu0 %v608_v62 }
 0x10f   : > { %916 = vmatmul.mubr.f32.gmra.mxu0 %v607_v63 }
 0x110   : > { %920 = vmatprep.mubr.f32.mxu0 %v610_v0 }
 0x113   : > { %921 = vmatmul.mubr.f32.gmra.mxu0 %v609_v2 }
 0x114   : > { %925 = vmatprep.mubr.f32.mxu0 %v612_v3 }
 0x117   : > { %926 = vmatmul.mubr.f32.gmra.mxu0 %v611_v4 }
 0x118   : > { %930 = vmatprep.mubr.f32.mxu0 %v614_v5 }
 0x11b   : > { %931 = vmatmul.mubr.f32.gmra.mxu0 %v613_v6 }
 0x11c   : > { %935 = vmatprep.mubr.f32.mxu0 %v616_v7 }
 0x11f   : > { %936 = vmatmul.mubr.f32.gmra.mxu0 %v615_v8 }
 0x120   : > { %940 = vmatprep.mubr.f32.mxu0 %v618_v9 }
 0x123   : > { %941 = vmatmul.mubr.f32.gmra.mxu0 %v617_v10 }
 0x124   : > { %945 = vmatprep.mubr.f32.mxu0 %v620_v11 }
 0x127   : > { %946 = vmatmul.mubr.f32.gmra.mxu0 %v619_v12 }
 0x128   : > { %950 = vmatprep.mubr.f32.mxu0 %v622_v14 }
 0x12b   : > { %951 = vmatmul.mubr.f32.gmra.mxu0 %v621_v15 }
 0x12c   : > { %955 = vmatprep.mubr.f32.mxu0 %v624_v16 }
 0x12f   : > { %956 = vmatmul.mubr.f32.gmra.mxu0 %v623_v17 }
 0x130   : > { %960 = vmatprep.mubr.f32.mxu0 %v626_v18 }
 0x133   : > { %961 = vmatmul.mubr.f32.gmra.mxu0 %v625_v19 }
 0x134   : > { %965 = vmatprep.mubr.f32.mxu0 %v628_v20 }
 0x137   : > { %966 = vmatmul.mubr.f32.gmra.mxu0 %v627_v21 }
 0x138   : > { %970 = vmatprep.mubr.f32.mxu0 %v630_v22 }
 0x13b   : > { %971 = vmatmul.mubr.f32.gmra.mxu0 %v629_v23 }
 0x13c   : > { %975 = vmatprep.mubr.f32.mxu0 %v632_v24 }
 0x13f   : > { %976 = vmatmul.mubr.f32.gmra.mxu0 %v631_v25 }
 0x140   : > { %980 = vmatprep.mubr.f32.mxu0 %v634_v27 }
 0x143   : > { %981 = vmatmul.mubr.f32.gmra.mxu0 %v633_v28 }
 0x144   : > { %985 = vmatprep.mubr.f32.mxu0 %v636_v29 }
 0x147   : > { %986 = vmatmul.mubr.f32.gmra.mxu0 %v635_v30 }
 0x148   : > { %990 = vmatprep.mubr.f32.mxu0 %v638_v31 }
 0x14b   : > { %991 = vmatmul.mubr.f32.gmra.mxu0 %v637_v32 }
 0x14c   : > { %995 = vmatprep.mubr.f32.mxu0 %v640_v33 }
 0x14f   : > { %996 = vmatmul.mubr.f32.gmra.mxu0 %v639_v34 }
 0x150   : > { %1000 = vmatprep.mubr.f32.mxu0 %v642_v35 }
 0x153   : > { %1001 = vmatmul.mubr.f32.gmra.mxu0 %v641_v36 }
 0x15f   : > { %v3837_v38 = vpop.f32.mrf.mxu0 }
 0x161   : > { %v779_v39 = vpop.f32.mrf.mxu0  ;;  %v3839_v40 = vpop.f32.mrf.mxu1 }
 0x163   : > { %v3841_v41 = vpop.f32.mrf.mxu0  ;;  %v1009_v42 = vpop.f32.mrf.mxu1 }
 0x165   : > { %v784_v43 = vpop.f32.mrf.mxu0  ;;  %v3843_v44 = vpop.f32.mrf.mxu1 }
 0x167   : > { %v3845_v45 = vpop.f32.mrf.mxu0  ;;  %v1014_v46 = vpop.f32.mrf.mxu1 }
 0x169   : > { %v789_v47 = vpop.f32.mrf.mxu0  ;;  %v3847_v48 = vpop.f32.mrf.mxu1 }
 0x16b   : > { %v3849_v49 = vpop.f32.mrf.mxu0  ;;  %v1019_v50 = vpop.f32.mrf.mxu1 }
 0x16d   : > { %v794_v51 = vpop.f32.mrf.mxu0  ;;  %v3853_v52 = vpop.f32.mrf.mxu1 }
 0x16f   : > { %v3855_v53 = vpop.f32.mrf.mxu0  ;;  %v1024_v54 = vpop.f32.mrf.mxu1 }
 0x171   : > { %v799_v55 = vpop.f32.mrf.mxu0  ;;  %v3857_v56 = vpop.f32.mrf.mxu1 }
 0x173   : > { %v3859_v57 = vpop.f32.mrf.mxu0  ;;  %v1029_v58 = vpop.f32.mrf.mxu1 }
 0x175   : > { %v804_v59 = vpop.f32.mrf.mxu0  ;;  %v3861_v60 = vpop.f32.mrf.mxu1 }
 0x177   : > { %v3863_v61 = vpop.f32.mrf.mxu0  ;;  %v1034_v62 = vpop.f32.mrf.mxu1 }
 0x179   : > { %v809_v63 = vpop.f32.mrf.mxu0  ;;  %v3865_v0 = vpop.f32.mrf.mxu1 }
 0x17b   : > { %v3867_v2 = vpop.f32.mrf.mxu0  ;;  %v1039_v3 = vpop.f32.mrf.mxu1 }
 0x17d   : > { %v814_v4 = vpop.f32.mrf.mxu0  ;;  %v3869_v5 = vpop.f32.mrf.mxu1 }
 0x17f   : > { %v3871_v6 = vpop.f32.mrf.mxu0  ;;  %v1044_v7 = vpop.f32.mrf.mxu1 }
 0x181   : > { %v819_v8 = vpop.f32.mrf.mxu0  ;;  %v3873_v9 = vpop.f32.mrf.mxu1 }
 0x183   : > { %v3875_v10 = vpop.f32.mrf.mxu0  ;;  %v1049_v11 = vpop.f32.mrf.mxu1 }
 0x185   : > { %v824_v12 = vpop.f32.mrf.mxu0  ;;  %v3877_v13 = vpop.f32.mrf.mxu1 }
 0x187   : > { %v3879_v14 = vpop.f32.mrf.mxu0  ;;  %v1054_v15 = vpop.f32.mrf.mxu1 }
 0x189   : > { %v829_v16 = vpop.f32.mrf.mxu0  ;;  %v3881_v17 = vpop.f32.mrf.mxu1 }
 0x18b   : > { %v3883_v18 = vpop.f32.mrf.mxu0  ;;  %v1059_v19 = vpop.f32.mrf.mxu1 }
 0x18d   : > { %v834_v20 = vpop.f32.mrf.mxu0  ;;  %v3885_v21 = vpop.f32.mrf.mxu1 }
 0x18f   : > { %v3887_v22 = vpop.f32.mrf.mxu0  ;;  %v1064_v23 = vpop.f32.mrf.mxu1 }
 0x191   : > { %v839_v24 = vpop.f32.mrf.mxu0  ;;  %v3889_v25 = vpop.f32.mrf.mxu1 }
 0x193   : > { %v3891_v26 = vpop.f32.mrf.mxu0  ;;  %v1069_v27 = vpop.f32.mrf.mxu1 }
 0x195   : > { %v844_v28 = vpop.f32.mrf.mxu0  ;;  %v3893_v29 = vpop.f32.mrf.mxu1 }
 0x197   : > { %v847_v30 = vpop.f32.mrf.mxu0  ;;  %v1074_v31 = vpop.f32.mrf.mxu1 }
 0x199   : > { %v849_v32 = vpop.f32.mrf.mxu0  ;;  %v3895_v33 = vpop.f32.mrf.mxu1 }
 0x19b   : > { %v3897_v34 = vpop.f32.mrf.mxu0  ;;  %v1079_v35 = vpop.f32.mrf.mxu1 }
 0x19d   : > { %v854_v36 = vpop.f32.mrf.mxu0  ;;  %v3899_v37 = vpop.f32.mrf.mxu1 }
 0x19f   : > { %v3901_v39 = vpop.f32.mrf.mxu0  ;;  %v1084_v42 = vpop.f32.mrf.mxu1 }
 0x1a0   : > { %v1096_v43 = vmax.f32 %v3837_v38, %v3901_v39  ;;  %v1184_v38 = vld [vmem:[%s4368_s3 + $0x8] sm:$0xff] }
 0x1a1   : > { %v859_v46 = vpop.f32.mrf.mxu0  ;;  %v1087_v47 = vpop.f32.mrf.mxu1 }
 0x1a2   : > { %v1126_v50 = vmax.f32 %v3839_v40, %v1087_v47 }
 0x1a3   : > { %v862_v51 = vpop.f32.mrf.mxu0  ;;  %v1089_v54 = vpop.f32.mrf.mxu1 }
 0x1a4   : > { %v1097_v55 = vmax.f32 %v3841_v41, %v862_v51  ;;  %v3959_v54 = vld [vmem:[%s4367_s2] ss:$0 sm:$0xff] }
 0x1a5   : > { %v864_v58 = vpop.f32.mrf.mxu0  ;;  %v1092_v59 = vpop.f32.mrf.mxu1 }
 0x1a6   : > { %v1127_v62 = vmax.f32 %v3843_v44, %v1092_v59 }
 0x1a7   : > { %v3908_v63 = vpop.f32.mrf.mxu0  ;;  %v1094_v3 = vpop.f32.mrf.mxu1 }
 0x1a8   : > { %v1098_v4 = vmax.f32 %v3845_v45, %v3908_v63 }
 0x1a9   : > { %v869_v7 = vpop.f32.mrf.mxu0 }
 0x1ab   : > { %v3912_v8 = vpop.f32.mrf.mxu0 }
 0x1ac   : > { %v1099_v40 = vmax.f32 %v3849_v49, %v3912_v8 }
 0x1ad   : > { %v874_v11 = vpop.f32.mrf.mxu0 }
 0x1af   : > { %v3916_v12 = vpop.f32.mrf.mxu0 }
 0x1b0   : > { %v1100_v41 = vmax.f32 %v3855_v53, %v3916_v12 }
 0x1b1   : > { %v879_v15 = vpop.f32.mrf.mxu0 }
 0x1b3   : > { %v3920_v44 = vpop.f32.mrf.mxu0 }
 0x1b5   : > { %v884_v19 = vpop.f32.mrf.mxu0 }
 0x1b7   : > { %v3924_v20 = vpop.f32.mrf.mxu0 }
 0x1b9   : > { %v889_v24 = vpop.f32.mrf.mxu0 }
 0x1bb   : > { %v3928_v27 = vpop.f32.mrf.mxu0 }
 0x1bd   : > { %v894_v31 = vpop.f32.mrf.mxu0 }
 0x1bf   : > { %v3932_v32 = vpop.f32.mrf.mxu0 }
 0x1c1   : > { %v899_v36 = vpop.f32.mrf.mxu0 }
 0x1c3   : > { %v3936_v42 = vpop.f32.mrf.mxu0 }
 0x1c5   : > { %v904_v47 = vpop.f32.mrf.mxu0 }
 0x1c7   : > { %v3940_v51 = vpop.f32.mrf.mxu0 }
 0x1c9   : > { %v909_v58 = vpop.f32.mrf.mxu0 }
 0x1cb   : > { %v3944_v59 = vpop.f32.mrf.mxu0 }
 0x1cd   : > { %v914_v7 = vpop.f32.mrf.mxu0 }
 0x1cf   : > { %v3948_v11 = vpop.f32.mrf.mxu0 }
 0x1d1   : > { %v919_v19 = vpop.f32.mrf.mxu0 }
 0x1d3   : > { %v3952_v24 = vpop.f32.mrf.mxu0 }
 0x1d5   : > { %v924_v36 = vpop.f32.mrf.mxu0 }
 0x1d7   : > { %v927_v47 = vpop.f32.mrf.mxu0 }
 0x1d8   : > { %v1110_v58 = vmax.f32 %v847_v30, %v927_v47 }
 0x1d9   : > { %v929_v7 = vpop.f32.mrf.mxu0 }
 0x1da   : > { %v1142_v46 = vmax.f32 %v1110_v58, %v1126_v50 }
 0x1db   : > { %v932_v35 = vpop.f32.mrf.mxu0 }
 0x1dc   : > { %v3962_v3 = vadd.f32 %v3959_v54, %v1142_v46  ;;  %v1111_v19 = vmax.f32 %v3897_v34, %v932_v35 }
 0x1dd   : > { %v934_v15 = vpop.f32.mrf.mxu0 }
 0x1de   : > { %v1143_v28 = vmax.f32 %v1111_v19, %v1127_v62 }
 0x1df   : > { %v937_v23 = vpop.f32.mrf.mxu0 }
 0x1e0   : > { %v3966_v36 = vadd.f32 %v3959_v54, %v1143_v28  ;;  %v1112_v31 = vmax.f32 %v937_v23, %v3847_v48  ;;  %v1185_v48 = vld [vmem:[%s4368_s3 + $0x10] sm:$0xf] }
 0x1e1   : > { %v939_v30 = vpop.f32.mrf.mxu0 }
 0x1e2   : > { %v1128_v46 = vmax.f32 %v1096_v43, %v1112_v31  ;;  %v1183_v43 = vld [vmem:[%s4368_s3] sm:$0xff]  ;;  %v2687_v30 = vld [vmem:[%s4368_s3 + $0x30] sm:$0xff] }
 0x1e3   : > { %v942_v47 = vpop.f32.mrf.mxu0  ;;  %v2689_v31 = vld [vmem:[%s4368_s3 + $0x40] sm:$0xf] }
 0x1e4   : > { %v1113_v16 = vmax.f32 %v942_v47, %v3853_v52  ;;  %v1151_v52 = vadd.f32 %v3959_v54, %v1128_v46 }
 0x1e5   : > { %v944_v7 = vpop.f32.mrf.mxu0 }
 0x1e6   : > { %v1129_v50 = vmax.f32 %v1097_v55, %v1113_v16  ;;  %v1167_v16 = vmax.f32 %v1151_v52, 0.0 }
 0x1e7   : > { %v947_v58 = vpop.f32.mrf.mxu0 }
 0x1e8   : > { %v1152_v34 = vadd.f32 %v3959_v54, %v1129_v50  ;;  %v1114_v28 = vmax.f32 %v947_v58, %v3857_v56  ;;  %v2694_v58 = vld [vmem:[%s4368_s3 + $0x58] sm:$0xf] }
 0x1e9   : > { %v949_v62 = vpop.f32.mrf.mxu0 }
 0x1ea   : > { %v1168_v35 = vmax.f32 %v1152_v34, 0.0  ;;  %v1130_v56 = vmax.f32 %v1098_v4, %v1114_v28  ;;  %v2688_v4 = vld [vmem:[%s4368_s3 + $0x38] sm:$0xff]  ;;  %v2692_v34 = vld [vmem:[%s4368_s3 + $0x48] sm:$0xff] }
 0x1eb   : > { %v952_v23 = vpop.f32.mrf.mxu0 }
 0x1ec   : > { %2845 = vmatmul.mubr.msk.f32.vlgmr.msra.gmra.mxu1 %vm1190_vm2, %v1168_v35  ;;  %v1115_v15 = vmax.f32 %v952_v23, %v3861_v60  ;;  %v1153_v63 = vadd.f32 %v3959_v54, %v1130_v56  ;;  %v4376_v23 = vmax.f32 %v3859_v57, %v3920_v44 }
 0x1ed   : > { %2848 = vmatpush3.msk.msra.mxu1 %vm1194_vm0, %v1185_v48  ;;  %v954_v39 = vpop.f32.mrf.mxu0  ;;  %2853 = vmatprep.mubr.msk.f32.mxu1 %vm3171_vm1, %v3170_v1  ;;  %v2699_v48 = vld [vmem:[%s4368_s3 + $0x70] sm:$0xf] }
 0x1ee   : > { %2849 = vmatprep.subr.mxu1 %v3170_v1  ;;  %v1131_v19 = vmax.f32 %v1099_v40, %v1115_v15  ;;  %v1169_v7 = vmax.f32 %v1153_v63, 0.0  ;;  %v2693_v40 = vld [vmem:[%s4368_s3 + $0x50] sm:$0xff]  ;;  %v4377_v15 = vmax.f32 %v3863_v61, %v3924_v20 }
 0x1ef   : > { %2850 = vmatpush3.msra.mxu1 %v1184_v38  ;;  %v957_v55 = vpop.f32.mrf.mxu0  ;;  %v2697_v38 = vld [vmem:[%s4368_s3 + $0x60] sm:$0xff] }
 0x1f0   : > { %2851 = vmatprep.subr.mxu1 %v3170_v1  ;;  %v1116_v50 = vmax.f32 %v957_v55, %v3865_v0  ;;  %v1154_v8 = vadd.f32 %v3959_v54, %v1131_v19  ;;  %v2704_v55 = vld [vmem:[%s4368_s3 + $0x88] sm:$0xf]  ;;  %v2709_v19 = vld [vmem:[%s4368_s3 + $0xa0] sm:$0xf] }
 0x1f1   : > { %2852 = vmatpush3.msra.mxu1 %v1183_v43  ;;  %v959_v45 = vpop.f32.mrf.mxu0 }
 0x1f2   : > { %2854 = vmatmul.mubr.msk.f32.vlgmr.msra.gmra.mxu1 %vm1190_vm2, %v1167_v16  ;;  %2856 = vmatprep.subr.mxu1 %v3170_v1  ;;  %v1132_v46 = vmax.f32 %v1100_v41, %v1116_v50  ;;  %v1170_v35 = vmax.f32 %v1154_v8, 0.0  ;;  %v2698_v41 = vld [vmem:[%s4368_s3 + $0x68] sm:$0xff]  ;;  %v2703_v16 = vld [vmem:[%s4368_s3 + $0x80] sm:$0xff]  ;;  %v2702_v45 = vld [vmem:[%s4368_s3 + $0x78] sm:$0xff] }
 0x1f3   : > { %2857 = vmatpush3.msk.msra.mxu1 %vm1194_vm0, %v2689_v31  ;;  %v962_v60 = vpop.f32.mrf.mxu0  ;;  %2862 = vmatprep.mubr.msk.f32.mxu1 %vm3171_vm1, %v3170_v1 }
 0x1f4   : > { %2858 = vmatprep.subr.mxu1 %v3170_v1  ;;  %v1117_v28 = vmax.f32 %v962_v60, %v3869_v5  ;;  %v1155_v12 = vadd.f32 %v3959_v54, %v1132_v46 }
 0x1f5   : > { %2859 = vmatpush3.msra.mxu1 %v2688_v4  ;;  %v964_v47 = vpop.f32.mrf.mxu0 }
 0x1f6   : > { %2860 = vmatprep.subr.mxu1 %v3170_v1  ;;  %v1133_v52 = vmax.f32 %v4376_v23, %v1117_v28  ;;  %v1171_v56 = vmax.f32 %v1155_v12, 0.0  ;;  %v4378_v47 = vmax.f32 %v3867_v2, %v3928_v27  ;;  %v2714_v2 = vld [vmem:[%s4368_s3 + $0xb8] sm:$0xf]  ;;  %v4382_v23 = vmax.f32 %v3891_v26, %v3952_v24  ;;  %v2717_v24 = vld [vmem:[%s4368_s3 + $0xc0] sm:$0xff] }
 0x1f7   : > { %2861 = vmatpush3.msra.mxu1 %v2687_v30  ;;  %v967_v49 = vpop.f32.mrf.mxu0  ;;  %v2708_v30 = vld [vmem:[%s4368_s3 + $0x98] sm:$0xff] }
 0x1f8   : > { %2863 = vmatmul.mubr.msk.f32.vlgmr.msra.gmra.mxu1 %vm1190_vm2, %v1169_v7  ;;  %2865 = vmatprep.subr.mxu1 %v3170_v1  ;;  %v1118_v43 = vmax.f32 %v967_v49, %v3873_v9  ;;  %v1156_v44 = vadd.f32 %v3959_v54, %v1133_v52 }
 0x1f9   : > { %2866 = vmatpush3.msk.msra.mxu1 %vm1194_vm0, %v2694_v58  ;;  %v969_v0 = vpop.f32.mrf.mxu0  ;;  %2871 = vmatprep.mubr.msk.f32.mxu1 %vm3171_vm1, %v3170_v1  ;;  %v2707_v58 = vld [vmem:[%s4368_s3 + $0x90] sm:$0xff] }
 0x1fa   : > { %2867 = vmatprep.subr.mxu1 %v3170_v1  ;;  %v1134_v31 = vmax.f32 %v4377_v15, %v1118_v43  ;;  %v1172_v4 = vmax.f32 %v1156_v44, 0.0  ;;  %v4379_v0 = vmax.f32 %v3883_v18, %v3944_v59  ;;  %v4380_v59 = vmax.f32 %v3871_v6, %v3932_v32  ;;  %v2723_v43 = vld [vmem:[%s4368_s3 + $0xe0] sm:$0xff]  ;;  %v2734_v15 = vld [vmem:[%s4368_s3 + $0x118] sm:$0xf] }
 0x1fb   : > { %2868 = vmatpush3.msra.mxu1 %v2693_v40  ;;  %v972_v62 = vpop.f32.mrf.mxu0 }
 0x1fc   : > { %2869 = vmatprep.subr.mxu1 %v3170_v1  ;;  %v1119_v60 = vmax.f32 %v972_v62, %v3877_v13  ;;  %v1157_v20 = vadd.f32 %v3959_v54, %v1134_v31  ;;  %v2733_v31 = vld [vmem:[%s4368_s3 + $0x110] sm:$0xff] }
 0x1fd   : > { %2870 = vmatpush3.msra.mxu1 %v2692_v34  ;;  %v974_v53 = vpop.f32.mrf.mxu0 }
 0x1fe   : > { %2872 = vmatmul.mubr.msk.f32.vlgmr.msra.gmra.mxu1 %vm1190_vm2, %v1170_v35  ;;  %2874 = vmatprep.subr.mxu1 %v3170_v1  ;;  %v1135_v7 = vmax.f32 %v4378_v47, %v1119_v60  ;;  %v1173_v8 = vmax.f32 %v1157_v20, 0.0  ;;  %v2738_v60 = vld [vmem:[%s4368_s3 + $0x128] sm:$0xff] }
 0x1ff   : > { %2875 = vmatpush3.msk.msra.mxu1 %vm1194_vm0, %v2699_v48  ;;  %v977_v5 = vpop.f32.mrf.mxu0  ;;  %2880 = vmatprep.mubr.msk.f32.mxu1 %vm3171_vm1, %v3170_v1  ;;  %v2712_v48 = vld [vmem:[%s4368_s3 + $0xa8] sm:$0xff] }
 0x200   : > { %2876 = vmatprep.subr.mxu1 %v3170_v1  ;;  %v1120_v40 = vmax.f32 %v977_v5, %v3881_v17  ;;  %v1158_v27 = vadd.f32 %v3959_v54, %v1135_v7  ;;  %v2713_v17 = vld [vmem:[%s4368_s3 + $0xb0] sm:$0xff]  ;;  %v2744_v20 = vld [vmem:[%s4368_s3 + $0x148] sm:$0xf]  ;;  %v2749_v7 = vld [vmem:[%s4368_s3 + $0x160] sm:$0xf] }
 0x201   : > { %2877 = vmatpush3.msra.mxu1 %v2698_v41  ;;  %v979_v39 = vpop.f32.mrf.mxu0 }
 0x202   : > { %2878 = vmatprep.subr.mxu1 %v3170_v1  ;;  %v1136_v35 = vmax.f32 %v4380_v59, %v1120_v40  ;;  %v1174_v12 = vmax.f32 %v1158_v27, 0.0  ;;  %v2753_v40 = vld [vmem:[%s4368_s3 + $0x170] sm:$0xff] }
 0x203   : > { %2879 = vmatpush3.msra.mxu1 %v2697_v38  ;;  %v4061_v57 = vpop.f32.mrf.mxu0  ;;  %v2489_v27 = vld [vmem:[%s4370_s5 + $0x10] sm:$0xff] }
 0x204   : > { %2881 = vmatmul.mubr.msk.f32.vlgmr.msra.gmra.mxu1 %vm1190_vm2, %v1171_v56  ;;  %2883 = vmatprep.subr.mxu1 %v3170_v1  ;;  %v1121_v41 = vmax.f32 %v4061_v57, %v3885_v21  ;;  %v2718_v21 = vld [vmem:[%s4368_s3 + $0xc8] sm:$0xff]  ;;  %v2722_v57 = vld [vmem:[%s4368_s3 + $0xd8] sm:$0xff] }
 0x205   : > { %2884 = vmatpush3.msk.msra.mxu1 %vm1194_vm0, %v2704_v55  ;;  %v984_v9 = vpop.f32.mrf.mxu0  ;;  %2889 = vmatprep.mubr.msk.f32.mxu1 %vm3171_vm1, %v3170_v1 }
 0x206   : > { %2885 = vmatprep.subr.mxu1 %v3170_v1 }
 0x207   : > { %2886 = vmatpush3.msra.mxu1 %v2703_v16  ;;  %v4079_v63 = vpop.f32.mrf.mxu0  ;;  %v2729_v16 = vld [vmem:[%s4368_s3 + $0x100] sm:$0xf] }
 0x208   : > { %2887 = vmatprep.subr.mxu1 %v3170_v1  ;;  %v1122_v56 = vmax.f32 %v4079_v63, %v3889_v25  ;;  %v4384_v25 = vmax.f32 %v3879_v14, %v3940_v51  ;;  %v2728_v14 = vld [vmem:[%s4368_s3 + $0xf8] sm:$0xff]  ;;  %v2727_v51 = vld [vmem:[%s4368_s3 + $0xf0] sm:$0xff] }
 0x209   : > { %2888 = vmatpush3.msra.mxu1 %v2702_v45  ;;  %v989_v61 = vpop.f32.mrf.mxu0  ;;  %v2732_v45 = vld [vmem:[%s4368_s3 + $0x108] sm:$0xff] }
 0x20a   : > { %2890 = vmatmul.mubr.msk.f32.vlgmr.msra.gmra.mxu1 %vm1190_vm2, %v1172_v4  ;;  %2892 = vmatprep.subr.mxu1 %v3170_v1  ;;  %v1138_v55 = vmax.f32 %v4384_v25, %v1122_v56  ;;  %v2739_v4 = vld [vmem:[%s4368_s3 + $0x130] sm:$0xf] }
 0x20b   : > { %2893 = vmatpush3.msk.msra.mxu1 %vm1194_vm0, %v2709_v19  ;;  %v992_v13 = vpop.f32.mrf.mxu0  ;;  %2898 = vmatprep.mubr.msk.f32.mxu1 %vm3171_vm1, %v3170_v1  ;;  %v2737_v19 = vld [vmem:[%s4368_s3 + $0x120] sm:$0xff] }
 0x20c   : > { %v1123_v50 = vmax.f32 %v992_v13, %v3893_v29  ;;  %2894 = vmatprep.subr.mxu1 %v3170_v1  ;;  %v1161_v9 = vadd.f32 %v3959_v54, %v1138_v55  ;;  %v2742_v13 = vld [vmem:[%s4368_s3 + $0x138] sm:$0xff] }
 0x20d   : > { %2895 = vmatpush3.msra.mxu1 %v2708_v30  ;;  %v994_v49 = vpop.f32.mrf.mxu0  ;;  %v2743_v30 = vld [vmem:[%s4368_s3 + $0x140] sm:$0xff] }
 0x20e   : > { %v1139_v46 = vmax.f32 %v4379_v0, %v1123_v50  ;;  %2896 = vmatprep.subr.mxu1 %v3170_v1  ;;  %v2748_v50 = vld [vmem:[%s4368_s3 + $0x158] sm:$0xff]  ;;  %v1181_v49 = vmax.f32 %v3962_v3, 0.0  ;;  %v2752_v3 = vld [vmem:[%s4368_s3 + $0x168] sm:$0xff]  ;;  %v1182_v0 = vmax.f32 %v3966_v36, 0.0 }
 0x20f   : > { %2897 = vmatpush3.msra.mxu1 %v2707_v58  ;;  %v997_v29 = vpop.f32.mrf.mxu0  ;;  %v2747_v58 = vld [vmem:[%s4368_s3 + $0x150] sm:$0xff]  ;;  %v2492_v36 = vld [vmem:[%s4370_s5 + $0x28] sm:$0xff] }
 0x210   : > { %v4113_v34 = vadd.f32 %v3959_v54, %v1139_v46  ;;  %v1124_v62 = vmax.f32 %v997_v29, %v3895_v33  ;;  %2899 = vmatmul.mubr.msk.f32.vlgmr.msra.gmra.mxu1 %vm1190_vm2, %v1173_v8  ;;  %2901 = vmatprep.subr.mxu1 %v3170_v1  ;;  %v4381_v33 = vmax.f32 %v3887_v22, %v3948_v11  ;;  %v2719_v22 = vld [vmem:[%s4368_s3 + $0xd0] sm:$0xf]  ;;  %v2754_v8 = vld [vmem:[%s4368_s3 + $0x178] sm:$0xf] }
 0x211   : > { %2902 = vmatpush3.msk.msra.mxu1 %vm1194_vm0, %v2714_v2  ;;  %v999_v18 = vpop.f32.mrf.mxu0  ;;  %2907 = vmatprep.mubr.msk.f32.mxu1 %vm3171_vm1, %v3170_v1  ;;  %v1159_v11 = vadd.f32 %v3959_v54, %v1136_v35  ;;  %v2493_v46 = vld [vmem:[%s4370_s5 + $0x30] sm:$0x3]  ;;  %v2491_v2 = vld [vmem:[%s4370_s5 + $0x20] sm:$0xff]  ;;  %v2490_v29 = vld [vmem:[%s4370_s5 + $0x18] sm:$0xff] }
 0x212   : > { %v1140_v28 = vmax.f32 %v4381_v33, %v1124_v62  ;;  %2903 = vmatprep.subr.mxu1 %v3170_v1  ;;  %v1178_v63 = vmax.f32 %v4113_v34, 0.0  ;;  %v2488_v34 = vld [vmem:[%s4370_s5 + $0x8] sm:$0xff]  ;;  %v2487_v62 = vld [vmem:[%s4370_s5] sm:$0xff] }
 0x213   : > { %2904 = vmatpush3.msra.mxu1 %v2713_v17  ;;  %v1002_v53 = vpop.f32.mrf.mxu0  ;;  %v1175_v39 = vmax.f32 %v1159_v11, 0.0 }
 0x214   : > { %v4137_v5 = vadd.f32 %v3959_v54, %v1140_v28  ;;  %v1125_v6 = vmax.f32 %v1002_v53, %v3899_v37  ;;  %2905 = vmatprep.subr.mxu1 %v3170_v1  ;;  %v4383_v37 = vmax.f32 %v3875_v10, %v3936_v42  ;;  %v2724_v10 = vld [vmem:[%s4368_s3 + $0xe8] sm:$0xf] }
 0x215   : > { %2906 = vmatpush3.msra.mxu1 %v2712_v48  ;;  %v1004_v32 = vpop.f32.mrf.mxu0 }
 0x216   : > { %v1141_v52 = vmax.f32 %v4382_v23, %v1125_v6  ;;  %2908 = vmatmul.mubr.msk.f32.vlgmr.msra.gmra.mxu1 %vm1190_vm2, %v1174_v12  ;;  %2910 = vmatprep.subr.mxu1 %v3170_v1  ;;  %v1137_v38 = vmax.f32 %v4383_v37, %v1121_v41  ;;  %v1179_v61 = vmax.f32 %v4137_v5, 0.0 }
 0x217   : > { %2911 = vmatpush3.msk.msra.mxu1 %vm1194_vm0, %v2719_v22  ;;  %2916 = vmatprep.mubr.msk.f32.mxu1 %vm3171_vm1, %v3170_v1 }
 0x218   : > { %v4160_v26 = vadd.f32 %v3959_v54, %v1141_v52  ;;  %2912 = vmatprep.subr.mxu1 %v3170_v1  ;;  %v1160_v42 = vadd.f32 %v3959_v54, %v1137_v38  ;;  %v1177_v54 = vmax.f32 %v1161_v9, 0.0 }
 0x219   : > { %2913 = vmatpush3.msra.mxu1 %v2718_v21 }
 0x21a   : > { %2914 = vmatprep.subr.mxu1 %v3170_v1  ;;  %v1176_v44 = vmax.f32 %v1160_v42, 0.0  ;;  %v1180_v47 = vmax.f32 %v4160_v26, 0.0 }
 0x21b   : > { %2915 = vmatpush3.msra.mxu1 %v2717_v24 }
 0x21c   : > { %2917 = vmatmul.mubr.msk.f32.vlgmr.msra.gmra.mxu1 %vm1190_vm2, %v1175_v39  ;;  %2919 = vmatprep.subr.mxu1 %v3170_v1 }
 0x21d   : > { %2920 = vmatpush3.msk.msra.mxu1 %vm1194_vm0, %v2724_v10  ;;  %2925 = vmatprep.mubr.msk.f32.mxu1 %vm3171_vm1, %v3170_v1 }
 0x21e   : > { %2921 = vmatprep.subr.mxu1 %v3170_v1 }
 0x21f   : > { %2922 = vmatpush3.msra.mxu1 %v2723_v43 }
 0x220   : > { %2923 = vmatprep.subr.mxu1 %v3170_v1 }
 0x221   : > { %2924 = vmatpush3.msra.mxu1 %v2722_v57 }
 0x222   : > { %2926 = vmatmul.mubr.msk.f32.vlgmr.msra.gmra.mxu1 %vm1190_vm2, %v1176_v44  ;;  %2928 = vmatprep.subr.mxu1 %v3170_v1 }
 0x223   : > { %2929 = vmatpush3.msk.msra.mxu1 %vm1194_vm0, %v2729_v16  ;;  %2934 = vmatprep.mubr.msk.f32.mxu1 %vm3171_vm1, %v3170_v1 }
 0x224   : > { %2930 = vmatprep.subr.mxu1 %v3170_v1 }
 0x225   : > { %2931 = vmatpush3.msra.mxu1 %v2728_v14 }
 0x226   : > { %2932 = vmatprep.subr.mxu1 %v3170_v1 }
 0x227   : > { %2933 = vmatpush3.msra.mxu1 %v2727_v51 }
 0x228   : > { %2935 = vmatmul.mubr.msk.f32.vlgmr.msra.gmra.mxu1 %vm1190_vm2, %v1177_v54  ;;  %2937 = vmatprep.subr.mxu1 %v3170_v1 }
 0x229   : > { %2938 = vmatpush3.msk.msra.mxu1 %vm1194_vm0, %v2734_v15  ;;  %2943 = vmatprep.mubr.msk.f32.mxu1 %vm3171_vm1, %v3170_v1 }
 0x22a   : > { %2939 = vmatprep.subr.mxu1 %v3170_v1 }
 0x22b   : > { %2940 = vmatpush3.msra.mxu1 %v2733_v31 }
 0x22c   : > { %2941 = vmatprep.subr.mxu1 %v3170_v1 }
 0x22d   : > { %2942 = vmatpush3.msra.mxu1 %v2732_v45 }
 0x22e   : > { %2944 = vmatmul.mubr.msk.f32.vlgmr.msra.gmra.mxu1 %vm1190_vm2, %v1178_v63  ;;  %2946 = vmatprep.subr.mxu1 %v3170_v1 }
 0x22f   : > { %2947 = vmatpush3.msk.msra.mxu1 %vm1194_vm0, %v2739_v4  ;;  %2952 = vmatprep.mubr.msk.f32.mxu1 %vm3171_vm1, %v3170_v1 }
 0x230   : > { %2948 = vmatprep.subr.mxu1 %v3170_v1 }
 0x231   : > { %2949 = vmatpush3.msra.mxu1 %v2738_v60 }
 0x232   : > { %2950 = vmatprep.subr.mxu1 %v3170_v1 }
 0x233   : > { %2951 = vmatpush3.msra.mxu1 %v2737_v19 }
 0x234   : > { %2953 = vmatmul.mubr.msk.f32.vlgmr.msra.gmra.mxu1 %vm1190_vm2, %v1179_v61  ;;  %2955 = vmatprep.subr.mxu1 %v3170_v1 }
 0x235   : > { %2956 = vmatpush3.msk.msra.mxu1 %vm1194_vm0, %v2744_v20  ;;  %2961 = vmatprep.mubr.msk.f32.mxu1 %vm3171_vm1, %v3170_v1  ;;  %v2757_v20 = vld [vmem:[%s4369_s4] ss:$0 sm:$0xff] }
 0x236   : > { %2957 = vmatprep.subr.mxu1 %v3170_v1 }
 0x237   : > { %2958 = vmatpush3.msra.mxu1 %v2743_v30 }
 0x238   : > { %2959 = vmatprep.subr.mxu1 %v3170_v1 }
 0x239   : > { %2960 = vmatpush3.msra.mxu1 %v2742_v13 }
 0x23a   : > { %2962 = vmatmul.mubr.msk.f32.vlgmr.msra.gmra.mxu1 %vm1190_vm2, %v1180_v47  ;;  %2964 = vmatprep.subr.mxu1 %v3170_v1 }
 0x23b   : > { %2965 = vmatpush3.msk.msra.mxu1 %vm1194_vm0, %v2749_v7  ;;  %2970 = vmatprep.mubr.msk.f32.mxu1 %vm3171_vm1, %v3170_v1 }
 0x23c   : > { %2966 = vmatprep.subr.mxu1 %v3170_v1 }
 0x23d   : > { %2967 = vmatpush3.msra.mxu1 %v2748_v50  ;;  %v2758_v50 = vld [vmem:[%s4371_s6] ss:$0 sm:$0xff] }
 0x23e   : > { %2968 = vmatprep.subr.mxu1 %v3170_v1 }
 0x23f   : > { %2969 = vmatpush3.msra.mxu1 %v2747_v58 }
 0x240   : > { %2971 = vmatmul.mubr.msk.f32.vlgmr.msra.gmra.mxu1 %vm1190_vm2, %v1181_v49  ;;  %2973 = vmatprep.subr.mxu1 %v3170_v1 }
 0x241   : > { %2974 = vmatpush3.msk.msra.mxu1 %vm1194_vm0, %v2754_v8  ;;  %2979 = vmatprep.mubr.msk.f32.mxu1 %vm3171_vm1, %v3170_v1 }
 0x242   : > { %2975 = vmatprep.subr.mxu1 %v3170_v1 }
 0x243   : > { %2976 = vmatpush3.msra.mxu1 %v2753_v40 }
 0x244   : > { %2977 = vmatprep.subr.mxu1 %v3170_v1 }
 0x245   : > { %2978 = vmatpush3.msra.mxu1 %v2752_v3 }
 0x246   : > { %2980 = vmatmul.mubr.msk.f32.vlgmr.msra.gmra.mxu1 %vm1190_vm2, %v1182_v0  ;;  %2982 = vmatprep.subr.mxu1 %v3170_v1 }
 0x247   : > { %2996 = vmatprep.mubr.msk.f32.mxu1 %vm3171_vm1, %v3170_v1  ;;  %2983 = vmatpush3.msk.msra.mxu1 %vm2505_vm3, %v2493_v46 }
 0x248   : > { %2984 = vmatprep.subr.mxu1 %v3170_v1 }
 0x249   : > { %2985 = vmatpush3.msra.mxu1 %v2492_v36 }
 0x24a   : > { %2986 = vmatprep.subr.mxu1 %v3170_v1 }
 0x24b   : > { %2987 = vmatpush3.msra.mxu1 %v2491_v2 }
 0x24c   : > { %2988 = vmatprep.subr.mxu1 %v3170_v1 }
 0x24d   : > { %2989 = vmatpush3.msra.mxu1 %v2490_v29 }
 0x24e   : > { %2990 = vmatprep.subr.mxu1 %v3170_v1 }
 0x24f   : > { %2991 = vmatpush3.msra.mxu1 %v2489_v27 }
 0x250   : > { %2992 = vmatprep.subr.mxu1 %v3170_v1 }
 0x251   : > { %2993 = vmatpush3.msra.mxu1 %v2488_v34 }
 0x252   : > { %2994 = vmatprep.subr.mxu1 %v3170_v1 }
 0x253   : > { %2995 = vmatpush3.msra.mxu1 %v2487_v62 }
 0x2ac   : > { %v1264_v17 = vpop.f32.mrf.mxu1 }
 0x2ae   : > { %v2846_v18 = vpop.f32.mrf.mxu1 }
 0x2b2   : > { %v1340_v59 = vpop.f32.mrf.mxu1 }
 0x2b3   : > { %v1341_v24 = vadd.f32 %v1340_v59, %v1264_v17 }
 0x2b4   : > { %v2855_v35 = vpop.f32.mrf.mxu1 }
 0x2b8   : > { %v1420_v33 = vpop.f32.mrf.mxu1 }
 0x2b9   : > { %v1424_v39 = vadd.f32 %v1420_v33, %v1341_v24 }
 0x2ba   : > { %v2864_v28 = vpop.f32.mrf.mxu1 }
 0x2be   : > { %v1501_v48 = vpop.f32.mrf.mxu1 }
 0x2bf   : > { %v1505_v10 = vadd.f32 %v1501_v48, %v1424_v39 }
 0x2c0   : > { %v2873_v53 = vpop.f32.mrf.mxu1 }
 0x2c4   : > { %v1582_v12 = vpop.f32.mrf.mxu1 }
 0x2c5   : > { %v1586_v43 = vadd.f32 %v1582_v12, %v1505_v10 }
 0x2c6   : > { %v2882_v41 = vpop.f32.mrf.mxu1 }
 0x2ca   : > { %v1663_v5 = vpop.f32.mrf.mxu1 }
 0x2cb   : > { %v1667_v25 = vadd.f32 %v1663_v5, %v1586_v43 }
 0x2cc   : > { %v2891_v6 = vpop.f32.mrf.mxu1 }
 0x2d0   : > { %v1744_v22 = vpop.f32.mrf.mxu1 }
 0x2d1   : > { %v1748_v57 = vadd.f32 %v1744_v22, %v1667_v25 }
 0x2d2   : > { %v2900_v32 = vpop.f32.mrf.mxu1 }
 0x2d6   : > { %v1825_v1 = vpop.f32.mrf.mxu1 }
 0x2d7   : > { %v1829_v16 = vadd.f32 %v1825_v1, %v1748_v57 }
 0x2d8   : > { %v2909_v11 = vpop.f32.mrf.mxu1 }
 0x2dc   : > { %v1906_v23 = vpop.f32.mrf.mxu1 }
 0x2dd   : > { %v1910_v9 = vadd.f32 %v1906_v23, %v1829_v16 }
 0x2de   : > { %v2918_v52 = vpop.f32.mrf.mxu1 }
 0x2e2   : > { %v1987_v21 = vpop.f32.mrf.mxu1 }
 0x2e3   : > { %v1991_v51 = vadd.f32 %v1987_v21, %v1910_v9 }
 0x2e4   : > { %v2927_v37 = vpop.f32.mrf.mxu1 }
 0x2e8   : > { %v2068_v38 = vpop.f32.mrf.mxu1 }
 0x2e9   : > { %v2072_v15 = vadd.f32 %v2068_v38, %v1991_v51 }
 0x2ea   : > { %v2936_v26 = vpop.f32.mrf.mxu1 }
 0x2ee   : > { %v2149_v56 = vpop.f32.mrf.mxu1 }
 0x2ef   : > { %v2153_v31 = vadd.f32 %v2149_v56, %v2072_v15 }
 0x2f0   : > { %v2945_v42 = vpop.f32.mrf.mxu1 }
 0x2f4   : > { %v2230_v55 = vpop.f32.mrf.mxu1 }
 0x2f5   : > { %v2234_v63 = vadd.f32 %v2230_v55, %v2153_v31 }
 0x2f6   : > { %v2954_v44 = vpop.f32.mrf.mxu1 }
 0x2fa   : > { %v2311_v14 = vpop.f32.mrf.mxu1 }
 0x2fb   : > { %v2315_v60 = vadd.f32 %v2311_v14, %v2234_v63 }
 0x2fc   : > { %v2963_v54 = vpop.f32.mrf.mxu1 }
 0x300   : > { %v2392_v45 = vpop.f32.mrf.mxu1 }
 0x301   : > { %v2396_v19 = vadd.f32 %v2392_v45, %v2315_v60 }
 0x302   : > { %v2972_v4 = vpop.f32.mrf.mxu1 }
 0x306   : > { %v2473_v61 = vpop.f32.mrf.mxu1 }
 0x307   : > { %v2477_v30 = vadd.f32 %v2473_v61, %v2396_v19 }
 0x308   : > { %v2981_v13 = vpop.f32.mrf.mxu1 }
 0x309   : > { %v2485_v47 = vadd.f32 %v2757_v20, %v2477_v30 }
 0x30b   : > { %v2486_v7 = vmax.f32 %v2485_v47, 0.0 }
 0x30d   : > { %2997 = vmatmul.mubr.msk.f32.vlgmr.msra.gmra.mxu1 %vm2501_vm4, %v2486_v7 }
 0x3cd   : > { %v2575_v58 = vpop.f32.mrf.mxu1 }
 0x3ce   : > { %v2576_v49 = vadd.f32 %v2758_v50, %v2575_v58 }
 0x3cf   : > { %v2998_v8 = vpop.f32.mrf.mxu1 }
 0x3d0   : > { %v2580_v40 = vsel %vm2579_vm5, %v2576_v49, -inf }
 0x3d1   : > { %2581 = vmax.xlane.f32.xlu0 %v2580_v40 }
 0x45a   : > { %v2582_v3 = vpop.xlane.xlu0 %2581 }
 0x45b   : > { %v2583_v0 = vsub.f32 %v2576_v49, %v2582_v3 }
 0x45d   : > { %v2584_v46 = vmul.f32 1.442695, %v2583_v0 }
 0x45f   : > { %3104 = vpow2.f32 %v2584_v46 }
 0x46c   : > { %v3105_v36 = vpop.eup %3104 }
 0x46d   : > { %2586 = vadd.xlane.f32.xlu0 %v3105_v36 }
 0x4f6   : > { %v2587_v2 = vpop.xlane.xlu0 %2586 }
 0x4f7   : > { %3106 = vrcp.f32 %v2587_v2 }
 0x504   : > { %v3107_v29 = vpop.eup %3106 }
 0x505   : > { %v2589_v27 = vmul.f32 %v3107_v29, %v3105_v36 }
 0x507   : > { %2590 = vst [vmem:[%s550_s13] sm:$0xff] %v2589_v27 }
 0x508   : > { %3121 = shalt.err (!%p3118_p5)
}
 0x509   : > { %s3122_s22 = scalar_lea.hbm %s2603_s17, 128  ;;  %s3126_s8 = scalar_lea.hbm %s4372_s7, 256 }
 0x50a   : > { %p3123_p7 = scmp.ne.s32.totalorder %s2603_s17, %s3122_s22  ;;  %p3127_p12 = scmp.lt.s32.totalorder %s2603_s17, %s4372_s7 }
 0x50b   : > { %p3128_p13 = scmp.lt.s32.totalorder %s3126_s8, %s3122_s22 }
 0x50c   : > { %p3124_p10 = pnand %p3123_p7, %p3251_p6 }
 0x50d   : > { %p3129_p0 = por %p3128_p13, %p3127_p12 }
 0x50e   : > { %p3125_p11 = pneg %p3124_p10 }
 0x510   : > { %p3130_p9 = pnand %p3129_p0, %p3125_p11 }
 0x512   : > { %3133 = shalt.err (!%p3130_p9)
}
 0x513   : > { %3063 = dma.vmem_to_hbm [thread:$0]  (%p3251_p6), %s2606_s14, 128, %s2603_s17, %s2592_s20  }
 0x514 PF: > { %s2617_s15 = sand.u32 1, %s3156_s24   ;;  %p4385_p1 = scmp.ge.s32.totalorder %s3168_s27, 2 }
 0x515   : > { %s2618_s16 = scalar_lea.sflag [#allocation4], %s2617_s15 }
 0x516   : > { %p3066_p2 = pnand %p4385_p1, %p3255_p8 }
 0x518   : > { %p3067_p3 = pneg %p3066_p2 }
 0x51a   : > { %3151 = dma.done.wait (%p3067_p3), %s2618_s16, 128  }
 0x51b   : > { %3153 = vsyncadd (%p3067_p3), %s2618_s16, 4294967168  ;;  %p17_p9 = scmp.ge.s32.totalorder %s3236_s30, 4   ;;  %s4386_s24 = smov %s3160_s25 }
 0x51c   : > { %s4387_s25 = smov %s3164_s26  ;;  %s4388_s26 = smov %s3249_s10 }
 0x51d   : > { %s4389_s27 = smov %s3236_s30  ;;  %19 = sbr.rel (!%p17_p9) target bundleno = 3 (0x3), region = 126 }
 0x522   :  { %2623 = vsyncpa [#allocation4], 1 }
 0x523   :  { %2625 = vsyncpa [#allocation4 + $0x1], 1 }

</bundles_post_ra>
